<compile_context>
chip_gen: v7x
topology: tpu7x:2x2x1
jax: 0.10.0
libtpu: 0.0.40
codegen_flags: <defaults>
</compile_context>

<pallas_src>
import math

import jax
import jax.numpy as jnp
from jax.experimental import pallas as pl
from jax.experimental.pallas import tpu as pltpu

LRELU_SLOPE = 0.2


def _lrelu(v):
    return jnp.where(v >= 0.0, v, LRELU_SLOPE * v)


# ----------------------------------------------------------------------------
# Fused forward kernel
# ----------------------------------------------------------------------------
def _fused_kernel_factory(spatial):
    """spatial: per-block input plane size (square), e.g. [16, 8, 4].

    Kernel ref order:
      inputs : x(1, H*H, Cm), wm(Cm, C0), bm(1, C0),
               [w1, b1, w2, b2] per block,
               wfc(C, 1), bfc(1, 1),
               pool_i((s/2)^2, s^2) per non-final block
      outputs: out(1, 1, 1)
      scratch: [pad_a, pad_b] per non-final block, pad_a for the final block
               (each (s+2, s+2, C) zero-padded activation buffer in VMEM)
    """
    n = len(spatial)

    def store_interior(pad_ref, y2d, hw, c):
        # Write an (hw*hw, c) plane (row-major over (h, w)) into the interior
        # of an (hw+2, hw+2, c) zero-padded VMEM scratch buffer.
        if hw % 8 == 0:
            pad_ref[1:hw + 1, 1:hw + 1, :] = y2d.reshape(hw, hw, c)
        else:
            for h in range(hw):                              # tiny planes only
                pad_ref[1 + h, 1:hw + 1, :] = y2d[h * hw:(h + 1) * hw, :]

    def conv3x3_plane(pad_ref, w_ref, b_ref, hw):
        # Per-tap whole-plane matmuls; hw is a multiple of 8 so the
        # (hw, hw, Cin) -> (hw*hw, Cin) collapse stays sublane-tile aligned.
        cin = pad_ref.shape[-1]
        cout = w_ref.shape[-1]
        acc = jnp.zeros((hw * hw, cout), jnp.float32)
        for kh in range(3):
            for kw in range(3):
                patch = pad_ref[kh:kh + hw, kw:kw + hw, :].reshape(hw * hw, cin)
                acc = acc + jnp.dot(patch, w_ref[kh, kw],
                                    preferred_element_type=jnp.float32)
        return _lrelu(acc + b_ref[...])                       # bias+lrelu hoisted

    def kernel(*refs):
        it = iter(refs)
        x_ref = next(it)
        wm_ref, bm_ref = next(it), next(it)
        blk = [tuple(next(it) for _ in range(4)) for _ in range(n)]
        wfc_ref, bfc_ref = next(it), next(it)
        pool = [next(it) for _ in range(n - 1)]
        out_ref = next(it)
        scratch = list(it)

        # Scratch is uninitialised; zero it so conv halos read as zero padding.
        for s in scratch:
            s[...] = jnp.zeros(s.shape, s.dtype)

        # from_mask: 1x1 conv + lrelu over the whole flattened plane (one matmul).
        h0 = spatial[0]
        y = _lrelu(jnp.dot(x_ref[0], wm_ref[...],
                           preferred_element_type=jnp.float32) + bm_ref[...])
        store_interior(scratch[0], y, h0, wm_ref.shape[-1])

        # Non-final blocks: conv3x3+lrelu, conv3x3+lrelu, 2x2 avg-pool (matmul).
        for i in range(n - 1):
            hw = spatial[i]
            w1, b1, w2, b2 = blk[i]
            pad_a, pad_b, pad_next = scratch[2 * i], scratch[2 * i + 1], scratch[2 * i + 2]
            y = conv3x3_plane(pad_a, w1, b1, hw)
            store_interior(pad_b, y, hw, w1.shape[-1])
            y = conv3x3_plane(pad_b, w2, b2, hw)              # (hw*hw, Cout)
            y = jnp.dot(pool[i][...], y,                      # 2x2 avg-pool
                        preferred_element_type=jnp.float32)   # ((hw/2)^2, Cout)
            store_interior(pad_next, y, hw // 2, w2.shape[-1])

        # Final block: conv3x3(pad 1)+lrelu, conv4x4(valid)+lrelu, flatten, fc3.
        hw = spatial[-1]                                      # == 4
        w1, b1, w2, b2 = blk[-1]
        pad_a = scratch[2 * (n - 1)]
        acc2 = jnp.zeros((1, w2.shape[-1]), jnp.float32)
        for oh in range(hw):                  # conv1 output row == conv2 tap row
            racc = jnp.zeros((hw, w1.shape[-1]), jnp.float32)
            for kh in range(3):
                for kw in range(3):
                    patch = pad_a[oh + kh, kw:kw + hw, :]     # (hw, Cin)
                    racc = racc + jnp.dot(patch, w1[kh, kw],
                                          preferred_element_type=jnp.float32)
            racc = _lrelu(racc + b1[...])                     # (hw, Cmid)
            for ow in range(hw):                              # conv2 (4x4 valid) taps
                acc2 = acc2 + jnp.dot(racc[ow:ow + 1, :], w2[oh, ow],
                                      preferred_element_type=jnp.float32)
        y = _lrelu(acc2 + b2[...])                            # (1, Cout) == flatten
        out = jnp.dot(y, wfc_ref[...],
                      preferred_element_type=jnp.float32) + bfc_ref[...]
        out_ref[...] = out.reshape(1, 1, 1)

    return kernel


# ----------------------------------------------------------------------------
# Wrapper (BlockSpecs, grid, scratch allocation)
# ----------------------------------------------------------------------------
def _const_spec(a):
    zeros = (0,) * a.ndim
    return pl.BlockSpec(a.shape, lambda b, z=zeros: z)


def _pool_matrix(hw):
    """((hw/2)^2, hw^2) matrix with 0.25 where the output pixel pools the input
    pixel (row-major flattened planes): 2x2 average pooling as one matmul."""
    ho = hw // 2
    p = jnp.arange(ho * ho, dtype=jnp.int32)[:, None]
    q = jnp.arange(hw * hw, dtype=jnp.int32)[None, :]
    hit = ((q // hw) // 2 == p // ho) & ((q % hw) // 2 == p % ho)
    return jnp.where(hit, 0.25, 0.0).astype(jnp.float32)


def progan_discriminator_forward(params, x_nchw):
    """NCHW input (PyTorch convention); runs at full resolution (scale == max_scale)."""
    # TODO(synk): the stride-(1, aspect_ratio) conv1 of the final block and the
    #             'original_cgan' fc0/concat branch are not implemented (this
    #             config uses aspect_ratio=1 and cond_mode='none').
    B, Cm, H, W = x_nchw.shape
    n = params["max_scale"]
    spatial = [H // (2 ** i) for i in range(n)]
    assert H == W and spatial[-1] == 4, "final block expects a 4x4 plane"
    assert all(s % 8 == 0 for s in spatial[:-1]), "non-final planes must be multiples of 8"

    # NCHW -> NHWC -> (B, H*W, C): lane-dense channels-last planes.
    x = jnp.transpose(x_nchw, (0, 2, 3, 1)).astype(jnp.float32).reshape(B, H * W, Cm)

    blocks = params["blocks"]
    wm, bm = blocks[0]["from_mask"]
    wm2d = wm.reshape(wm.shape[2], wm.shape[3])       # 1x1 conv -> plain matmul weight

    operands = [x, wm2d, bm]
    in_specs = [pl.BlockSpec((1, H * W, Cm), lambda b: (b, 0, 0)),
                _const_spec(wm2d), _const_spec(bm)]
    for blk in blocks:
        for arr in (*blk["conv1"], *blk["conv2"]):
            operands.append(arr)
            in_specs.append(_const_spec(arr))
    wfc, bfc = blocks[-1]["fc3"]
    operands += [wfc, bfc]
    in_specs += [_const_spec(wfc), _const_spec(bfc)]
    for s in spatial[:-1]:
        pm = _pool_matrix(s)
        operands.append(pm)
        in_specs.append(_const_spec(pm))

    scratch_shapes = []
    for i in range(n - 1):
        s = spatial[i]
        cin = blocks[i]["conv1"][0].shape[2]
        cmid = blocks[i]["conv1"][0].shape[3]
        scratch_shapes.append(pltpu.VMEM((s + 2, s + 2, cin), jnp.float32))
        scratch_shapes.append(pltpu.VMEM((s + 2, s + 2, cmid), jnp.float32))
    scratch_shapes.append(
        pltpu.VMEM((spatial[-1] + 2, spatial[-1] + 2,
                    blocks[-1]["conv1"][0].shape[2]), jnp.float32))

    out = pl.pallas_call(
        _fused_kernel_factory(spatial),
        out_shape=jax.ShapeDtypeStruct((B, 1, 1), jnp.float32),
        grid=(B,),
        in_specs=in_specs,
        out_specs=pl.BlockSpec((1, 1, 1), lambda b: (b, 0, 0)),
        scratch_shapes=scratch_shapes,
        compiler_params=pltpu.CompilerParams(dimension_semantics=("parallel",)),
    )(*operands)
    return out.reshape(B, 1)


# ----------------------------------------------------------------------------
# Deterministic synthetic parameters (equalized-lr scaling baked into weights:
# w_eff = N(0,1) * gain * sqrt(2 / fan_in), bias = 0).
# ----------------------------------------------------------------------------
def _he_scale(fan_in, gain):
    return gain * math.sqrt(2.0 / fan_in)


def _conv_params(key, kh, kw, cin, cout, gain=math.sqrt(2.0)):
    w = jax.random.normal(key, (kh, kw, cin, cout), jnp.float32)
    w = w * _he_scale(cin * kh * kw, gain)
    b = jnp.zeros((1, cout), jnp.float32)
    return w, b


def _linear_params(key, fin, fout, gain=math.sqrt(2.0)):
    w = jax.random.normal(key, (fin, fout), jnp.float32) * _he_scale(fin, gain)
    b = jnp.zeros((1, fout), jnp.float32)
    return w, b


def build_progan_discriminator(key, *, max_dim=16, max_hidden_dim=32,
                               num_semantics=8):
    max_scale = int(math.log2(max_dim)) - 1
    mask_channels = num_semantics      # get_seg_size(...) with panoptic=False
    params = {"max_scale": max_scale, "blocks": []}
    keys = jax.random.split(key, max_scale * 4)
    for i in range(max_scale):
        block_i = max_scale - 1 - i
        in_dim = min(max_hidden_dim, 2 ** (13 - block_i - 1))
        out_dim = min(max_hidden_dim, 2 ** (13 - block_i))
        final = i == max_scale - 1
        k = keys[4 * i: 4 * i + 4]
        blk = {
            "final": final,
            "from_mask": _conv_params(k[0], 1, 1, mask_channels, in_dim, gain=1.0),
            "conv1": _conv_params(k[1], 3, 3, in_dim, in_dim),
        }
        if final:
            blk["conv2"] = _conv_params(k[2], 4, 4, in_dim, out_dim)
            blk["fc3"] = _linear_params(k[3], out_dim, 1)
        else:
            blk["conv2"] = _conv_params(k[2], 3, 3, in_dim, out_dim)
        params["blocks"].append(blk)
    return params


# ----------------------------------------------------------------------------
# Pure-JAX (XLA) reference of the same forward pass, for validation.
# ----------------------------------------------------------------------------
def reference_forward(params, x_nchw):
    hi = jax.lax.Precision.HIGHEST
    dn = ("NHWC", "HWIO", "NHWC")

    def conv_lrelu(x, wb, pad):
        w, b = wb
        y = jax.lax.conv_general_dilated(x, w, (1, 1), [(pad, pad), (pad, pad)],
                                         dimension_numbers=dn, precision=hi)
        y = y + b.reshape(1, 1, 1, -1)
        return jnp.where(y >= 0.0, y, LRELU_SLOPE * y)

    x = jnp.transpose(x_nchw, (0, 2, 3, 1)).astype(jnp.float32)
    blocks = params["blocks"]
    x = conv_lrelu(x, blocks[0]["from_mask"], 0)
    for blk in blocks:
        x = conv_lrelu(x, blk["conv1"], 1)
        if blk["final"]:
            x = conv_lrelu(x, blk["conv2"], 0)           # (B, 1, 1, C)
            x = x.reshape(x.shape[0], -1)
            w3, b3 = blk["fc3"]
            x = jnp.dot(x, w3, precision=hi) + b3
        else:
            x = conv_lrelu(x, blk["conv2"], 1)
            B, H, W, C = x.shape
            x = x.reshape(B, H // 2, 2, W // 2, 2, C).mean(axis=(2, 4))
    return x


if __name__ == "__main__":
    key = jax.random.PRNGKey(0)
    pkey, xkey = jax.random.split(key)
    params = build_progan_discriminator(pkey, max_dim=16, max_hidden_dim=32,
                                        num_semantics=8)
    # NCHW semantic-segmentation-style input: batch=2, mask_channels=8, 16x16.
    x = jax.random.normal(xkey, (2, 8, 16, 16), jnp.float32)

    fwd = jax.jit(lambda xx: progan_discriminator_forward(params, xx))
    out = jax.block_until_ready(fwd(x))
    assert out.shape == (2, 1), out.shape

    ref = jax.block_until_ready(reference_forward(params, x))
    assert bool(jnp.all(jnp.isfinite(out))), out
    assert bool(jnp.allclose(out, ref, rtol=1e-3, atol=1e-3)), (out, ref)
    print("KERNEL_OK")
</pallas_src>

<mosaic_0001>
module attributes {stable_mosaic.version = 11 : i64} {
  func.func @kernel(%arg0: i32, %arg1: memref<1x256x8xf32, #tpu.memory_space<vmem>>, %arg2: memref<8x32xf32, #tpu.memory_space<vmem>>, %arg3: memref<1x32xf32, #tpu.memory_space<vmem>>, %arg4: memref<3x3x32x32xf32, #tpu.memory_space<vmem>>, %arg5: memref<1x32xf32, #tpu.memory_space<vmem>>, %arg6: memref<3x3x32x32xf32, #tpu.memory_space<vmem>>, %arg7: memref<1x32xf32, #tpu.memory_space<vmem>>, %arg8: memref<3x3x32x32xf32, #tpu.memory_space<vmem>>, %arg9: memref<1x32xf32, #tpu.memory_space<vmem>>, %arg10: memref<3x3x32x32xf32, #tpu.memory_space<vmem>>, %arg11: memref<1x32xf32, #tpu.memory_space<vmem>>, %arg12: memref<3x3x32x32xf32, #tpu.memory_space<vmem>>, %arg13: memref<1x32xf32, #tpu.memory_space<vmem>>, %arg14: memref<4x4x32x32xf32, #tpu.memory_space<vmem>>, %arg15: memref<1x32xf32, #tpu.memory_space<vmem>>, %arg16: memref<32x1xf32, #tpu.memory_space<vmem>>, %arg17: memref<1x1xf32, #tpu.memory_space<vmem>>, %arg18: memref<64x256xf32, #tpu.memory_space<vmem>>, %arg19: memref<16x64xf32, #tpu.memory_space<vmem>>, %arg20: memref<1x1x1xf32, #tpu.memory_space<vmem>>, %arg21: memref<18x18x32xf32, #tpu.memory_space<vmem>>, %arg22: memref<18x18x32xf32, #tpu.memory_space<vmem>>, %arg23: memref<10x10x32xf32, #tpu.memory_space<vmem>>, %arg24: memref<10x10x32xf32, #tpu.memory_space<vmem>>, %arg25: memref<6x6x32xf32, #tpu.memory_space<vmem>>) attributes {dimension_semantics = [#tpu.dimension_semantics<parallel>], iteration_bounds = array<i64: 2>, scalar_prefetch = 0 : i64, scratch_operands = 5 : i64, tpu.core_type = #tpu.core_type<tc>, window_params = [{transform_indices = @transform_0, window_bounds = array<i64: 1, 256, 8>}, {pipeline_mode = #tpu.pipeline_mode<synchronous>, transform_indices = @transform_1, window_bounds = array<i64: 8, 32>}, {pipeline_mode = #tpu.pipeline_mode<synchronous>, transform_indices = @transform_2, window_bounds = array<i64: 1, 32>}, {pipeline_mode = #tpu.pipeline_mode<synchronous>, transform_indices = @transform_3, window_bounds = array<i64: 3, 3, 32, 32>}, {pipeline_mode = #tpu.pipeline_mode<synchronous>, transform_indices = @transform_4, window_bounds = array<i64: 1, 32>}, {pipeline_mode = #tpu.pipeline_mode<synchronous>, transform_indices = @transform_5, window_bounds = array<i64: 3, 3, 32, 32>}, {pipeline_mode = #tpu.pipeline_mode<synchronous>, transform_indices = @transform_6, window_bounds = array<i64: 1, 32>}, {pipeline_mode = #tpu.pipeline_mode<synchronous>, transform_indices = @transform_7, window_bounds = array<i64: 3, 3, 32, 32>}, {pipeline_mode = #tpu.pipeline_mode<synchronous>, transform_indices = @transform_8, window_bounds = array<i64: 1, 32>}, {pipeline_mode = #tpu.pipeline_mode<synchronous>, transform_indices = @transform_9, window_bounds = array<i64: 3, 3, 32, 32>}, {pipeline_mode = #tpu.pipeline_mode<synchronous>, transform_indices = @transform_10, window_bounds = array<i64: 1, 32>}, {pipeline_mode = #tpu.pipeline_mode<synchronous>, transform_indices = @transform_11, window_bounds = array<i64: 3, 3, 32, 32>}, {pipeline_mode = #tpu.pipeline_mode<synchronous>, transform_indices = @transform_12, window_bounds = array<i64: 1, 32>}, {pipeline_mode = #tpu.pipeline_mode<synchronous>, transform_indices = @transform_13, window_bounds = array<i64: 4, 4, 32, 32>}, {pipeline_mode = #tpu.pipeline_mode<synchronous>, transform_indices = @transform_14, window_bounds = array<i64: 1, 32>}, {pipeline_mode = #tpu.pipeline_mode<synchronous>, transform_indices = @transform_15, window_bounds = array<i64: 32, 1>}, {pipeline_mode = #tpu.pipeline_mode<synchronous>, transform_indices = @transform_16, window_bounds = array<i64: 1, 1>}, {pipeline_mode = #tpu.pipeline_mode<synchronous>, transform_indices = @transform_17, window_bounds = array<i64: 64, 256>}, {pipeline_mode = #tpu.pipeline_mode<synchronous>, transform_indices = @transform_18, window_bounds = array<i64: 16, 64>}, {transform_indices = @transform_19, window_bounds = array<i64: 1, 1, 1>}]} {
    %cst = arith.constant 0.000000e+00 : f32
    %0 = vector.broadcast %cst : f32 to vector<18x18x32xf32>
    %c0 = arith.constant 0 : index
    %c0_0 = arith.constant 0 : index
    %c0_1 = arith.constant 0 : index
    %1 = vector.load %arg21[%c0, %c0_0, %c0_1] : memref<18x18x32xf32, #tpu.memory_space<vmem>>, vector<18x18x32xf32>
    tpu.vector_store %arg21[%c0, %c0_0, %c0_1], %0 {strides = array<i32>} : memref<18x18x32xf32, #tpu.memory_space<vmem>>, vector<18x18x32xf32>,
    %cst_2 = arith.constant 0.000000e+00 : f32
    %2 = vector.broadcast %cst_2 : f32 to vector<18x18x32xf32>
    %c0_3 = arith.constant 0 : index
    %c0_4 = arith.constant 0 : index
    %c0_5 = arith.constant 0 : index
    %3 = vector.load %arg22[%c0_3, %c0_4, %c0_5] : memref<18x18x32xf32, #tpu.memory_space<vmem>>, vector<18x18x32xf32>
    tpu.vector_store %arg22[%c0_3, %c0_4, %c0_5], %2 {strides = array<i32>} : memref<18x18x32xf32, #tpu.memory_space<vmem>>, vector<18x18x32xf32>,
    %cst_6 = arith.constant 0.000000e+00 : f32
    %4 = vector.broadcast %cst_6 : f32 to vector<10x10x32xf32>
    %c0_7 = arith.constant 0 : index
    %c0_8 = arith.constant 0 : index
    %c0_9 = arith.constant 0 : index
    %5 = vector.load %arg23[%c0_7, %c0_8, %c0_9] : memref<10x10x32xf32, #tpu.memory_space<vmem>>, vector<10x10x32xf32>
    tpu.vector_store %arg23[%c0_7, %c0_8, %c0_9], %4 {strides = array<i32>} : memref<10x10x32xf32, #tpu.memory_space<vmem>>, vector<10x10x32xf32>,
    %cst_10 = arith.constant 0.000000e+00 : f32
    %6 = vector.broadcast %cst_10 : f32 to vector<10x10x32xf32>
    %c0_11 = arith.constant 0 : index
    %c0_12 = arith.constant 0 : index
    %c0_13 = arith.constant 0 : index
    %7 = vector.load %arg24[%c0_11, %c0_12, %c0_13] : memref<10x10x32xf32, #tpu.memory_space<vmem>>, vector<10x10x32xf32>
    tpu.vector_store %arg24[%c0_11, %c0_12, %c0_13], %6 {strides = array<i32>} : memref<10x10x32xf32, #tpu.memory_space<vmem>>, vector<10x10x32xf32>,
    %cst_14 = arith.constant 0.000000e+00 : f32
    %8 = vector.broadcast %cst_14 : f32 to vector<6x6x32xf32>
    %c0_15 = arith.constant 0 : index
    %c0_16 = arith.constant 0 : index
    %c0_17 = arith.constant 0 : index
    %9 = vector.load %arg25[%c0_15, %c0_16, %c0_17] : memref<6x6x32xf32, #tpu.memory_space<vmem>>, vector<6x6x32xf32>
    tpu.vector_store %arg25[%c0_15, %c0_16, %c0_17], %8 {strides = array<i32>} : memref<6x6x32xf32, #tpu.memory_space<vmem>>, vector<6x6x32xf32>,
    %c0_18 = arith.constant 0 : index
    %c0_19 = arith.constant 0 : index
    %c0_20 = arith.constant 0 : index
    %10 = vector.load %arg1[%c0_18, %c0_19, %c0_20] : memref<1x256x8xf32, #tpu.memory_space<vmem>>, vector<1x256x8xf32>
    %11 = vector.shape_cast %10 : vector<1x256x8xf32> to vector<256x8xf32>
    %c0_21 = arith.constant 0 : index
    %c0_22 = arith.constant 0 : index
    %12 = vector.load %arg2[%c0_21, %c0_22] : memref<8x32xf32, #tpu.memory_space<vmem>>, vector<8x32xf32>
    %cst_23 = arith.constant dense<0.000000e+00> : vector<256x32xf32>
    %13 = tpu.matmul %11, %12, %cst_23 {dimension_numbers = #tpu.dot_dimension_numbers<[1], [0], [0], [1], [0, 0, 1, 1], [], []>} : vector<256x8xf32>, vector<8x32xf32>, vector<256x32xf32> -> vector<256x32xf32>
    %c0_24 = arith.constant 0 : index
    %c0_25 = arith.constant 0 : index
    %14 = vector.load %arg3[%c0_24, %c0_25] : memref<1x32xf32, #tpu.memory_space<vmem>>, vector<1x32xf32>
    %15 = vector.broadcast %14 : vector<1x32xf32> to vector<256x32xf32>
    %16 = arith.addf %13, %15 : vector<256x32xf32>
    %cst_26 = arith.constant 0.000000e+00 : f32
    %17 = vector.broadcast %cst_26 : f32 to vector<256x32xf32>
    %18 = arith.cmpf oge, %16, %17 : vector<256x32xf32>
    %cst_27 = arith.constant 2.000000e-01 : f32
    %19 = vector.broadcast %cst_27 : f32 to vector<256x32xf32>
    %20 = arith.mulf %19, %16 : vector<256x32xf32>
    %21 = arith.select %18, %16, %20 : vector<256x32xi1>, vector<256x32xf32>
    %22 = vector.shape_cast %21 : vector<256x32xf32> to vector<16x16x32xf32>
    %c1 = arith.constant 1 : index
    %c1_28 = arith.constant 1 : index
    %c0_29 = arith.constant 0 : index
    %23 = vector.load %arg21[%c1, %c1_28, %c0_29] : memref<18x18x32xf32, #tpu.memory_space<vmem>>, vector<16x16x32xf32>
    tpu.vector_store %arg21[%c1, %c1_28, %c0_29], %22 {strides = array<i32>} : memref<18x18x32xf32, #tpu.memory_space<vmem>>, vector<16x16x32xf32>,
    %cst_30 = arith.constant 0.000000e+00 : f32
    %24 = vector.broadcast %cst_30 : f32 to vector<256x32xf32>
    %c0_31 = arith.constant 0 : index
    %c0_32 = arith.constant 0 : index
    %c0_33 = arith.constant 0 : index
    %25 = vector.load %arg21[%c0_31, %c0_32, %c0_33] : memref<18x18x32xf32, #tpu.memory_space<vmem>>, vector<16x16x32xf32>
    %26 = vector.shape_cast %25 : vector<16x16x32xf32> to vector<256x32xf32>
    %c0_34 = arith.constant 0 : index
    %c0_35 = arith.constant 0 : index
    %c0_36 = arith.constant 0 : index
    %c0_37 = arith.constant 0 : index
    %27 = vector.load %arg4[%c0_34, %c0_35, %c0_36, %c0_37] : memref<3x3x32x32xf32, #tpu.memory_space<vmem>>, vector<1x1x32x32xf32>
    %28 = vector.shape_cast %27 : vector<1x1x32x32xf32> to vector<32x32xf32>
    %cst_38 = arith.constant dense<0.000000e+00> : vector<256x32xf32>
    %29 = tpu.matmul %26, %28, %cst_38 {dimension_numbers = #tpu.dot_dimension_numbers<[1], [0], [0], [1], [0, 0, 1, 1], [], []>} : vector<256x32xf32>, vector<32x32xf32>, vector<256x32xf32> -> vector<256x32xf32>
    %30 = arith.addf %24, %29 : vector<256x32xf32>
    %c0_39 = arith.constant 0 : index
    %c1_40 = arith.constant 1 : index
    %c0_41 = arith.constant 0 : index
    %31 = vector.load %arg21[%c0_39, %c1_40, %c0_41] : memref<18x18x32xf32, #tpu.memory_space<vmem>>, vector<16x16x32xf32>
    %32 = vector.shape_cast %31 : vector<16x16x32xf32> to vector<256x32xf32>
    %c0_42 = arith.constant 0 : index
    %c1_43 = arith.constant 1 : index
    %c0_44 = arith.constant 0 : index
    %c0_45 = arith.constant 0 : index
    %33 = vector.load %arg4[%c0_42, %c1_43, %c0_44, %c0_45] : memref<3x3x32x32xf32, #tpu.memory_space<vmem>>, vector<1x1x32x32xf32>
    %34 = vector.shape_cast %33 : vector<1x1x32x32xf32> to vector<32x32xf32>
    %cst_46 = arith.constant dense<0.000000e+00> : vector<256x32xf32>
    %35 = tpu.matmul %32, %34, %cst_46 {dimension_numbers = #tpu.dot_dimension_numbers<[1], [0], [0], [1], [0, 0, 1, 1], [], []>} : vector<256x32xf32>, vector<32x32xf32>, vector<256x32xf32> -> vector<256x32xf32>
    %36 = arith.addf %30, %35 : vector<256x32xf32>
    %c0_47 = arith.constant 0 : index
    %c2 = arith.constant 2 : index
    %c0_48 = arith.constant 0 : index
    %37 = vector.load %arg21[%c0_47, %c2, %c0_48] : memref<18x18x32xf32, #tpu.memory_space<vmem>>, vector<16x16x32xf32>
    %38 = vector.shape_cast %37 : vector<16x16x32xf32> to vector<256x32xf32>
    %c0_49 = arith.constant 0 : index
    %c2_50 = arith.constant 2 : index
    %c0_51 = arith.constant 0 : index
    %c0_52 = arith.constant 0 : index
    %39 = vector.load %arg4[%c0_49, %c2_50, %c0_51, %c0_52] : memref<3x3x32x32xf32, #tpu.memory_space<vmem>>, vector<1x1x32x32xf32>
    %40 = vector.shape_cast %39 : vector<1x1x32x32xf32> to vector<32x32xf32>
    %cst_53 = arith.constant dense<0.000000e+00> : vector<256x32xf32>
    %41 = tpu.matmul %38, %40, %cst_53 {dimension_numbers = #tpu.dot_dimension_numbers<[1], [0], [0], [1], [0, 0, 1, 1], [], []>} : vector<256x32xf32>, vector<32x32xf32>, vector<256x32xf32> -> vector<256x32xf32>
    %42 = arith.addf %36, %41 : vector<256x32xf32>
    %c1_54 = arith.constant 1 : index
    %c0_55 = arith.constant 0 : index
    %c0_56 = arith.constant 0 : index
    %43 = vector.load %arg21[%c1_54, %c0_55, %c0_56] : memref<18x18x32xf32, #tpu.memory_space<vmem>>, vector<16x16x32xf32>
    %44 = vector.shape_cast %43 : vector<16x16x32xf32> to vector<256x32xf32>
    %c1_57 = arith.constant 1 : index
    %c0_58 = arith.constant 0 : index
    %c0_59 = arith.constant 0 : index
    %c0_60 = arith.constant 0 : index
    %45 = vector.load %arg4[%c1_57, %c0_58, %c0_59, %c0_60] : memref<3x3x32x32xf32, #tpu.memory_space<vmem>>, vector<1x1x32x32xf32>
    %46 = vector.shape_cast %45 : vector<1x1x32x32xf32> to vector<32x32xf32>
    %cst_61 = arith.constant dense<0.000000e+00> : vector<256x32xf32>
    %47 = tpu.matmul %44, %46, %cst_61 {dimension_numbers = #tpu.dot_dimension_numbers<[1], [0], [0], [1], [0, 0, 1, 1], [], []>} : vector<256x32xf32>, vector<32x32xf32>, vector<256x32xf32> -> vector<256x32xf32>
    %48 = arith.addf %42, %47 : vector<256x32xf32>
    %c1_62 = arith.constant 1 : index
    %c1_63 = arith.constant 1 : index
    %c0_64 = arith.constant 0 : index
    %49 = vector.load %arg21[%c1_62, %c1_63, %c0_64] : memref<18x18x32xf32, #tpu.memory_space<vmem>>, vector<16x16x32xf32>
    %50 = vector.shape_cast %49 : vector<16x16x32xf32> to vector<256x32xf32>
    %c1_65 = arith.constant 1 : index
    %c1_66 = arith.constant 1 : index
    %c0_67 = arith.constant 0 : index
    %c0_68 = arith.constant 0 : index
    %51 = vector.load %arg4[%c1_65, %c1_66, %c0_67, %c0_68] : memref<3x3x32x32xf32, #tpu.memory_space<vmem>>, vector<1x1x32x32xf32>
    %52 = vector.shape_cast %51 : vector<1x1x32x32xf32> to vector<32x32xf32>
    %cst_69 = arith.constant dense<0.000000e+00> : vector<256x32xf32>
    %53 = tpu.matmul %50, %52, %cst_69 {dimension_numbers = #tpu.dot_dimension_numbers<[1], [0], [0], [1], [0, 0, 1, 1], [], []>} : vector<256x32xf32>, vector<32x32xf32>, vector<256x32xf32> -> vector<256x32xf32>
    %54 = arith.addf %48, %53 : vector<256x32xf32>
    %c1_70 = arith.constant 1 : index
    %c2_71 = arith.constant 2 : index
    %c0_72 = arith.constant 0 : index
    %55 = vector.load %arg21[%c1_70, %c2_71, %c0_72] : memref<18x18x32xf32, #tpu.memory_space<vmem>>, vector<16x16x32xf32>
    %56 = vector.shape_cast %55 : vector<16x16x32xf32> to vector<256x32xf32>
    %c1_73 = arith.constant 1 : index
    %c2_74 = arith.constant 2 : index
    %c0_75 = arith.constant 0 : index
    %c0_76 = arith.constant 0 : index
    %57 = vector.load %arg4[%c1_73, %c2_74, %c0_75, %c0_76] : memref<3x3x32x32xf32, #tpu.memory_space<vmem>>, vector<1x1x32x32xf32>
    %58 = vector.shape_cast %57 : vector<1x1x32x32xf32> to vector<32x32xf32>
    %cst_77 = arith.constant dense<0.000000e+00> : vector<256x32xf32>
    %59 = tpu.matmul %56, %58, %cst_77 {dimension_numbers = #tpu.dot_dimension_numbers<[1], [0], [0], [1], [0, 0, 1, 1], [], []>} : vector<256x32xf32>, vector<32x32xf32>, vector<256x32xf32> -> vector<256x32xf32>
    %60 = arith.addf %54, %59 : vector<256x32xf32>
    %c2_78 = arith.constant 2 : index
    %c0_79 = arith.constant 0 : index
    %c0_80 = arith.constant 0 : index
    %61 = vector.load %arg21[%c2_78, %c0_79, %c0_80] : memref<18x18x32xf32, #tpu.memory_space<vmem>>, vector<16x16x32xf32>
    %62 = vector.shape_cast %61 : vector<16x16x32xf32> to vector<256x32xf32>
    %c2_81 = arith.constant 2 : index
    %c0_82 = arith.constant 0 : index
    %c0_83 = arith.constant 0 : index
    %c0_84 = arith.constant 0 : index
    %63 = vector.load %arg4[%c2_81, %c0_82, %c0_83, %c0_84] : memref<3x3x32x32xf32, #tpu.memory_space<vmem>>, vector<1x1x32x32xf32>
    %64 = vector.shape_cast %63 : vector<1x1x32x32xf32> to vector<32x32xf32>
    %cst_85 = arith.constant dense<0.000000e+00> : vector<256x32xf32>
    %65 = tpu.matmul %62, %64, %cst_85 {dimension_numbers = #tpu.dot_dimension_numbers<[1], [0], [0], [1], [0, 0, 1, 1], [], []>} : vector<256x32xf32>, vector<32x32xf32>, vector<256x32xf32> -> vector<256x32xf32>
    %66 = arith.addf %60, %65 : vector<256x32xf32>
    %c2_86 = arith.constant 2 : index
    %c1_87 = arith.constant 1 : index
    %c0_88 = arith.constant 0 : index
    %67 = vector.load %arg21[%c2_86, %c1_87, %c0_88] : memref<18x18x32xf32, #tpu.memory_space<vmem>>, vector<16x16x32xf32>
    %68 = vector.shape_cast %67 : vector<16x16x32xf32> to vector<256x32xf32>
    %c2_89 = arith.constant 2 : index
    %c1_90 = arith.constant 1 : index
    %c0_91 = arith.constant 0 : index
    %c0_92 = arith.constant 0 : index
    %69 = vector.load %arg4[%c2_89, %c1_90, %c0_91, %c0_92] : memref<3x3x32x32xf32, #tpu.memory_space<vmem>>, vector<1x1x32x32xf32>
    %70 = vector.shape_cast %69 : vector<1x1x32x32xf32> to vector<32x32xf32>
    %cst_93 = arith.constant dense<0.000000e+00> : vector<256x32xf32>
    %71 = tpu.matmul %68, %70, %cst_93 {dimension_numbers = #tpu.dot_dimension_numbers<[1], [0], [0], [1], [0, 0, 1, 1], [], []>} : vector<256x32xf32>, vector<32x32xf32>, vector<256x32xf32> -> vector<256x32xf32>
    %72 = arith.addf %66, %71 : vector<256x32xf32>
    %c2_94 = arith.constant 2 : index
    %c2_95 = arith.constant 2 : index
    %c0_96 = arith.constant 0 : index
    %73 = vector.load %arg21[%c2_94, %c2_95, %c0_96] : memref<18x18x32xf32, #tpu.memory_space<vmem>>, vector<16x16x32xf32>
    %74 = vector.shape_cast %73 : vector<16x16x32xf32> to vector<256x32xf32>
    %c2_97 = arith.constant 2 : index
    %c2_98 = arith.constant 2 : index
    %c0_99 = arith.constant 0 : index
    %c0_100 = arith.constant 0 : index
    %75 = vector.load %arg4[%c2_97, %c2_98, %c0_99, %c0_100] : memref<3x3x32x32xf32, #tpu.memory_space<vmem>>, vector<1x1x32x32xf32>
    %76 = vector.shape_cast %75 : vector<1x1x32x32xf32> to vector<32x32xf32>
    %cst_101 = arith.constant dense<0.000000e+00> : vector<256x32xf32>
    %77 = tpu.matmul %74, %76, %cst_101 {dimension_numbers = #tpu.dot_dimension_numbers<[1], [0], [0], [1], [0, 0, 1, 1], [], []>} : vector<256x32xf32>, vector<32x32xf32>, vector<256x32xf32> -> vector<256x32xf32>
    %78 = arith.addf %72, %77 : vector<256x32xf32>
    %c0_102 = arith.constant 0 : index
    %c0_103 = arith.constant 0 : index
    %79 = vector.load %arg5[%c0_102, %c0_103] : memref<1x32xf32, #tpu.memory_space<vmem>>, vector<1x32xf32>
    %80 = vector.broadcast %79 : vector<1x32xf32> to vector<256x32xf32>
    %81 = arith.addf %78, %80 : vector<256x32xf32>
    %cst_104 = arith.constant 0.000000e+00 : f32
    %82 = vector.broadcast %cst_104 : f32 to vector<256x32xf32>
    %83 = arith.cmpf oge, %81, %82 : vector<256x32xf32>
    %cst_105 = arith.constant 2.000000e-01 : f32
    %84 = vector.broadcast %cst_105 : f32 to vector<256x32xf32>
    %85 = arith.mulf %84, %81 : vector<256x32xf32>
    %86 = arith.select %83, %81, %85 : vector<256x32xi1>, vector<256x32xf32>
    %87 = vector.shape_cast %86 : vector<256x32xf32> to vector<16x16x32xf32>
    %c1_106 = arith.constant 1 : index
    %c1_107 = arith.constant 1 : index
    %c0_108 = arith.constant 0 : index
    %88 = vector.load %arg22[%c1_106, %c1_107, %c0_108] : memref<18x18x32xf32, #tpu.memory_space<vmem>>, vector<16x16x32xf32>
    tpu.vector_store %arg22[%c1_106, %c1_107, %c0_108], %87 {strides = array<i32>} : memref<18x18x32xf32, #tpu.memory_space<vmem>>, vector<16x16x32xf32>,
    %cst_109 = arith.constant 0.000000e+00 : f32
    %89 = vector.broadcast %cst_109 : f32 to vector<256x32xf32>
    %c0_110 = arith.constant 0 : index
    %c0_111 = arith.constant 0 : index
    %c0_112 = arith.constant 0 : index
    %90 = vector.load %arg22[%c0_110, %c0_111, %c0_112] : memref<18x18x32xf32, #tpu.memory_space<vmem>>, vector<16x16x32xf32>
    %91 = vector.shape_cast %90 : vector<16x16x32xf32> to vector<256x32xf32>
    %c0_113 = arith.constant 0 : index
    %c0_114 = arith.constant 0 : index
    %c0_115 = arith.constant 0 : index
    %c0_116 = arith.constant 0 : index
    %92 = vector.load %arg6[%c0_113, %c0_114, %c0_115, %c0_116] : memref<3x3x32x32xf32, #tpu.memory_space<vmem>>, vector<1x1x32x32xf32>
    %93 = vector.shape_cast %92 : vector<1x1x32x32xf32> to vector<32x32xf32>
    %cst_117 = arith.constant dense<0.000000e+00> : vector<256x32xf32>
    %94 = tpu.matmul %91, %93, %cst_117 {dimension_numbers = #tpu.dot_dimension_numbers<[1], [0], [0], [1], [0, 0, 1, 1], [], []>} : vector<256x32xf32>, vector<32x32xf32>, vector<256x32xf32> -> vector<256x32xf32>
    %95 = arith.addf %89, %94 : vector<256x32xf32>
    %c0_118 = arith.constant 0 : index
    %c1_119 = arith.constant 1 : index
    %c0_120 = arith.constant 0 : index
    %96 = vector.load %arg22[%c0_118, %c1_119, %c0_120] : memref<18x18x32xf32, #tpu.memory_space<vmem>>, vector<16x16x32xf32>
    %97 = vector.shape_cast %96 : vector<16x16x32xf32> to vector<256x32xf32>
    %c0_121 = arith.constant 0 : index
    %c1_122 = arith.constant 1 : index
    %c0_123 = arith.constant 0 : index
    %c0_124 = arith.constant 0 : index
    %98 = vector.load %arg6[%c0_121, %c1_122, %c0_123, %c0_124] : memref<3x3x32x32xf32, #tpu.memory_space<vmem>>, vector<1x1x32x32xf32>
    %99 = vector.shape_cast %98 : vector<1x1x32x32xf32> to vector<32x32xf32>
    %cst_125 = arith.constant dense<0.000000e+00> : vector<256x32xf32>
    %100 = tpu.matmul %97, %99, %cst_125 {dimension_numbers = #tpu.dot_dimension_numbers<[1], [0], [0], [1], [0, 0, 1, 1], [], []>} : vector<256x32xf32>, vector<32x32xf32>, vector<256x32xf32> -> vector<256x32xf32>
    %101 = arith.addf %95, %100 : vector<256x32xf32>
    %c0_126 = arith.constant 0 : index
    %c2_127 = arith.constant 2 : index
    %c0_128 = arith.constant 0 : index
    %102 = vector.load %arg22[%c0_126, %c2_127, %c0_128] : memref<18x18x32xf32, #tpu.memory_space<vmem>>, vector<16x16x32xf32>
    %103 = vector.shape_cast %102 : vector<16x16x32xf32> to vector<256x32xf32>
    %c0_129 = arith.constant 0 : index
    %c2_130 = arith.constant 2 : index
    %c0_131 = arith.constant 0 : index
    %c0_132 = arith.constant 0 : index
    %104 = vector.load %arg6[%c0_129, %c2_130, %c0_131, %c0_132] : memref<3x3x32x32xf32, #tpu.memory_space<vmem>>, vector<1x1x32x32xf32>
    %105 = vector.shape_cast %104 : vector<1x1x32x32xf32> to vector<32x32xf32>
    %cst_133 = arith.constant dense<0.000000e+00> : vector<256x32xf32>
    %106 = tpu.matmul %103, %105, %cst_133 {dimension_numbers = #tpu.dot_dimension_numbers<[1], [0], [0], [1], [0, 0, 1, 1], [], []>} : vector<256x32xf32>, vector<32x32xf32>, vector<256x32xf32> -> vector<256x32xf32>
    %107 = arith.addf %101, %106 : vector<256x32xf32>
    %c1_134 = arith.constant 1 : index
    %c0_135 = arith.constant 0 : index
    %c0_136 = arith.constant 0 : index
    %108 = vector.load %arg22[%c1_134, %c0_135, %c0_136] : memref<18x18x32xf32, #tpu.memory_space<vmem>>, vector<16x16x32xf32>
    %109 = vector.shape_cast %108 : vector<16x16x32xf32> to vector<256x32xf32>
    %c1_137 = arith.constant 1 : index
    %c0_138 = arith.constant 0 : index
    %c0_139 = arith.constant 0 : index
    %c0_140 = arith.constant 0 : index
    %110 = vector.load %arg6[%c1_137, %c0_138, %c0_139, %c0_140] : memref<3x3x32x32xf32, #tpu.memory_space<vmem>>, vector<1x1x32x32xf32>
    %111 = vector.shape_cast %110 : vector<1x1x32x32xf32> to vector<32x32xf32>
    %cst_141 = arith.constant dense<0.000000e+00> : vector<256x32xf32>
    %112 = tpu.matmul %109, %111, %cst_141 {dimension_numbers = #tpu.dot_dimension_numbers<[1], [0], [0], [1], [0, 0, 1, 1], [], []>} : vector<256x32xf32>, vector<32x32xf32>, vector<256x32xf32> -> vector<256x32xf32>
    %113 = arith.addf %107, %112 : vector<256x32xf32>
    %c1_142 = arith.constant 1 : index
    %c1_143 = arith.constant 1 : index
    %c0_144 = arith.constant 0 : index
    %114 = vector.load %arg22[%c1_142, %c1_143, %c0_144] : memref<18x18x32xf32, #tpu.memory_space<vmem>>, vector<16x16x32xf32>
    %115 = vector.shape_cast %114 : vector<16x16x32xf32> to vector<256x32xf32>
    %c1_145 = arith.constant 1 : index
    %c1_146 = arith.constant 1 : index
    %c0_147 = arith.constant 0 : index
    %c0_148 = arith.constant 0 : index
    %116 = vector.load %arg6[%c1_145, %c1_146, %c0_147, %c0_148] : memref<3x3x32x32xf32, #tpu.memory_space<vmem>>, vector<1x1x32x32xf32>
    %117 = vector.shape_cast %116 : vector<1x1x32x32xf32> to vector<32x32xf32>
    %cst_149 = arith.constant dense<0.000000e+00> : vector<256x32xf32>
    %118 = tpu.matmul %115, %117, %cst_149 {dimension_numbers = #tpu.dot_dimension_numbers<[1], [0], [0], [1], [0, 0, 1, 1], [], []>} : vector<256x32xf32>, vector<32x32xf32>, vector<256x32xf32> -> vector<256x32xf32>
    %119 = arith.addf %113, %118 : vector<256x32xf32>
    %c1_150 = arith.constant 1 : index
    %c2_151 = arith.constant 2 : index
    %c0_152 = arith.constant 0 : index
    %120 = vector.load %arg22[%c1_150, %c2_151, %c0_152] : memref<18x18x32xf32, #tpu.memory_space<vmem>>, vector<16x16x32xf32>
    %121 = vector.shape_cast %120 : vector<16x16x32xf32> to vector<256x32xf32>
    %c1_153 = arith.constant 1 : index
    %c2_154 = arith.constant 2 : index
    %c0_155 = arith.constant 0 : index
    %c0_156 = arith.constant 0 : index
    %122 = vector.load %arg6[%c1_153, %c2_154, %c0_155, %c0_156] : memref<3x3x32x32xf32, #tpu.memory_space<vmem>>, vector<1x1x32x32xf32>
    %123 = vector.shape_cast %122 : vector<1x1x32x32xf32> to vector<32x32xf32>
    %cst_157 = arith.constant dense<0.000000e+00> : vector<256x32xf32>
    %124 = tpu.matmul %121, %123, %cst_157 {dimension_numbers = #tpu.dot_dimension_numbers<[1], [0], [0], [1], [0, 0, 1, 1], [], []>} : vector<256x32xf32>, vector<32x32xf32>, vector<256x32xf32> -> vector<256x32xf32>
    %125 = arith.addf %119, %124 : vector<256x32xf32>
    %c2_158 = arith.constant 2 : index
    %c0_159 = arith.constant 0 : index
    %c0_160 = arith.constant 0 : index
    %126 = vector.load %arg22[%c2_158, %c0_159, %c0_160] : memref<18x18x32xf32, #tpu.memory_space<vmem>>, vector<16x16x32xf32>
    %127 = vector.shape_cast %126 : vector<16x16x32xf32> to vector<256x32xf32>
    %c2_161 = arith.constant 2 : index
    %c0_162 = arith.constant 0 : index
    %c0_163 = arith.constant 0 : index
    %c0_164 = arith.constant 0 : index
    %128 = vector.load %arg6[%c2_161, %c0_162, %c0_163, %c0_164] : memref<3x3x32x32xf32, #tpu.memory_space<vmem>>, vector<1x1x32x32xf32>
    %129 = vector.shape_cast %128 : vector<1x1x32x32xf32> to vector<32x32xf32>
    %cst_165 = arith.constant dense<0.000000e+00> : vector<256x32xf32>
    %130 = tpu.matmul %127, %129, %cst_165 {dimension_numbers = #tpu.dot_dimension_numbers<[1], [0], [0], [1], [0, 0, 1, 1], [], []>} : vector<256x32xf32>, vector<32x32xf32>, vector<256x32xf32> -> vector<256x32xf32>
    %131 = arith.addf %125, %130 : vector<256x32xf32>
    %c2_166 = arith.constant 2 : index
    %c1_167 = arith.constant 1 : index
    %c0_168 = arith.constant 0 : index
    %132 = vector.load %arg22[%c2_166, %c1_167, %c0_168] : memref<18x18x32xf32, #tpu.memory_space<vmem>>, vector<16x16x32xf32>
    %133 = vector.shape_cast %132 : vector<16x16x32xf32> to vector<256x32xf32>
    %c2_169 = arith.constant 2 : index
    %c1_170 = arith.constant 1 : index
    %c0_171 = arith.constant 0 : index
    %c0_172 = arith.constant 0 : index
    %134 = vector.load %arg6[%c2_169, %c1_170, %c0_171, %c0_172] : memref<3x3x32x32xf32, #tpu.memory_space<vmem>>, vector<1x1x32x32xf32>
    %135 = vector.shape_cast %134 : vector<1x1x32x32xf32> to vector<32x32xf32>
    %cst_173 = arith.constant dense<0.000000e+00> : vector<256x32xf32>
    %136 = tpu.matmul %133, %135, %cst_173 {dimension_numbers = #tpu.dot_dimension_numbers<[1], [0], [0], [1], [0, 0, 1, 1], [], []>} : vector<256x32xf32>, vector<32x32xf32>, vector<256x32xf32> -> vector<256x32xf32>
    %137 = arith.addf %131, %136 : vector<256x32xf32>
    %c2_174 = arith.constant 2 : index
    %c2_175 = arith.constant 2 : index
    %c0_176 = arith.constant 0 : index
    %138 = vector.load %arg22[%c2_174, %c2_175, %c0_176] : memref<18x18x32xf32, #tpu.memory_space<vmem>>, vector<16x16x32xf32>
    %139 = vector.shape_cast %138 : vector<16x16x32xf32> to vector<256x32xf32>
    %c2_177 = arith.constant 2 : index
    %c2_178 = arith.constant 2 : index
    %c0_179 = arith.constant 0 : index
    %c0_180 = arith.constant 0 : index
    %140 = vector.load %arg6[%c2_177, %c2_178, %c0_179, %c0_180] : memref<3x3x32x32xf32, #tpu.memory_space<vmem>>, vector<1x1x32x32xf32>
    %141 = vector.shape_cast %140 : vector<1x1x32x32xf32> to vector<32x32xf32>
    %cst_181 = arith.constant dense<0.000000e+00> : vector<256x32xf32>
    %142 = tpu.matmul %139, %141, %cst_181 {dimension_numbers = #tpu.dot_dimension_numbers<[1], [0], [0], [1], [0, 0, 1, 1], [], []>} : vector<256x32xf32>, vector<32x32xf32>, vector<256x32xf32> -> vector<256x32xf32>
    %143 = arith.addf %137, %142 : vector<256x32xf32>
    %c0_182 = arith.constant 0 : index
    %c0_183 = arith.constant 0 : index
    %144 = vector.load %arg7[%c0_182, %c0_183] : memref<1x32xf32, #tpu.memory_space<vmem>>, vector<1x32xf32>
    %145 = vector.broadcast %144 : vector<1x32xf32> to vector<256x32xf32>
    %146 = arith.addf %143, %145 : vector<256x32xf32>
    %cst_184 = arith.constant 0.000000e+00 : f32
    %147 = vector.broadcast %cst_184 : f32 to vector<256x32xf32>
    %148 = arith.cmpf oge, %146, %147 : vector<256x32xf32>
    %cst_185 = arith.constant 2.000000e-01 : f32
    %149 = vector.broadcast %cst_185 : f32 to vector<256x32xf32>
    %150 = arith.mulf %149, %146 : vector<256x32xf32>
    %151 = arith.select %148, %146, %150 : vector<256x32xi1>, vector<256x32xf32>
    %c0_186 = arith.constant 0 : index
    %c0_187 = arith.constant 0 : index
    %152 = vector.load %arg18[%c0_186, %c0_187] : memref<64x256xf32, #tpu.memory_space<vmem>>, vector<64x256xf32>
    %cst_188 = arith.constant dense<0.000000e+00> : vector<64x32xf32>
    %153 = tpu.matmul %152, %151, %cst_188 {dimension_numbers = #tpu.dot_dimension_numbers<[1], [0], [0], [1], [0, 0, 1, 1], [], []>} : vector<64x256xf32>, vector<256x32xf32>, vector<64x32xf32> -> vector<64x32xf32>
    %154 = vector.shape_cast %153 : vector<64x32xf32> to vector<8x8x32xf32>
    %c1_189 = arith.constant 1 : index
    %c1_190 = arith.constant 1 : index
    %c0_191 = arith.constant 0 : index
    %155 = vector.load %arg23[%c1_189, %c1_190, %c0_191] : memref<10x10x32xf32, #tpu.memory_space<vmem>>, vector<8x8x32xf32>
    tpu.vector_store %arg23[%c1_189, %c1_190, %c0_191], %154 {strides = array<i32>} : memref<10x10x32xf32, #tpu.memory_space<vmem>>, vector<8x8x32xf32>,
    %cst_192 = arith.constant 0.000000e+00 : f32
    %156 = vector.broadcast %cst_192 : f32 to vector<64x32xf32>
    %c0_193 = arith.constant 0 : index
    %c0_194 = arith.constant 0 : index
    %c0_195 = arith.constant 0 : index
    %157 = vector.load %arg23[%c0_193, %c0_194, %c0_195] : memref<10x10x32xf32, #tpu.memory_space<vmem>>, vector<8x8x32xf32>
    %158 = vector.shape_cast %157 : vector<8x8x32xf32> to vector<64x32xf32>
    %c0_196 = arith.constant 0 : index
    %c0_197 = arith.constant 0 : index
    %c0_198 = arith.constant 0 : index
    %c0_199 = arith.constant 0 : index
    %159 = vector.load %arg8[%c0_196, %c0_197, %c0_198, %c0_199] : memref<3x3x32x32xf32, #tpu.memory_space<vmem>>, vector<1x1x32x32xf32>
    %160 = vector.shape_cast %159 : vector<1x1x32x32xf32> to vector<32x32xf32>
    %cst_200 = arith.constant dense<0.000000e+00> : vector<64x32xf32>
    %161 = tpu.matmul %158, %160, %cst_200 {dimension_numbers = #tpu.dot_dimension_numbers<[1], [0], [0], [1], [0, 0, 1, 1], [], []>} : vector<64x32xf32>, vector<32x32xf32>, vector<64x32xf32> -> vector<64x32xf32>
    %162 = arith.addf %156, %161 : vector<64x32xf32>
    %c0_201 = arith.constant 0 : index
    %c1_202 = arith.constant 1 : index
    %c0_203 = arith.constant 0 : index
    %163 = vector.load %arg23[%c0_201, %c1_202, %c0_203] : memref<10x10x32xf32, #tpu.memory_space<vmem>>, vector<8x8x32xf32>
    %164 = vector.shape_cast %163 : vector<8x8x32xf32> to vector<64x32xf32>
    %c0_204 = arith.constant 0 : index
    %c1_205 = arith.constant 1 : index
    %c0_206 = arith.constant 0 : index
    %c0_207 = arith.constant 0 : index
    %165 = vector.load %arg8[%c0_204, %c1_205, %c0_206, %c0_207] : memref<3x3x32x32xf32, #tpu.memory_space<vmem>>, vector<1x1x32x32xf32>
    %166 = vector.shape_cast %165 : vector<1x1x32x32xf32> to vector<32x32xf32>
    %cst_208 = arith.constant dense<0.000000e+00> : vector<64x32xf32>
    %167 = tpu.matmul %164, %166, %cst_208 {dimension_numbers = #tpu.dot_dimension_numbers<[1], [0], [0], [1], [0, 0, 1, 1], [], []>} : vector<64x32xf32>, vector<32x32xf32>, vector<64x32xf32> -> vector<64x32xf32>
    %168 = arith.addf %162, %167 : vector<64x32xf32>
    %c0_209 = arith.constant 0 : index
    %c2_210 = arith.constant 2 : index
    %c0_211 = arith.constant 0 : index
    %169 = vector.load %arg23[%c0_209, %c2_210, %c0_211] : memref<10x10x32xf32, #tpu.memory_space<vmem>>, vector<8x8x32xf32>
    %170 = vector.shape_cast %169 : vector<8x8x32xf32> to vector<64x32xf32>
    %c0_212 = arith.constant 0 : index
    %c2_213 = arith.constant 2 : index
    %c0_214 = arith.constant 0 : index
    %c0_215 = arith.constant 0 : index
    %171 = vector.load %arg8[%c0_212, %c2_213, %c0_214, %c0_215] : memref<3x3x32x32xf32, #tpu.memory_space<vmem>>, vector<1x1x32x32xf32>
    %172 = vector.shape_cast %171 : vector<1x1x32x32xf32> to vector<32x32xf32>
    %cst_216 = arith.constant dense<0.000000e+00> : vector<64x32xf32>
    %173 = tpu.matmul %170, %172, %cst_216 {dimension_numbers = #tpu.dot_dimension_numbers<[1], [0], [0], [1], [0, 0, 1, 1], [], []>} : vector<64x32xf32>, vector<32x32xf32>, vector<64x32xf32> -> vector<64x32xf32>
    %174 = arith.addf %168, %173 : vector<64x32xf32>
    %c1_217 = arith.constant 1 : index
    %c0_218 = arith.constant 0 : index
    %c0_219 = arith.constant 0 : index
    %175 = vector.load %arg23[%c1_217, %c0_218, %c0_219] : memref<10x10x32xf32, #tpu.memory_space<vmem>>, vector<8x8x32xf32>
    %176 = vector.shape_cast %175 : vector<8x8x32xf32> to vector<64x32xf32>
    %c1_220 = arith.constant 1 : index
    %c0_221 = arith.constant 0 : index
    %c0_222 = arith.constant 0 : index
    %c0_223 = arith.constant 0 : index
    %177 = vector.load %arg8[%c1_220, %c0_221, %c0_222, %c0_223] : memref<3x3x32x32xf32, #tpu.memory_space<vmem>>, vector<1x1x32x32xf32>
    %178 = vector.shape_cast %177 : vector<1x1x32x32xf32> to vector<32x32xf32>
    %cst_224 = arith.constant dense<0.000000e+00> : vector<64x32xf32>
    %179 = tpu.matmul %176, %178, %cst_224 {dimension_numbers = #tpu.dot_dimension_numbers<[1], [0], [0], [1], [0, 0, 1, 1], [], []>} : vector<64x32xf32>, vector<32x32xf32>, vector<64x32xf32> -> vector<64x32xf32>
    %180 = arith.addf %174, %179 : vector<64x32xf32>
    %c1_225 = arith.constant 1 : index
    %c1_226 = arith.constant 1 : index
    %c0_227 = arith.constant 0 : index
    %181 = vector.load %arg23[%c1_225, %c1_226, %c0_227] : memref<10x10x32xf32, #tpu.memory_space<vmem>>, vector<8x8x32xf32>
    %182 = vector.shape_cast %181 : vector<8x8x32xf32> to vector<64x32xf32>
    %c1_228 = arith.constant 1 : index
    %c1_229 = arith.constant 1 : index
    %c0_230 = arith.constant 0 : index
    %c0_231 = arith.constant 0 : index
    %183 = vector.load %arg8[%c1_228, %c1_229, %c0_230, %c0_231] : memref<3x3x32x32xf32, #tpu.memory_space<vmem>>, vector<1x1x32x32xf32>
    %184 = vector.shape_cast %183 : vector<1x1x32x32xf32> to vector<32x32xf32>
    %cst_232 = arith.constant dense<0.000000e+00> : vector<64x32xf32>
    %185 = tpu.matmul %182, %184, %cst_232 {dimension_numbers = #tpu.dot_dimension_numbers<[1], [0], [0], [1], [0, 0, 1, 1], [], []>} : vector<64x32xf32>, vector<32x32xf32>, vector<64x32xf32> -> vector<64x32xf32>
    %186 = arith.addf %180, %185 : vector<64x32xf32>
    %c1_233 = arith.constant 1 : index
    %c2_234 = arith.constant 2 : index
    %c0_235 = arith.constant 0 : index
    %187 = vector.load %arg23[%c1_233, %c2_234, %c0_235] : memref<10x10x32xf32, #tpu.memory_space<vmem>>, vector<8x8x32xf32>
    %188 = vector.shape_cast %187 : vector<8x8x32xf32> to vector<64x32xf32>
    %c1_236 = arith.constant 1 : index
    %c2_237 = arith.constant 2 : index
    %c0_238 = arith.constant 0 : index
    %c0_239 = arith.constant 0 : index
    %189 = vector.load %arg8[%c1_236, %c2_237, %c0_238, %c0_239] : memref<3x3x32x32xf32, #tpu.memory_space<vmem>>, vector<1x1x32x32xf32>
    %190 = vector.shape_cast %189 : vector<1x1x32x32xf32> to vector<32x32xf32>
    %cst_240 = arith.constant dense<0.000000e+00> : vector<64x32xf32>
    %191 = tpu.matmul %188, %190, %cst_240 {dimension_numbers = #tpu.dot_dimension_numbers<[1], [0], [0], [1], [0, 0, 1, 1], [], []>} : vector<64x32xf32>, vector<32x32xf32>, vector<64x32xf32> -> vector<64x32xf32>
    %192 = arith.addf %186, %191 : vector<64x32xf32>
    %c2_241 = arith.constant 2 : index
    %c0_242 = arith.constant 0 : index
    %c0_243 = arith.constant 0 : index
    %193 = vector.load %arg23[%c2_241, %c0_242, %c0_243] : memref<10x10x32xf32, #tpu.memory_space<vmem>>, vector<8x8x32xf32>
    %194 = vector.shape_cast %193 : vector<8x8x32xf32> to vector<64x32xf32>
    %c2_244 = arith.constant 2 : index
    %c0_245 = arith.constant 0 : index
    %c0_246 = arith.constant 0 : index
    %c0_247 = arith.constant 0 : index
    %195 = vector.load %arg8[%c2_244, %c0_245, %c0_246, %c0_247] : memref<3x3x32x32xf32, #tpu.memory_space<vmem>>, vector<1x1x32x32xf32>
    %196 = vector.shape_cast %195 : vector<1x1x32x32xf32> to vector<32x32xf32>
    %cst_248 = arith.constant dense<0.000000e+00> : vector<64x32xf32>
    %197 = tpu.matmul %194, %196, %cst_248 {dimension_numbers = #tpu.dot_dimension_numbers<[1], [0], [0], [1], [0, 0, 1, 1], [], []>} : vector<64x32xf32>, vector<32x32xf32>, vector<64x32xf32> -> vector<64x32xf32>
    %198 = arith.addf %192, %197 : vector<64x32xf32>
    %c2_249 = arith.constant 2 : index
    %c1_250 = arith.constant 1 : index
    %c0_251 = arith.constant 0 : index
    %199 = vector.load %arg23[%c2_249, %c1_250, %c0_251] : memref<10x10x32xf32, #tpu.memory_space<vmem>>, vector<8x8x32xf32>
    %200 = vector.shape_cast %199 : vector<8x8x32xf32> to vector<64x32xf32>
    %c2_252 = arith.constant 2 : index
    %c1_253 = arith.constant 1 : index
    %c0_254 = arith.constant 0 : index
    %c0_255 = arith.constant 0 : index
    %201 = vector.load %arg8[%c2_252, %c1_253, %c0_254, %c0_255] : memref<3x3x32x32xf32, #tpu.memory_space<vmem>>, vector<1x1x32x32xf32>
    %202 = vector.shape_cast %201 : vector<1x1x32x32xf32> to vector<32x32xf32>
    %cst_256 = arith.constant dense<0.000000e+00> : vector<64x32xf32>
    %203 = tpu.matmul %200, %202, %cst_256 {dimension_numbers = #tpu.dot_dimension_numbers<[1], [0], [0], [1], [0, 0, 1, 1], [], []>} : vector<64x32xf32>, vector<32x32xf32>, vector<64x32xf32> -> vector<64x32xf32>
    %204 = arith.addf %198, %203 : vector<64x32xf32>
    %c2_257 = arith.constant 2 : index
    %c2_258 = arith.constant 2 : index
    %c0_259 = arith.constant 0 : index
    %205 = vector.load %arg23[%c2_257, %c2_258, %c0_259] : memref<10x10x32xf32, #tpu.memory_space<vmem>>, vector<8x8x32xf32>
    %206 = vector.shape_cast %205 : vector<8x8x32xf32> to vector<64x32xf32>
    %c2_260 = arith.constant 2 : index
    %c2_261 = arith.constant 2 : index
    %c0_262 = arith.constant 0 : index
    %c0_263 = arith.constant 0 : index
    %207 = vector.load %arg8[%c2_260, %c2_261, %c0_262, %c0_263] : memref<3x3x32x32xf32, #tpu.memory_space<vmem>>, vector<1x1x32x32xf32>
    %208 = vector.shape_cast %207 : vector<1x1x32x32xf32> to vector<32x32xf32>
    %cst_264 = arith.constant dense<0.000000e+00> : vector<64x32xf32>
    %209 = tpu.matmul %206, %208, %cst_264 {dimension_numbers = #tpu.dot_dimension_numbers<[1], [0], [0], [1], [0, 0, 1, 1], [], []>} : vector<64x32xf32>, vector<32x32xf32>, vector<64x32xf32> -> vector<64x32xf32>
    %210 = arith.addf %204, %209 : vector<64x32xf32>
    %c0_265 = arith.constant 0 : index
    %c0_266 = arith.constant 0 : index
    %211 = vector.load %arg9[%c0_265, %c0_266] : memref<1x32xf32, #tpu.memory_space<vmem>>, vector<1x32xf32>
    %212 = vector.broadcast %211 : vector<1x32xf32> to vector<64x32xf32>
    %213 = arith.addf %210, %212 : vector<64x32xf32>
    %cst_267 = arith.constant 0.000000e+00 : f32
    %214 = vector.broadcast %cst_267 : f32 to vector<64x32xf32>
    %215 = arith.cmpf oge, %213, %214 : vector<64x32xf32>
    %cst_268 = arith.constant 2.000000e-01 : f32
    %216 = vector.broadcast %cst_268 : f32 to vector<64x32xf32>
    %217 = arith.mulf %216, %213 : vector<64x32xf32>
    %218 = arith.select %215, %213, %217 : vector<64x32xi1>, vector<64x32xf32>
    %219 = vector.shape_cast %218 : vector<64x32xf32> to vector<8x8x32xf32>
    %c1_269 = arith.constant 1 : index
    %c1_270 = arith.constant 1 : index
    %c0_271 = arith.constant 0 : index
    %220 = vector.load %arg24[%c1_269, %c1_270, %c0_271] : memref<10x10x32xf32, #tpu.memory_space<vmem>>, vector<8x8x32xf32>
    tpu.vector_store %arg24[%c1_269, %c1_270, %c0_271], %219 {strides = array<i32>} : memref<10x10x32xf32, #tpu.memory_space<vmem>>, vector<8x8x32xf32>,
    %cst_272 = arith.constant 0.000000e+00 : f32
    %221 = vector.broadcast %cst_272 : f32 to vector<64x32xf32>
    %c0_273 = arith.constant 0 : index
    %c0_274 = arith.constant 0 : index
    %c0_275 = arith.constant 0 : index
    %222 = vector.load %arg24[%c0_273, %c0_274, %c0_275] : memref<10x10x32xf32, #tpu.memory_space<vmem>>, vector<8x8x32xf32>
    %223 = vector.shape_cast %222 : vector<8x8x32xf32> to vector<64x32xf32>
    %c0_276 = arith.constant 0 : index
    %c0_277 = arith.constant 0 : index
    %c0_278 = arith.constant 0 : index
    %c0_279 = arith.constant 0 : index
    %224 = vector.load %arg10[%c0_276, %c0_277, %c0_278, %c0_279] : memref<3x3x32x32xf32, #tpu.memory_space<vmem>>, vector<1x1x32x32xf32>
    %225 = vector.shape_cast %224 : vector<1x1x32x32xf32> to vector<32x32xf32>
    %cst_280 = arith.constant dense<0.000000e+00> : vector<64x32xf32>
    %226 = tpu.matmul %223, %225, %cst_280 {dimension_numbers = #tpu.dot_dimension_numbers<[1], [0], [0], [1], [0, 0, 1, 1], [], []>} : vector<64x32xf32>, vector<32x32xf32>, vector<64x32xf32> -> vector<64x32xf32>
    %227 = arith.addf %221, %226 : vector<64x32xf32>
    %c0_281 = arith.constant 0 : index
    %c1_282 = arith.constant 1 : index
    %c0_283 = arith.constant 0 : index
    %228 = vector.load %arg24[%c0_281, %c1_282, %c0_283] : memref<10x10x32xf32, #tpu.memory_space<vmem>>, vector<8x8x32xf32>
    %229 = vector.shape_cast %228 : vector<8x8x32xf32> to vector<64x32xf32>
    %c0_284 = arith.constant 0 : index
    %c1_285 = arith.constant 1 : index
    %c0_286 = arith.constant 0 : index
    %c0_287 = arith.constant 0 : index
    %230 = vector.load %arg10[%c0_284, %c1_285, %c0_286, %c0_287] : memref<3x3x32x32xf32, #tpu.memory_space<vmem>>, vector<1x1x32x32xf32>
    %231 = vector.shape_cast %230 : vector<1x1x32x32xf32> to vector<32x32xf32>
    %cst_288 = arith.constant dense<0.000000e+00> : vector<64x32xf32>
    %232 = tpu.matmul %229, %231, %cst_288 {dimension_numbers = #tpu.dot_dimension_numbers<[1], [0], [0], [1], [0, 0, 1, 1], [], []>} : vector<64x32xf32>, vector<32x32xf32>, vector<64x32xf32> -> vector<64x32xf32>
    %233 = arith.addf %227, %232 : vector<64x32xf32>
    %c0_289 = arith.constant 0 : index
    %c2_290 = arith.constant 2 : index
    %c0_291 = arith.constant 0 : index
    %234 = vector.load %arg24[%c0_289, %c2_290, %c0_291] : memref<10x10x32xf32, #tpu.memory_space<vmem>>, vector<8x8x32xf32>
    %235 = vector.shape_cast %234 : vector<8x8x32xf32> to vector<64x32xf32>
    %c0_292 = arith.constant 0 : index
    %c2_293 = arith.constant 2 : index
    %c0_294 = arith.constant 0 : index
    %c0_295 = arith.constant 0 : index
    %236 = vector.load %arg10[%c0_292, %c2_293, %c0_294, %c0_295] : memref<3x3x32x32xf32, #tpu.memory_space<vmem>>, vector<1x1x32x32xf32>
    %237 = vector.shape_cast %236 : vector<1x1x32x32xf32> to vector<32x32xf32>
    %cst_296 = arith.constant dense<0.000000e+00> : vector<64x32xf32>
    %238 = tpu.matmul %235, %237, %cst_296 {dimension_numbers = #tpu.dot_dimension_numbers<[1], [0], [0], [1], [0, 0, 1, 1], [], []>} : vector<64x32xf32>, vector<32x32xf32>, vector<64x32xf32> -> vector<64x32xf32>
    %239 = arith.addf %233, %238 : vector<64x32xf32>
    %c1_297 = arith.constant 1 : index
    %c0_298 = arith.constant 0 : index
    %c0_299 = arith.constant 0 : index
    %240 = vector.load %arg24[%c1_297, %c0_298, %c0_299] : memref<10x10x32xf32, #tpu.memory_space<vmem>>, vector<8x8x32xf32>
    %241 = vector.shape_cast %240 : vector<8x8x32xf32> to vector<64x32xf32>
    %c1_300 = arith.constant 1 : index
    %c0_301 = arith.constant 0 : index
    %c0_302 = arith.constant 0 : index
    %c0_303 = arith.constant 0 : index
    %242 = vector.load %arg10[%c1_300, %c0_301, %c0_302, %c0_303] : memref<3x3x32x32xf32, #tpu.memory_space<vmem>>, vector<1x1x32x32xf32>
    %243 = vector.shape_cast %242 : vector<1x1x32x32xf32> to vector<32x32xf32>
    %cst_304 = arith.constant dense<0.000000e+00> : vector<64x32xf32>
    %244 = tpu.matmul %241, %243, %cst_304 {dimension_numbers = #tpu.dot_dimension_numbers<[1], [0], [0], [1], [0, 0, 1, 1], [], []>} : vector<64x32xf32>, vector<32x32xf32>, vector<64x32xf32> -> vector<64x32xf32>
    %245 = arith.addf %239, %244 : vector<64x32xf32>
    %c1_305 = arith.constant 1 : index
    %c1_306 = arith.constant 1 : index
    %c0_307 = arith.constant 0 : index
    %246 = vector.load %arg24[%c1_305, %c1_306, %c0_307] : memref<10x10x32xf32, #tpu.memory_space<vmem>>, vector<8x8x32xf32>
    %247 = vector.shape_cast %246 : vector<8x8x32xf32> to vector<64x32xf32>
    %c1_308 = arith.constant 1 : index
    %c1_309 = arith.constant 1 : index
    %c0_310 = arith.constant 0 : index
    %c0_311 = arith.constant 0 : index
    %248 = vector.load %arg10[%c1_308, %c1_309, %c0_310, %c0_311] : memref<3x3x32x32xf32, #tpu.memory_space<vmem>>, vector<1x1x32x32xf32>
    %249 = vector.shape_cast %248 : vector<1x1x32x32xf32> to vector<32x32xf32>
    %cst_312 = arith.constant dense<0.000000e+00> : vector<64x32xf32>
    %250 = tpu.matmul %247, %249, %cst_312 {dimension_numbers = #tpu.dot_dimension_numbers<[1], [0], [0], [1], [0, 0, 1, 1], [], []>} : vector<64x32xf32>, vector<32x32xf32>, vector<64x32xf32> -> vector<64x32xf32>
    %251 = arith.addf %245, %250 : vector<64x32xf32>
    %c1_313 = arith.constant 1 : index
    %c2_314 = arith.constant 2 : index
    %c0_315 = arith.constant 0 : index
    %252 = vector.load %arg24[%c1_313, %c2_314, %c0_315] : memref<10x10x32xf32, #tpu.memory_space<vmem>>, vector<8x8x32xf32>
    %253 = vector.shape_cast %252 : vector<8x8x32xf32> to vector<64x32xf32>
    %c1_316 = arith.constant 1 : index
    %c2_317 = arith.constant 2 : index
    %c0_318 = arith.constant 0 : index
    %c0_319 = arith.constant 0 : index
    %254 = vector.load %arg10[%c1_316, %c2_317, %c0_318, %c0_319] : memref<3x3x32x32xf32, #tpu.memory_space<vmem>>, vector<1x1x32x32xf32>
    %255 = vector.shape_cast %254 : vector<1x1x32x32xf32> to vector<32x32xf32>
    %cst_320 = arith.constant dense<0.000000e+00> : vector<64x32xf32>
    %256 = tpu.matmul %253, %255, %cst_320 {dimension_numbers = #tpu.dot_dimension_numbers<[1], [0], [0], [1], [0, 0, 1, 1], [], []>} : vector<64x32xf32>, vector<32x32xf32>, vector<64x32xf32> -> vector<64x32xf32>
    %257 = arith.addf %251, %256 : vector<64x32xf32>
    %c2_321 = arith.constant 2 : index
    %c0_322 = arith.constant 0 : index
    %c0_323 = arith.constant 0 : index
    %258 = vector.load %arg24[%c2_321, %c0_322, %c0_323] : memref<10x10x32xf32, #tpu.memory_space<vmem>>, vector<8x8x32xf32>
    %259 = vector.shape_cast %258 : vector<8x8x32xf32> to vector<64x32xf32>
    %c2_324 = arith.constant 2 : index
    %c0_325 = arith.constant 0 : index
    %c0_326 = arith.constant 0 : index
    %c0_327 = arith.constant 0 : index
    %260 = vector.load %arg10[%c2_324, %c0_325, %c0_326, %c0_327] : memref<3x3x32x32xf32, #tpu.memory_space<vmem>>, vector<1x1x32x32xf32>
    %261 = vector.shape_cast %260 : vector<1x1x32x32xf32> to vector<32x32xf32>
    %cst_328 = arith.constant dense<0.000000e+00> : vector<64x32xf32>
    %262 = tpu.matmul %259, %261, %cst_328 {dimension_numbers = #tpu.dot_dimension_numbers<[1], [0], [0], [1], [0, 0, 1, 1], [], []>} : vector<64x32xf32>, vector<32x32xf32>, vector<64x32xf32> -> vector<64x32xf32>
    %263 = arith.addf %257, %262 : vector<64x32xf32>
    %c2_329 = arith.constant 2 : index
    %c1_330 = arith.constant 1 : index
    %c0_331 = arith.constant 0 : index
    %264 = vector.load %arg24[%c2_329, %c1_330, %c0_331] : memref<10x10x32xf32, #tpu.memory_space<vmem>>, vector<8x8x32xf32>
    %265 = vector.shape_cast %264 : vector<8x8x32xf32> to vector<64x32xf32>
    %c2_332 = arith.constant 2 : index
    %c1_333 = arith.constant 1 : index
    %c0_334 = arith.constant 0 : index
    %c0_335 = arith.constant 0 : index
    %266 = vector.load %arg10[%c2_332, %c1_333, %c0_334, %c0_335] : memref<3x3x32x32xf32, #tpu.memory_space<vmem>>, vector<1x1x32x32xf32>
    %267 = vector.shape_cast %266 : vector<1x1x32x32xf32> to vector<32x32xf32>
    %cst_336 = arith.constant dense<0.000000e+00> : vector<64x32xf32>
    %268 = tpu.matmul %265, %267, %cst_336 {dimension_numbers = #tpu.dot_dimension_numbers<[1], [0], [0], [1], [0, 0, 1, 1], [], []>} : vector<64x32xf32>, vector<32x32xf32>, vector<64x32xf32> -> vector<64x32xf32>
    %269 = arith.addf %263, %268 : vector<64x32xf32>
    %c2_337 = arith.constant 2 : index
    %c2_338 = arith.constant 2 : index
    %c0_339 = arith.constant 0 : index
    %270 = vector.load %arg24[%c2_337, %c2_338, %c0_339] : memref<10x10x32xf32, #tpu.memory_space<vmem>>, vector<8x8x32xf32>
    %271 = vector.shape_cast %270 : vector<8x8x32xf32> to vector<64x32xf32>
    %c2_340 = arith.constant 2 : index
    %c2_341 = arith.constant 2 : index
    %c0_342 = arith.constant 0 : index
    %c0_343 = arith.constant 0 : index
    %272 = vector.load %arg10[%c2_340, %c2_341, %c0_342, %c0_343] : memref<3x3x32x32xf32, #tpu.memory_space<vmem>>, vector<1x1x32x32xf32>
    %273 = vector.shape_cast %272 : vector<1x1x32x32xf32> to vector<32x32xf32>
    %cst_344 = arith.constant dense<0.000000e+00> : vector<64x32xf32>
    %274 = tpu.matmul %271, %273, %cst_344 {dimension_numbers = #tpu.dot_dimension_numbers<[1], [0], [0], [1], [0, 0, 1, 1], [], []>} : vector<64x32xf32>, vector<32x32xf32>, vector<64x32xf32> -> vector<64x32xf32>
    %275 = arith.addf %269, %274 : vector<64x32xf32>
    %c0_345 = arith.constant 0 : index
    %c0_346 = arith.constant 0 : index
    %276 = vector.load %arg11[%c0_345, %c0_346] : memref<1x32xf32, #tpu.memory_space<vmem>>, vector<1x32xf32>
    %277 = vector.broadcast %276 : vector<1x32xf32> to vector<64x32xf32>
    %278 = arith.addf %275, %277 : vector<64x32xf32>
    %cst_347 = arith.constant 0.000000e+00 : f32
    %279 = vector.broadcast %cst_347 : f32 to vector<64x32xf32>
    %280 = arith.cmpf oge, %278, %279 : vector<64x32xf32>
    %cst_348 = arith.constant 2.000000e-01 : f32
    %281 = vector.broadcast %cst_348 : f32 to vector<64x32xf32>
    %282 = arith.mulf %281, %278 : vector<64x32xf32>
    %283 = arith.select %280, %278, %282 : vector<64x32xi1>, vector<64x32xf32>
    %c0_349 = arith.constant 0 : index
    %c0_350 = arith.constant 0 : index
    %284 = vector.load %arg19[%c0_349, %c0_350] : memref<16x64xf32, #tpu.memory_space<vmem>>, vector<16x64xf32>
    %cst_351 = arith.constant dense<0.000000e+00> : vector<16x32xf32>
    %285 = tpu.matmul %284, %283, %cst_351 {dimension_numbers = #tpu.dot_dimension_numbers<[1], [0], [0], [1], [0, 0, 1, 1], [], []>} : vector<16x64xf32>, vector<64x32xf32>, vector<16x32xf32> -> vector<16x32xf32>
    %286 = vector.extract_strided_slice %285 {offsets = [0, 0], sizes = [4, 32], strides = [1, 1]} : vector<16x32xf32> to vector<4x32xf32>
    %c1_352 = arith.constant 1 : index
    %c1_353 = arith.constant 1 : index
    %c0_354 = arith.constant 0 : index
    %287 = vector.load %arg25[%c1_352, %c1_353, %c0_354] : memref<6x6x32xf32, #tpu.memory_space<vmem>>, vector<1x4x32xf32>
    %288 = vector.shape_cast %287 : vector<1x4x32xf32> to vector<4x32xf32>
    %289 = vector.shape_cast %286 : vector<4x32xf32> to vector<1x4x32xf32>
    tpu.vector_store %arg25[%c1_352, %c1_353, %c0_354], %289 {strides = array<i32>} : memref<6x6x32xf32, #tpu.memory_space<vmem>>, vector<1x4x32xf32>,
    %290 = vector.extract_strided_slice %285 {offsets = [4, 0], sizes = [4, 32], strides = [1, 1]} : vector<16x32xf32> to vector<4x32xf32>
    %c2_355 = arith.constant 2 : index
    %c1_356 = arith.constant 1 : index
    %c0_357 = arith.constant 0 : index
    %291 = vector.load %arg25[%c2_355, %c1_356, %c0_357] : memref<6x6x32xf32, #tpu.memory_space<vmem>>, vector<1x4x32xf32>
    %292 = vector.shape_cast %291 : vector<1x4x32xf32> to vector<4x32xf32>
    %293 = vector.shape_cast %290 : vector<4x32xf32> to vector<1x4x32xf32>
    tpu.vector_store %arg25[%c2_355, %c1_356, %c0_357], %293 {strides = array<i32>} : memref<6x6x32xf32, #tpu.memory_space<vmem>>, vector<1x4x32xf32>,
    %294 = vector.extract_strided_slice %285 {offsets = [8, 0], sizes = [4, 32], strides = [1, 1]} : vector<16x32xf32> to vector<4x32xf32>
    %c3 = arith.constant 3 : index
    %c1_358 = arith.constant 1 : index
    %c0_359 = arith.constant 0 : index
    %295 = vector.load %arg25[%c3, %c1_358, %c0_359] : memref<6x6x32xf32, #tpu.memory_space<vmem>>, vector<1x4x32xf32>
    %296 = vector.shape_cast %295 : vector<1x4x32xf32> to vector<4x32xf32>
    %297 = vector.shape_cast %294 : vector<4x32xf32> to vector<1x4x32xf32>
    tpu.vector_store %arg25[%c3, %c1_358, %c0_359], %297 {strides = array<i32>} : memref<6x6x32xf32, #tpu.memory_space<vmem>>, vector<1x4x32xf32>,
    %298 = vector.extract_strided_slice %285 {offsets = [12, 0], sizes = [4, 32], strides = [1, 1]} : vector<16x32xf32> to vector<4x32xf32>
    %c4 = arith.constant 4 : index
    %c1_360 = arith.constant 1 : index
    %c0_361 = arith.constant 0 : index
    %299 = vector.load %arg25[%c4, %c1_360, %c0_361] : memref<6x6x32xf32, #tpu.memory_space<vmem>>, vector<1x4x32xf32>
    %300 = vector.shape_cast %299 : vector<1x4x32xf32> to vector<4x32xf32>
    %301 = vector.shape_cast %298 : vector<4x32xf32> to vector<1x4x32xf32>
    tpu.vector_store %arg25[%c4, %c1_360, %c0_361], %301 {strides = array<i32>} : memref<6x6x32xf32, #tpu.memory_space<vmem>>, vector<1x4x32xf32>,
    %cst_362 = arith.constant 0.000000e+00 : f32
    %302 = vector.broadcast %cst_362 : f32 to vector<1x32xf32>
    %cst_363 = arith.constant 0.000000e+00 : f32
    %303 = vector.broadcast %cst_363 : f32 to vector<4x32xf32>
    %c0_364 = arith.constant 0 : index
    %c0_365 = arith.constant 0 : index
    %c0_366 = arith.constant 0 : index
    %304 = vector.load %arg25[%c0_364, %c0_365, %c0_366] : memref<6x6x32xf32, #tpu.memory_space<vmem>>, vector<1x4x32xf32>
    %305 = vector.shape_cast %304 : vector<1x4x32xf32> to vector<4x32xf32>
    %c0_367 = arith.constant 0 : index
    %c0_368 = arith.constant 0 : index
    %c0_369 = arith.constant 0 : index
    %c0_370 = arith.constant 0 : index
    %306 = vector.load %arg12[%c0_367, %c0_368, %c0_369, %c0_370] : memref<3x3x32x32xf32, #tpu.memory_space<vmem>>, vector<1x1x32x32xf32>
    %307 = vector.shape_cast %306 : vector<1x1x32x32xf32> to vector<32x32xf32>
    %cst_371 = arith.constant dense<0.000000e+00> : vector<4x32xf32>
    %308 = tpu.matmul %305, %307, %cst_371 {dimension_numbers = #tpu.dot_dimension_numbers<[1], [0], [0], [1], [0, 0, 1, 1], [], []>} : vector<4x32xf32>, vector<32x32xf32>, vector<4x32xf32> -> vector<4x32xf32>
    %309 = arith.addf %303, %308 : vector<4x32xf32>
    %c0_372 = arith.constant 0 : index
    %c1_373 = arith.constant 1 : index
    %c0_374 = arith.constant 0 : index
    %310 = vector.load %arg25[%c0_372, %c1_373, %c0_374] : memref<6x6x32xf32, #tpu.memory_space<vmem>>, vector<1x4x32xf32>
    %311 = vector.shape_cast %310 : vector<1x4x32xf32> to vector<4x32xf32>
    %c0_375 = arith.constant 0 : index
    %c1_376 = arith.constant 1 : index
    %c0_377 = arith.constant 0 : index
    %c0_378 = arith.constant 0 : index
    %312 = vector.load %arg12[%c0_375, %c1_376, %c0_377, %c0_378] : memref<3x3x32x32xf32, #tpu.memory_space<vmem>>, vector<1x1x32x32xf32>
    %313 = vector.shape_cast %312 : vector<1x1x32x32xf32> to vector<32x32xf32>
    %cst_379 = arith.constant dense<0.000000e+00> : vector<4x32xf32>
    %314 = tpu.matmul %311, %313, %cst_379 {dimension_numbers = #tpu.dot_dimension_numbers<[1], [0], [0], [1], [0, 0, 1, 1], [], []>} : vector<4x32xf32>, vector<32x32xf32>, vector<4x32xf32> -> vector<4x32xf32>
    %315 = arith.addf %309, %314 : vector<4x32xf32>
    %c0_380 = arith.constant 0 : index
    %c2_381 = arith.constant 2 : index
    %c0_382 = arith.constant 0 : index
    %316 = vector.load %arg25[%c0_380, %c2_381, %c0_382] : memref<6x6x32xf32, #tpu.memory_space<vmem>>, vector<1x4x32xf32>
    %317 = vector.shape_cast %316 : vector<1x4x32xf32> to vector<4x32xf32>
    %c0_383 = arith.constant 0 : index
    %c2_384 = arith.constant 2 : index
    %c0_385 = arith.constant 0 : index
    %c0_386 = arith.constant 0 : index
    %318 = vector.load %arg12[%c0_383, %c2_384, %c0_385, %c0_386] : memref<3x3x32x32xf32, #tpu.memory_space<vmem>>, vector<1x1x32x32xf32>
    %319 = vector.shape_cast %318 : vector<1x1x32x32xf32> to vector<32x32xf32>
    %cst_387 = arith.constant dense<0.000000e+00> : vector<4x32xf32>
    %320 = tpu.matmul %317, %319, %cst_387 {dimension_numbers = #tpu.dot_dimension_numbers<[1], [0], [0], [1], [0, 0, 1, 1], [], []>} : vector<4x32xf32>, vector<32x32xf32>, vector<4x32xf32> -> vector<4x32xf32>
    %321 = arith.addf %315, %320 : vector<4x32xf32>
    %c1_388 = arith.constant 1 : index
    %c0_389 = arith.constant 0 : index
    %c0_390 = arith.constant 0 : index
    %322 = vector.load %arg25[%c1_388, %c0_389, %c0_390] : memref<6x6x32xf32, #tpu.memory_space<vmem>>, vector<1x4x32xf32>
    %323 = vector.shape_cast %322 : vector<1x4x32xf32> to vector<4x32xf32>
    %c1_391 = arith.constant 1 : index
    %c0_392 = arith.constant 0 : index
    %c0_393 = arith.constant 0 : index
    %c0_394 = arith.constant 0 : index
    %324 = vector.load %arg12[%c1_391, %c0_392, %c0_393, %c0_394] : memref<3x3x32x32xf32, #tpu.memory_space<vmem>>, vector<1x1x32x32xf32>
    %325 = vector.shape_cast %324 : vector<1x1x32x32xf32> to vector<32x32xf32>
    %cst_395 = arith.constant dense<0.000000e+00> : vector<4x32xf32>
    %326 = tpu.matmul %323, %325, %cst_395 {dimension_numbers = #tpu.dot_dimension_numbers<[1], [0], [0], [1], [0, 0, 1, 1], [], []>} : vector<4x32xf32>, vector<32x32xf32>, vector<4x32xf32> -> vector<4x32xf32>
    %327 = arith.addf %321, %326 : vector<4x32xf32>
    %c1_396 = arith.constant 1 : index
    %c1_397 = arith.constant 1 : index
    %c0_398 = arith.constant 0 : index
    %328 = vector.load %arg25[%c1_396, %c1_397, %c0_398] : memref<6x6x32xf32, #tpu.memory_space<vmem>>, vector<1x4x32xf32>
    %329 = vector.shape_cast %328 : vector<1x4x32xf32> to vector<4x32xf32>
    %c1_399 = arith.constant 1 : index
    %c1_400 = arith.constant 1 : index
    %c0_401 = arith.constant 0 : index
    %c0_402 = arith.constant 0 : index
    %330 = vector.load %arg12[%c1_399, %c1_400, %c0_401, %c0_402] : memref<3x3x32x32xf32, #tpu.memory_space<vmem>>, vector<1x1x32x32xf32>
    %331 = vector.shape_cast %330 : vector<1x1x32x32xf32> to vector<32x32xf32>
    %cst_403 = arith.constant dense<0.000000e+00> : vector<4x32xf32>
    %332 = tpu.matmul %329, %331, %cst_403 {dimension_numbers = #tpu.dot_dimension_numbers<[1], [0], [0], [1], [0, 0, 1, 1], [], []>} : vector<4x32xf32>, vector<32x32xf32>, vector<4x32xf32> -> vector<4x32xf32>
    %333 = arith.addf %327, %332 : vector<4x32xf32>
    %c1_404 = arith.constant 1 : index
    %c2_405 = arith.constant 2 : index
    %c0_406 = arith.constant 0 : index
    %334 = vector.load %arg25[%c1_404, %c2_405, %c0_406] : memref<6x6x32xf32, #tpu.memory_space<vmem>>, vector<1x4x32xf32>
    %335 = vector.shape_cast %334 : vector<1x4x32xf32> to vector<4x32xf32>
    %c1_407 = arith.constant 1 : index
    %c2_408 = arith.constant 2 : index
    %c0_409 = arith.constant 0 : index
    %c0_410 = arith.constant 0 : index
    %336 = vector.load %arg12[%c1_407, %c2_408, %c0_409, %c0_410] : memref<3x3x32x32xf32, #tpu.memory_space<vmem>>, vector<1x1x32x32xf32>
    %337 = vector.shape_cast %336 : vector<1x1x32x32xf32> to vector<32x32xf32>
    %cst_411 = arith.constant dense<0.000000e+00> : vector<4x32xf32>
    %338 = tpu.matmul %335, %337, %cst_411 {dimension_numbers = #tpu.dot_dimension_numbers<[1], [0], [0], [1], [0, 0, 1, 1], [], []>} : vector<4x32xf32>, vector<32x32xf32>, vector<4x32xf32> -> vector<4x32xf32>
    %339 = arith.addf %333, %338 : vector<4x32xf32>
    %c2_412 = arith.constant 2 : index
    %c0_413 = arith.constant 0 : index
    %c0_414 = arith.constant 0 : index
    %340 = vector.load %arg25[%c2_412, %c0_413, %c0_414] : memref<6x6x32xf32, #tpu.memory_space<vmem>>, vector<1x4x32xf32>
    %341 = vector.shape_cast %340 : vector<1x4x32xf32> to vector<4x32xf32>
    %c2_415 = arith.constant 2 : index
    %c0_416 = arith.constant 0 : index
    %c0_417 = arith.constant 0 : index
    %c0_418 = arith.constant 0 : index
    %342 = vector.load %arg12[%c2_415, %c0_416, %c0_417, %c0_418] : memref<3x3x32x32xf32, #tpu.memory_space<vmem>>, vector<1x1x32x32xf32>
    %343 = vector.shape_cast %342 : vector<1x1x32x32xf32> to vector<32x32xf32>
    %cst_419 = arith.constant dense<0.000000e+00> : vector<4x32xf32>
    %344 = tpu.matmul %341, %343, %cst_419 {dimension_numbers = #tpu.dot_dimension_numbers<[1], [0], [0], [1], [0, 0, 1, 1], [], []>} : vector<4x32xf32>, vector<32x32xf32>, vector<4x32xf32> -> vector<4x32xf32>
    %345 = arith.addf %339, %344 : vector<4x32xf32>
    %c2_420 = arith.constant 2 : index
    %c1_421 = arith.constant 1 : index
    %c0_422 = arith.constant 0 : index
    %346 = vector.load %arg25[%c2_420, %c1_421, %c0_422] : memref<6x6x32xf32, #tpu.memory_space<vmem>>, vector<1x4x32xf32>
    %347 = vector.shape_cast %346 : vector<1x4x32xf32> to vector<4x32xf32>
    %c2_423 = arith.constant 2 : index
    %c1_424 = arith.constant 1 : index
    %c0_425 = arith.constant 0 : index
    %c0_426 = arith.constant 0 : index
    %348 = vector.load %arg12[%c2_423, %c1_424, %c0_425, %c0_426] : memref<3x3x32x32xf32, #tpu.memory_space<vmem>>, vector<1x1x32x32xf32>
    %349 = vector.shape_cast %348 : vector<1x1x32x32xf32> to vector<32x32xf32>
    %cst_427 = arith.constant dense<0.000000e+00> : vector<4x32xf32>
    %350 = tpu.matmul %347, %349, %cst_427 {dimension_numbers = #tpu.dot_dimension_numbers<[1], [0], [0], [1], [0, 0, 1, 1], [], []>} : vector<4x32xf32>, vector<32x32xf32>, vector<4x32xf32> -> vector<4x32xf32>
    %351 = arith.addf %345, %350 : vector<4x32xf32>
    %c2_428 = arith.constant 2 : index
    %c2_429 = arith.constant 2 : index
    %c0_430 = arith.constant 0 : index
    %352 = vector.load %arg25[%c2_428, %c2_429, %c0_430] : memref<6x6x32xf32, #tpu.memory_space<vmem>>, vector<1x4x32xf32>
    %353 = vector.shape_cast %352 : vector<1x4x32xf32> to vector<4x32xf32>
    %c2_431 = arith.constant 2 : index
    %c2_432 = arith.constant 2 : index
    %c0_433 = arith.constant 0 : index
    %c0_434 = arith.constant 0 : index
    %354 = vector.load %arg12[%c2_431, %c2_432, %c0_433, %c0_434] : memref<3x3x32x32xf32, #tpu.memory_space<vmem>>, vector<1x1x32x32xf32>
    %355 = vector.shape_cast %354 : vector<1x1x32x32xf32> to vector<32x32xf32>
    %cst_435 = arith.constant dense<0.000000e+00> : vector<4x32xf32>
    %356 = tpu.matmul %353, %355, %cst_435 {dimension_numbers = #tpu.dot_dimension_numbers<[1], [0], [0], [1], [0, 0, 1, 1], [], []>} : vector<4x32xf32>, vector<32x32xf32>, vector<4x32xf32> -> vector<4x32xf32>
    %357 = arith.addf %351, %356 : vector<4x32xf32>
    %c0_436 = arith.constant 0 : index
    %c0_437 = arith.constant 0 : index
    %358 = vector.load %arg13[%c0_436, %c0_437] : memref<1x32xf32, #tpu.memory_space<vmem>>, vector<1x32xf32>
    %359 = vector.broadcast %358 : vector<1x32xf32> to vector<4x32xf32>
    %360 = arith.addf %357, %359 : vector<4x32xf32>
    %cst_438 = arith.constant 0.000000e+00 : f32
    %361 = vector.broadcast %cst_438 : f32 to vector<4x32xf32>
    %362 = arith.cmpf oge, %360, %361 : vector<4x32xf32>
    %cst_439 = arith.constant 2.000000e-01 : f32
    %363 = vector.broadcast %cst_439 : f32 to vector<4x32xf32>
    %364 = arith.mulf %363, %360 : vector<4x32xf32>
    %365 = arith.select %362, %360, %364 : vector<4x32xi1>, vector<4x32xf32>
    %366 = vector.extract_strided_slice %365 {offsets = [0, 0], sizes = [1, 32], strides = [1, 1]} : vector<4x32xf32> to vector<1x32xf32>
    %c0_440 = arith.constant 0 : index
    %c0_441 = arith.constant 0 : index
    %c0_442 = arith.constant 0 : index
    %c0_443 = arith.constant 0 : index
    %367 = vector.load %arg14[%c0_440, %c0_441, %c0_442, %c0_443] : memref<4x4x32x32xf32, #tpu.memory_space<vmem>>, vector<1x1x32x32xf32>
    %368 = vector.shape_cast %367 : vector<1x1x32x32xf32> to vector<32x32xf32>
    %cst_444 = arith.constant dense<0.000000e+00> : vector<1x32xf32>
    %369 = tpu.matmul %366, %368, %cst_444 {dimension_numbers = #tpu.dot_dimension_numbers<[1], [0], [0], [1], [0, 0, 1, 1], [], []>} : vector<1x32xf32>, vector<32x32xf32>, vector<1x32xf32> -> vector<1x32xf32>
    %370 = arith.addf %302, %369 : vector<1x32xf32>
    %371 = vector.extract_strided_slice %365 {offsets = [1, 0], sizes = [1, 32], strides = [1, 1]} : vector<4x32xf32> to vector<1x32xf32>
    %c0_445 = arith.constant 0 : index
    %c1_446 = arith.constant 1 : index
    %c0_447 = arith.constant 0 : index
    %c0_448 = arith.constant 0 : index
    %372 = vector.load %arg14[%c0_445, %c1_446, %c0_447, %c0_448] : memref<4x4x32x32xf32, #tpu.memory_space<vmem>>, vector<1x1x32x32xf32>
    %373 = vector.shape_cast %372 : vector<1x1x32x32xf32> to vector<32x32xf32>
    %cst_449 = arith.constant dense<0.000000e+00> : vector<1x32xf32>
    %374 = tpu.matmul %371, %373, %cst_449 {dimension_numbers = #tpu.dot_dimension_numbers<[1], [0], [0], [1], [0, 0, 1, 1], [], []>} : vector<1x32xf32>, vector<32x32xf32>, vector<1x32xf32> -> vector<1x32xf32>
    %375 = arith.addf %370, %374 : vector<1x32xf32>
    %376 = vector.extract_strided_slice %365 {offsets = [2, 0], sizes = [1, 32], strides = [1, 1]} : vector<4x32xf32> to vector<1x32xf32>
    %c0_450 = arith.constant 0 : index
    %c2_451 = arith.constant 2 : index
    %c0_452 = arith.constant 0 : index
    %c0_453 = arith.constant 0 : index
    %377 = vector.load %arg14[%c0_450, %c2_451, %c0_452, %c0_453] : memref<4x4x32x32xf32, #tpu.memory_space<vmem>>, vector<1x1x32x32xf32>
    %378 = vector.shape_cast %377 : vector<1x1x32x32xf32> to vector<32x32xf32>
    %cst_454 = arith.constant dense<0.000000e+00> : vector<1x32xf32>
    %379 = tpu.matmul %376, %378, %cst_454 {dimension_numbers = #tpu.dot_dimension_numbers<[1], [0], [0], [1], [0, 0, 1, 1], [], []>} : vector<1x32xf32>, vector<32x32xf32>, vector<1x32xf32> -> vector<1x32xf32>
    %380 = arith.addf %375, %379 : vector<1x32xf32>
    %381 = vector.extract_strided_slice %365 {offsets = [3, 0], sizes = [1, 32], strides = [1, 1]} : vector<4x32xf32> to vector<1x32xf32>
    %c0_455 = arith.constant 0 : index
    %c3_456 = arith.constant 3 : index
    %c0_457 = arith.constant 0 : index
    %c0_458 = arith.constant 0 : index
    %382 = vector.load %arg14[%c0_455, %c3_456, %c0_457, %c0_458] : memref<4x4x32x32xf32, #tpu.memory_space<vmem>>, vector<1x1x32x32xf32>
    %383 = vector.shape_cast %382 : vector<1x1x32x32xf32> to vector<32x32xf32>
    %cst_459 = arith.constant dense<0.000000e+00> : vector<1x32xf32>
    %384 = tpu.matmul %381, %383, %cst_459 {dimension_numbers = #tpu.dot_dimension_numbers<[1], [0], [0], [1], [0, 0, 1, 1], [], []>} : vector<1x32xf32>, vector<32x32xf32>, vector<1x32xf32> -> vector<1x32xf32>
    %385 = arith.addf %380, %384 : vector<1x32xf32>
    %cst_460 = arith.constant 0.000000e+00 : f32
    %386 = vector.broadcast %cst_460 : f32 to vector<4x32xf32>
    %c1_461 = arith.constant 1 : index
    %c0_462 = arith.constant 0 : index
    %c0_463 = arith.constant 0 : index
    %387 = vector.load %arg25[%c1_461, %c0_462, %c0_463] : memref<6x6x32xf32, #tpu.memory_space<vmem>>, vector<1x4x32xf32>
    %388 = vector.shape_cast %387 : vector<1x4x32xf32> to vector<4x32xf32>
    %c0_464 = arith.constant 0 : index
    %c0_465 = arith.constant 0 : index
    %c0_466 = arith.constant 0 : index
    %c0_467 = arith.constant 0 : index
    %389 = vector.load %arg12[%c0_464, %c0_465, %c0_466, %c0_467] : memref<3x3x32x32xf32, #tpu.memory_space<vmem>>, vector<1x1x32x32xf32>
    %390 = vector.shape_cast %389 : vector<1x1x32x32xf32> to vector<32x32xf32>
    %cst_468 = arith.constant dense<0.000000e+00> : vector<4x32xf32>
    %391 = tpu.matmul %388, %390, %cst_468 {dimension_numbers = #tpu.dot_dimension_numbers<[1], [0], [0], [1], [0, 0, 1, 1], [], []>} : vector<4x32xf32>, vector<32x32xf32>, vector<4x32xf32> -> vector<4x32xf32>
    %392 = arith.addf %386, %391 : vector<4x32xf32>
    %c1_469 = arith.constant 1 : index
    %c1_470 = arith.constant 1 : index
    %c0_471 = arith.constant 0 : index
    %393 = vector.load %arg25[%c1_469, %c1_470, %c0_471] : memref<6x6x32xf32, #tpu.memory_space<vmem>>, vector<1x4x32xf32>
    %394 = vector.shape_cast %393 : vector<1x4x32xf32> to vector<4x32xf32>
    %c0_472 = arith.constant 0 : index
    %c1_473 = arith.constant 1 : index
    %c0_474 = arith.constant 0 : index
    %c0_475 = arith.constant 0 : index
    %395 = vector.load %arg12[%c0_472, %c1_473, %c0_474, %c0_475] : memref<3x3x32x32xf32, #tpu.memory_space<vmem>>, vector<1x1x32x32xf32>
    %396 = vector.shape_cast %395 : vector<1x1x32x32xf32> to vector<32x32xf32>
    %cst_476 = arith.constant dense<0.000000e+00> : vector<4x32xf32>
    %397 = tpu.matmul %394, %396, %cst_476 {dimension_numbers = #tpu.dot_dimension_numbers<[1], [0], [0], [1], [0, 0, 1, 1], [], []>} : vector<4x32xf32>, vector<32x32xf32>, vector<4x32xf32> -> vector<4x32xf32>
    %398 = arith.addf %392, %397 : vector<4x32xf32>
    %c1_477 = arith.constant 1 : index
    %c2_478 = arith.constant 2 : index
    %c0_479 = arith.constant 0 : index
    %399 = vector.load %arg25[%c1_477, %c2_478, %c0_479] : memref<6x6x32xf32, #tpu.memory_space<vmem>>, vector<1x4x32xf32>
    %400 = vector.shape_cast %399 : vector<1x4x32xf32> to vector<4x32xf32>
    %c0_480 = arith.constant 0 : index
    %c2_481 = arith.constant 2 : index
    %c0_482 = arith.constant 0 : index
    %c0_483 = arith.constant 0 : index
    %401 = vector.load %arg12[%c0_480, %c2_481, %c0_482, %c0_483] : memref<3x3x32x32xf32, #tpu.memory_space<vmem>>, vector<1x1x32x32xf32>
    %402 = vector.shape_cast %401 : vector<1x1x32x32xf32> to vector<32x32xf32>
    %cst_484 = arith.constant dense<0.000000e+00> : vector<4x32xf32>
    %403 = tpu.matmul %400, %402, %cst_484 {dimension_numbers = #tpu.dot_dimension_numbers<[1], [0], [0], [1], [0, 0, 1, 1], [], []>} : vector<4x32xf32>, vector<32x32xf32>, vector<4x32xf32> -> vector<4x32xf32>
    %404 = arith.addf %398, %403 : vector<4x32xf32>
    %c2_485 = arith.constant 2 : index
    %c0_486 = arith.constant 0 : index
    %c0_487 = arith.constant 0 : index
    %405 = vector.load %arg25[%c2_485, %c0_486, %c0_487] : memref<6x6x32xf32, #tpu.memory_space<vmem>>, vector<1x4x32xf32>
    %406 = vector.shape_cast %405 : vector<1x4x32xf32> to vector<4x32xf32>
    %c1_488 = arith.constant 1 : index
    %c0_489 = arith.constant 0 : index
    %c0_490 = arith.constant 0 : index
    %c0_491 = arith.constant 0 : index
    %407 = vector.load %arg12[%c1_488, %c0_489, %c0_490, %c0_491] : memref<3x3x32x32xf32, #tpu.memory_space<vmem>>, vector<1x1x32x32xf32>
    %408 = vector.shape_cast %407 : vector<1x1x32x32xf32> to vector<32x32xf32>
    %cst_492 = arith.constant dense<0.000000e+00> : vector<4x32xf32>
    %409 = tpu.matmul %406, %408, %cst_492 {dimension_numbers = #tpu.dot_dimension_numbers<[1], [0], [0], [1], [0, 0, 1, 1], [], []>} : vector<4x32xf32>, vector<32x32xf32>, vector<4x32xf32> -> vector<4x32xf32>
    %410 = arith.addf %404, %409 : vector<4x32xf32>
    %c2_493 = arith.constant 2 : index
    %c1_494 = arith.constant 1 : index
    %c0_495 = arith.constant 0 : index
    %411 = vector.load %arg25[%c2_493, %c1_494, %c0_495] : memref<6x6x32xf32, #tpu.memory_space<vmem>>, vector<1x4x32xf32>
    %412 = vector.shape_cast %411 : vector<1x4x32xf32> to vector<4x32xf32>
    %c1_496 = arith.constant 1 : index
    %c1_497 = arith.constant 1 : index
    %c0_498 = arith.constant 0 : index
    %c0_499 = arith.constant 0 : index
    %413 = vector.load %arg12[%c1_496, %c1_497, %c0_498, %c0_499] : memref<3x3x32x32xf32, #tpu.memory_space<vmem>>, vector<1x1x32x32xf32>
    %414 = vector.shape_cast %413 : vector<1x1x32x32xf32> to vector<32x32xf32>
    %cst_500 = arith.constant dense<0.000000e+00> : vector<4x32xf32>
    %415 = tpu.matmul %412, %414, %cst_500 {dimension_numbers = #tpu.dot_dimension_numbers<[1], [0], [0], [1], [0, 0, 1, 1], [], []>} : vector<4x32xf32>, vector<32x32xf32>, vector<4x32xf32> -> vector<4x32xf32>
    %416 = arith.addf %410, %415 : vector<4x32xf32>
    %c2_501 = arith.constant 2 : index
    %c2_502 = arith.constant 2 : index
    %c0_503 = arith.constant 0 : index
    %417 = vector.load %arg25[%c2_501, %c2_502, %c0_503] : memref<6x6x32xf32, #tpu.memory_space<vmem>>, vector<1x4x32xf32>
    %418 = vector.shape_cast %417 : vector<1x4x32xf32> to vector<4x32xf32>
    %c1_504 = arith.constant 1 : index
    %c2_505 = arith.constant 2 : index
    %c0_506 = arith.constant 0 : index
    %c0_507 = arith.constant 0 : index
    %419 = vector.load %arg12[%c1_504, %c2_505, %c0_506, %c0_507] : memref<3x3x32x32xf32, #tpu.memory_space<vmem>>, vector<1x1x32x32xf32>
    %420 = vector.shape_cast %419 : vector<1x1x32x32xf32> to vector<32x32xf32>
    %cst_508 = arith.constant dense<0.000000e+00> : vector<4x32xf32>
    %421 = tpu.matmul %418, %420, %cst_508 {dimension_numbers = #tpu.dot_dimension_numbers<[1], [0], [0], [1], [0, 0, 1, 1], [], []>} : vector<4x32xf32>, vector<32x32xf32>, vector<4x32xf32> -> vector<4x32xf32>
    %422 = arith.addf %416, %421 : vector<4x32xf32>
    %c3_509 = arith.constant 3 : index
    %c0_510 = arith.constant 0 : index
    %c0_511 = arith.constant 0 : index
    %423 = vector.load %arg25[%c3_509, %c0_510, %c0_511] : memref<6x6x32xf32, #tpu.memory_space<vmem>>, vector<1x4x32xf32>
    %424 = vector.shape_cast %423 : vector<1x4x32xf32> to vector<4x32xf32>
    %c2_512 = arith.constant 2 : index
    %c0_513 = arith.constant 0 : index
    %c0_514 = arith.constant 0 : index
    %c0_515 = arith.constant 0 : index
    %425 = vector.load %arg12[%c2_512, %c0_513, %c0_514, %c0_515] : memref<3x3x32x32xf32, #tpu.memory_space<vmem>>, vector<1x1x32x32xf32>
    %426 = vector.shape_cast %425 : vector<1x1x32x32xf32> to vector<32x32xf32>
    %cst_516 = arith.constant dense<0.000000e+00> : vector<4x32xf32>
    %427 = tpu.matmul %424, %426, %cst_516 {dimension_numbers = #tpu.dot_dimension_numbers<[1], [0], [0], [1], [0, 0, 1, 1], [], []>} : vector<4x32xf32>, vector<32x32xf32>, vector<4x32xf32> -> vector<4x32xf32>
    %428 = arith.addf %422, %427 : vector<4x32xf32>
    %c3_517 = arith.constant 3 : index
    %c1_518 = arith.constant 1 : index
    %c0_519 = arith.constant 0 : index
    %429 = vector.load %arg25[%c3_517, %c1_518, %c0_519] : memref<6x6x32xf32, #tpu.memory_space<vmem>>, vector<1x4x32xf32>
    %430 = vector.shape_cast %429 : vector<1x4x32xf32> to vector<4x32xf32>
    %c2_520 = arith.constant 2 : index
    %c1_521 = arith.constant 1 : index
    %c0_522 = arith.constant 0 : index
    %c0_523 = arith.constant 0 : index
    %431 = vector.load %arg12[%c2_520, %c1_521, %c0_522, %c0_523] : memref<3x3x32x32xf32, #tpu.memory_space<vmem>>, vector<1x1x32x32xf32>
    %432 = vector.shape_cast %431 : vector<1x1x32x32xf32> to vector<32x32xf32>
    %cst_524 = arith.constant dense<0.000000e+00> : vector<4x32xf32>
    %433 = tpu.matmul %430, %432, %cst_524 {dimension_numbers = #tpu.dot_dimension_numbers<[1], [0], [0], [1], [0, 0, 1, 1], [], []>} : vector<4x32xf32>, vector<32x32xf32>, vector<4x32xf32> -> vector<4x32xf32>
    %434 = arith.addf %428, %433 : vector<4x32xf32>
    %c3_525 = arith.constant 3 : index
    %c2_526 = arith.constant 2 : index
    %c0_527 = arith.constant 0 : index
    %435 = vector.load %arg25[%c3_525, %c2_526, %c0_527] : memref<6x6x32xf32, #tpu.memory_space<vmem>>, vector<1x4x32xf32>
    %436 = vector.shape_cast %435 : vector<1x4x32xf32> to vector<4x32xf32>
    %c2_528 = arith.constant 2 : index
    %c2_529 = arith.constant 2 : index
    %c0_530 = arith.constant 0 : index
    %c0_531 = arith.constant 0 : index
    %437 = vector.load %arg12[%c2_528, %c2_529, %c0_530, %c0_531] : memref<3x3x32x32xf32, #tpu.memory_space<vmem>>, vector<1x1x32x32xf32>
    %438 = vector.shape_cast %437 : vector<1x1x32x32xf32> to vector<32x32xf32>
    %cst_532 = arith.constant dense<0.000000e+00> : vector<4x32xf32>
    %439 = tpu.matmul %436, %438, %cst_532 {dimension_numbers = #tpu.dot_dimension_numbers<[1], [0], [0], [1], [0, 0, 1, 1], [], []>} : vector<4x32xf32>, vector<32x32xf32>, vector<4x32xf32> -> vector<4x32xf32>
    %440 = arith.addf %434, %439 : vector<4x32xf32>
    %c0_533 = arith.constant 0 : index
    %c0_534 = arith.constant 0 : index
    %441 = vector.load %arg13[%c0_533, %c0_534] : memref<1x32xf32, #tpu.memory_space<vmem>>, vector<1x32xf32>
    %442 = vector.broadcast %441 : vector<1x32xf32> to vector<4x32xf32>
    %443 = arith.addf %440, %442 : vector<4x32xf32>
    %cst_535 = arith.constant 0.000000e+00 : f32
    %444 = vector.broadcast %cst_535 : f32 to vector<4x32xf32>
    %445 = arith.cmpf oge, %443, %444 : vector<4x32xf32>
    %cst_536 = arith.constant 2.000000e-01 : f32
    %446 = vector.broadcast %cst_536 : f32 to vector<4x32xf32>
    %447 = arith.mulf %446, %443 : vector<4x32xf32>
    %448 = arith.select %445, %443, %447 : vector<4x32xi1>, vector<4x32xf32>
    %449 = vector.extract_strided_slice %448 {offsets = [0, 0], sizes = [1, 32], strides = [1, 1]} : vector<4x32xf32> to vector<1x32xf32>
    %c1_537 = arith.constant 1 : index
    %c0_538 = arith.constant 0 : index
    %c0_539 = arith.constant 0 : index
    %c0_540 = arith.constant 0 : index
    %450 = vector.load %arg14[%c1_537, %c0_538, %c0_539, %c0_540] : memref<4x4x32x32xf32, #tpu.memory_space<vmem>>, vector<1x1x32x32xf32>
    %451 = vector.shape_cast %450 : vector<1x1x32x32xf32> to vector<32x32xf32>
    %cst_541 = arith.constant dense<0.000000e+00> : vector<1x32xf32>
    %452 = tpu.matmul %449, %451, %cst_541 {dimension_numbers = #tpu.dot_dimension_numbers<[1], [0], [0], [1], [0, 0, 1, 1], [], []>} : vector<1x32xf32>, vector<32x32xf32>, vector<1x32xf32> -> vector<1x32xf32>
    %453 = arith.addf %385, %452 : vector<1x32xf32>
    %454 = vector.extract_strided_slice %448 {offsets = [1, 0], sizes = [1, 32], strides = [1, 1]} : vector<4x32xf32> to vector<1x32xf32>
    %c1_542 = arith.constant 1 : index
    %c1_543 = arith.constant 1 : index
    %c0_544 = arith.constant 0 : index
    %c0_545 = arith.constant 0 : index
    %455 = vector.load %arg14[%c1_542, %c1_543, %c0_544, %c0_545] : memref<4x4x32x32xf32, #tpu.memory_space<vmem>>, vector<1x1x32x32xf32>
    %456 = vector.shape_cast %455 : vector<1x1x32x32xf32> to vector<32x32xf32>
    %cst_546 = arith.constant dense<0.000000e+00> : vector<1x32xf32>
    %457 = tpu.matmul %454, %456, %cst_546 {dimension_numbers = #tpu.dot_dimension_numbers<[1], [0], [0], [1], [0, 0, 1, 1], [], []>} : vector<1x32xf32>, vector<32x32xf32>, vector<1x32xf32> -> vector<1x32xf32>
    %458 = arith.addf %453, %457 : vector<1x32xf32>
    %459 = vector.extract_strided_slice %448 {offsets = [2, 0], sizes = [1, 32], strides = [1, 1]} : vector<4x32xf32> to vector<1x32xf32>
    %c1_547 = arith.constant 1 : index
    %c2_548 = arith.constant 2 : index
    %c0_549 = arith.constant 0 : index
    %c0_550 = arith.constant 0 : index
    %460 = vector.load %arg14[%c1_547, %c2_548, %c0_549, %c0_550] : memref<4x4x32x32xf32, #tpu.memory_space<vmem>>, vector<1x1x32x32xf32>
    %461 = vector.shape_cast %460 : vector<1x1x32x32xf32> to vector<32x32xf32>
    %cst_551 = arith.constant dense<0.000000e+00> : vector<1x32xf32>
    %462 = tpu.matmul %459, %461, %cst_551 {dimension_numbers = #tpu.dot_dimension_numbers<[1], [0], [0], [1], [0, 0, 1, 1], [], []>} : vector<1x32xf32>, vector<32x32xf32>, vector<1x32xf32> -> vector<1x32xf32>
    %463 = arith.addf %458, %462 : vector<1x32xf32>
    %464 = vector.extract_strided_slice %448 {offsets = [3, 0], sizes = [1, 32], strides = [1, 1]} : vector<4x32xf32> to vector<1x32xf32>
    %c1_552 = arith.constant 1 : index
    %c3_553 = arith.constant 3 : index
    %c0_554 = arith.constant 0 : index
    %c0_555 = arith.constant 0 : index
    %465 = vector.load %arg14[%c1_552, %c3_553, %c0_554, %c0_555] : memref<4x4x32x32xf32, #tpu.memory_space<vmem>>, vector<1x1x32x32xf32>
    %466 = vector.shape_cast %465 : vector<1x1x32x32xf32> to vector<32x32xf32>
    %cst_556 = arith.constant dense<0.000000e+00> : vector<1x32xf32>
    %467 = tpu.matmul %464, %466, %cst_556 {dimension_numbers = #tpu.dot_dimension_numbers<[1], [0], [0], [1], [0, 0, 1, 1], [], []>} : vector<1x32xf32>, vector<32x32xf32>, vector<1x32xf32> -> vector<1x32xf32>
    %468 = arith.addf %463, %467 : vector<1x32xf32>
    %cst_557 = arith.constant 0.000000e+00 : f32
    %469 = vector.broadcast %cst_557 : f32 to vector<4x32xf32>
    %c2_558 = arith.constant 2 : index
    %c0_559 = arith.constant 0 : index
    %c0_560 = arith.constant 0 : index
    %470 = vector.load %arg25[%c2_558, %c0_559, %c0_560] : memref<6x6x32xf32, #tpu.memory_space<vmem>>, vector<1x4x32xf32>
    %471 = vector.shape_cast %470 : vector<1x4x32xf32> to vector<4x32xf32>
    %c0_561 = arith.constant 0 : index
    %c0_562 = arith.constant 0 : index
    %c0_563 = arith.constant 0 : index
    %c0_564 = arith.constant 0 : index
    %472 = vector.load %arg12[%c0_561, %c0_562, %c0_563, %c0_564] : memref<3x3x32x32xf32, #tpu.memory_space<vmem>>, vector<1x1x32x32xf32>
    %473 = vector.shape_cast %472 : vector<1x1x32x32xf32> to vector<32x32xf32>
    %cst_565 = arith.constant dense<0.000000e+00> : vector<4x32xf32>
    %474 = tpu.matmul %471, %473, %cst_565 {dimension_numbers = #tpu.dot_dimension_numbers<[1], [0], [0], [1], [0, 0, 1, 1], [], []>} : vector<4x32xf32>, vector<32x32xf32>, vector<4x32xf32> -> vector<4x32xf32>
    %475 = arith.addf %469, %474 : vector<4x32xf32>
    %c2_566 = arith.constant 2 : index
    %c1_567 = arith.constant 1 : index
    %c0_568 = arith.constant 0 : index
    %476 = vector.load %arg25[%c2_566, %c1_567, %c0_568] : memref<6x6x32xf32, #tpu.memory_space<vmem>>, vector<1x4x32xf32>
    %477 = vector.shape_cast %476 : vector<1x4x32xf32> to vector<4x32xf32>
    %c0_569 = arith.constant 0 : index
    %c1_570 = arith.constant 1 : index
    %c0_571 = arith.constant 0 : index
    %c0_572 = arith.constant 0 : index
    %478 = vector.load %arg12[%c0_569, %c1_570, %c0_571, %c0_572] : memref<3x3x32x32xf32, #tpu.memory_space<vmem>>, vector<1x1x32x32xf32>
    %479 = vector.shape_cast %478 : vector<1x1x32x32xf32> to vector<32x32xf32>
    %cst_573 = arith.constant dense<0.000000e+00> : vector<4x32xf32>
    %480 = tpu.matmul %477, %479, %cst_573 {dimension_numbers = #tpu.dot_dimension_numbers<[1], [0], [0], [1], [0, 0, 1, 1], [], []>} : vector<4x32xf32>, vector<32x32xf32>, vector<4x32xf32> -> vector<4x32xf32>
    %481 = arith.addf %475, %480 : vector<4x32xf32>
    %c2_574 = arith.constant 2 : index
    %c2_575 = arith.constant 2 : index
    %c0_576 = arith.constant 0 : index
    %482 = vector.load %arg25[%c2_574, %c2_575, %c0_576] : memref<6x6x32xf32, #tpu.memory_space<vmem>>, vector<1x4x32xf32>
    %483 = vector.shape_cast %482 : vector<1x4x32xf32> to vector<4x32xf32>
    %c0_577 = arith.constant 0 : index
    %c2_578 = arith.constant 2 : index
    %c0_579 = arith.constant 0 : index
    %c0_580 = arith.constant 0 : index
    %484 = vector.load %arg12[%c0_577, %c2_578, %c0_579, %c0_580] : memref<3x3x32x32xf32, #tpu.memory_space<vmem>>, vector<1x1x32x32xf32>
    %485 = vector.shape_cast %484 : vector<1x1x32x32xf32> to vector<32x32xf32>
    %cst_581 = arith.constant dense<0.000000e+00> : vector<4x32xf32>
    %486 = tpu.matmul %483, %485, %cst_581 {dimension_numbers = #tpu.dot_dimension_numbers<[1], [0], [0], [1], [0, 0, 1, 1], [], []>} : vector<4x32xf32>, vector<32x32xf32>, vector<4x32xf32> -> vector<4x32xf32>
    %487 = arith.addf %481, %486 : vector<4x32xf32>
    %c3_582 = arith.constant 3 : index
    %c0_583 = arith.constant 0 : index
    %c0_584 = arith.constant 0 : index
    %488 = vector.load %arg25[%c3_582, %c0_583, %c0_584] : memref<6x6x32xf32, #tpu.memory_space<vmem>>, vector<1x4x32xf32>
    %489 = vector.shape_cast %488 : vector<1x4x32xf32> to vector<4x32xf32>
    %c1_585 = arith.constant 1 : index
    %c0_586 = arith.constant 0 : index
    %c0_587 = arith.constant 0 : index
    %c0_588 = arith.constant 0 : index
    %490 = vector.load %arg12[%c1_585, %c0_586, %c0_587, %c0_588] : memref<3x3x32x32xf32, #tpu.memory_space<vmem>>, vector<1x1x32x32xf32>
    %491 = vector.shape_cast %490 : vector<1x1x32x32xf32> to vector<32x32xf32>
    %cst_589 = arith.constant dense<0.000000e+00> : vector<4x32xf32>
    %492 = tpu.matmul %489, %491, %cst_589 {dimension_numbers = #tpu.dot_dimension_numbers<[1], [0], [0], [1], [0, 0, 1, 1], [], []>} : vector<4x32xf32>, vector<32x32xf32>, vector<4x32xf32> -> vector<4x32xf32>
    %493 = arith.addf %487, %492 : vector<4x32xf32>
    %c3_590 = arith.constant 3 : index
    %c1_591 = arith.constant 1 : index
    %c0_592 = arith.constant 0 : index
    %494 = vector.load %arg25[%c3_590, %c1_591, %c0_592] : memref<6x6x32xf32, #tpu.memory_space<vmem>>, vector<1x4x32xf32>
    %495 = vector.shape_cast %494 : vector<1x4x32xf32> to vector<4x32xf32>
    %c1_593 = arith.constant 1 : index
    %c1_594 = arith.constant 1 : index
    %c0_595 = arith.constant 0 : index
    %c0_596 = arith.constant 0 : index
    %496 = vector.load %arg12[%c1_593, %c1_594, %c0_595, %c0_596] : memref<3x3x32x32xf32, #tpu.memory_space<vmem>>, vector<1x1x32x32xf32>
    %497 = vector.shape_cast %496 : vector<1x1x32x32xf32> to vector<32x32xf32>
    %cst_597 = arith.constant dense<0.000000e+00> : vector<4x32xf32>
    %498 = tpu.matmul %495, %497, %cst_597 {dimension_numbers = #tpu.dot_dimension_numbers<[1], [0], [0], [1], [0, 0, 1, 1], [], []>} : vector<4x32xf32>, vector<32x32xf32>, vector<4x32xf32> -> vector<4x32xf32>
    %499 = arith.addf %493, %498 : vector<4x32xf32>
    %c3_598 = arith.constant 3 : index
    %c2_599 = arith.constant 2 : index
    %c0_600 = arith.constant 0 : index
    %500 = vector.load %arg25[%c3_598, %c2_599, %c0_600] : memref<6x6x32xf32, #tpu.memory_space<vmem>>, vector<1x4x32xf32>
    %501 = vector.shape_cast %500 : vector<1x4x32xf32> to vector<4x32xf32>
    %c1_601 = arith.constant 1 : index
    %c2_602 = arith.constant 2 : index
    %c0_603 = arith.constant 0 : index
    %c0_604 = arith.constant 0 : index
    %502 = vector.load %arg12[%c1_601, %c2_602, %c0_603, %c0_604] : memref<3x3x32x32xf32, #tpu.memory_space<vmem>>, vector<1x1x32x32xf32>
    %503 = vector.shape_cast %502 : vector<1x1x32x32xf32> to vector<32x32xf32>
    %cst_605 = arith.constant dense<0.000000e+00> : vector<4x32xf32>
    %504 = tpu.matmul %501, %503, %cst_605 {dimension_numbers = #tpu.dot_dimension_numbers<[1], [0], [0], [1], [0, 0, 1, 1], [], []>} : vector<4x32xf32>, vector<32x32xf32>, vector<4x32xf32> -> vector<4x32xf32>
    %505 = arith.addf %499, %504 : vector<4x32xf32>
    %c4_606 = arith.constant 4 : index
    %c0_607 = arith.constant 0 : index
    %c0_608 = arith.constant 0 : index
    %506 = vector.load %arg25[%c4_606, %c0_607, %c0_608] : memref<6x6x32xf32, #tpu.memory_space<vmem>>, vector<1x4x32xf32>
    %507 = vector.shape_cast %506 : vector<1x4x32xf32> to vector<4x32xf32>
    %c2_609 = arith.constant 2 : index
    %c0_610 = arith.constant 0 : index
    %c0_611 = arith.constant 0 : index
    %c0_612 = arith.constant 0 : index
    %508 = vector.load %arg12[%c2_609, %c0_610, %c0_611, %c0_612] : memref<3x3x32x32xf32, #tpu.memory_space<vmem>>, vector<1x1x32x32xf32>
    %509 = vector.shape_cast %508 : vector<1x1x32x32xf32> to vector<32x32xf32>
    %cst_613 = arith.constant dense<0.000000e+00> : vector<4x32xf32>
    %510 = tpu.matmul %507, %509, %cst_613 {dimension_numbers = #tpu.dot_dimension_numbers<[1], [0], [0], [1], [0, 0, 1, 1], [], []>} : vector<4x32xf32>, vector<32x32xf32>, vector<4x32xf32> -> vector<4x32xf32>
    %511 = arith.addf %505, %510 : vector<4x32xf32>
    %c4_614 = arith.constant 4 : index
    %c1_615 = arith.constant 1 : index
    %c0_616 = arith.constant 0 : index
    %512 = vector.load %arg25[%c4_614, %c1_615, %c0_616] : memref<6x6x32xf32, #tpu.memory_space<vmem>>, vector<1x4x32xf32>
    %513 = vector.shape_cast %512 : vector<1x4x32xf32> to vector<4x32xf32>
    %c2_617 = arith.constant 2 : index
    %c1_618 = arith.constant 1 : index
    %c0_619 = arith.constant 0 : index
    %c0_620 = arith.constant 0 : index
    %514 = vector.load %arg12[%c2_617, %c1_618, %c0_619, %c0_620] : memref<3x3x32x32xf32, #tpu.memory_space<vmem>>, vector<1x1x32x32xf32>
    %515 = vector.shape_cast %514 : vector<1x1x32x32xf32> to vector<32x32xf32>
    %cst_621 = arith.constant dense<0.000000e+00> : vector<4x32xf32>
    %516 = tpu.matmul %513, %515, %cst_621 {dimension_numbers = #tpu.dot_dimension_numbers<[1], [0], [0], [1], [0, 0, 1, 1], [], []>} : vector<4x32xf32>, vector<32x32xf32>, vector<4x32xf32> -> vector<4x32xf32>
    %517 = arith.addf %511, %516 : vector<4x32xf32>
    %c4_622 = arith.constant 4 : index
    %c2_623 = arith.constant 2 : index
    %c0_624 = arith.constant 0 : index
    %518 = vector.load %arg25[%c4_622, %c2_623, %c0_624] : memref<6x6x32xf32, #tpu.memory_space<vmem>>, vector<1x4x32xf32>
    %519 = vector.shape_cast %518 : vector<1x4x32xf32> to vector<4x32xf32>
    %c2_625 = arith.constant 2 : index
    %c2_626 = arith.constant 2 : index
    %c0_627 = arith.constant 0 : index
    %c0_628 = arith.constant 0 : index
    %520 = vector.load %arg12[%c2_625, %c2_626, %c0_627, %c0_628] : memref<3x3x32x32xf32, #tpu.memory_space<vmem>>, vector<1x1x32x32xf32>
    %521 = vector.shape_cast %520 : vector<1x1x32x32xf32> to vector<32x32xf32>
    %cst_629 = arith.constant dense<0.000000e+00> : vector<4x32xf32>
    %522 = tpu.matmul %519, %521, %cst_629 {dimension_numbers = #tpu.dot_dimension_numbers<[1], [0], [0], [1], [0, 0, 1, 1], [], []>} : vector<4x32xf32>, vector<32x32xf32>, vector<4x32xf32> -> vector<4x32xf32>
    %523 = arith.addf %517, %522 : vector<4x32xf32>
    %c0_630 = arith.constant 0 : index
    %c0_631 = arith.constant 0 : index
    %524 = vector.load %arg13[%c0_630, %c0_631] : memref<1x32xf32, #tpu.memory_space<vmem>>, vector<1x32xf32>
    %525 = vector.broadcast %524 : vector<1x32xf32> to vector<4x32xf32>
    %526 = arith.addf %523, %525 : vector<4x32xf32>
    %cst_632 = arith.constant 0.000000e+00 : f32
    %527 = vector.broadcast %cst_632 : f32 to vector<4x32xf32>
    %528 = arith.cmpf oge, %526, %527 : vector<4x32xf32>
    %cst_633 = arith.constant 2.000000e-01 : f32
    %529 = vector.broadcast %cst_633 : f32 to vector<4x32xf32>
    %530 = arith.mulf %529, %526 : vector<4x32xf32>
    %531 = arith.select %528, %526, %530 : vector<4x32xi1>, vector<4x32xf32>
    %532 = vector.extract_strided_slice %531 {offsets = [0, 0], sizes = [1, 32], strides = [1, 1]} : vector<4x32xf32> to vector<1x32xf32>
    %c2_634 = arith.constant 2 : index
    %c0_635 = arith.constant 0 : index
    %c0_636 = arith.constant 0 : index
    %c0_637 = arith.constant 0 : index
    %533 = vector.load %arg14[%c2_634, %c0_635, %c0_636, %c0_637] : memref<4x4x32x32xf32, #tpu.memory_space<vmem>>, vector<1x1x32x32xf32>
    %534 = vector.shape_cast %533 : vector<1x1x32x32xf32> to vector<32x32xf32>
    %cst_638 = arith.constant dense<0.000000e+00> : vector<1x32xf32>
    %535 = tpu.matmul %532, %534, %cst_638 {dimension_numbers = #tpu.dot_dimension_numbers<[1], [0], [0], [1], [0, 0, 1, 1], [], []>} : vector<1x32xf32>, vector<32x32xf32>, vector<1x32xf32> -> vector<1x32xf32>
    %536 = arith.addf %468, %535 : vector<1x32xf32>
    %537 = vector.extract_strided_slice %531 {offsets = [1, 0], sizes = [1, 32], strides = [1, 1]} : vector<4x32xf32> to vector<1x32xf32>
    %c2_639 = arith.constant 2 : index
    %c1_640 = arith.constant 1 : index
    %c0_641 = arith.constant 0 : index
    %c0_642 = arith.constant 0 : index
    %538 = vector.load %arg14[%c2_639, %c1_640, %c0_641, %c0_642] : memref<4x4x32x32xf32, #tpu.memory_space<vmem>>, vector<1x1x32x32xf32>
    %539 = vector.shape_cast %538 : vector<1x1x32x32xf32> to vector<32x32xf32>
    %cst_643 = arith.constant dense<0.000000e+00> : vector<1x32xf32>
    %540 = tpu.matmul %537, %539, %cst_643 {dimension_numbers = #tpu.dot_dimension_numbers<[1], [0], [0], [1], [0, 0, 1, 1], [], []>} : vector<1x32xf32>, vector<32x32xf32>, vector<1x32xf32> -> vector<1x32xf32>
    %541 = arith.addf %536, %540 : vector<1x32xf32>
    %542 = vector.extract_strided_slice %531 {offsets = [2, 0], sizes = [1, 32], strides = [1, 1]} : vector<4x32xf32> to vector<1x32xf32>
    %c2_644 = arith.constant 2 : index
    %c2_645 = arith.constant 2 : index
    %c0_646 = arith.constant 0 : index
    %c0_647 = arith.constant 0 : index
    %543 = vector.load %arg14[%c2_644, %c2_645, %c0_646, %c0_647] : memref<4x4x32x32xf32, #tpu.memory_space<vmem>>, vector<1x1x32x32xf32>
    %544 = vector.shape_cast %543 : vector<1x1x32x32xf32> to vector<32x32xf32>
    %cst_648 = arith.constant dense<0.000000e+00> : vector<1x32xf32>
    %545 = tpu.matmul %542, %544, %cst_648 {dimension_numbers = #tpu.dot_dimension_numbers<[1], [0], [0], [1], [0, 0, 1, 1], [], []>} : vector<1x32xf32>, vector<32x32xf32>, vector<1x32xf32> -> vector<1x32xf32>
    %546 = arith.addf %541, %545 : vector<1x32xf32>
    %547 = vector.extract_strided_slice %531 {offsets = [3, 0], sizes = [1, 32], strides = [1, 1]} : vector<4x32xf32> to vector<1x32xf32>
    %c2_649 = arith.constant 2 : index
    %c3_650 = arith.constant 3 : index
    %c0_651 = arith.constant 0 : index
    %c0_652 = arith.constant 0 : index
    %548 = vector.load %arg14[%c2_649, %c3_650, %c0_651, %c0_652] : memref<4x4x32x32xf32, #tpu.memory_space<vmem>>, vector<1x1x32x32xf32>
    %549 = vector.shape_cast %548 : vector<1x1x32x32xf32> to vector<32x32xf32>
    %cst_653 = arith.constant dense<0.000000e+00> : vector<1x32xf32>
    %550 = tpu.matmul %547, %549, %cst_653 {dimension_numbers = #tpu.dot_dimension_numbers<[1], [0], [0], [1], [0, 0, 1, 1], [], []>} : vector<1x32xf32>, vector<32x32xf32>, vector<1x32xf32> -> vector<1x32xf32>
    %551 = arith.addf %546, %550 : vector<1x32xf32>
    %cst_654 = arith.constant 0.000000e+00 : f32
    %552 = vector.broadcast %cst_654 : f32 to vector<4x32xf32>
    %c3_655 = arith.constant 3 : index
    %c0_656 = arith.constant 0 : index
    %c0_657 = arith.constant 0 : index
    %553 = vector.load %arg25[%c3_655, %c0_656, %c0_657] : memref<6x6x32xf32, #tpu.memory_space<vmem>>, vector<1x4x32xf32>
    %554 = vector.shape_cast %553 : vector<1x4x32xf32> to vector<4x32xf32>
    %c0_658 = arith.constant 0 : index
    %c0_659 = arith.constant 0 : index
    %c0_660 = arith.constant 0 : index
    %c0_661 = arith.constant 0 : index
    %555 = vector.load %arg12[%c0_658, %c0_659, %c0_660, %c0_661] : memref<3x3x32x32xf32, #tpu.memory_space<vmem>>, vector<1x1x32x32xf32>
    %556 = vector.shape_cast %555 : vector<1x1x32x32xf32> to vector<32x32xf32>
    %cst_662 = arith.constant dense<0.000000e+00> : vector<4x32xf32>
    %557 = tpu.matmul %554, %556, %cst_662 {dimension_numbers = #tpu.dot_dimension_numbers<[1], [0], [0], [1], [0, 0, 1, 1], [], []>} : vector<4x32xf32>, vector<32x32xf32>, vector<4x32xf32> -> vector<4x32xf32>
    %558 = arith.addf %552, %557 : vector<4x32xf32>
    %c3_663 = arith.constant 3 : index
    %c1_664 = arith.constant 1 : index
    %c0_665 = arith.constant 0 : index
    %559 = vector.load %arg25[%c3_663, %c1_664, %c0_665] : memref<6x6x32xf32, #tpu.memory_space<vmem>>, vector<1x4x32xf32>
    %560 = vector.shape_cast %559 : vector<1x4x32xf32> to vector<4x32xf32>
    %c0_666 = arith.constant 0 : index
    %c1_667 = arith.constant 1 : index
    %c0_668 = arith.constant 0 : index
    %c0_669 = arith.constant 0 : index
    %561 = vector.load %arg12[%c0_666, %c1_667, %c0_668, %c0_669] : memref<3x3x32x32xf32, #tpu.memory_space<vmem>>, vector<1x1x32x32xf32>
    %562 = vector.shape_cast %561 : vector<1x1x32x32xf32> to vector<32x32xf32>
    %cst_670 = arith.constant dense<0.000000e+00> : vector<4x32xf32>
    %563 = tpu.matmul %560, %562, %cst_670 {dimension_numbers = #tpu.dot_dimension_numbers<[1], [0], [0], [1], [0, 0, 1, 1], [], []>} : vector<4x32xf32>, vector<32x32xf32>, vector<4x32xf32> -> vector<4x32xf32>
    %564 = arith.addf %558, %563 : vector<4x32xf32>
    %c3_671 = arith.constant 3 : index
    %c2_672 = arith.constant 2 : index
    %c0_673 = arith.constant 0 : index
    %565 = vector.load %arg25[%c3_671, %c2_672, %c0_673] : memref<6x6x32xf32, #tpu.memory_space<vmem>>, vector<1x4x32xf32>
    %566 = vector.shape_cast %565 : vector<1x4x32xf32> to vector<4x32xf32>
    %c0_674 = arith.constant 0 : index
    %c2_675 = arith.constant 2 : index
    %c0_676 = arith.constant 0 : index
    %c0_677 = arith.constant 0 : index
    %567 = vector.load %arg12[%c0_674, %c2_675, %c0_676, %c0_677] : memref<3x3x32x32xf32, #tpu.memory_space<vmem>>, vector<1x1x32x32xf32>
    %568 = vector.shape_cast %567 : vector<1x1x32x32xf32> to vector<32x32xf32>
    %cst_678 = arith.constant dense<0.000000e+00> : vector<4x32xf32>
    %569 = tpu.matmul %566, %568, %cst_678 {dimension_numbers = #tpu.dot_dimension_numbers<[1], [0], [0], [1], [0, 0, 1, 1], [], []>} : vector<4x32xf32>, vector<32x32xf32>, vector<4x32xf32> -> vector<4x32xf32>
    %570 = arith.addf %564, %569 : vector<4x32xf32>
    %c4_679 = arith.constant 4 : index
    %c0_680 = arith.constant 0 : index
    %c0_681 = arith.constant 0 : index
    %571 = vector.load %arg25[%c4_679, %c0_680, %c0_681] : memref<6x6x32xf32, #tpu.memory_space<vmem>>, vector<1x4x32xf32>
    %572 = vector.shape_cast %571 : vector<1x4x32xf32> to vector<4x32xf32>
    %c1_682 = arith.constant 1 : index
    %c0_683 = arith.constant 0 : index
    %c0_684 = arith.constant 0 : index
    %c0_685 = arith.constant 0 : index
    %573 = vector.load %arg12[%c1_682, %c0_683, %c0_684, %c0_685] : memref<3x3x32x32xf32, #tpu.memory_space<vmem>>, vector<1x1x32x32xf32>
    %574 = vector.shape_cast %573 : vector<1x1x32x32xf32> to vector<32x32xf32>
    %cst_686 = arith.constant dense<0.000000e+00> : vector<4x32xf32>
    %575 = tpu.matmul %572, %574, %cst_686 {dimension_numbers = #tpu.dot_dimension_numbers<[1], [0], [0], [1], [0, 0, 1, 1], [], []>} : vector<4x32xf32>, vector<32x32xf32>, vector<4x32xf32> -> vector<4x32xf32>
    %576 = arith.addf %570, %575 : vector<4x32xf32>
    %c4_687 = arith.constant 4 : index
    %c1_688 = arith.constant 1 : index
    %c0_689 = arith.constant 0 : index
    %577 = vector.load %arg25[%c4_687, %c1_688, %c0_689] : memref<6x6x32xf32, #tpu.memory_space<vmem>>, vector<1x4x32xf32>
    %578 = vector.shape_cast %577 : vector<1x4x32xf32> to vector<4x32xf32>
    %c1_690 = arith.constant 1 : index
    %c1_691 = arith.constant 1 : index
    %c0_692 = arith.constant 0 : index
    %c0_693 = arith.constant 0 : index
    %579 = vector.load %arg12[%c1_690, %c1_691, %c0_692, %c0_693] : memref<3x3x32x32xf32, #tpu.memory_space<vmem>>, vector<1x1x32x32xf32>
    %580 = vector.shape_cast %579 : vector<1x1x32x32xf32> to vector<32x32xf32>
    %cst_694 = arith.constant dense<0.000000e+00> : vector<4x32xf32>
    %581 = tpu.matmul %578, %580, %cst_694 {dimension_numbers = #tpu.dot_dimension_numbers<[1], [0], [0], [1], [0, 0, 1, 1], [], []>} : vector<4x32xf32>, vector<32x32xf32>, vector<4x32xf32> -> vector<4x32xf32>
    %582 = arith.addf %576, %581 : vector<4x32xf32>
    %c4_695 = arith.constant 4 : index
    %c2_696 = arith.constant 2 : index
    %c0_697 = arith.constant 0 : index
    %583 = vector.load %arg25[%c4_695, %c2_696, %c0_697] : memref<6x6x32xf32, #tpu.memory_space<vmem>>, vector<1x4x32xf32>
    %584 = vector.shape_cast %583 : vector<1x4x32xf32> to vector<4x32xf32>
    %c1_698 = arith.constant 1 : index
    %c2_699 = arith.constant 2 : index
    %c0_700 = arith.constant 0 : index
    %c0_701 = arith.constant 0 : index
    %585 = vector.load %arg12[%c1_698, %c2_699, %c0_700, %c0_701] : memref<3x3x32x32xf32, #tpu.memory_space<vmem>>, vector<1x1x32x32xf32>
    %586 = vector.shape_cast %585 : vector<1x1x32x32xf32> to vector<32x32xf32>
    %cst_702 = arith.constant dense<0.000000e+00> : vector<4x32xf32>
    %587 = tpu.matmul %584, %586, %cst_702 {dimension_numbers = #tpu.dot_dimension_numbers<[1], [0], [0], [1], [0, 0, 1, 1], [], []>} : vector<4x32xf32>, vector<32x32xf32>, vector<4x32xf32> -> vector<4x32xf32>
    %588 = arith.addf %582, %587 : vector<4x32xf32>
    %c5 = arith.constant 5 : index
    %c0_703 = arith.constant 0 : index
    %c0_704 = arith.constant 0 : index
    %589 = vector.load %arg25[%c5, %c0_703, %c0_704] : memref<6x6x32xf32, #tpu.memory_space<vmem>>, vector<1x4x32xf32>
    %590 = vector.shape_cast %589 : vector<1x4x32xf32> to vector<4x32xf32>
    %c2_705 = arith.constant 2 : index
    %c0_706 = arith.constant 0 : index
    %c0_707 = arith.constant 0 : index
    %c0_708 = arith.constant 0 : index
    %591 = vector.load %arg12[%c2_705, %c0_706, %c0_707, %c0_708] : memref<3x3x32x32xf32, #tpu.memory_space<vmem>>, vector<1x1x32x32xf32>
    %592 = vector.shape_cast %591 : vector<1x1x32x32xf32> to vector<32x32xf32>
    %cst_709 = arith.constant dense<0.000000e+00> : vector<4x32xf32>
    %593 = tpu.matmul %590, %592, %cst_709 {dimension_numbers = #tpu.dot_dimension_numbers<[1], [0], [0], [1], [0, 0, 1, 1], [], []>} : vector<4x32xf32>, vector<32x32xf32>, vector<4x32xf32> -> vector<4x32xf32>
    %594 = arith.addf %588, %593 : vector<4x32xf32>
    %c5_710 = arith.constant 5 : index
    %c1_711 = arith.constant 1 : index
    %c0_712 = arith.constant 0 : index
    %595 = vector.load %arg25[%c5_710, %c1_711, %c0_712] : memref<6x6x32xf32, #tpu.memory_space<vmem>>, vector<1x4x32xf32>
    %596 = vector.shape_cast %595 : vector<1x4x32xf32> to vector<4x32xf32>
    %c2_713 = arith.constant 2 : index
    %c1_714 = arith.constant 1 : index
    %c0_715 = arith.constant 0 : index
    %c0_716 = arith.constant 0 : index
    %597 = vector.load %arg12[%c2_713, %c1_714, %c0_715, %c0_716] : memref<3x3x32x32xf32, #tpu.memory_space<vmem>>, vector<1x1x32x32xf32>
    %598 = vector.shape_cast %597 : vector<1x1x32x32xf32> to vector<32x32xf32>
    %cst_717 = arith.constant dense<0.000000e+00> : vector<4x32xf32>
    %599 = tpu.matmul %596, %598, %cst_717 {dimension_numbers = #tpu.dot_dimension_numbers<[1], [0], [0], [1], [0, 0, 1, 1], [], []>} : vector<4x32xf32>, vector<32x32xf32>, vector<4x32xf32> -> vector<4x32xf32>
    %600 = arith.addf %594, %599 : vector<4x32xf32>
    %c5_718 = arith.constant 5 : index
    %c2_719 = arith.constant 2 : index
    %c0_720 = arith.constant 0 : index
    %601 = vector.load %arg25[%c5_718, %c2_719, %c0_720] : memref<6x6x32xf32, #tpu.memory_space<vmem>>, vector<1x4x32xf32>
    %602 = vector.shape_cast %601 : vector<1x4x32xf32> to vector<4x32xf32>
    %c2_721 = arith.constant 2 : index
    %c2_722 = arith.constant 2 : index
    %c0_723 = arith.constant 0 : index
    %c0_724 = arith.constant 0 : index
    %603 = vector.load %arg12[%c2_721, %c2_722, %c0_723, %c0_724] : memref<3x3x32x32xf32, #tpu.memory_space<vmem>>, vector<1x1x32x32xf32>
    %604 = vector.shape_cast %603 : vector<1x1x32x32xf32> to vector<32x32xf32>
    %cst_725 = arith.constant dense<0.000000e+00> : vector<4x32xf32>
    %605 = tpu.matmul %602, %604, %cst_725 {dimension_numbers = #tpu.dot_dimension_numbers<[1], [0], [0], [1], [0, 0, 1, 1], [], []>} : vector<4x32xf32>, vector<32x32xf32>, vector<4x32xf32> -> vector<4x32xf32>
    %606 = arith.addf %600, %605 : vector<4x32xf32>
    %c0_726 = arith.constant 0 : index
    %c0_727 = arith.constant 0 : index
    %607 = vector.load %arg13[%c0_726, %c0_727] : memref<1x32xf32, #tpu.memory_space<vmem>>, vector<1x32xf32>
    %608 = vector.broadcast %607 : vector<1x32xf32> to vector<4x32xf32>
    %609 = arith.addf %606, %608 : vector<4x32xf32>
    %cst_728 = arith.constant 0.000000e+00 : f32
    %610 = vector.broadcast %cst_728 : f32 to vector<4x32xf32>
    %611 = arith.cmpf oge, %609, %610 : vector<4x32xf32>
    %cst_729 = arith.constant 2.000000e-01 : f32
    %612 = vector.broadcast %cst_729 : f32 to vector<4x32xf32>
    %613 = arith.mulf %612, %609 : vector<4x32xf32>
    %614 = arith.select %611, %609, %613 : vector<4x32xi1>, vector<4x32xf32>
    %615 = vector.extract_strided_slice %614 {offsets = [0, 0], sizes = [1, 32], strides = [1, 1]} : vector<4x32xf32> to vector<1x32xf32>
    %c3_730 = arith.constant 3 : index
    %c0_731 = arith.constant 0 : index
    %c0_732 = arith.constant 0 : index
    %c0_733 = arith.constant 0 : index
    %616 = vector.load %arg14[%c3_730, %c0_731, %c0_732, %c0_733] : memref<4x4x32x32xf32, #tpu.memory_space<vmem>>, vector<1x1x32x32xf32>
    %617 = vector.shape_cast %616 : vector<1x1x32x32xf32> to vector<32x32xf32>
    %cst_734 = arith.constant dense<0.000000e+00> : vector<1x32xf32>
    %618 = tpu.matmul %615, %617, %cst_734 {dimension_numbers = #tpu.dot_dimension_numbers<[1], [0], [0], [1], [0, 0, 1, 1], [], []>} : vector<1x32xf32>, vector<32x32xf32>, vector<1x32xf32> -> vector<1x32xf32>
    %619 = arith.addf %551, %618 : vector<1x32xf32>
    %620 = vector.extract_strided_slice %614 {offsets = [1, 0], sizes = [1, 32], strides = [1, 1]} : vector<4x32xf32> to vector<1x32xf32>
    %c3_735 = arith.constant 3 : index
    %c1_736 = arith.constant 1 : index
    %c0_737 = arith.constant 0 : index
    %c0_738 = arith.constant 0 : index
    %621 = vector.load %arg14[%c3_735, %c1_736, %c0_737, %c0_738] : memref<4x4x32x32xf32, #tpu.memory_space<vmem>>, vector<1x1x32x32xf32>
    %622 = vector.shape_cast %621 : vector<1x1x32x32xf32> to vector<32x32xf32>
    %cst_739 = arith.constant dense<0.000000e+00> : vector<1x32xf32>
    %623 = tpu.matmul %620, %622, %cst_739 {dimension_numbers = #tpu.dot_dimension_numbers<[1], [0], [0], [1], [0, 0, 1, 1], [], []>} : vector<1x32xf32>, vector<32x32xf32>, vector<1x32xf32> -> vector<1x32xf32>
    %624 = arith.addf %619, %623 : vector<1x32xf32>
    %625 = vector.extract_strided_slice %614 {offsets = [2, 0], sizes = [1, 32], strides = [1, 1]} : vector<4x32xf32> to vector<1x32xf32>
    %c3_740 = arith.constant 3 : index
    %c2_741 = arith.constant 2 : index
    %c0_742 = arith.constant 0 : index
    %c0_743 = arith.constant 0 : index
    %626 = vector.load %arg14[%c3_740, %c2_741, %c0_742, %c0_743] : memref<4x4x32x32xf32, #tpu.memory_space<vmem>>, vector<1x1x32x32xf32>
    %627 = vector.shape_cast %626 : vector<1x1x32x32xf32> to vector<32x32xf32>
    %cst_744 = arith.constant dense<0.000000e+00> : vector<1x32xf32>
    %628 = tpu.matmul %625, %627, %cst_744 {dimension_numbers = #tpu.dot_dimension_numbers<[1], [0], [0], [1], [0, 0, 1, 1], [], []>} : vector<1x32xf32>, vector<32x32xf32>, vector<1x32xf32> -> vector<1x32xf32>
    %629 = arith.addf %624, %628 : vector<1x32xf32>
    %630 = vector.extract_strided_slice %614 {offsets = [3, 0], sizes = [1, 32], strides = [1, 1]} : vector<4x32xf32> to vector<1x32xf32>
    %c3_745 = arith.constant 3 : index
    %c3_746 = arith.constant 3 : index
    %c0_747 = arith.constant 0 : index
    %c0_748 = arith.constant 0 : index
    %631 = vector.load %arg14[%c3_745, %c3_746, %c0_747, %c0_748] : memref<4x4x32x32xf32, #tpu.memory_space<vmem>>, vector<1x1x32x32xf32>
    %632 = vector.shape_cast %631 : vector<1x1x32x32xf32> to vector<32x32xf32>
    %cst_749 = arith.constant dense<0.000000e+00> : vector<1x32xf32>
    %633 = tpu.matmul %630, %632, %cst_749 {dimension_numbers = #tpu.dot_dimension_numbers<[1], [0], [0], [1], [0, 0, 1, 1], [], []>} : vector<1x32xf32>, vector<32x32xf32>, vector<1x32xf32> -> vector<1x32xf32>
    %634 = arith.addf %629, %633 : vector<1x32xf32>
    %c0_750 = arith.constant 0 : index
    %c0_751 = arith.constant 0 : index
    %635 = vector.load %arg15[%c0_750, %c0_751] : memref<1x32xf32, #tpu.memory_space<vmem>>, vector<1x32xf32>
    %636 = arith.addf %634, %635 : vector<1x32xf32>
    %cst_752 = arith.constant 0.000000e+00 : f32
    %637 = vector.broadcast %cst_752 : f32 to vector<1x32xf32>
    %638 = arith.cmpf oge, %636, %637 : vector<1x32xf32>
    %cst_753 = arith.constant 2.000000e-01 : f32
    %639 = vector.broadcast %cst_753 : f32 to vector<1x32xf32>
    %640 = arith.mulf %639, %636 : vector<1x32xf32>
    %641 = arith.select %638, %636, %640 : vector<1x32xi1>, vector<1x32xf32>
    %c0_754 = arith.constant 0 : index
    %c0_755 = arith.constant 0 : index
    %642 = vector.load %arg16[%c0_754, %c0_755] : memref<32x1xf32, #tpu.memory_space<vmem>>, vector<32x1xf32>
    %cst_756 = arith.constant dense<0.000000e+00> : vector<1x1xf32>
    %643 = tpu.matmul %641, %642, %cst_756 {dimension_numbers = #tpu.dot_dimension_numbers<[1], [0], [0], [1], [0, 0, 1, 1], [], []>} : vector<1x32xf32>, vector<32x1xf32>, vector<1x1xf32> -> vector<1x1xf32>
    %c0_757 = arith.constant 0 : index
    %c0_758 = arith.constant 0 : index
    %644 = vector.load %arg17[%c0_757, %c0_758] : memref<1x1xf32, #tpu.memory_space<vmem>>, vector<1x1xf32>
    %645 = arith.addf %643, %644 : vector<1x1xf32>
    %646 = vector.shape_cast %645 : vector<1x1xf32> to vector<1x1x1xf32>
    %c0_759 = arith.constant 0 : index
    %c0_760 = arith.constant 0 : index
    %c0_761 = arith.constant 0 : index
    %647 = vector.load %arg20[%c0_759, %c0_760, %c0_761] : memref<1x1x1xf32, #tpu.memory_space<vmem>>, vector<1x1x1xf32>
    tpu.vector_store %arg20[%c0_759, %c0_760, %c0_761], %646 {strides = array<i32>} : memref<1x1x1xf32, #tpu.memory_space<vmem>>, vector<1x1x1xf32>,
    return
  }
  func.func @transform_0(%arg0: i32) -> (i32, i32, i32) {
    %c0_i32 = arith.constant 0 : i32
    %c0_i32_0 = arith.constant 0 : i32
    %c0_i32_1 = arith.constant 0 : i32
    return %arg0, %c0_i32, %c0_i32_0 : i32, i32, i32
  }
  func.func @transform_1(%arg0: i32) -> (i32, i32) {
    %c0_i32 = arith.constant 0 : i32
    %c0_i32_0 = arith.constant 0 : i32
    %c0_i32_1 = arith.constant 0 : i32
    return %c0_i32, %c0_i32_0 : i32, i32
  }
  func.func @transform_2(%arg0: i32) -> (i32, i32) {
    %c0_i32 = arith.constant 0 : i32
    %c0_i32_0 = arith.constant 0 : i32
    %c0_i32_1 = arith.constant 0 : i32
    return %c0_i32, %c0_i32_0 : i32, i32
  }
  func.func @transform_3(%arg0: i32) -> (i32, i32, i32, i32) {
    %c0_i32 = arith.constant 0 : i32
    %c0_i32_0 = arith.constant 0 : i32
    %c0_i32_1 = arith.constant 0 : i32
    %c0_i32_2 = arith.constant 0 : i32
    %c0_i32_3 = arith.constant 0 : i32
    return %c0_i32, %c0_i32_0, %c0_i32_1, %c0_i32_2 : i32, i32, i32, i32
  }
  func.func @transform_4(%arg0: i32) -> (i32, i32) {
    %c0_i32 = arith.constant 0 : i32
    %c0_i32_0 = arith.constant 0 : i32
    %c0_i32_1 = arith.constant 0 : i32
    return %c0_i32, %c0_i32_0 : i32, i32
  }
  func.func @transform_5(%arg0: i32) -> (i32, i32, i32, i32) {
    %c0_i32 = arith.constant 0 : i32
    %c0_i32_0 = arith.constant 0 : i32
    %c0_i32_1 = arith.constant 0 : i32
    %c0_i32_2 = arith.constant 0 : i32
    %c0_i32_3 = arith.constant 0 : i32
    return %c0_i32, %c0_i32_0, %c0_i32_1, %c0_i32_2 : i32, i32, i32, i32
  }
  func.func @transform_6(%arg0: i32) -> (i32, i32) {
    %c0_i32 = arith.constant 0 : i32
    %c0_i32_0 = arith.constant 0 : i32
    %c0_i32_1 = arith.constant 0 : i32
    return %c0_i32, %c0_i32_0 : i32, i32
  }
  func.func @transform_7(%arg0: i32) -> (i32, i32, i32, i32) {
    %c0_i32 = arith.constant 0 : i32
    %c0_i32_0 = arith.constant 0 : i32
    %c0_i32_1 = arith.constant 0 : i32
    %c0_i32_2 = arith.constant 0 : i32
    %c0_i32_3 = arith.constant 0 : i32
    return %c0_i32, %c0_i32_0, %c0_i32_1, %c0_i32_2 : i32, i32, i32, i32
  }
  func.func @transform_8(%arg0: i32) -> (i32, i32) {
    %c0_i32 = arith.constant 0 : i32
    %c0_i32_0 = arith.constant 0 : i32
    %c0_i32_1 = arith.constant 0 : i32
    return %c0_i32, %c0_i32_0 : i32, i32
  }
  func.func @transform_9(%arg0: i32) -> (i32, i32, i32, i32) {
    %c0_i32 = arith.constant 0 : i32
    %c0_i32_0 = arith.constant 0 : i32
    %c0_i32_1 = arith.constant 0 : i32
    %c0_i32_2 = arith.constant 0 : i32
    %c0_i32_3 = arith.constant 0 : i32
    return %c0_i32, %c0_i32_0, %c0_i32_1, %c0_i32_2 : i32, i32, i32, i32
  }
  func.func @transform_10(%arg0: i32) -> (i32, i32) {
    %c0_i32 = arith.constant 0 : i32
    %c0_i32_0 = arith.constant 0 : i32
    %c0_i32_1 = arith.constant 0 : i32
    return %c0_i32, %c0_i32_0 : i32, i32
  }
  func.func @transform_11(%arg0: i32) -> (i32, i32, i32, i32) {
    %c0_i32 = arith.constant 0 : i32
    %c0_i32_0 = arith.constant 0 : i32
    %c0_i32_1 = arith.constant 0 : i32
    %c0_i32_2 = arith.constant 0 : i32
    %c0_i32_3 = arith.constant 0 : i32
    return %c0_i32, %c0_i32_0, %c0_i32_1, %c0_i32_2 : i32, i32, i32, i32
  }
  func.func @transform_12(%arg0: i32) -> (i32, i32) {
    %c0_i32 = arith.constant 0 : i32
    %c0_i32_0 = arith.constant 0 : i32
    %c0_i32_1 = arith.constant 0 : i32
    return %c0_i32, %c0_i32_0 : i32, i32
  }
  func.func @transform_13(%arg0: i32) -> (i32, i32, i32, i32) {
    %c0_i32 = arith.constant 0 : i32
    %c0_i32_0 = arith.constant 0 : i32
    %c0_i32_1 = arith.constant 0 : i32
    %c0_i32_2 = arith.constant 0 : i32
    %c0_i32_3 = arith.constant 0 : i32
    return %c0_i32, %c0_i32_0, %c0_i32_1, %c0_i32_2 : i32, i32, i32, i32
  }
  func.func @transform_14(%arg0: i32) -> (i32, i32) {
    %c0_i32 = arith.constant 0 : i32
    %c0_i32_0 = arith.constant 0 : i32
    %c0_i32_1 = arith.constant 0 : i32
    return %c0_i32, %c0_i32_0 : i32, i32
  }
  func.func @transform_15(%arg0: i32) -> (i32, i32) {
    %c0_i32 = arith.constant 0 : i32
    %c0_i32_0 = arith.constant 0 : i32
    %c0_i32_1 = arith.constant 0 : i32
    return %c0_i32, %c0_i32_0 : i32, i32
  }
  func.func @transform_16(%arg0: i32) -> (i32, i32) {
    %c0_i32 = arith.constant 0 : i32
    %c0_i32_0 = arith.constant 0 : i32
    %c0_i32_1 = arith.constant 0 : i32
    return %c0_i32, %c0_i32_0 : i32, i32
  }
  func.func @transform_17(%arg0: i32) -> (i32, i32) {
    %c0_i32 = arith.constant 0 : i32
    %c0_i32_0 = arith.constant 0 : i32
    %c0_i32_1 = arith.constant 0 : i32
    return %c0_i32, %c0_i32_0 : i32, i32
  }
  func.func @transform_18(%arg0: i32) -> (i32, i32) {
    %c0_i32 = arith.constant 0 : i32
    %c0_i32_0 = arith.constant 0 : i32
    %c0_i32_1 = arith.constant 0 : i32
    return %c0_i32, %c0_i32_0 : i32, i32
  }
  func.func @transform_19(%arg0: i32) -> (i32, i32, i32) {
    %c0_i32 = arith.constant 0 : i32
    %c0_i32_0 = arith.constant 0 : i32
    %c0_i32_1 = arith.constant 0 : i32
    return %arg0, %c0_i32, %c0_i32_0 : i32, i32, i32
  }
}

</mosaic_0001>

<bundles_post_ra>
// kernel: _lambda_.1
= control target key start
LH: loop header
LB: loop body
LE: loop exit
PB: predicated region body
PF: predicated region fallthrough
CT: control target
= control target key end

     0   :  { %s24809_s0 = inlined_call_operand.vmem [shape: f32[2,256,8], index: 0, kind: input, shape index: {}]   ;;  %s24810_s1 = inlined_call_operand.vmem [shape: f32[8,32], index: 1, kind: input, shape index: {}]   ;;  %s24811_s2 = inlined_call_operand.vmem [shape: f32[1,32], index: 2, kind: input, shape index: {}, may-alias: {2,4,6,8,10,12,14}]   ;;  %s24812_s3 = inlined_call_operand.hbm [shape: f32[3,3,32,32], index: 3, kind: input, shape index: {}]   ;;  %s24813_s4 = inlined_call_operand.vmem [shape: f32[1,32], index: 4, kind: input, shape index: {}, may-alias: {2,4,6,8,10,12,14}]   ;;  %s24814_s5 = inlined_call_operand.hbm [shape: f32[3,3,32,32], index: 5, kind: input, shape index: {}]   ;;  %s24815_s6 = inlined_call_operand.vmem [shape: f32[1,32], index: 6, kind: input, shape index: {}, may-alias: {2,4,6,8,10,12,14}]   ;;  %s24816_s7 = inlined_call_operand.hbm [shape: f32[3,3,32,32], index: 7, kind: input, shape index: {}]   ;;  %s24817_s8 = inlined_call_operand.vmem [shape: f32[1,32], index: 8, kind: input, shape index: {}, may-alias: {2,4,6,8,10,12,14}]   ;;  %s24818_s9 = inlined_call_operand.hbm [shape: f32[3,3,32,32], index: 9, kind: input, shape index: {}]   ;;  %s24819_s10 = inlined_call_operand.vmem [shape: f32[1,32], index: 10, kind: input, shape index: {}, may-alias: {2,4,6,8,10,12,14}]   ;;  %s24820_s11 = inlined_call_operand.vmem [shape: f32[3,3,32,32], index: 11, kind: input, shape index: {}]   ;;  %s24821_s12 = inlined_call_operand.vmem [shape: f32[1,32], index: 12, kind: input, shape index: {}, may-alias: {2,4,6,8,10,12,14}]   ;;  %s24822_s13 = inlined_call_operand.vmem [shape: f32[4,4,32,32], index: 13, kind: input, shape index: {}]   ;;  %s24823_s14 = inlined_call_operand.vmem [shape: f32[1,32], index: 14, kind: input, shape index: {}, may-alias: {2,4,6,8,10,12,14}]   ;;  %s24824_s15 = inlined_call_operand.vmem [shape: f32[32,1], index: 15, kind: input, shape index: {}]   ;;  %s24825_s16 = inlined_call_operand.<no memory space> [shape: f32[1,1], index: 16, kind: input, shape index: {}]   ;;  %s24826_s17 = inlined_call_operand.vmem [shape: f32[64,256], index: 17, kind: input, shape index: {}]   ;;  %s24827_s18 = inlined_call_operand.vmem [shape: f32[16,64], index: 18, kind: input, shape index: {}]   ;;  %s24828_s19 = inlined_call_operand.vmem [shape: f32[2,1,1], index: 19, kind: output, shape index: {}]  }
   0x1   :  { %24965 = sst [smem:[#allocation53_spill]] %s24809_s0  ;;  %v24_v0 = vstv %s24825_s16 }
   0x2   :  { %24966 = sst [smem:[#allocation54_spill]] %s24810_s1  ;;  %25 = vst [vmem:[#allocation7] sm:$0x1] %v24_v0 }
   0x3   :  { %24967 = sst [smem:[#allocation55_spill]] %s24811_s2 }
   0x4   :  { %24968 = sst [smem:[#allocation56_spill]] %s24812_s3 }
   0x5   :  { %24969 = sst [smem:[#allocation57_spill]] %s24821_s12 }
   0x6   :  { %24970 = sst [smem:[#allocation58_spill]] %s24822_s13 }
   0x7   :  { %24971 = sst [smem:[#allocation59_spill]] %s24823_s14 }
   0x8   :  { %24972 = sst [smem:[#allocation60_spill]] %s24824_s15 }
   0x9   :  { %24973 = sst [smem:[#allocation61_spill]] %s24828_s19 }
   0xa   :  { %26 = vsyncpa [#allocation9], 0 }
   0xb   :  { %27 = vsyncpa [#allocation11], 0 }
   0xc   :  { %28 = vsyncpa [#allocation14], 0  ;;  %s21367_s20 = smov 0  }
   0xd LB: > { %24974 = sst [smem:[#allocation18_spill]] %s21253_s20  ;;  %s21373_s21 = sadd.s32 4294967295, %s21253_s20   ;;  %s21253_s20 = sphi %s21367_s20, %s34_s20  }
   0xe   : > { %p15606_p0 = scmp.ge.s32.totalorder %s21253_s20, 1  ;;  %p469_p1 = scmp.lt.s32.totalorder %s21253_s20, 3 }
   0xf   : > { %p24833_p2 = scmp.eq.s32.totalorder %s21373_s21, 0  ;;  %s21255_s1 = smov [#allocation10]  }
  0x10   : > { %p21378_p3 = pnand %p15606_p0, %p469_p1  ;;  %s503_s22 = sshll.u32 %s21255_s1, 4  ;;  %s21382_s22 = int_to_ptr.vmem [resolvable:$true] %s503_s22 }
  0x11   : > { %s21256_s2 = smov [#allocation8]   ;;  %s21257_s25 = smov [#allocation12]  }
  0x12   : > { %s24975_s16 = scalar_select %p21378_p3, 1, 0 }
  0x13   : > { %p21085_p4 = pneg %p21378_p3  ;;  %s487_s23 = sshll.u32 %s21256_s2, 4  ;;  %s21386_s23 = int_to_ptr.vmem [resolvable:$true] %s487_s23 }
  0x14   : > { %s519_s3 = sshll.u32 %s21257_s25, 4  ;;  %s21258_s26 = smov [#allocation13]   ;;  %s21394_s3 = int_to_ptr.vmem [resolvable:$true] %s519_s3 }
  0x15   : > { %p21390_p5 = pnand %p24833_p2, %p21085_p4  ;;  %s21396_s27 = sshll.u32 %s21258_s26, 4  ;;  %s536_s27 = int_to_ptr.vmem [resolvable:$true] %s21396_s27 }
  0x16   : > { %s21123_s0 = scalar_lea.hbm %s24814_s5, 4608 }
  0x17   : > { %p21124_p6 = scmp.ne.s32.totalorder %s24814_s5, %s21123_s0  ;;  %p21406_p7 = pneg %p21390_p5 }
  0x18   : > { %p21130_p10 = scmp.lt.u32.totalorder %s21123_s0, %s24814_s5 }
  0x19   : > { %p21126_p8 = pnand %p21406_p7, %p21124_p6 }
  0x1b   : > { %p21127_p9 = pneg %p21126_p8 }
  0x1d   : > { %p21132_p11 = pnand %p21130_p10, %p21127_p9 }
  0x1f   : > { %21135 = shalt.err (!%p21132_p11)
}
  0x20   : > { %s21136_s28 = scalar_lea.vmem %s21382_s22, 4608  ;;  %p21144_p1 = scmp.lt.s32.totalorder %s21382_s22, %s21382_s22 }
  0x21   : > { %p21137_p12 = scmp.ne.s32.totalorder %s21382_s22, %s21136_s28  ;;  %p21145_p4 = scmp.lt.s32.totalorder %s21136_s28, %s21136_s28 }
  0x23   : > { %p21139_p13 = pnand %p21137_p12, %p21406_p7  ;;  %p21146_p6 = por %p21145_p4, %p21144_p1 }
  0x25   : > { %p21140_p0 = pneg %p21139_p13 }
  0x27   : > { %p21147_p8 = pnand %p21146_p6, %p21140_p0 }
  0x29   : > { %21150 = shalt.err (!%p21147_p8)
}
  0x2a   : > { %s21259_s29 = smov 128   ;;  %s21260_s0 = smov 8  }
  0x2b   : > { %21091 = dma.hbm_to_vmem [thread:$0]  (!%p21390_p5), %s24814_s5, 4608, %s21382_s22, [#allocation11], %s21259_s29, %s21259_s29, %s21260_s0  }
  0x2c   : > { %s24978_s20 = sld [smem:[#allocation56_spill]] }
  0x32   : > { %s24979_s19 = smov %s24978_s20  ;;  %s21151_s28 = scalar_lea.hbm %s24978_s20, 4608 }
  0x33   : > { %p21152_p9 = scmp.ne.s32.totalorder %s24979_s19, %s21151_s28  ;;  %p21158_p12 = scmp.lt.u32.totalorder %s21151_s28, %s24979_s19 }
  0x35   : > { %p21154_p10 = pnand %p21152_p9, %p21406_p7 }
  0x37   : > { %p21155_p11 = pneg %p21154_p10 }
  0x39   : > { %p21160_p13 = pnand %p21158_p12, %p21155_p11 }
  0x3b   : > { %21163 = shalt.err (!%p21160_p13)
}
  0x3c   : > { %s21164_s22 = scalar_lea.vmem %s21386_s23, 4608  ;;  %p21172_p6 = scmp.lt.s32.totalorder %s21386_s23, %s21386_s23 }
  0x3d   : > { %p21165_p0 = scmp.ne.s32.totalorder %s21386_s23, %s21164_s22  ;;  %p21173_p8 = scmp.lt.s32.totalorder %s21164_s22, %s21164_s22 }
  0x3f   : > { %p21167_p1 = pnand %p21165_p0, %p21406_p7  ;;  %p21174_p9 = por %p21173_p8, %p21172_p6 }
  0x41   : > { %p21168_p4 = pneg %p21167_p1 }
  0x43   : > { %p21175_p10 = pnand %p21174_p9, %p21168_p4 }
  0x45   : > { %21178 = shalt.err (!%p21175_p10)
}
  0x46   : > { %21088 = dma.hbm_to_vmem [thread:$0]  (!%p21390_p5), %s24979_s19, 4608, %s21386_s23, [#allocation9], %s21259_s29, %s21259_s29, %s21260_s0  }
  0x47   : > { %s21179_s20 = scalar_lea.hbm %s24816_s7, 4608 }
  0x48   : > { %p21180_p11 = scmp.ne.s32.totalorder %s24816_s7, %s21179_s20  ;;  %p21186_p0 = scmp.lt.u32.totalorder %s21179_s20, %s24816_s7 }
  0x4a   : > { %p21182_p12 = pnand %p21180_p11, %p21406_p7 }
  0x4c   : > { %p21183_p13 = pneg %p21182_p12 }
  0x4e   : > { %p21188_p1 = pnand %p21186_p0, %p21183_p13 }
  0x50   : > { %21191 = shalt.err (!%p21188_p1)
}
  0x51   : > { %s21192_s23 = scalar_lea.vmem %s21394_s3, 4608  ;;  %p21200_p9 = scmp.lt.s32.totalorder %s21394_s3, %s21394_s3 }
  0x52   : > { %p21193_p4 = scmp.ne.s32.totalorder %s21394_s3, %s21192_s23  ;;  %p21201_p10 = scmp.lt.s32.totalorder %s21192_s23, %s21192_s23 }
  0x54   : > { %p21195_p6 = pnand %p21193_p4, %p21406_p7  ;;  %p21202_p11 = por %p21201_p10, %p21200_p9 }
  0x56   : > { %p21196_p8 = pneg %p21195_p6 }
  0x58   : > { %p21203_p12 = pnand %p21202_p11, %p21196_p8 }
  0x5a   : > { %21206 = shalt.err (!%p21203_p12)
}
  0x5b   : > { %21094 = dma.hbm_to_vmem [thread:$0]  (!%p21390_p5), %s24816_s7, 4608, %s21394_s3, [#allocation11], %s21259_s29, %s21259_s29, %s21260_s0  }
  0x5c   : > { %s21207_s14 = scalar_lea.hbm %s24818_s9, 4608 }
  0x5d   : > { %p21208_p13 = scmp.ne.s32.totalorder %s24818_s9, %s21207_s14  ;;  %p21214_p4 = scmp.lt.u32.totalorder %s21207_s14, %s24818_s9 }
  0x5f   : > { %p21210_p0 = pnand %p21208_p13, %p21406_p7 }
  0x61   : > { %p21211_p1 = pneg %p21210_p0 }
  0x63   : > { %p21216_p6 = pnand %p21214_p4, %p21211_p1 }
  0x65   : > { %21219 = shalt.err (!%p21216_p6)
}
  0x66   : > { %s21220_s25 = scalar_lea.vmem %s536_s27, 4608  ;;  %p21228_p11 = scmp.lt.s32.totalorder %s536_s27, %s536_s27 }
  0x67   : > { %p21221_p8 = scmp.ne.s32.totalorder %s536_s27, %s21220_s25  ;;  %p21229_p12 = scmp.lt.s32.totalorder %s21220_s25, %s21220_s25 }
  0x69   : > { %p21223_p9 = pnand %p21221_p8, %p21406_p7  ;;  %p21230_p2 = por %p21229_p12, %p21228_p11 }
  0x6b   : > { %p21224_p10 = pneg %p21223_p9 }
  0x6d   : > { %p21231_p3 = pnand %p21230_p2, %p21224_p10 }
  0x6f   : > { %21234 = shalt.err (!%p21231_p3)
}
  0x70   : > { %21097 = dma.hbm_to_vmem [thread:$0]  (!%p21390_p5), %s24818_s9, 4608, %s536_s27, [#allocation14], %s21259_s29, %s21259_s29, %s21260_s0  }
  0x71   : > { %p24980_p13 = scmp.ne.s32.totalorder %s24975_s16, 0 }
  0x73   : > { %586 = sbr.rel (%p24980_p13) target bundleno = 4555 (0x11cb), region = 96 }
  0x7a   : > { %p24981_p7 = scmp.eq.s32.totalorder %s21373_s21, 0 }
  0x7c   : > { %21240 = dma.done.wait (%p24981_p7), [#allocation9], 4608   ;;  %p24982_p0 = pmov %p24981_p7 }
  0x7e   : > { %21242 = vsyncadd (%p24982_p0), [#allocation9], 4294962688  ;;  %p24983_p2 = pmov %p24982_p0 }
  0x7f   : > { %p24984_p3 = pmov %p24982_p0 }
  0x80   : > { %21244 = dma.done.wait (%p24983_p2), [#allocation11], 9216  }
  0x81   : > { %21246 = vsyncadd (%p24984_p3), [#allocation11], 4294958080  ;;  %p24985_p1 = pmov %p24982_p0 }
  0x82   : > { %p24986_p5 = pmov %p24982_p0 }
  0x83   : > { %21248 = dma.done.wait (%p24985_p1), [#allocation14], 4608  }
  0x84   : > { %21250 = vsyncadd (%p24986_p5), [#allocation14], 4294962688  ;;  %p652_p4 = scmp.lt.s32.totalorder %s21373_s21, 1  ;;  %vm660_vm0 = vcmask 261120   ;;  %vm663_vm1 = vcmask 254976   ;;  %v24835_v1 = vmov 0.0  }
  0x85   : > { %666 = vst.msk [vmem:[#allocation2 + $0x20] sm:$0xff] %vm660_vm0, %v24835_v1  ;;  %661 = vst.msk [vmem:[#allocation2] sm:$0xff] %vm660_vm0, %v24835_v1  ;;  %s24987_s2 = sld [smem:[#allocation53_spill]]  ;;  %vm857_vm2 = vcmask 64512   ;;  %s24988_s28 = sld [smem:[#allocation54_spill]]  ;;  %v1377_v33 = vld [vmem:[#allocation8 + $0x20] sm:$0xff] }
  0x86   : > { %662 = vst.msk [vmem:[#allocation2 + $0x8] sm:$0xff] %vm660_vm0, %v24835_v1  ;;  %665 = vst.msk [vmem:[#allocation2 + $0x18] sm:$0xff] %vm660_vm0, %v24835_v1  ;;  %s25150_s21 = smov (!%p652_p4, %s21373_s21), 1  ;;  %v1378_v34 = vld [vmem:[#allocation8 + $0x28] sm:$0xff]  ;;  %v1379_v36 = vld [vmem:[#allocation8 + $0x30] sm:$0xff]  ;;  %s24989_s13 = sld [smem:[#allocation55_spill]] }
  0x87   : > { %668 = vst.msk [vmem:[#allocation2 + $0x30] sm:$0xff] %vm660_vm0, %v24835_v1  ;;  %669 = vst.msk [vmem:[#allocation2 + $0x38] sm:$0xff] %vm660_vm0, %v24835_v1  ;;  %s16526_s16 = sshll.u32 %s25150_s21, 8  ;;  %v19775_v35 = vpack.c.bf16 %v1378_v34, %v1377_v33  ;;  %v1380_v37 = vld [vmem:[#allocation8 + $0x38] sm:$0xff]  ;;  %v1340_v43 = vld [vmem:[#allocation8] sm:$0xff]  ;;  %s25143_s1 = sld [smem:[#allocation58_spill]] }
  0x88   : > { %671 = vst.msk [vmem:[#allocation2 + $0x48] sm:$0xff] %vm660_vm0, %v24835_v1  ;;  %672 = vst.msk [vmem:[#allocation2 + $0x50] sm:$0xff] %vm660_vm0, %v24835_v1  ;;  %v19779_v38 = vpack.c.bf16 %v1380_v37, %v1379_v36  ;;  %v1341_v44 = vld [vmem:[#allocation8 + $0x8] sm:$0xff]  ;;  %v1342_v46 = vld [vmem:[#allocation8 + $0x10] sm:$0xff]  ;;  %s25144_s20 = sld [smem:[#allocation57_spill]]  ;;  %s25145_s27 = sld [smem:[#allocation60_spill]] }
  0x89   : > { %674 = vst.msk [vmem:[#allocation2 + $0x60] sm:$0xff] %vm660_vm0, %v24835_v1  ;;  %675 = vst.msk [vmem:[#allocation2 + $0x68] sm:$0xff] %vm660_vm0, %v24835_v1  ;;  %19776 = vmatprep.subr.bf16.mxu1 %v19775_v35  ;;  %v19783_v45 = vpack.c.bf16 %v1341_v44, %v1340_v43  ;;  %v1343_v47 = vld [vmem:[#allocation8 + $0x18] sm:$0xff]  ;;  %v2056_v49 = vld [vmem:[#allocation8 + $0x40] sm:$0xff]  ;;  %s25146_s14 = sld [smem:[#allocation59_spill]]  ;;  %s25147_s30 = sld [smem:[#allocation61_spill]] }
  0x8a   : > { %677 = vst.msk [vmem:[#allocation2 + $0x78] sm:$0xff] %vm660_vm0, %v24835_v1  ;;  %678 = vst.msk [vmem:[#allocation2 + $0x80] sm:$0xff] %vm660_vm0, %v24835_v1  ;;  %19778 = vmatpush3.bf16.msra.mxu1 %v19775_v35  ;;  %v19787_v48 = vpack.c.bf16 %v1343_v47, %v1342_v46  ;;  %v2057_v50 = vld [vmem:[#allocation8 + $0x48] sm:$0xff] }
  0x8b   : > { %680 = vst.msk [vmem:[#allocation2 + $0x90] sm:$0xff] %vm660_vm0, %v24835_v1  ;;  %681 = vst.msk [vmem:[#allocation2 + $0x98] sm:$0xff] %vm660_vm0, %v24835_v1  ;;  %s21824_s29 = scalar_lea.vmem %s24987_s2, %s16526_s16  ;;  %v849_v2 = vld [vmem:[%s24988_s28] sm:$0xff]  ;;  %19780 = vmatprep.subr.bf16.mxu1 %v19779_v38  ;;  %v21895_v51 = vpack.c.bf16 %v2057_v50, %v2056_v49 }
  0x8c   : > { %683 = vst.msk [vmem:[#allocation2 + $0xa8] sm:$0xff] %vm660_vm0, %v24835_v1  ;;  %684 = vst.msk [vmem:[#allocation2 + $0xb0] sm:$0xff] %vm660_vm0, %v24835_v1  ;;  %v817_v3 = vld [vmem:[%s21824_s29] sm:$0xff]  ;;  %v818_v4 = vld [vmem:[%s21824_s29 + $0x8] sm:$0xff]  ;;  %17755 = vmatprep.subr.mxu0 %v849_v2 }
  0x8d   : > { %686 = vst.msk [vmem:[#allocation2 + $0xc0] sm:$0xff] %vm660_vm0, %v24835_v1  ;;  %687 = vst.msk [vmem:[#allocation2 + $0xc8] sm:$0xff] %vm660_vm0, %v24835_v1  ;;  %17757 = vmatprep.mubr.msk.f32.mxu0 %vm857_vm2, %v817_v3  ;;  %v819_v5 = vld [vmem:[%s21824_s29 + $0x10] sm:$0xff]  ;;  %17756 = vmatpush3.msra.mxu0 %v849_v2  ;;  %v820_v6 = vld [vmem:[%s21824_s29 + $0x18] sm:$0xff] }
  0x8e   : > { %689 = vst.msk [vmem:[#allocation2 + $0xd8] sm:$0xff] %vm660_vm0, %v24835_v1  ;;  %690 = vst.msk [vmem:[#allocation2 + $0xe0] sm:$0xff] %vm660_vm0, %v24835_v1  ;;  %17758 = vmatmul.mubr.msk.f32.vlgmr.msra.gmra.mrb[0].mxu0 %vm857_vm2, %v818_v4  ;;  %v821_v7 = vld [vmem:[%s21824_s29 + $0x20] sm:$0xff]  ;;  %v822_v8 = vld [vmem:[%s21824_s29 + $0x28] sm:$0xff]  ;;  %19782 = vmatpush3.bf16.msra.mxu1 %v19779_v38 }
  0x8f   : > { %692 = vst.msk [vmem:[#allocation2 + $0xf0] sm:$0xff] %vm660_vm0, %v24835_v1  ;;  %693 = vst.msk [vmem:[#allocation2 + $0xf8] sm:$0xff] %vm660_vm0, %v24835_v1  ;;  %17760 = vmatprep.mubr.msk.f32.mxu0 %vm857_vm2, %v819_v5  ;;  %v823_v9 = vld [vmem:[%s21824_s29 + $0x30] sm:$0xff]  ;;  %v824_v10 = vld [vmem:[%s21824_s29 + $0x38] sm:$0xff]  ;;  %19784 = vmatprep.subr.bf16.mxu1 %v19783_v45  ;;  %s659_s25 = scalar_lea.vmem %s25147_s30, %s25150_s21 }
  0x90   : > { %695 = vst.msk [vmem:[#allocation2 + $0x108] sm:$0xff] %vm660_vm0, %v24835_v1  ;;  %696 = vst.msk [vmem:[#allocation2 + $0x110] sm:$0xff] %vm660_vm0, %v24835_v1  ;;  %v825_v11 = vld [vmem:[%s21824_s29 + $0x40] sm:$0xff]  ;;  %v826_v12 = vld [vmem:[%s21824_s29 + $0x48] sm:$0xff] }
  0x91   : > { %698 = vst.msk [vmem:[#allocation2 + $0x120] sm:$0xff] %vm660_vm0, %v24835_v1  ;;  %699 = vst.msk [vmem:[#allocation2 + $0x128] sm:$0xff] %vm660_vm0, %v24835_v1  ;;  %v827_v13 = vld [vmem:[%s21824_s29 + $0x50] sm:$0xff]  ;;  %v828_v14 = vld [vmem:[%s21824_s29 + $0x58] sm:$0xff] }
  0x92   : > { %701 = vst.msk [vmem:[#allocation2 + $0x138] sm:$0xff] %vm660_vm0, %v24835_v1  ;;  %702 = vst.msk [vmem:[#allocation2 + $0x140] sm:$0xff] %vm660_vm0, %v24835_v1  ;;  %17761 = vmatmul.mubr.msk.f32.gmra.mrb[2].mxu0 %vm857_vm2, %v820_v6  ;;  %v829_v15 = vld [vmem:[%s21824_s29 + $0x60] sm:$0xff]  ;;  %v830_v16 = vld [vmem:[%s21824_s29 + $0x68] sm:$0xff] }
  0x93   : > { %704 = vst.msk [vmem:[#allocation2 + $0x150] sm:$0xff] %vm660_vm0, %v24835_v1  ;;  %705 = vst.msk [vmem:[#allocation2 + $0x158] sm:$0xff] %vm660_vm0, %v24835_v1  ;;  %17763 = vmatprep.mubr.msk.f32.mxu0 %vm857_vm2, %v821_v7  ;;  %v831_v17 = vld [vmem:[%s21824_s29 + $0x70] sm:$0xff]  ;;  %v832_v18 = vld [vmem:[%s21824_s29 + $0x78] sm:$0xff] }
  0x94   : > { %707 = vst.msk [vmem:[#allocation2 + $0x168] sm:$0xff] %vm660_vm0, %v24835_v1  ;;  %708 = vst.msk [vmem:[#allocation2 + $0x170] sm:$0xff] %vm660_vm0, %v24835_v1  ;;  %v833_v19 = vld [vmem:[%s21824_s29 + $0x80] sm:$0xff]  ;;  %v834_v20 = vld [vmem:[%s21824_s29 + $0x88] sm:$0xff] }
  0x95   : > { %710 = vst.msk [vmem:[#allocation2 + $0x180] sm:$0xff] %vm660_vm0, %v24835_v1  ;;  %711 = vst.msk [vmem:[#allocation2 + $0x188] sm:$0xff] %vm660_vm0, %v24835_v1  ;;  %v835_v21 = vld [vmem:[%s21824_s29 + $0x90] sm:$0xff]  ;;  %v836_v22 = vld [vmem:[%s21824_s29 + $0x98] sm:$0xff] }
  0x96   : > { %713 = vst.msk [vmem:[#allocation2 + $0x198] sm:$0xff] %vm660_vm0, %v24835_v1  ;;  %714 = vst.msk [vmem:[#allocation2 + $0x1a0] sm:$0xff] %vm660_vm0, %v24835_v1  ;;  %17764 = vmatmul.mubr.msk.f32.gmra.mrb[4].mxu0 %vm857_vm2, %v822_v8  ;;  %v837_v23 = vld [vmem:[%s21824_s29 + $0xa0] sm:$0xff]  ;;  %v838_v24 = vld [vmem:[%s21824_s29 + $0xa8] sm:$0xff] }
  0x97   : > { %716 = vst.msk [vmem:[#allocation3] sm:$0xff] %vm660_vm0, %v24835_v1  ;;  %717 = vst.msk [vmem:[#allocation3 + $0x8] sm:$0xff] %vm660_vm0, %v24835_v1  ;;  %17766 = vmatprep.mubr.msk.f32.mxu0 %vm857_vm2, %v823_v9  ;;  %v839_v25 = vld [vmem:[%s21824_s29 + $0xb0] sm:$0xff]  ;;  %v840_v26 = vld [vmem:[%s21824_s29 + $0xb8] sm:$0xff] }
  0x98   : > { %719 = vst.msk [vmem:[#allocation3 + $0x18] sm:$0xff] %vm660_vm0, %v24835_v1  ;;  %720 = vst.msk [vmem:[#allocation3 + $0x20] sm:$0xff] %vm660_vm0, %v24835_v1  ;;  %v841_v27 = vld [vmem:[%s21824_s29 + $0xc0] sm:$0xff]  ;;  %v842_v28 = vld [vmem:[%s21824_s29 + $0xc8] sm:$0xff] }
  0x99   : > { %722 = vst.msk [vmem:[#allocation3 + $0x30] sm:$0xff] %vm660_vm0, %v24835_v1  ;;  %723 = vst.msk [vmem:[#allocation3 + $0x38] sm:$0xff] %vm660_vm0, %v24835_v1  ;;  %v843_v29 = vld [vmem:[%s21824_s29 + $0xd0] sm:$0xff]  ;;  %v844_v30 = vld [vmem:[%s21824_s29 + $0xd8] sm:$0xff] }
  0x9a   : > { %725 = vst.msk [vmem:[#allocation3 + $0x48] sm:$0xff] %vm660_vm0, %v24835_v1  ;;  %726 = vst.msk [vmem:[#allocation3 + $0x50] sm:$0xff] %vm660_vm0, %v24835_v1  ;;  %17767 = vmatmul.mubr.msk.f32.gmra.mrb[6].mxu0 %vm857_vm2, %v824_v10  ;;  %v845_v31 = vld [vmem:[%s21824_s29 + $0xe0] sm:$0xff]  ;;  %v846_v32 = vld [vmem:[%s21824_s29 + $0xe8] sm:$0xff] }
  0x9b   : > { %728 = vst.msk [vmem:[#allocation3 + $0x60] sm:$0xff] %vm660_vm0, %v24835_v1  ;;  %729 = vst.msk [vmem:[#allocation3 + $0x68] sm:$0xff] %vm660_vm0, %v24835_v1  ;;  %17769 = vmatprep.mubr.msk.f32.mxu0 %vm857_vm2, %v825_v11  ;;  %v1344_v39 = vld [vmem:[#allocation2 + $0x1] sm:$0xff]  ;;  %v847_v41 = vld [vmem:[%s21824_s29 + $0xf0] sm:$0xff] }
  0x9c   : > { %731 = vst.msk [vmem:[#allocation3 + $0x78] sm:$0xff] %vm660_vm0, %v24835_v1  ;;  %732 = vst.msk [vmem:[#allocation3 + $0x80] sm:$0xff] %vm660_vm0, %v24835_v1  ;;  %17813 = vmatprep.mubr.msk.f32.mxu1 %vm660_vm0, %v1344_v39  ;;  %v848_v42 = vld [vmem:[%s21824_s29 + $0xf8] sm:$0xff]  ;;  %v21901_v52 = vld [vmem:[%s24989_s13] ss:$0 sm:$0xff] }
  0x9d   : > { %734 = vst.msk [vmem:[#allocation3 + $0x90] sm:$0xff] %vm660_vm0, %v24835_v1  ;;  %735 = vst.msk [vmem:[#allocation3 + $0x98] sm:$0xff] %vm660_vm0, %v24835_v1 }
  0x9e   : > { %737 = vst.msk [vmem:[#allocation3 + $0xa8] sm:$0xff] %vm660_vm0, %v24835_v1  ;;  %738 = vst.msk [vmem:[#allocation3 + $0xb0] sm:$0xff] %vm660_vm0, %v24835_v1  ;;  %17770 = vmatmul.mubr.msk.f32.gmra.mrb[8].mxu0 %vm857_vm2, %v826_v12 }
  0x9f   : > { %740 = vst.msk [vmem:[#allocation3 + $0xc0] sm:$0xff] %vm660_vm0, %v24835_v1  ;;  %741 = vst.msk [vmem:[#allocation3 + $0xc8] sm:$0xff] %vm660_vm0, %v24835_v1  ;;  %17772 = vmatprep.mubr.msk.f32.mxu0 %vm857_vm2, %v827_v13 }
  0xa0   : > { %743 = vst.msk [vmem:[#allocation3 + $0xd8] sm:$0xff] %vm660_vm0, %v24835_v1  ;;  %744 = vst.msk [vmem:[#allocation3 + $0xe0] sm:$0xff] %vm660_vm0, %v24835_v1 }
  0xa1   : > { %746 = vst.msk [vmem:[#allocation3 + $0xf0] sm:$0xff] %vm660_vm0, %v24835_v1  ;;  %747 = vst.msk [vmem:[#allocation3 + $0xf8] sm:$0xff] %vm660_vm0, %v24835_v1 }
  0xa2   : > { %749 = vst.msk [vmem:[#allocation3 + $0x108] sm:$0xff] %vm660_vm0, %v24835_v1  ;;  %750 = vst.msk [vmem:[#allocation3 + $0x110] sm:$0xff] %vm660_vm0, %v24835_v1  ;;  %17773 = vmatmul.mubr.msk.f32.gmra.mrb[10].mxu0 %vm857_vm2, %v828_v14 }
  0xa3   : > { %752 = vst.msk [vmem:[#allocation3 + $0x120] sm:$0xff] %vm660_vm0, %v24835_v1  ;;  %753 = vst.msk [vmem:[#allocation3 + $0x128] sm:$0xff] %vm660_vm0, %v24835_v1  ;;  %17775 = vmatprep.mubr.msk.f32.mxu0 %vm857_vm2, %v829_v15 }
  0xa4   : > { %755 = vst.msk [vmem:[#allocation3 + $0x138] sm:$0xff] %vm660_vm0, %v24835_v1  ;;  %756 = vst.msk [vmem:[#allocation3 + $0x140] sm:$0xff] %vm660_vm0, %v24835_v1 }
  0xa5   : > { %758 = vst.msk [vmem:[#allocation3 + $0x150] sm:$0xff] %vm660_vm0, %v24835_v1  ;;  %759 = vst.msk [vmem:[#allocation3 + $0x158] sm:$0xff] %vm660_vm0, %v24835_v1 }
  0xa6   : > { %761 = vst.msk [vmem:[#allocation3 + $0x168] sm:$0xff] %vm660_vm0, %v24835_v1  ;;  %762 = vst.msk [vmem:[#allocation3 + $0x170] sm:$0xff] %vm660_vm0, %v24835_v1  ;;  %17776 = vmatmul.mubr.msk.f32.gmra.mrb[12].mxu0 %vm857_vm2, %v830_v16 }
  0xa7   : > { %764 = vst.msk [vmem:[#allocation3 + $0x180] sm:$0xff] %vm660_vm0, %v24835_v1  ;;  %765 = vst.msk [vmem:[#allocation3 + $0x188] sm:$0xff] %vm660_vm0, %v24835_v1  ;;  %17778 = vmatprep.mubr.msk.f32.mxu0 %vm857_vm2, %v831_v17 }
  0xa8   : > { %767 = vst.msk [vmem:[#allocation3 + $0x198] sm:$0xff] %vm660_vm0, %v24835_v1  ;;  %768 = vst.msk [vmem:[#allocation3 + $0x1a0] sm:$0xff] %vm660_vm0, %v24835_v1 }
  0xa9   : > { %770 = vst.msk [vmem:[#allocation4] sm:$0xff] %vm660_vm0, %v24835_v1  ;;  %772 = vst.msk [vmem:[#allocation4 + $0x10] sm:$0xff] %vm660_vm0, %v24835_v1 }
  0xaa   : > { %774 = vst.msk [vmem:[#allocation4 + $0x20] sm:$0xff] %vm660_vm0, %v24835_v1  ;;  %776 = vst.msk [vmem:[#allocation4 + $0x30] sm:$0xff] %vm660_vm0, %v24835_v1  ;;  %17779 = vmatmul.mubr.msk.f32.gmra.mrb[14].mxu0 %vm857_vm2, %v832_v18 }
  0xab   : > { %778 = vst.msk [vmem:[#allocation4 + $0x40] sm:$0xff] %vm660_vm0, %v24835_v1  ;;  %780 = vst.msk [vmem:[#allocation4 + $0x50] sm:$0xff] %vm660_vm0, %v24835_v1  ;;  %17781 = vmatprep.mubr.msk.f32.mxu0 %vm857_vm2, %v833_v19 }
  0xac   : > { %782 = vst.msk [vmem:[#allocation4 + $0x60] sm:$0xff] %vm660_vm0, %v24835_v1  ;;  %784 = vst.msk [vmem:[#allocation4 + $0x70] sm:$0xff] %vm660_vm0, %v24835_v1 }
  0xad   : > { %786 = vst.msk [vmem:[#allocation4 + $0x80] sm:$0xff] %vm660_vm0, %v24835_v1  ;;  %788 = vst.msk [vmem:[#allocation4 + $0x90] sm:$0xff] %vm660_vm0, %v24835_v1 }
  0xae   : > { %790 = vst.msk [vmem:[#allocation5] sm:$0xff] %vm660_vm0, %v24835_v1  ;;  %792 = vst.msk [vmem:[#allocation5 + $0x10] sm:$0xff] %vm660_vm0, %v24835_v1  ;;  %17782 = vmatmul.mubr.msk.f32.gmra.mrb[16].mxu0 %vm857_vm2, %v834_v20 }
  0xaf   : > { %794 = vst.msk [vmem:[#allocation5 + $0x20] sm:$0xff] %vm660_vm0, %v24835_v1  ;;  %796 = vst.msk [vmem:[#allocation5 + $0x30] sm:$0xff] %vm660_vm0, %v24835_v1  ;;  %17784 = vmatprep.mubr.msk.f32.mxu0 %vm857_vm2, %v835_v21 }
  0xb0   : > { %798 = vst.msk [vmem:[#allocation5 + $0x40] sm:$0xff] %vm660_vm0, %v24835_v1  ;;  %800 = vst.msk [vmem:[#allocation5 + $0x50] sm:$0xff] %vm660_vm0, %v24835_v1 }
  0xb1   : > { %802 = vst.msk [vmem:[#allocation5 + $0x60] sm:$0xff] %vm660_vm0, %v24835_v1  ;;  %804 = vst.msk [vmem:[#allocation5 + $0x70] sm:$0xff] %vm660_vm0, %v24835_v1 }
  0xb2   : > { %806 = vst.msk [vmem:[#allocation5 + $0x80] sm:$0xff] %vm660_vm0, %v24835_v1  ;;  %808 = vst.msk [vmem:[#allocation5 + $0x90] sm:$0xff] %vm660_vm0, %v24835_v1  ;;  %17785 = vmatmul.mubr.msk.f32.gmra.mrb[18].mxu0 %vm857_vm2, %v836_v22 }
  0xb3   : > { %667 = vst.msk [vmem:[#allocation2 + $0x28] sm:$0x3] %vm663_vm1, %v24835_v1  ;;  %664 = vst.msk [vmem:[#allocation2 + $0x10] sm:$0x3] %vm663_vm1, %v24835_v1  ;;  %17787 = vmatprep.mubr.msk.f32.mxu0 %vm857_vm2, %v837_v23 }
  0xb4   : > { %670 = vst.msk [vmem:[#allocation2 + $0x40] sm:$0x3] %vm663_vm1, %v24835_v1  ;;  %673 = vst.msk [vmem:[#allocation2 + $0x58] sm:$0x3] %vm663_vm1, %v24835_v1 }
  0xb5   : > { %676 = vst.msk [vmem:[#allocation2 + $0x70] sm:$0x3] %vm663_vm1, %v24835_v1  ;;  %679 = vst.msk [vmem:[#allocation2 + $0x88] sm:$0x3] %vm663_vm1, %v24835_v1 }
  0xb6   : > { %682 = vst.msk [vmem:[#allocation2 + $0xa0] sm:$0x3] %vm663_vm1, %v24835_v1  ;;  %685 = vst.msk [vmem:[#allocation2 + $0xb8] sm:$0x3] %vm663_vm1, %v24835_v1  ;;  %17788 = vmatmul.mubr.msk.f32.gmra.mrb[20].mxu0 %vm857_vm2, %v838_v24 }
  0xb7   : > { %688 = vst.msk [vmem:[#allocation2 + $0xd0] sm:$0x3] %vm663_vm1, %v24835_v1  ;;  %691 = vst.msk [vmem:[#allocation2 + $0xe8] sm:$0x3] %vm663_vm1, %v24835_v1  ;;  %17790 = vmatprep.mubr.msk.f32.mxu0 %vm857_vm2, %v839_v25 }
  0xb8   : > { %694 = vst.msk [vmem:[#allocation2 + $0x100] sm:$0x3] %vm663_vm1, %v24835_v1  ;;  %697 = vst.msk [vmem:[#allocation2 + $0x118] sm:$0x3] %vm663_vm1, %v24835_v1 }
  0xb9   : > { %700 = vst.msk [vmem:[#allocation2 + $0x130] sm:$0x3] %vm663_vm1, %v24835_v1  ;;  %703 = vst.msk [vmem:[#allocation2 + $0x148] sm:$0x3] %vm663_vm1, %v24835_v1 }
  0xba   : > { %706 = vst.msk [vmem:[#allocation2 + $0x160] sm:$0x3] %vm663_vm1, %v24835_v1  ;;  %709 = vst.msk [vmem:[#allocation2 + $0x178] sm:$0x3] %vm663_vm1, %v24835_v1  ;;  %17791 = vmatmul.mubr.msk.f32.gmra.mrb[22].mxu0 %vm857_vm2, %v840_v26  ;;  %v1345_v40 = vld [vmem:[#allocation2 + $0x9] sm:$0xff] }
  0xbb   : > { %712 = vst.msk [vmem:[#allocation2 + $0x190] sm:$0x3] %vm663_vm1, %v24835_v1  ;;  %715 = vst.msk [vmem:[#allocation2 + $0x1a8] sm:$0x3] %vm663_vm1, %v24835_v1  ;;  %17793 = vmatprep.mubr.msk.f32.mxu0 %vm857_vm2, %v841_v27  ;;  %17814 = vmatmul.mubr.msk.f32.vlgmr.msra.gmra.mrb[0].mxu1 %vm660_vm0, %v1345_v40 }
  0xbc   : > { %718 = vst.msk [vmem:[#allocation3 + $0x10] sm:$0x3] %vm663_vm1, %v24835_v1  ;;  %721 = vst.msk [vmem:[#allocation3 + $0x28] sm:$0x3] %vm663_vm1, %v24835_v1  ;;  %19786 = vmatpush3.bf16.msra.mxu1 %v19783_v45 }
  0xbd   : > { %724 = vst.msk [vmem:[#allocation3 + $0x40] sm:$0x3] %vm663_vm1, %v24835_v1  ;;  %727 = vst.msk [vmem:[#allocation3 + $0x58] sm:$0x3] %vm663_vm1, %v24835_v1  ;;  %19788 = vmatprep.subr.bf16.mxu1 %v19787_v48 }
  0xbe   : > { %730 = vst.msk [vmem:[#allocation3 + $0x70] sm:$0x3] %vm663_vm1, %v24835_v1  ;;  %733 = vst.msk [vmem:[#allocation3 + $0x88] sm:$0x3] %vm663_vm1, %v24835_v1  ;;  %17794 = vmatmul.mubr.msk.f32.gmra.mrb[24].mxu0 %vm857_vm2, %v842_v28 }
  0xbf   : > { %736 = vst.msk [vmem:[#allocation3 + $0xa0] sm:$0x3] %vm663_vm1, %v24835_v1  ;;  %739 = vst.msk [vmem:[#allocation3 + $0xb8] sm:$0x3] %vm663_vm1, %v24835_v1  ;;  %17796 = vmatprep.mubr.msk.f32.mxu0 %vm857_vm2, %v843_v29 }
  0xc0   : > { %742 = vst.msk [vmem:[#allocation3 + $0xd0] sm:$0x3] %vm663_vm1, %v24835_v1  ;;  %745 = vst.msk [vmem:[#allocation3 + $0xe8] sm:$0x3] %vm663_vm1, %v24835_v1  ;;  %19790 = vmatpush3.bf16.msra.mxu1 %v19787_v48 }
  0xc1   : > { %748 = vst.msk [vmem:[#allocation3 + $0x100] sm:$0x3] %vm663_vm1, %v24835_v1  ;;  %751 = vst.msk [vmem:[#allocation3 + $0x118] sm:$0x3] %vm663_vm1, %v24835_v1  ;;  %19792 = vmatprep.subr.bf16.mxu1 %v21895_v51 }
  0xc2   : > { %754 = vst.msk [vmem:[#allocation3 + $0x130] sm:$0x3] %vm663_vm1, %v24835_v1  ;;  %757 = vst.msk [vmem:[#allocation3 + $0x148] sm:$0x3] %vm663_vm1, %v24835_v1  ;;  %17797 = vmatmul.mubr.msk.f32.gmra.mrb[26].mxu0 %vm857_vm2, %v844_v30 }
  0xc3   : > { %760 = vst.msk [vmem:[#allocation3 + $0x160] sm:$0x3] %vm663_vm1, %v24835_v1  ;;  %763 = vst.msk [vmem:[#allocation3 + $0x178] sm:$0x3] %vm663_vm1, %v24835_v1  ;;  %17799 = vmatprep.mubr.msk.f32.mxu0 %vm857_vm2, %v845_v31 }
  0xc4   : > { %766 = vst.msk [vmem:[#allocation3 + $0x190] sm:$0x3] %vm663_vm1, %v24835_v1  ;;  %769 = vst.msk [vmem:[#allocation3 + $0x1a8] sm:$0x3] %vm663_vm1, %v24835_v1 }
  0xc5   : > { %771 = vst.msk [vmem:[#allocation4 + $0x8] sm:$0x3] %vm663_vm1, %v24835_v1  ;;  %773 = vst.msk [vmem:[#allocation4 + $0x18] sm:$0x3] %vm663_vm1, %v24835_v1 }
  0xc6   : > { %775 = vst.msk [vmem:[#allocation4 + $0x28] sm:$0x3] %vm663_vm1, %v24835_v1  ;;  %777 = vst.msk [vmem:[#allocation4 + $0x38] sm:$0x3] %vm663_vm1, %v24835_v1  ;;  %17800 = vmatmul.mubr.msk.f32.gmra.mrb[28].mxu0 %vm857_vm2, %v846_v32 }
  0xc7   : > { %779 = vst.msk [vmem:[#allocation4 + $0x48] sm:$0x3] %vm663_vm1, %v24835_v1  ;;  %781 = vst.msk [vmem:[#allocation4 + $0x58] sm:$0x3] %vm663_vm1, %v24835_v1  ;;  %17802 = vmatprep.mubr.msk.f32.mxu0 %vm857_vm2, %v847_v41 }
  0xc8   : > { %783 = vst.msk [vmem:[#allocation4 + $0x68] sm:$0x3] %vm663_vm1, %v24835_v1  ;;  %785 = vst.msk [vmem:[#allocation4 + $0x78] sm:$0x3] %vm663_vm1, %v24835_v1 }
  0xc9   : > { %787 = vst.msk [vmem:[#allocation4 + $0x88] sm:$0x3] %vm663_vm1, %v24835_v1  ;;  %789 = vst.msk [vmem:[#allocation4 + $0x98] sm:$0x3] %vm663_vm1, %v24835_v1 }
  0xca   : > { %791 = vst.msk [vmem:[#allocation5 + $0x8] sm:$0x3] %vm663_vm1, %v24835_v1  ;;  %793 = vst.msk [vmem:[#allocation5 + $0x18] sm:$0x3] %vm663_vm1, %v24835_v1  ;;  %17803 = vmatmul.mubr.msk.f32.gmra.mrb[30].mxu0 %vm857_vm2, %v848_v42 }
  0xcb   : > { %795 = vst.msk [vmem:[#allocation5 + $0x28] sm:$0x3] %vm663_vm1, %v24835_v1  ;;  %797 = vst.msk [vmem:[#allocation5 + $0x38] sm:$0x3] %vm663_vm1, %v24835_v1 }
  0xcc   : > { %799 = vst.msk [vmem:[#allocation5 + $0x48] sm:$0x3] %vm663_vm1, %v24835_v1  ;;  %801 = vst.msk [vmem:[#allocation5 + $0x58] sm:$0x3] %vm663_vm1, %v24835_v1 }
  0xcd   : > { %803 = vst.msk [vmem:[#allocation5 + $0x68] sm:$0x3] %vm663_vm1, %v24835_v1  ;;  %805 = vst.msk [vmem:[#allocation5 + $0x78] sm:$0x3] %vm663_vm1, %v24835_v1 }
  0xce   : > { %807 = vst.msk [vmem:[#allocation5 + $0x88] sm:$0x3] %vm663_vm1, %v24835_v1  ;;  %809 = vst.msk [vmem:[#allocation5 + $0x98] sm:$0x3] %vm663_vm1, %v24835_v1  ;;  %v2449_v1 = vld [vmem:[#allocation8 + $0x78] sm:$0xff] }
 0x161   : > { %v17759_v53 = vpop.f32.mrb[0].mxu0 }
 0x162   : > { %v1026_v54 = vadd.f32 %v17759_v53, %v21901_v52  ;;  %v1020_v55 = vpop.f32.mrb[1].mxu0 }
 0x163   : > { %v1021_v56 = vadd.f32 %v21901_v52, %v1020_v55 }
 0x164   : > { %vm1180_vm3 = vcmp.ge.f32.partialorder %v1026_v54, 0.0  ;;  %v1212_v57 = vmul.f32 0.2, %v1026_v54 }
 0x165   : > { %vm1179_vm4 = vcmp.ge.f32.partialorder %v1021_v56, 0.0  ;;  %v1211_v58 = vmul.f32 0.2, %v1021_v56  ;;  %v17762_v59 = vpop.f32.mrb[2].mxu0 }
 0x166   : > { %v1244_v60 = vsel %vm1180_vm3, %v1026_v54, %v1212_v57  ;;  %v1036_v61 = vadd.f32 %v17762_v59, %v21901_v52  ;;  %v1030_v62 = vpop.f32.mrb[3].mxu0 }
 0x167   : > { %1277 = vst.msk [vmem:[#allocation2 + $0x21] sm:$0xff] %vm660_vm0, %v1244_v60  ;;  %v1243_v63 = vsel %vm1179_vm4, %v1021_v56, %v1211_v58  ;;  %v1031_v0 = vadd.f32 %v21901_v52, %v1030_v62 }
 0x168   : > { %1276 = vst.msk [vmem:[#allocation2 + $0x19] sm:$0xff] %vm660_vm0, %v1243_v63  ;;  %vm1182_vm5 = vcmp.ge.f32.partialorder %v1036_v61, 0.0  ;;  %v1214_v2 = vmul.f32 0.2, %v1036_v61 }
 0x169   : > { %vm1181_vm6 = vcmp.ge.f32.partialorder %v1031_v0, 0.0  ;;  %v1213_v3 = vmul.f32 0.2, %v1031_v0  ;;  %v17765_v4 = vpop.f32.mrb[4].mxu0 }
 0x16a   : > { %v1246_v5 = vsel %vm1182_vm5, %v1036_v61, %v1214_v2  ;;  %v1046_v6 = vadd.f32 %v17765_v4, %v21901_v52  ;;  %v1040_v7 = vpop.f32.mrb[5].mxu0 }
 0x16b   : > { %1279 = vst.msk [vmem:[#allocation2 + $0x39] sm:$0xff] %vm660_vm0, %v1246_v5  ;;  %v1245_v8 = vsel %vm1181_vm6, %v1031_v0, %v1213_v3  ;;  %v1041_v9 = vadd.f32 %v21901_v52, %v1040_v7 }
 0x16c   : > { %1278 = vst.msk [vmem:[#allocation2 + $0x31] sm:$0xff] %vm660_vm0, %v1245_v8  ;;  %vm1184_vm7 = vcmp.ge.f32.partialorder %v1046_v6, 0.0  ;;  %v1216_v10 = vmul.f32 0.2, %v1046_v6 }
 0x16d   : > { %vm1183_vm8 = vcmp.ge.f32.partialorder %v1041_v9, 0.0  ;;  %v1215_v11 = vmul.f32 0.2, %v1041_v9  ;;  %v17768_v12 = vpop.f32.mrb[6].mxu0 }
 0x16e   : > { %v1248_v13 = vsel %vm1184_vm7, %v1046_v6, %v1216_v10  ;;  %v1056_v14 = vadd.f32 %v17768_v12, %v21901_v52  ;;  %v1050_v15 = vpop.f32.mrb[7].mxu0  ;;  %v21921_v20 = vld [vmem:[#allocation2 + $0x21] sm:$0xff] }
 0x16f   : > { %1281 = vst.msk [vmem:[#allocation2 + $0x51] sm:$0xff] %vm660_vm0, %v1248_v13  ;;  %v1247_v16 = vsel %vm1183_vm8, %v1041_v9, %v1215_v11  ;;  %v1051_v17 = vadd.f32 %v21901_v52, %v1050_v15  ;;  %v21916_v18 = vld [vmem:[#allocation2 + $0x19] sm:$0xff] }
 0x170   : > { %1280 = vst.msk [vmem:[#allocation2 + $0x49] sm:$0xff] %vm660_vm0, %v1247_v16  ;;  %vm1186_vm9 = vcmp.ge.f32.partialorder %v1056_v14, 0.0  ;;  %v1218_v19 = vmul.f32 0.2, %v1056_v14  ;;  %17816 = vmatprep.mubr.msk.f32.mxu1 %vm660_vm0, %v21916_v18 }
 0x171   : > { %vm1185_vm10 = vcmp.ge.f32.partialorder %v1051_v17, 0.0  ;;  %v1217_v21 = vmul.f32 0.2, %v1051_v17  ;;  %v17771_v22 = vpop.f32.mrb[8].mxu0  ;;  %17817 = vmatmul.mubr.msk.f32.gmra.mrb[2].mxu1 %vm660_vm0, %v21921_v20 }
 0x172   : > { %v1250_v23 = vsel %vm1186_vm9, %v1056_v14, %v1218_v19  ;;  %v1066_v24 = vadd.f32 %v17771_v22, %v21901_v52  ;;  %v1060_v25 = vpop.f32.mrb[9].mxu0  ;;  %v21933_v30 = vld [vmem:[#allocation2 + $0x39] sm:$0xff] }
 0x173   : > { %1283 = vst.msk [vmem:[#allocation2 + $0x69] sm:$0xff] %vm660_vm0, %v1250_v23  ;;  %v1249_v26 = vsel %vm1185_vm10, %v1051_v17, %v1217_v21  ;;  %v1061_v27 = vadd.f32 %v21901_v52, %v1060_v25  ;;  %v21928_v28 = vld [vmem:[#allocation2 + $0x31] sm:$0xff] }
 0x174   : > { %1282 = vst.msk [vmem:[#allocation2 + $0x61] sm:$0xff] %vm660_vm0, %v1249_v26  ;;  %vm1188_vm11 = vcmp.ge.f32.partialorder %v1066_v24, 0.0  ;;  %v1220_v29 = vmul.f32 0.2, %v1066_v24  ;;  %17819 = vmatprep.mubr.msk.f32.mxu1 %vm660_vm0, %v21928_v28 }
 0x175   : > { %vm1187_vm12 = vcmp.ge.f32.partialorder %v1061_v27, 0.0  ;;  %v1219_v31 = vmul.f32 0.2, %v1061_v27  ;;  %v17774_v32 = vpop.f32.mrb[10].mxu0  ;;  %17820 = vmatmul.mubr.msk.f32.gmra.mrb[4].mxu1 %vm660_vm0, %v21933_v30 }
 0x176   : > { %v1252_v33 = vsel %vm1188_vm11, %v1066_v24, %v1220_v29  ;;  %v1076_v34 = vadd.f32 %v17774_v32, %v21901_v52  ;;  %v1070_v35 = vpop.f32.mrb[11].mxu0  ;;  %v21945_v40 = vld [vmem:[#allocation2 + $0x51] sm:$0xff] }
 0x177   : > { %1285 = vst.msk [vmem:[#allocation2 + $0x81] sm:$0xff] %vm660_vm0, %v1252_v33  ;;  %v1251_v36 = vsel %vm1187_vm12, %v1061_v27, %v1219_v31  ;;  %v1071_v37 = vadd.f32 %v21901_v52, %v1070_v35  ;;  %v21940_v38 = vld [vmem:[#allocation2 + $0x49] sm:$0xff] }
 0x178   : > { %1284 = vst.msk [vmem:[#allocation2 + $0x79] sm:$0xff] %vm660_vm0, %v1251_v36  ;;  %vm1190_vm13 = vcmp.ge.f32.partialorder %v1076_v34, 0.0  ;;  %v1222_v39 = vmul.f32 0.2, %v1076_v34  ;;  %17822 = vmatprep.mubr.msk.f32.mxu1 %vm660_vm0, %v21940_v38 }
 0x179   : > { %vm1189_vm14 = vcmp.ge.f32.partialorder %v1071_v37, 0.0  ;;  %v1221_v41 = vmul.f32 0.2, %v1071_v37  ;;  %v17777_v42 = vpop.f32.mrb[12].mxu0  ;;  %17823 = vmatmul.mubr.msk.f32.gmra.mrb[6].mxu1 %vm660_vm0, %v21945_v40 }
 0x17a   : > { %v1254_v43 = vsel %vm1190_vm13, %v1076_v34, %v1222_v39  ;;  %v1086_v44 = vadd.f32 %v17777_v42, %v21901_v52  ;;  %v1080_v45 = vpop.f32.mrb[13].mxu0  ;;  %v21957_v50 = vld [vmem:[#allocation2 + $0x69] sm:$0xff] }
 0x17b   : > { %1287 = vst.msk [vmem:[#allocation2 + $0x99] sm:$0xff] %vm660_vm0, %v1254_v43  ;;  %v1253_v46 = vsel %vm1189_vm14, %v1071_v37, %v1221_v41  ;;  %v1081_v47 = vadd.f32 %v21901_v52, %v1080_v45  ;;  %v21952_v48 = vld [vmem:[#allocation2 + $0x61] sm:$0xff] }
 0x17c   : > { %1286 = vst.msk [vmem:[#allocation2 + $0x91] sm:$0xff] %vm660_vm0, %v1253_v46  ;;  %vm1192_vm15 = vcmp.ge.f32.partialorder %v1086_v44, 0.0  ;;  %v1224_v49 = vmul.f32 0.2, %v1086_v44  ;;  %17825 = vmatprep.mubr.msk.f32.mxu1 %vm660_vm0, %v21952_v48 }
 0x17d   : > { %vm1191_vm1 = vcmp.ge.f32.partialorder %v1081_v47, 0.0  ;;  %v1223_v53 = vmul.f32 0.2, %v1081_v47  ;;  %v17780_v54 = vpop.f32.mrb[14].mxu0  ;;  %17826 = vmatmul.mubr.msk.f32.gmra.mrb[8].mxu1 %vm660_vm0, %v21957_v50 }
 0x17e   : > { %v1256_v55 = vsel %vm1192_vm15, %v1086_v44, %v1224_v49  ;;  %v1096_v56 = vadd.f32 %v17780_v54, %v21901_v52  ;;  %v1090_v57 = vpop.f32.mrb[15].mxu0  ;;  %v21969_v62 = vld [vmem:[#allocation2 + $0x81] sm:$0xff] }
 0x17f   : > { %1289 = vst.msk [vmem:[#allocation2 + $0xb1] sm:$0xff] %vm660_vm0, %v1256_v55  ;;  %v1255_v58 = vsel %vm1191_vm1, %v1081_v47, %v1223_v53  ;;  %v1091_v59 = vadd.f32 %v21901_v52, %v1090_v57  ;;  %v21964_v60 = vld [vmem:[#allocation2 + $0x79] sm:$0xff] }
 0x180   : > { %1288 = vst.msk [vmem:[#allocation2 + $0xa9] sm:$0xff] %vm660_vm0, %v1255_v58  ;;  %vm1194_vm2 = vcmp.ge.f32.partialorder %v1096_v56, 0.0  ;;  %v1226_v61 = vmul.f32 0.2, %v1096_v56  ;;  %17828 = vmatprep.mubr.msk.f32.mxu1 %vm660_vm0, %v21964_v60 }
 0x181   : > { %vm1193_vm3 = vcmp.ge.f32.partialorder %v1091_v59, 0.0  ;;  %v1225_v63 = vmul.f32 0.2, %v1091_v59  ;;  %v17783_v0 = vpop.f32.mrb[16].mxu0  ;;  %17829 = vmatmul.mubr.msk.f32.gmra.mrb[10].mxu1 %vm660_vm0, %v21969_v62 }
 0x182   : > { %v1258_v2 = vsel %vm1194_vm2, %v1096_v56, %v1226_v61  ;;  %v1106_v3 = vadd.f32 %v17783_v0, %v21901_v52  ;;  %v1100_v4 = vpop.f32.mrb[17].mxu0  ;;  %v21981_v9 = vld [vmem:[#allocation2 + $0x99] sm:$0xff] }
 0x183   : > { %1291 = vst.msk [vmem:[#allocation2 + $0xc9] sm:$0xff] %vm660_vm0, %v1258_v2  ;;  %v1257_v5 = vsel %vm1193_vm3, %v1091_v59, %v1225_v63  ;;  %v1101_v6 = vadd.f32 %v21901_v52, %v1100_v4  ;;  %v21976_v7 = vld [vmem:[#allocation2 + $0x91] sm:$0xff] }
 0x184   : > { %1290 = vst.msk [vmem:[#allocation2 + $0xc1] sm:$0xff] %vm660_vm0, %v1257_v5  ;;  %vm1196_vm4 = vcmp.ge.f32.partialorder %v1106_v3, 0.0  ;;  %v1228_v8 = vmul.f32 0.2, %v1106_v3  ;;  %17831 = vmatprep.mubr.msk.f32.mxu1 %vm660_vm0, %v21976_v7 }
 0x185   : > { %vm1195_vm5 = vcmp.ge.f32.partialorder %v1101_v6, 0.0  ;;  %v1227_v10 = vmul.f32 0.2, %v1101_v6  ;;  %v17786_v11 = vpop.f32.mrb[18].mxu0  ;;  %17832 = vmatmul.mubr.msk.f32.gmra.mrb[12].mxu1 %vm660_vm0, %v21981_v9 }
 0x186   : > { %v1260_v12 = vsel %vm1196_vm4, %v1106_v3, %v1228_v8  ;;  %v1116_v13 = vadd.f32 %v17786_v11, %v21901_v52  ;;  %v1110_v14 = vpop.f32.mrb[19].mxu0  ;;  %v21993_v21 = vld [vmem:[#allocation2 + $0xb1] sm:$0xff] }
 0x187   : > { %1293 = vst.msk [vmem:[#allocation2 + $0xe1] sm:$0xff] %vm660_vm0, %v1260_v12  ;;  %v1259_v15 = vsel %vm1195_vm5, %v1101_v6, %v1227_v10  ;;  %v1111_v16 = vadd.f32 %v21901_v52, %v1110_v14  ;;  %v21988_v17 = vld [vmem:[#allocation2 + $0xa9] sm:$0xff] }
 0x188   : > { %1292 = vst.msk [vmem:[#allocation2 + $0xd9] sm:$0xff] %vm660_vm0, %v1259_v15  ;;  %vm1198_vm6 = vcmp.ge.f32.partialorder %v1116_v13, 0.0  ;;  %v1230_v19 = vmul.f32 0.2, %v1116_v13  ;;  %17834 = vmatprep.mubr.msk.f32.mxu1 %vm660_vm0, %v21988_v17 }
 0x189   : > { %vm1197_vm7 = vcmp.ge.f32.partialorder %v1111_v16, 0.0  ;;  %v1229_v22 = vmul.f32 0.2, %v1111_v16  ;;  %v17789_v23 = vpop.f32.mrb[20].mxu0  ;;  %17835 = vmatmul.mubr.msk.f32.gmra.mrb[14].mxu1 %vm660_vm0, %v21993_v21 }
 0x18a   : > { %v1262_v24 = vsel %vm1198_vm6, %v1116_v13, %v1230_v19  ;;  %v1126_v25 = vadd.f32 %v17789_v23, %v21901_v52  ;;  %v1120_v26 = vpop.f32.mrb[21].mxu0  ;;  %v22005_v33 = vld [vmem:[#allocation2 + $0xc9] sm:$0xff] }
 0x18b   : > { %1295 = vst.msk [vmem:[#allocation2 + $0xf9] sm:$0xff] %vm660_vm0, %v1262_v24  ;;  %v1261_v27 = vsel %vm1197_vm7, %v1111_v16, %v1229_v22  ;;  %v1121_v29 = vadd.f32 %v21901_v52, %v1120_v26  ;;  %v22000_v31 = vld [vmem:[#allocation2 + $0xc1] sm:$0xff] }
 0x18c   : > { %1294 = vst.msk [vmem:[#allocation2 + $0xf1] sm:$0xff] %vm660_vm0, %v1261_v27  ;;  %vm1200_vm8 = vcmp.ge.f32.partialorder %v1126_v25, 0.0  ;;  %v1232_v32 = vmul.f32 0.2, %v1126_v25  ;;  %17837 = vmatprep.mubr.msk.f32.mxu1 %vm660_vm0, %v22000_v31 }
 0x18d   : > { %vm1199_vm9 = vcmp.ge.f32.partialorder %v1121_v29, 0.0  ;;  %v1231_v34 = vmul.f32 0.2, %v1121_v29  ;;  %v17792_v35 = vpop.f32.mrb[22].mxu0  ;;  %17838 = vmatmul.mubr.msk.f32.gmra.mrb[16].mxu1 %vm660_vm0, %v22005_v33 }
 0x18e   : > { %v1264_v36 = vsel %vm1200_vm8, %v1126_v25, %v1232_v32  ;;  %v1136_v37 = vadd.f32 %v17792_v35, %v21901_v52  ;;  %v1130_v39 = vpop.f32.mrb[23].mxu0  ;;  %v22017_v45 = vld [vmem:[#allocation2 + $0xe1] sm:$0xff] }
 0x18f   : > { %1297 = vst.msk [vmem:[#allocation2 + $0x111] sm:$0xff] %vm660_vm0, %v1264_v36  ;;  %v1263_v41 = vsel %vm1199_vm9, %v1121_v29, %v1231_v34  ;;  %v1131_v42 = vadd.f32 %v21901_v52, %v1130_v39  ;;  %v22012_v43 = vld [vmem:[#allocation2 + $0xd9] sm:$0xff] }
 0x190   : > { %1296 = vst.msk [vmem:[#allocation2 + $0x109] sm:$0xff] %vm660_vm0, %v1263_v41  ;;  %vm1202_vm10 = vcmp.ge.f32.partialorder %v1136_v37, 0.0  ;;  %v1234_v44 = vmul.f32 0.2, %v1136_v37  ;;  %17840 = vmatprep.mubr.msk.f32.mxu1 %vm660_vm0, %v22012_v43  ;;  %v2058_v41 = vld [vmem:[#allocation8 + $0x50] sm:$0xff] }
 0x191   : > { %vm1201_vm11 = vcmp.ge.f32.partialorder %v1131_v42, 0.0  ;;  %v1233_v46 = vmul.f32 0.2, %v1131_v42  ;;  %v17795_v47 = vpop.f32.mrb[24].mxu0  ;;  %17841 = vmatmul.mubr.msk.f32.gmra.mrb[18].mxu1 %vm660_vm0, %v22017_v45 }
 0x192   : > { %v1266_v49 = vsel %vm1202_vm10, %v1136_v37, %v1234_v44  ;;  %v1146_v53 = vadd.f32 %v17795_v47, %v21901_v52  ;;  %v1140_v54 = vpop.f32.mrb[25].mxu0  ;;  %v22029_v59 = vld [vmem:[#allocation2 + $0xf9] sm:$0xff]  ;;  %v1309_v44 = vld [vmem:[#allocation2 + $0x8] sm:$0xff]  ;;  %v2446_v47 = vld [vmem:[#allocation8 + $0x60] sm:$0xff] }
 0x193   : > { %1299 = vst.msk [vmem:[#allocation2 + $0x129] sm:$0xff] %vm660_vm0, %v1266_v49  ;;  %v1265_v55 = vsel %vm1201_vm11, %v1131_v42, %v1233_v46  ;;  %v1141_v56 = vadd.f32 %v21901_v52, %v1140_v54  ;;  %v22024_v57 = vld [vmem:[#allocation2 + $0xf1] sm:$0xff]  ;;  %v1308_v37 = vld [vmem:[#allocation2] sm:$0xff]  ;;  %v2059_v42 = vld [vmem:[#allocation8 + $0x58] sm:$0xff] }
 0x194   : > { %1298 = vst.msk [vmem:[#allocation2 + $0x121] sm:$0xff] %vm660_vm0, %v1265_v55  ;;  %vm1204_vm12 = vcmp.ge.f32.partialorder %v1146_v53, 0.0  ;;  %v1236_v58 = vmul.f32 0.2, %v1146_v53  ;;  %17843 = vmatprep.mubr.msk.f32.mxu1 %vm660_vm0, %v22024_v57  ;;  %v19795_v46 = vpack.c.bf16 %v2059_v42, %v2058_v41  ;;  %v2447_v49 = vld [vmem:[#allocation8 + $0x68] sm:$0xff] }
 0x195   : > { %vm1203_vm13 = vcmp.ge.f32.partialorder %v1141_v56, 0.0  ;;  %v1235_v61 = vmul.f32 0.2, %v1141_v56  ;;  %v17798_v63 = vpop.f32.mrb[26].mxu0  ;;  %17844 = vmatmul.mubr.msk.f32.gmra.mrb[20].mxu1 %vm660_vm0, %v22029_v59  ;;  %v22090_v54 = vpack.c.bf16 %v2447_v49, %v2446_v47  ;;  %v22092_v55 = vld [vmem:[#allocation2 + $0x20] sm:$0xff] }
 0x196   : > { %v1268_v0 = vsel %vm1204_vm12, %v1146_v53, %v1236_v58  ;;  %v1156_v2 = vadd.f32 %v17798_v63, %v21901_v52  ;;  %v1150_v3 = vpop.f32.mrb[27].mxu0  ;;  %v22041_v10 = vld [vmem:[#allocation2 + $0x111] sm:$0xff]  ;;  %v22113_v63 = vld [vmem:[#allocation2 + $0x60] sm:$0xff] }
 0x197   : > { %1301 = vst.msk [vmem:[#allocation2 + $0x141] sm:$0xff] %vm660_vm0, %v1268_v0  ;;  %v1267_v4 = vsel %vm1203_vm13, %v1141_v56, %v1235_v61  ;;  %v1151_v5 = vadd.f32 %v21901_v52, %v1150_v3  ;;  %v22036_v6 = vld [vmem:[#allocation2 + $0x109] sm:$0xff]  ;;  %v22085_v53 = vld [vmem:[#allocation2 + $0x18] sm:$0xff]  ;;  %v22125_v3 = vld [vmem:[#allocation2 + $0x80] sm:$0xff] }
 0x198   : > { %1300 = vst.msk [vmem:[#allocation2 + $0x139] sm:$0xff] %vm660_vm0, %v1267_v4  ;;  %vm1206_vm14 = vcmp.ge.f32.partialorder %v1156_v2, 0.0  ;;  %v1238_v8 = vmul.f32 0.2, %v1156_v2  ;;  %17846 = vmatprep.mubr.msk.f32.mxu1 %vm660_vm0, %v22036_v6  ;;  %v22096_v56 = vld [vmem:[#allocation2 + $0x30] sm:$0xff]  ;;  %v22101_v58 = vld [vmem:[#allocation2 + $0x38] sm:$0xff] }
 0x199   : > { %vm1205_vm15 = vcmp.ge.f32.partialorder %v1151_v5, 0.0  ;;  %v1237_v11 = vmul.f32 0.2, %v1151_v5  ;;  %v17801_v12 = vpop.f32.mrb[28].mxu0  ;;  %17847 = vmatmul.mubr.msk.f32.gmra.mrb[22].mxu1 %vm660_vm0, %v22041_v10  ;;  %v22109_v61 = vld [vmem:[#allocation2 + $0x50] sm:$0xff]  ;;  %v22117_v0 = vld [vmem:[#allocation2 + $0x68] sm:$0xff] }
 0x19a   : > { %v1270_v13 = vsel %vm1206_vm14, %v1156_v2, %v1238_v8  ;;  %v1166_v14 = vadd.f32 %v17801_v12, %v21901_v52  ;;  %v1160_v15 = vpop.f32.mrb[29].mxu0  ;;  %v22053_v24 = vld [vmem:[#allocation2 + $0x129] sm:$0xff]  ;;  %v22121_v2 = vld [vmem:[#allocation2 + $0x78] sm:$0xff]  ;;  %v22145_v12 = vld [vmem:[#allocation2 + $0xc0] sm:$0xff] }
 0x19b   : > { %1303 = vst.msk [vmem:[#allocation2 + $0x159] sm:$0xff] %vm660_vm0, %v1270_v13  ;;  %v1269_v16 = vsel %vm1205_vm15, %v1151_v5, %v1237_v11  ;;  %v1161_v19 = vadd.f32 %v21901_v52, %v1160_v15  ;;  %v22048_v22 = vld [vmem:[#allocation2 + $0x121] sm:$0xff]  ;;  %24990 = vst [vmem:[#allocation19_spill] sm:$0xff] %v22053_v24  ;;  %v22129_v4 = vld [vmem:[#allocation2 + $0x90] sm:$0xff] }
 0x19c   : > { %1302 = vst.msk [vmem:[#allocation2 + $0x151] sm:$0xff] %vm660_vm0, %v1269_v16  ;;  %vm1208_vm1 = vcmp.ge.f32.partialorder %v1166_v14, 0.0  ;;  %v1240_v23 = vmul.f32 0.2, %v1166_v14  ;;  %17849 = vmatprep.mubr.msk.f32.mxu1 %vm660_vm0, %v22048_v22  ;;  %v22133_v5 = vld [vmem:[#allocation2 + $0x98] sm:$0xff]  ;;  %v22137_v8 = vld [vmem:[#allocation2 + $0xa8] sm:$0xff] }
 0x19d   : > { %vm1207_vm2 = vcmp.ge.f32.partialorder %v1161_v19, 0.0  ;;  %v1239_v25 = vmul.f32 0.2, %v1161_v19  ;;  %17850 = vmatmul.mubr.msk.f32.gmra.mrb[24].mxu1 %vm660_vm0, %v22053_v24  ;;  %v22141_v11 = vld [vmem:[#allocation2 + $0xb0] sm:$0xff]  ;;  %v22149_v13 = vld [vmem:[#allocation2 + $0xc8] sm:$0xff]  ;;  %v22157_v15 = vld [vmem:[#allocation2 + $0xe0] sm:$0xff] }
 0x19e   : > { %v1272_v26 = vsel %vm1208_vm1, %v1166_v14, %v1240_v23  ;;  %v22063_v32 = vld [vmem:[#allocation2 + $0x141] sm:$0xff]  ;;  %v22153_v14 = vld [vmem:[#allocation2 + $0xd8] sm:$0xff]  ;;  %v22161_v16 = vld [vmem:[#allocation2 + $0xf0] sm:$0xff] }
 0x19f   : > { %1305 = vst.msk [vmem:[#allocation2 + $0x171] sm:$0xff] %vm660_vm0, %v1272_v26  ;;  %v1271_v27 = vsel %vm1207_vm2, %v1161_v19, %v1239_v25  ;;  %v22058_v29 = vld [vmem:[#allocation2 + $0x139] sm:$0xff]  ;;  %24992 = vst [vmem:[#allocation21_spill] sm:$0xff] %v22063_v32  ;;  %v22169_v23 = vld [vmem:[#allocation2 + $0x108] sm:$0xff]  ;;  %v17804_v25 = vpop.f32.mrb[30].mxu0 }
 0x1a0   : > { %24991 = vst [vmem:[#allocation20_spill] sm:$0xff] %v22058_v29  ;;  %1304 = vst.msk [vmem:[#allocation2 + $0x169] sm:$0xff] %vm660_vm0, %v1271_v27  ;;  %17852 = vmatprep.mubr.msk.f32.mxu1 %vm660_vm0, %v22058_v29  ;;  %v22165_v19 = vld [vmem:[#allocation2 + $0xf8] sm:$0xff]  ;;  %v1176_v26 = vadd.f32 %v17804_v25, %v21901_v52  ;;  %v1170_v27 = vpop.f32.mrb[31].mxu0  ;;  %v22179_v42 = vld [vmem:[#allocation2 + $0x120] sm:$0xff] }
 0x1a1   : > { %17853 = vmatmul.mubr.msk.f32.gmra.mrb[26].mxu1 %vm660_vm0, %v22063_v32  ;;  %v1171_v41 = vadd.f32 %v21901_v52, %v1170_v27  ;;  %v22183_v49 = vld [vmem:[#allocation2 + $0x128] sm:$0xff]  ;;  %v22188_v52 = vld [vmem:[#allocation2 + $0x138] sm:$0xff]  ;;  %v22193_v27 = vld [vmem:[#allocation2 + $0x140] sm:$0xff] }
 0x1a2   : > { %v22071_v35 = vld [vmem:[#allocation2 + $0x159] sm:$0xff]  ;;  %vm1210_vm3 = vcmp.ge.f32.partialorder %v1176_v26, 0.0  ;;  %v22222_v24 = vld [vmem:[#allocation2 + $0x22] sm:$0xff] }
 0x1a3   : > { %v22067_v34 = vld [vmem:[#allocation2 + $0x151] sm:$0xff]  ;;  %24994 = vst [vmem:[#allocation23_spill] sm:$0xff] %v22071_v35  ;;  %vm1209_vm4 = vcmp.ge.f32.partialorder %v1171_v41, 0.0  ;;  %v22215_v32 = vld [vmem:[#allocation2 + $0x1a] sm:$0xff] }
 0x1a4   : > { %24993 = vst [vmem:[#allocation22_spill] sm:$0xff] %v22067_v34  ;;  %17855 = vmatprep.mubr.msk.f32.mxu1 %vm660_vm0, %v22067_v34  ;;  %v2837_v34 = vld [vmem:[#allocation8 + $0x88] sm:$0xff] }
 0x1a5   : > { %17856 = vmatmul.mubr.msk.f32.gmra.mrb[28].mxu1 %vm660_vm0, %v22071_v35  ;;  %v2836_v35 = vld [vmem:[#allocation8 + $0x80] sm:$0xff] }
 0x1a6   : > { %v22079_v39 = vld [vmem:[#allocation2 + $0x171] sm:$0xff]  ;;  %v22220_v29 = vpack.c.bf16 %v2837_v34, %v2836_v35 }
 0x1a7   : > { %v22075_v36 = vld [vmem:[#allocation2 + $0x169] sm:$0xff]  ;;  %24996 = vst [vmem:[#allocation25_spill] sm:$0xff] %v22079_v39  ;;  %v22239_v35 = vld [vmem:[#allocation2 + $0x52] sm:$0xff] }
 0x1a8   : > { %24995 = vst [vmem:[#allocation24_spill] sm:$0xff] %v22075_v36  ;;  %17858 = vmatprep.mubr.msk.f32.mxu1 %vm660_vm0, %v22075_v36  ;;  %v22235_v34 = vld [vmem:[#allocation2 + $0x4a] sm:$0xff]  ;;  %25000 = vst [vmem:[#allocation29_spill] sm:$0xff] %v22239_v35 }
 0x1a9   : > { %17859 = vmatmul.mubr.msk.f32.gmra.mrb[30].mxu1 %vm660_vm0, %v22079_v39  ;;  %v2024_v39 = vld [vmem:[#allocation2 + $0xa] sm:$0xff]  ;;  %24999 = vst [vmem:[#allocation28_spill] sm:$0xff] %v22235_v34 }
 0x1aa   : > { %17869 = vmatprep.mubr.msk.f32.mxu1 %vm660_vm0, %v1308_v37  ;;  %v22174_v37 = vld [vmem:[#allocation2 + $0x110] sm:$0xff] }
 0x1ad   : > { %17870 = vmatmul.mubr.msk.f32.vlgmr.msra.gmra.mrb[0].mxu1 %vm660_vm0, %v1309_v44  ;;  %v1242_v44 = vmul.f32 0.2, %v1176_v26 }
 0x1ae   : > { %17872 = vmatprep.mubr.msk.f32.mxu1 %vm660_vm0, %v22085_v53  ;;  %19794 = vmatpush3.bf16.msra.mxu1 %v21895_v51  ;;  %v22105_v51 = vld [vmem:[#allocation2 + $0x48] sm:$0xff] }
 0x1af   : > { %19796 = vmatprep.subr.bf16.mxu1 %v19795_v46  ;;  %v1274_v47 = vsel %vm1210_vm3, %v1176_v26, %v1242_v44  ;;  %v22197_v26 = vld [vmem:[#allocation2 + $0x150] sm:$0xff]  ;;  %v22205_v44 = vld [vmem:[#allocation2 + $0x168] sm:$0xff] }
 0x1b0   : > { %1307 = vst.msk [vmem:[#allocation2 + $0x189] sm:$0xff] %vm660_vm0, %v1274_v47  ;;  %v22209_v47 = vld [vmem:[#allocation2 + $0x170] sm:$0xff] }
 0x1b1   : > { %17873 = vmatmul.mubr.msk.f32.gmra.mrb[2].mxu1 %vm660_vm0, %v22092_v55 }
 0x1b2   : > { %17875 = vmatprep.mubr.msk.f32.mxu1 %vm660_vm0, %v22096_v56  ;;  %19798 = vmatpush3.bf16.msra.mxu1 %v19795_v46  ;;  %v1241_v46 = vmul.f32 0.2, %v1171_v41 }
 0x1b3   : > { %19800 = vmatprep.subr.bf16.mxu1 %v22090_v54 }
 0x1b4   : > { %v1273_v25 = vsel %vm1209_vm4, %v1171_v41, %v1241_v46  ;;  %v22201_v41 = vld [vmem:[#allocation2 + $0x158] sm:$0xff]  ;;  %v2023_v46 = vld [vmem:[#allocation2 + $0x2] sm:$0xff] }
 0x1b5   : > { %17876 = vmatmul.mubr.msk.f32.gmra.mrb[4].mxu1 %vm660_vm0, %v22101_v58  ;;  %1306 = vst.msk [vmem:[#allocation2 + $0x181] sm:$0xff] %vm660_vm0, %v1273_v25  ;;  %v2448_v25 = vld [vmem:[#allocation8 + $0x70] sm:$0xff] }
 0x1b6   : > { %17878 = vmatprep.mubr.msk.f32.mxu1 %vm660_vm0, %v22105_v51  ;;  %v19803_v36 = vpack.c.bf16 %v2449_v1, %v2448_v25  ;;  %v22226_v1 = vld [vmem:[#allocation2 + $0x32] sm:$0xff]  ;;  %v22255_v25 = vld [vmem:[#allocation2 + $0x82] sm:$0xff] }
 0x1b7   : > { %24997 = vst [vmem:[#allocation26_spill] sm:$0xff] %v22226_v1  ;;  %25004 = vst [vmem:[#allocation33_spill] sm:$0xff] %v22255_v25 }
 0x1b9   : > { %17879 = vmatmul.mubr.msk.f32.gmra.mrb[6].mxu1 %vm660_vm0, %v22109_v61 }
 0x1ba   : > { %17881 = vmatprep.mubr.msk.f32.mxu1 %vm660_vm0, %v22113_v63 }
 0x1bd   : > { %17882 = vmatmul.mubr.msk.f32.gmra.mrb[8].mxu1 %vm660_vm0, %v22117_v0 }
 0x1be   : > { %17884 = vmatprep.mubr.msk.f32.mxu1 %vm660_vm0, %v22121_v2 }
 0x1c1   : > { %17885 = vmatmul.mubr.msk.f32.gmra.mrb[10].mxu1 %vm660_vm0, %v22125_v3 }
 0x1c2   : > { %17887 = vmatprep.mubr.msk.f32.mxu1 %vm660_vm0, %v22129_v4 }
 0x1c5   : > { %17888 = vmatmul.mubr.msk.f32.gmra.mrb[12].mxu1 %vm660_vm0, %v22133_v5 }
 0x1c6   : > { %17890 = vmatprep.mubr.msk.f32.mxu1 %vm660_vm0, %v22137_v8 }
 0x1c9   : > { %17891 = vmatmul.mubr.msk.f32.gmra.mrb[14].mxu1 %vm660_vm0, %v22141_v11 }
 0x1ca   : > { %17893 = vmatprep.mubr.msk.f32.mxu1 %vm660_vm0, %v22145_v12 }
 0x1cd   : > { %17894 = vmatmul.mubr.msk.f32.gmra.mrb[16].mxu1 %vm660_vm0, %v22149_v13 }
 0x1ce   : > { %17896 = vmatprep.mubr.msk.f32.mxu1 %vm660_vm0, %v22153_v14 }
 0x1d1   : > { %17897 = vmatmul.mubr.msk.f32.gmra.mrb[18].mxu1 %vm660_vm0, %v22157_v15 }
 0x1d2   : > { %17899 = vmatprep.mubr.msk.f32.mxu1 %vm660_vm0, %v22161_v16 }
 0x1d5   : > { %17900 = vmatmul.mubr.msk.f32.gmra.mrb[20].mxu1 %vm660_vm0, %v22165_v19 }
 0x1d6   : > { %17902 = vmatprep.mubr.msk.f32.mxu1 %vm660_vm0, %v22169_v23 }
 0x1d9   : > { %17903 = vmatmul.mubr.msk.f32.gmra.mrb[22].mxu1 %vm660_vm0, %v22174_v37 }
 0x1da   : > { %17905 = vmatprep.mubr.msk.f32.mxu1 %vm660_vm0, %v22179_v42 }
 0x1dd   : > { %17906 = vmatmul.mubr.msk.f32.gmra.mrb[24].mxu1 %vm660_vm0, %v22183_v49 }
 0x1de   : > { %17908 = vmatprep.mubr.msk.f32.mxu1 %vm660_vm0, %v22188_v52 }
 0x1e1   : > { %17909 = vmatmul.mubr.msk.f32.gmra.mrb[26].mxu1 %vm660_vm0, %v22193_v27 }
 0x1e2   : > { %17911 = vmatprep.mubr.msk.f32.mxu1 %vm660_vm0, %v22197_v26 }
 0x1e5   : > { %17912 = vmatmul.mubr.msk.f32.gmra.mrb[28].mxu1 %vm660_vm0, %v22201_v41 }
 0x1e6   : > { %17914 = vmatprep.mubr.msk.f32.mxu1 %vm660_vm0, %v22205_v44 }
 0x1e9   : > { %17915 = vmatmul.mubr.msk.f32.gmra.mrb[30].mxu1 %vm660_vm0, %v22209_v47 }
 0x1ea   : > { %17925 = vmatprep.mubr.msk.f32.mxu1 %vm660_vm0, %v2023_v46  ;;  %v22251_v46 = vld [vmem:[#allocation2 + $0x7a] sm:$0xff] }
 0x1eb   : > { %25003 = vst [vmem:[#allocation32_spill] sm:$0xff] %v22251_v46 }
 0x1ed   : > { %17926 = vmatmul.mubr.msk.f32.vlgmr.msra.gmra.mrb[0].mxu1 %vm660_vm0, %v2024_v39  ;;  %v22231_v39 = vld [vmem:[#allocation2 + $0x3a] sm:$0xff] }
 0x1ee   : > { %17928 = vmatprep.mubr.msk.f32.mxu1 %vm660_vm0, %v22215_v32  ;;  %19802 = vmatpush3.bf16.msra.mxu1 %v22090_v54  ;;  %24998 = vst [vmem:[#allocation27_spill] sm:$0xff] %v22231_v39  ;;  %v22243_v54 = vld [vmem:[#allocation2 + $0x62] sm:$0xff] }
 0x1ef   : > { %19804 = vmatprep.subr.bf16.mxu1 %v19803_v36  ;;  %25001 = vst [vmem:[#allocation30_spill] sm:$0xff] %v22243_v54 }
 0x1f1   : > { %17929 = vmatmul.mubr.msk.f32.gmra.mrb[2].mxu1 %vm660_vm0, %v22222_v24 }
 0x1f2   : > { %17931 = vmatprep.mubr.msk.f32.mxu1 %vm660_vm0, %v22226_v1  ;;  %19806 = vmatpush3.bf16.msra.mxu1 %v19803_v36  ;;  %v22247_v36 = vld [vmem:[#allocation2 + $0x6a] sm:$0xff]  ;;  %v3227_v1 = vld [vmem:[#allocation8 + $0xa8] sm:$0xff] }
 0x1f3   : > { %19808 = vmatprep.subr.bf16.mxu1 %v22220_v29  ;;  %25002 = vst [vmem:[#allocation31_spill] sm:$0xff] %v22247_v36 }
 0x1f5   : > { %17932 = vmatmul.mubr.msk.f32.gmra.mrb[4].mxu1 %vm660_vm0, %v22231_v39  ;;  %v2839_v39 = vld [vmem:[#allocation8 + $0x98] sm:$0xff] }
 0x1f6   : > { %17934 = vmatprep.mubr.msk.f32.mxu1 %vm660_vm0, %v22235_v34  ;;  %v2838_v34 = vld [vmem:[#allocation8 + $0x90] sm:$0xff] }
 0x1f9   : > { %17935 = vmatmul.mubr.msk.f32.gmra.mrb[6].mxu1 %vm660_vm0, %v22239_v35  ;;  %v22259_v35 = vld [vmem:[#allocation2 + $0x92] sm:$0xff] }
 0x1fa   : > { %17937 = vmatprep.mubr.msk.f32.mxu1 %vm660_vm0, %v22243_v54  ;;  %25005 = vst [vmem:[#allocation34_spill] sm:$0xff] %v22259_v35  ;;  %v22263_v54 = vld [vmem:[#allocation2 + $0x9a] sm:$0xff] }
 0x1fb   : > { %25006 = vst [vmem:[#allocation35_spill] sm:$0xff] %v22263_v54 }
 0x1fd   : > { %17938 = vmatmul.mubr.msk.f32.gmra.mrb[8].mxu1 %vm660_vm0, %v22247_v36  ;;  %v22267_v36 = vld [vmem:[#allocation2 + $0xaa] sm:$0xff] }
 0x1fe   : > { %17940 = vmatprep.mubr.msk.f32.mxu1 %vm660_vm0, %v22251_v46  ;;  %25007 = vst [vmem:[#allocation36_spill] sm:$0xff] %v22267_v36  ;;  %v22271_v46 = vld [vmem:[#allocation2 + $0xb2] sm:$0xff] }
 0x1ff   : > { %25008 = vst [vmem:[#allocation37_spill] sm:$0xff] %v22271_v46 }
 0x201   : > { %17941 = vmatmul.mubr.msk.f32.gmra.mrb[10].mxu1 %vm660_vm0, %v22255_v25  ;;  %v22275_v25 = vld [vmem:[#allocation2 + $0xc2] sm:$0xff] }
 0x202   : > { %17943 = vmatprep.mubr.msk.f32.mxu1 %vm660_vm0, %v22259_v35  ;;  %25009 = vst [vmem:[#allocation38_spill] sm:$0xff] %v22275_v25  ;;  %v22279_v35 = vld [vmem:[#allocation2 + $0xca] sm:$0xff] }
 0x203   : > { %25010 = vst [vmem:[#allocation39_spill] sm:$0xff] %v22279_v35 }
 0x205   : > { %17944 = vmatmul.mubr.msk.f32.gmra.mrb[12].mxu1 %vm660_vm0, %v22263_v54  ;;  %v22283_v54 = vld [vmem:[#allocation2 + $0xda] sm:$0xff] }
 0x206   : > { %17946 = vmatprep.mubr.msk.f32.mxu1 %vm660_vm0, %v22267_v36  ;;  %25011 = vst [vmem:[#allocation40_spill] sm:$0xff] %v22283_v54  ;;  %v22287_v36 = vld [vmem:[#allocation2 + $0xe2] sm:$0xff] }
 0x207   : > { %25012 = vst [vmem:[#allocation41_spill] sm:$0xff] %v22287_v36 }
 0x209   : > { %17947 = vmatmul.mubr.msk.f32.gmra.mrb[14].mxu1 %vm660_vm0, %v22271_v46  ;;  %v22291_v46 = vld [vmem:[#allocation2 + $0xf2] sm:$0xff] }
 0x20a   : > { %17949 = vmatprep.mubr.msk.f32.mxu1 %vm660_vm0, %v22275_v25  ;;  %25013 = vst [vmem:[#allocation42_spill] sm:$0xff] %v22291_v46  ;;  %v22295_v25 = vld [vmem:[#allocation2 + $0xfa] sm:$0xff] }
 0x20b   : > { %25014 = vst [vmem:[#allocation43_spill] sm:$0xff] %v22295_v25 }
 0x20d   : > { %17950 = vmatmul.mubr.msk.f32.gmra.mrb[16].mxu1 %vm660_vm0, %v22279_v35  ;;  %v22299_v35 = vld [vmem:[#allocation2 + $0x10a] sm:$0xff] }
 0x20e   : > { %17952 = vmatprep.mubr.msk.f32.mxu1 %vm660_vm0, %v22283_v54  ;;  %25015 = vst [vmem:[#allocation44_spill] sm:$0xff] %v22299_v35  ;;  %v22303_v54 = vld [vmem:[#allocation2 + $0x112] sm:$0xff] }
 0x20f   : > { %25016 = vst [vmem:[#allocation45_spill] sm:$0xff] %v22303_v54 }
 0x211   : > { %17953 = vmatmul.mubr.msk.f32.gmra.mrb[18].mxu1 %vm660_vm0, %v22287_v36  ;;  %v22307_v36 = vld [vmem:[#allocation2 + $0x122] sm:$0xff] }
 0x212   : > { %17955 = vmatprep.mubr.msk.f32.mxu1 %vm660_vm0, %v22291_v46  ;;  %25017 = vst [vmem:[#allocation46_spill] sm:$0xff] %v22307_v36  ;;  %v22311_v46 = vld [vmem:[#allocation2 + $0x12a] sm:$0xff] }
 0x213   : > { %25018 = vst [vmem:[#allocation47_spill] sm:$0xff] %v22311_v46 }
 0x215   : > { %17956 = vmatmul.mubr.msk.f32.gmra.mrb[20].mxu1 %vm660_vm0, %v22295_v25  ;;  %v22315_v25 = vld [vmem:[#allocation2 + $0x13a] sm:$0xff] }
 0x216   : > { %17958 = vmatprep.mubr.msk.f32.mxu1 %vm660_vm0, %v22299_v35  ;;  %25019 = vst [vmem:[#allocation48_spill] sm:$0xff] %v22315_v25  ;;  %v22319_v35 = vld [vmem:[#allocation2 + $0x142] sm:$0xff] }
 0x217   : > { %25020 = vst [vmem:[#allocation49_spill] sm:$0xff] %v22319_v35 }
 0x219   : > { %17959 = vmatmul.mubr.msk.f32.gmra.mrb[22].mxu1 %vm660_vm0, %v22303_v54  ;;  %v22323_v54 = vld [vmem:[#allocation2 + $0x152] sm:$0xff] }
 0x21a   : > { %17961 = vmatprep.mubr.msk.f32.mxu1 %vm660_vm0, %v22307_v36  ;;  %25021 = vst [vmem:[#allocation50_spill] sm:$0xff] %v22323_v54  ;;  %v22327_v36 = vld [vmem:[#allocation2 + $0x15a] sm:$0xff] }
 0x21b   : > { %25022 = vst [vmem:[#allocation51_spill] sm:$0xff] %v22327_v36 }
 0x21d   : > { %17962 = vmatmul.mubr.msk.f32.gmra.mrb[24].mxu1 %vm660_vm0, %v22311_v46  ;;  %v22331_v46 = vld [vmem:[#allocation2 + $0x16a] sm:$0xff] }
 0x21e   : > { %17964 = vmatprep.mubr.msk.f32.mxu1 %vm660_vm0, %v22315_v25  ;;  %25023 = vst [vmem:[#allocation52_spill] sm:$0xff] %v22331_v46  ;;  %v22335_v25 = vld [vmem:[#allocation2 + $0x172] sm:$0xff] }
 0x221   : > { %17965 = vmatmul.mubr.msk.f32.gmra.mrb[26].mxu1 %vm660_vm0, %v22319_v35  ;;  %v3226_v35 = vld [vmem:[#allocation8 + $0xa0] sm:$0xff] }
 0x222   : > { %17967 = vmatprep.mubr.msk.f32.mxu1 %vm660_vm0, %v22323_v54  ;;  %v19811_v54 = vpack.c.bf16 %v2839_v39, %v2838_v34  ;;  %v3617_v34 = vld [vmem:[#allocation8 + $0xc0] sm:$0xff] }
 0x225   : > { %17968 = vmatmul.mubr.msk.f32.gmra.mrb[28].mxu1 %vm660_vm0, %v22327_v36 }
 0x226   : > { %17970 = vmatprep.mubr.msk.f32.mxu1 %vm660_vm0, %v22331_v46  ;;  %v19815_v46 = vpack.c.bf16 %v3227_v1, %v3226_v35  ;;  %v3229_v1 = vld [vmem:[#allocation8 + $0xb8] sm:$0xff]  ;;  %v3618_v35 = vld [vmem:[#allocation8 + $0xc8] sm:$0xff] }
 0x229   : > { %17971 = vmatmul.mubr.msk.f32.gmra.mrb[30].mxu1 %vm660_vm0, %v22335_v25 }
 0x22a   : > { %17981 = vmatprep.mubr.msk.f32.mxu1 %vm660_vm0, %v22085_v53  ;;  %v22404_v53 = vld [vmem:[#allocation2 + $0x188] sm:$0xff] }
 0x22d   : > { %17982 = vmatmul.mubr.msk.f32.vlgmr.msra.gmra.mrb[0].mxu1 %vm660_vm0, %v22092_v55  ;;  %v3228_v55 = vld [vmem:[#allocation8 + $0xb0] sm:$0xff] }
 0x22e   : > { %17984 = vmatprep.mubr.msk.f32.mxu1 %vm660_vm0, %v22096_v56  ;;  %19810 = vmatpush3.bf16.msra.mxu1 %v22220_v29  ;;  %v22398_v29 = vld [vmem:[#allocation2 + $0x180] sm:$0xff]  ;;  %v19819_v39 = vpack.c.bf16 %v3229_v1, %v3228_v55  ;;  %v25043_v1 = vld [vmem:[#allocation38_spill] sm:$0xff] }
 0x22f   : > { %19812 = vmatprep.subr.bf16.mxu1 %v19811_v54  ;;  %v25042_v55 = vld [vmem:[#allocation37_spill] sm:$0xff] }
 0x231   : > { %17985 = vmatmul.mubr.msk.f32.gmra.mrb[2].mxu1 %vm660_vm0, %v22101_v58 }
 0x232   : > { %17987 = vmatprep.mubr.msk.f32.mxu1 %vm660_vm0, %v22105_v51  ;;  %19814 = vmatpush3.bf16.msra.mxu1 %v19811_v54  ;;  %v19823_v54 = vpack.c.bf16 %v3618_v35, %v3617_v34  ;;  %v25045_v34 = vld [vmem:[#allocation40_spill] sm:$0xff]  ;;  %v25046_v35 = vld [vmem:[#allocation41_spill] sm:$0xff] }
 0x233   : > { %19816 = vmatprep.subr.bf16.mxu1 %v19815_v46 }
 0x235   : > { %17988 = vmatmul.mubr.msk.f32.gmra.mrb[4].mxu1 %vm660_vm0, %v22109_v61 }
 0x236   : > { %17990 = vmatprep.mubr.msk.f32.mxu1 %vm660_vm0, %v22113_v63 }
 0x239   : > { %17991 = vmatmul.mubr.msk.f32.gmra.mrb[6].mxu1 %vm660_vm0, %v22117_v0 }
 0x23a   : > { %17993 = vmatprep.mubr.msk.f32.mxu1 %vm660_vm0, %v22121_v2 }
 0x23d   : > { %17994 = vmatmul.mubr.msk.f32.gmra.mrb[8].mxu1 %vm660_vm0, %v22125_v3 }
 0x23e   : > { %17996 = vmatprep.mubr.msk.f32.mxu1 %vm660_vm0, %v22129_v4 }
 0x241   : > { %17997 = vmatmul.mubr.msk.f32.gmra.mrb[10].mxu1 %vm660_vm0, %v22133_v5 }
 0x242   : > { %17999 = vmatprep.mubr.msk.f32.mxu1 %vm660_vm0, %v22137_v8 }
 0x245   : > { %18000 = vmatmul.mubr.msk.f32.gmra.mrb[12].mxu1 %vm660_vm0, %v22141_v11 }
 0x246   : > { %18002 = vmatprep.mubr.msk.f32.mxu1 %vm660_vm0, %v22145_v12 }
 0x249   : > { %18003 = vmatmul.mubr.msk.f32.gmra.mrb[14].mxu1 %vm660_vm0, %v22149_v13 }
 0x24a   : > { %18005 = vmatprep.mubr.msk.f32.mxu1 %vm660_vm0, %v22153_v14 }
 0x24d   : > { %18006 = vmatmul.mubr.msk.f32.gmra.mrb[16].mxu1 %vm660_vm0, %v22157_v15 }
 0x24e   : > { %18008 = vmatprep.mubr.msk.f32.mxu1 %vm660_vm0, %v22161_v16 }
 0x251   : > { %18009 = vmatmul.mubr.msk.f32.gmra.mrb[18].mxu1 %vm660_vm0, %v22165_v19 }
 0x252   : > { %18011 = vmatprep.mubr.msk.f32.mxu1 %vm660_vm0, %v22169_v23 }
 0x255   : > { %18012 = vmatmul.mubr.msk.f32.gmra.mrb[20].mxu1 %vm660_vm0, %v22174_v37 }
 0x256   : > { %18014 = vmatprep.mubr.msk.f32.mxu1 %vm660_vm0, %v22179_v42 }
 0x259   : > { %18015 = vmatmul.mubr.msk.f32.gmra.mrb[22].mxu1 %vm660_vm0, %v22183_v49 }
 0x25a   : > { %18017 = vmatprep.mubr.msk.f32.mxu1 %vm660_vm0, %v22188_v52 }
 0x25d   : > { %18018 = vmatmul.mubr.msk.f32.gmra.mrb[24].mxu1 %vm660_vm0, %v22193_v27 }
 0x25e   : > { %18020 = vmatprep.mubr.msk.f32.mxu1 %vm660_vm0, %v22197_v26 }
 0x261   : > { %18021 = vmatmul.mubr.msk.f32.gmra.mrb[26].mxu1 %vm660_vm0, %v22201_v41 }
 0x262   : > { %18023 = vmatprep.mubr.msk.f32.mxu1 %vm660_vm0, %v22205_v44 }
 0x265   : > { %18024 = vmatmul.mubr.msk.f32.gmra.mrb[28].mxu1 %vm660_vm0, %v22209_v47 }
 0x266   : > { %18026 = vmatprep.mubr.msk.f32.mxu1 %vm660_vm0, %v22398_v29 }
 0x269   : > { %18027 = vmatmul.mubr.msk.f32.gmra.mrb[30].mxu1 %vm660_vm0, %v22404_v53 }
 0x26a   : > { %18037 = vmatprep.mubr.msk.f32.mxu1 %vm660_vm0, %v21916_v18  ;;  %v25024_v18 = vld [vmem:[#allocation19_spill] sm:$0xff] }
 0x26d   : > { %18038 = vmatmul.mubr.msk.f32.vlgmr.msra.gmra.mrb[0].mxu1 %vm660_vm0, %v21921_v20  ;;  %v25025_v20 = vld [vmem:[#allocation20_spill] sm:$0xff] }
 0x26e   : > { %18040 = vmatprep.mubr.msk.f32.mxu1 %vm660_vm0, %v21928_v28  ;;  %19818 = vmatpush3.bf16.msra.mxu1 %v19815_v46  ;;  %v25026_v28 = vld [vmem:[#allocation21_spill] sm:$0xff]  ;;  %v25041_v46 = vld [vmem:[#allocation36_spill] sm:$0xff] }
 0x26f   : > { %19820 = vmatprep.subr.bf16.mxu1 %v19819_v39 }
 0x271   : > { %18041 = vmatmul.mubr.msk.f32.gmra.mrb[2].mxu1 %vm660_vm0, %v21933_v30  ;;  %v25027_v30 = vld [vmem:[#allocation22_spill] sm:$0xff] }
 0x272   : > { %18043 = vmatprep.mubr.msk.f32.mxu1 %vm660_vm0, %v21940_v38  ;;  %19822 = vmatpush3.bf16.msra.mxu1 %v19819_v39  ;;  %v25028_v38 = vld [vmem:[#allocation23_spill] sm:$0xff] }
 0x273   : > { %19824 = vmatprep.subr.bf16.mxu1 %v19823_v54  ;;  %v25044_v39 = vld [vmem:[#allocation39_spill] sm:$0xff] }
 0x275   : > { %18044 = vmatmul.mubr.msk.f32.gmra.mrb[4].mxu1 %vm660_vm0, %v21945_v40  ;;  %v25029_v40 = vld [vmem:[#allocation24_spill] sm:$0xff] }
 0x276   : > { %18046 = vmatprep.mubr.msk.f32.mxu1 %vm660_vm0, %v21952_v48  ;;  %v25030_v48 = vld [vmem:[#allocation25_spill] sm:$0xff] }
 0x279   : > { %18047 = vmatmul.mubr.msk.f32.gmra.mrb[6].mxu1 %vm660_vm0, %v21957_v50  ;;  %v22468_v50 = vld [vmem:[#allocation2 + $0x181] sm:$0xff] }
 0x27a   : > { %18049 = vmatprep.mubr.msk.f32.mxu1 %vm660_vm0, %v21964_v60  ;;  %v22472_v60 = vld [vmem:[#allocation2 + $0x189] sm:$0xff] }
 0x27d   : > { %18050 = vmatmul.mubr.msk.f32.gmra.mrb[8].mxu1 %vm660_vm0, %v21969_v62  ;;  %v3619_v62 = vld [vmem:[#allocation8 + $0xd0] sm:$0xff] }
 0x27e   : > { %18052 = vmatprep.mubr.msk.f32.mxu1 %vm660_vm0, %v21976_v7  ;;  %v3620_v7 = vld [vmem:[#allocation8 + $0xd8] sm:$0xff] }
 0x281   : > { %18053 = vmatmul.mubr.msk.f32.gmra.mrb[10].mxu1 %vm660_vm0, %v21981_v9  ;;  %v19827_v9 = vpack.c.bf16 %v3620_v7, %v3619_v62  ;;  %v25055_v62 = vld [vmem:[#allocation50_spill] sm:$0xff]  ;;  %v25056_v7 = vld [vmem:[#allocation52_spill] sm:$0xff] }
 0x282   : > { %18055 = vmatprep.mubr.msk.f32.mxu1 %vm660_vm0, %v21988_v17  ;;  %v4007_v17 = vld [vmem:[#allocation8 + $0xe0] sm:$0xff] }
 0x285   : > { %18056 = vmatmul.mubr.msk.f32.gmra.mrb[12].mxu1 %vm660_vm0, %v21993_v21  ;;  %v4008_v21 = vld [vmem:[#allocation8 + $0xe8] sm:$0xff] }
 0x286   : > { %18058 = vmatprep.mubr.msk.f32.mxu1 %vm660_vm0, %v22000_v31  ;;  %v25031_v31 = vld [vmem:[#allocation26_spill] sm:$0xff] }
 0x289   : > { %18059 = vmatmul.mubr.msk.f32.gmra.mrb[14].mxu1 %vm660_vm0, %v22005_v33  ;;  %v19831_v33 = vpack.c.bf16 %v4008_v21, %v4007_v17  ;;  %v22540_v17 = vld [vmem:[#allocation2 + $0x18a] sm:$0xff]  ;;  %v4009_v21 = vld [vmem:[#allocation8 + $0xf0] sm:$0xff] }
 0x28a   : > { %18061 = vmatprep.mubr.msk.f32.mxu1 %vm660_vm0, %v22012_v43  ;;  %v25032_v43 = vld [vmem:[#allocation27_spill] sm:$0xff] }
 0x28d   : > { %18062 = vmatmul.mubr.msk.f32.gmra.mrb[16].mxu1 %vm660_vm0, %v22017_v45  ;;  %v25033_v45 = vld [vmem:[#allocation28_spill] sm:$0xff] }
 0x28e   : > { %18064 = vmatprep.mubr.msk.f32.mxu1 %vm660_vm0, %v22024_v57  ;;  %v25034_v57 = vld [vmem:[#allocation29_spill] sm:$0xff] }
 0x291   : > { %18065 = vmatmul.mubr.msk.f32.gmra.mrb[18].mxu1 %vm660_vm0, %v22029_v59  ;;  %v25035_v59 = vld [vmem:[#allocation30_spill] sm:$0xff] }
 0x292   : > { %18067 = vmatprep.mubr.msk.f32.mxu1 %vm660_vm0, %v22036_v6  ;;  %v25036_v6 = vld [vmem:[#allocation31_spill] sm:$0xff] }
 0x295   : > { %18068 = vmatmul.mubr.msk.f32.gmra.mrb[20].mxu1 %vm660_vm0, %v22041_v10  ;;  %v25037_v10 = vld [vmem:[#allocation32_spill] sm:$0xff] }
 0x296   : > { %18070 = vmatprep.mubr.msk.f32.mxu1 %vm660_vm0, %v22048_v22  ;;  %v25038_v22 = vld [vmem:[#allocation33_spill] sm:$0xff] }
 0x299   : > { %18071 = vmatmul.mubr.msk.f32.gmra.mrb[22].mxu1 %vm660_vm0, %v25024_v18  ;;  %v25048_v18 = vld [vmem:[#allocation43_spill] sm:$0xff] }
 0x29a   : > { %18073 = vmatprep.mubr.msk.f32.mxu1 %vm660_vm0, %v25025_v20  ;;  %v25049_v20 = vld [vmem:[#allocation44_spill] sm:$0xff] }
 0x29d   : > { %18074 = vmatmul.mubr.msk.f32.gmra.mrb[24].mxu1 %vm660_vm0, %v25026_v28  ;;  %v25050_v28 = vld [vmem:[#allocation45_spill] sm:$0xff] }
 0x29e   : > { %18076 = vmatprep.mubr.msk.f32.mxu1 %vm660_vm0, %v25027_v30  ;;  %v25051_v30 = vld [vmem:[#allocation46_spill] sm:$0xff] }
 0x2a1   : > { %18077 = vmatmul.mubr.msk.f32.gmra.mrb[26].mxu1 %vm660_vm0, %v25028_v38  ;;  %v25052_v38 = vld [vmem:[#allocation47_spill] sm:$0xff] }
 0x2a2   : > { %18079 = vmatprep.mubr.msk.f32.mxu1 %vm660_vm0, %v25029_v40  ;;  %v25053_v40 = vld [vmem:[#allocation48_spill] sm:$0xff] }
 0x2a5   : > { %18080 = vmatmul.mubr.msk.f32.gmra.mrb[28].mxu1 %vm660_vm0, %v25030_v48  ;;  %v25054_v48 = vld [vmem:[#allocation49_spill] sm:$0xff] }
 0x2a6   : > { %18082 = vmatprep.mubr.msk.f32.mxu1 %vm660_vm0, %v22468_v50 }
 0x2a9   : > { %18083 = vmatmul.mubr.msk.f32.gmra.mrb[30].mxu1 %vm660_vm0, %v22472_v60 }
 0x2aa   : > { %18093 = vmatprep.mubr.msk.f32.mxu1 %vm660_vm0, %v22215_v32  ;;  %v25040_v32 = vld [vmem:[#allocation35_spill] sm:$0xff] }
 0x2ad   : > { %18094 = vmatmul.mubr.msk.f32.vlgmr.msra.gmra.mrb[0].mxu1 %vm660_vm0, %v22222_v24  ;;  %v25039_v24 = vld [vmem:[#allocation34_spill] sm:$0xff] }
 0x2ae   : > { %18096 = vmatprep.mubr.msk.f32.mxu1 %vm660_vm0, %v25031_v31  ;;  %19826 = vmatpush3.bf16.msra.mxu1 %v19823_v54  ;;  %v25047_v54 = vld [vmem:[#allocation42_spill] sm:$0xff] }
 0x2af   : > { %19828 = vmatprep.subr.bf16.mxu1 %v19827_v9 }
 0x2b1   : > { %18097 = vmatmul.mubr.msk.f32.gmra.mrb[2].mxu1 %vm660_vm0, %v25032_v43 }
 0x2b2   : > { %18099 = vmatprep.mubr.msk.f32.mxu1 %vm660_vm0, %v25033_v45  ;;  %19830 = vmatpush3.bf16.msra.mxu1 %v19827_v9  ;;  %v22536_v9 = vld [vmem:[#allocation2 + $0x182] sm:$0xff] }
 0x2b3   : > { %19832 = vmatprep.subr.bf16.mxu1 %v19831_v33  ;;  %25057 = vst [vmem:[#allocation19_spill] sm:$0xff] %v22536_v9 }
 0x2b5   : > { %18100 = vmatmul.mubr.msk.f32.gmra.mrb[4].mxu1 %vm660_vm0, %v25034_v57 }
 0x2b6   : > { %18102 = vmatprep.mubr.msk.f32.mxu1 %vm660_vm0, %v25035_v59 }
 0x2b9   : > { %18103 = vmatmul.mubr.msk.f32.gmra.mrb[6].mxu1 %vm660_vm0, %v25036_v6 }
 0x2ba   : > { %18105 = vmatprep.mubr.msk.f32.mxu1 %vm660_vm0, %v25037_v10 }
 0x2bd   : > { %18106 = vmatmul.mubr.msk.f32.gmra.mrb[8].mxu1 %vm660_vm0, %v25038_v22 }
 0x2be   : > { %18108 = vmatprep.mubr.msk.f32.mxu1 %vm660_vm0, %v25039_v24 }
 0x2c1   : > { %18109 = vmatmul.mubr.msk.f32.gmra.mrb[10].mxu1 %vm660_vm0, %v25040_v32 }
 0x2c2   : > { %18111 = vmatprep.mubr.msk.f32.mxu1 %vm660_vm0, %v25041_v46 }
 0x2c5   : > { %18112 = vmatmul.mubr.msk.f32.gmra.mrb[12].mxu1 %vm660_vm0, %v25042_v55 }
 0x2c6   : > { %18114 = vmatprep.mubr.msk.f32.mxu1 %vm660_vm0, %v25043_v1 }
 0x2c9   : > { %18115 = vmatmul.mubr.msk.f32.gmra.mrb[14].mxu1 %vm660_vm0, %v25044_v39 }
 0x2ca   : > { %18117 = vmatprep.mubr.msk.f32.mxu1 %vm660_vm0, %v25045_v34 }
 0x2cd   : > { %18118 = vmatmul.mubr.msk.f32.gmra.mrb[16].mxu1 %vm660_vm0, %v25046_v35 }
 0x2ce   : > { %18120 = vmatprep.mubr.msk.f32.mxu1 %vm660_vm0, %v25047_v54 }
 0x2d1   : > { %18121 = vmatmul.mubr.msk.f32.gmra.mrb[18].mxu1 %vm660_vm0, %v25048_v18 }
 0x2d2   : > { %18123 = vmatprep.mubr.msk.f32.mxu1 %vm660_vm0, %v25049_v20 }
 0x2d5   : > { %18124 = vmatmul.mubr.msk.f32.gmra.mrb[20].mxu1 %vm660_vm0, %v25050_v28 }
 0x2d6   : > { %18126 = vmatprep.mubr.msk.f32.mxu1 %vm660_vm0, %v25051_v30 }
 0x2d9   : > { %18127 = vmatmul.mubr.msk.f32.gmra.mrb[22].mxu1 %vm660_vm0, %v25052_v38 }
 0x2da   : > { %18129 = vmatprep.mubr.msk.f32.mxu1 %vm660_vm0, %v25053_v40 }
 0x2dd   : > { %18130 = vmatmul.mubr.msk.f32.gmra.mrb[24].mxu1 %vm660_vm0, %v25054_v48  ;;  %v4010_v48 = vld [vmem:[#allocation8 + $0xf8] sm:$0xff] }
 0x2de   : > { %18132 = vmatprep.mubr.msk.f32.mxu1 %vm660_vm0, %v25055_v62  ;;  %v4398_v62 = vld [vmem:[#allocation8 + $0x108] sm:$0xff] }
 0x2e1   : > { %18133 = vmatmul.mubr.msk.f32.gmra.mrb[26].mxu1 %vm660_vm0, %v22327_v36  ;;  %v19835_v36 = vpack.c.bf16 %v4010_v48, %v4009_v21  ;;  %v3998_v48 = vld [vmem:[#allocation2 + $0x151] sm:$0xff]  ;;  %v4004_v21 = vld [vmem:[#allocation2 + $0x199] sm:$0xff] }
 0x2e2   : > { %18135 = vmatprep.mubr.msk.f32.mxu1 %vm660_vm0, %v25056_v7  ;;  %v4397_v7 = vld [vmem:[#allocation8 + $0x100] sm:$0xff] }
 0x2e5   : > { %18136 = vmatmul.mubr.msk.f32.gmra.mrb[28].mxu1 %vm660_vm0, %v22335_v25 }
 0x2e6   : > { %18138 = vmatprep.mubr.msk.f32.mxu1 %vm660_vm0, %v22536_v9  ;;  %v19839_v9 = vpack.c.bf16 %v4398_v62, %v4397_v7  ;;  %v3999_v62 = vld [vmem:[#allocation2 + $0x159] sm:$0xff]  ;;  %v4000_v7 = vld [vmem:[#allocation2 + $0x169] sm:$0xff] }
 0x2e9   : > { %18139 = vmatmul.mubr.msk.f32.gmra.mrb[30].mxu1 %vm660_vm0, %v22540_v17 }
 0x2ea   : > { %18149 = vmatprep.mubr.msk.f32.mxu1 %vm660_vm0, %v22096_v56  ;;  %v3614_v56 = vld [vmem:[#allocation2 + $0x198] sm:$0xff] }
 0x2ed   : > { %18150 = vmatmul.mubr.msk.f32.vlgmr.msra.gmra.mrb[0].mxu1 %vm660_vm0, %v22101_v58  ;;  %v3615_v58 = vld [vmem:[#allocation2 + $0x1a0] sm:$0xff] }
 0x2ee   : > { %18152 = vmatprep.mubr.msk.f32.mxu1 %vm660_vm0, %v22105_v51  ;;  %19834 = vmatpush3.bf16.msra.mxu1 %v19831_v33  ;;  %v4399_v51 = vld [vmem:[#allocation8 + $0x110] sm:$0xff] }
 0x2ef   : > { %19836 = vmatprep.subr.bf16.mxu1 %v19835_v36  ;;  %v3997_v33 = vld [vmem:[#allocation2 + $0x141] sm:$0xff] }
 0x2f1   : > { %18153 = vmatmul.mubr.msk.f32.gmra.mrb[2].mxu1 %vm660_vm0, %v22109_v61  ;;  %v4400_v61 = vld [vmem:[#allocation8 + $0x118] sm:$0xff] }
 0x2f2   : > { %18155 = vmatprep.mubr.msk.f32.mxu1 %vm660_vm0, %v22113_v63  ;;  %19838 = vmatpush3.bf16.msra.mxu1 %v19835_v36  ;;  %v3974_v63 = vld [vmem:[#allocation2 + $0x31] sm:$0xff]  ;;  %v3994_v36 = vld [vmem:[#allocation2 + $0x121] sm:$0xff] }
 0x2f3   : > { %19840 = vmatprep.subr.bf16.mxu1 %v19839_v9 }
 0x2f5   : > { %18156 = vmatmul.mubr.msk.f32.gmra.mrb[4].mxu1 %vm660_vm0, %v22117_v0  ;;  %v4991_v0 = vld [vmem:[#allocation10 + $0x20] sm:$0xff] }
 0x2f6   : > { %18158 = vmatprep.mubr.msk.f32.mxu1 %vm660_vm0, %v22121_v2  ;;  %v4992_v2 = vld [vmem:[#allocation10 + $0x28] sm:$0xff] }
 0x2f9   : > { %18159 = vmatmul.mubr.msk.f32.gmra.mrb[6].mxu1 %vm660_vm0, %v22125_v3  ;;  %v19847_v3 = vpack.c.bf16 %v4992_v2, %v4991_v0 }
 0x2fa   : > { %18161 = vmatprep.mubr.msk.f32.mxu1 %vm660_vm0, %v22129_v4  ;;  %v19843_v4 = vpack.c.bf16 %v4400_v61, %v4399_v51 }
 0x2fb   : > { %19848 = vmatprep.subr.bf16.mxu0 %v19847_v3 }
 0x2fc   : > { %19850 = vmatpush3.bf16.msra.mxu0 %v19847_v3 }
 0x2fd   : > { %18162 = vmatmul.mubr.msk.f32.gmra.mrb[8].mxu1 %vm660_vm0, %v22133_v5  ;;  %v3975_v5 = vld [vmem:[#allocation2 + $0x39] sm:$0xff] }
 0x2fe   : > { %18164 = vmatprep.mubr.msk.f32.mxu1 %vm660_vm0, %v22137_v8  ;;  %v3976_v8 = vld [vmem:[#allocation2 + $0x49] sm:$0xff] }
 0x301   : > { %18165 = vmatmul.mubr.msk.f32.gmra.mrb[10].mxu1 %vm660_vm0, %v22141_v11  ;;  %v3977_v11 = vld [vmem:[#allocation2 + $0x51] sm:$0xff] }
 0x302   : > { %18167 = vmatprep.mubr.msk.f32.mxu1 %vm660_vm0, %v22145_v12  ;;  %v3978_v12 = vld [vmem:[#allocation2 + $0x61] sm:$0xff] }
 0x305   : > { %18168 = vmatmul.mubr.msk.f32.gmra.mrb[12].mxu1 %vm660_vm0, %v22149_v13  ;;  %v3979_v13 = vld [vmem:[#allocation2 + $0x69] sm:$0xff] }
 0x306   : > { %18170 = vmatprep.mubr.msk.f32.mxu1 %vm660_vm0, %v22153_v14  ;;  %v3980_v14 = vld [vmem:[#allocation2 + $0x79] sm:$0xff] }
 0x309   : > { %18171 = vmatmul.mubr.msk.f32.gmra.mrb[14].mxu1 %vm660_vm0, %v22157_v15  ;;  %v3981_v15 = vld [vmem:[#allocation2 + $0x81] sm:$0xff] }
 0x30a   : > { %18173 = vmatprep.mubr.msk.f32.mxu1 %vm660_vm0, %v22161_v16  ;;  %v3982_v16 = vld [vmem:[#allocation2 + $0x91] sm:$0xff] }
 0x30d   : > { %18174 = vmatmul.mubr.msk.f32.gmra.mrb[16].mxu1 %vm660_vm0, %v22165_v19  ;;  %v3983_v19 = vld [vmem:[#allocation2 + $0x99] sm:$0xff] }
 0x30e   : > { %18176 = vmatprep.mubr.msk.f32.mxu1 %vm660_vm0, %v22169_v23  ;;  %v3984_v23 = vld [vmem:[#allocation2 + $0xa9] sm:$0xff] }
 0x311   : > { %18177 = vmatmul.mubr.msk.f32.gmra.mrb[18].mxu1 %vm660_vm0, %v22174_v37  ;;  %v3985_v37 = vld [vmem:[#allocation2 + $0xb1] sm:$0xff] }
 0x312   : > { %18179 = vmatprep.mubr.msk.f32.mxu1 %vm660_vm0, %v22179_v42  ;;  %v3986_v42 = vld [vmem:[#allocation2 + $0xc1] sm:$0xff] }
 0x315   : > { %18180 = vmatmul.mubr.msk.f32.gmra.mrb[20].mxu1 %vm660_vm0, %v22183_v49  ;;  %v3987_v49 = vld [vmem:[#allocation2 + $0xc9] sm:$0xff] }
 0x316   : > { %18182 = vmatprep.mubr.msk.f32.mxu1 %vm660_vm0, %v22188_v52  ;;  %v3988_v52 = vld [vmem:[#allocation2 + $0xd9] sm:$0xff] }
 0x319   : > { %18183 = vmatmul.mubr.msk.f32.gmra.mrb[22].mxu1 %vm660_vm0, %v22193_v27  ;;  %v3989_v27 = vld [vmem:[#allocation2 + $0xe1] sm:$0xff] }
 0x31a   : > { %18185 = vmatprep.mubr.msk.f32.mxu1 %vm660_vm0, %v22197_v26  ;;  %v3990_v26 = vld [vmem:[#allocation2 + $0xf1] sm:$0xff] }
 0x31d   : > { %18186 = vmatmul.mubr.msk.f32.gmra.mrb[24].mxu1 %vm660_vm0, %v22201_v41  ;;  %v3991_v41 = vld [vmem:[#allocation2 + $0xf9] sm:$0xff] }
 0x31e   : > { %18188 = vmatprep.mubr.msk.f32.mxu1 %vm660_vm0, %v22205_v44  ;;  %v3992_v44 = vld [vmem:[#allocation2 + $0x109] sm:$0xff] }
 0x321   : > { %18189 = vmatmul.mubr.msk.f32.gmra.mrb[26].mxu1 %vm660_vm0, %v22209_v47  ;;  %v3993_v47 = vld [vmem:[#allocation2 + $0x111] sm:$0xff] }
 0x322   : > { %18191 = vmatprep.mubr.msk.f32.mxu1 %vm660_vm0, %v22398_v29  ;;  %v3995_v29 = vld [vmem:[#allocation2 + $0x129] sm:$0xff] }
 0x325   : > { %18192 = vmatmul.mubr.msk.f32.gmra.mrb[28].mxu1 %vm660_vm0, %v22404_v53  ;;  %v3996_v53 = vld [vmem:[#allocation2 + $0x139] sm:$0xff] }
 0x326   : > { %18194 = vmatprep.mubr.msk.f32.mxu1 %vm660_vm0, %v3614_v56  ;;  %v4005_v56 = vld [vmem:[#allocation2 + $0x1a1] sm:$0xff] }
 0x329   : > { %18195 = vmatmul.mubr.msk.f32.gmra.mrb[30].mxu1 %vm660_vm0, %v3615_v58 }
 0x32a   : > { %18205 = vmatprep.mubr.msk.f32.mxu1 %vm660_vm0, %v3974_v63 }
 0x32d   : > { %18206 = vmatmul.mubr.msk.f32.vlgmr.msra.gmra.mrb[0].mxu1 %vm660_vm0, %v3975_v5 }
 0x32e   : > { %18208 = vmatprep.mubr.msk.f32.mxu1 %vm660_vm0, %v3976_v8  ;;  %19842 = vmatpush3.bf16.msra.mxu1 %v19839_v9  ;;  %v4001_v9 = vld [vmem:[#allocation2 + $0x171] sm:$0xff] }
 0x32f   : > { %19844 = vmatprep.subr.bf16.mxu1 %v19843_v4 }
 0x331   : > { %18209 = vmatmul.mubr.msk.f32.gmra.mrb[2].mxu1 %vm660_vm0, %v3977_v11 }
 0x332   : > { %18211 = vmatprep.mubr.msk.f32.mxu1 %vm660_vm0, %v3978_v12  ;;  %19846 = vmatpush3.bf16.msra.mxu1 %v19843_v4 }
 0x335   : > { %18212 = vmatmul.mubr.msk.f32.gmra.mrb[4].mxu1 %vm660_vm0, %v3979_v13 }
 0x336   : > { %18214 = vmatprep.mubr.msk.f32.mxu1 %vm660_vm0, %v3980_v14 }
 0x339   : > { %18215 = vmatmul.mubr.msk.f32.gmra.mrb[6].mxu1 %vm660_vm0, %v3981_v15 }
 0x33a   : > { %18217 = vmatprep.mubr.msk.f32.mxu1 %vm660_vm0, %v3982_v16 }
 0x33d   : > { %18218 = vmatmul.mubr.msk.f32.gmra.mrb[8].mxu1 %vm660_vm0, %v3983_v19 }
 0x33e   : > { %18220 = vmatprep.mubr.msk.f32.mxu1 %vm660_vm0, %v3984_v23 }
 0x341   : > { %18221 = vmatmul.mubr.msk.f32.gmra.mrb[10].mxu1 %vm660_vm0, %v3985_v37 }
 0x342   : > { %18223 = vmatprep.mubr.msk.f32.mxu1 %vm660_vm0, %v3986_v42 }
 0x345   : > { %18224 = vmatmul.mubr.msk.f32.gmra.mrb[12].mxu1 %vm660_vm0, %v3987_v49 }
 0x346   : > { %18226 = vmatprep.mubr.msk.f32.mxu1 %vm660_vm0, %v3988_v52 }
 0x349   : > { %18227 = vmatmul.mubr.msk.f32.gmra.mrb[14].mxu1 %vm660_vm0, %v3989_v27 }
 0x34a   : > { %18229 = vmatprep.mubr.msk.f32.mxu1 %vm660_vm0, %v3990_v26 }
 0x34d   : > { %18230 = vmatmul.mubr.msk.f32.gmra.mrb[16].mxu1 %vm660_vm0, %v3991_v41 }
 0x34e   : > { %18232 = vmatprep.mubr.msk.f32.mxu1 %vm660_vm0, %v3992_v44 }
 0x351   : > { %18233 = vmatmul.mubr.msk.f32.gmra.mrb[18].mxu1 %vm660_vm0, %v3993_v47 }
 0x352   : > { %18235 = vmatprep.mubr.msk.f32.mxu1 %vm660_vm0, %v3994_v36 }
 0x355   : > { %18236 = vmatmul.mubr.msk.f32.gmra.mrb[20].mxu1 %vm660_vm0, %v3995_v29 }
 0x356   : > { %18238 = vmatprep.mubr.msk.f32.mxu1 %vm660_vm0, %v3996_v53 }
 0x359   : > { %18239 = vmatmul.mubr.msk.f32.gmra.mrb[22].mxu1 %vm660_vm0, %v3997_v33 }
 0x35a   : > { %18241 = vmatprep.mubr.msk.f32.mxu1 %vm660_vm0, %v3998_v48 }
 0x35d   : > { %18242 = vmatmul.mubr.msk.f32.gmra.mrb[24].mxu1 %vm660_vm0, %v3999_v62 }
 0x35e   : > { %18244 = vmatprep.mubr.msk.f32.mxu1 %vm660_vm0, %v4000_v7 }
 0x361   : > { %18245 = vmatmul.mubr.msk.f32.gmra.mrb[26].mxu1 %vm660_vm0, %v4001_v9 }
 0x362   : > { %18247 = vmatprep.mubr.msk.f32.mxu1 %vm660_vm0, %v22468_v50  ;;  %v25058_v50 = vld [vmem:[#allocation49_spill] sm:$0xff] }
 0x365   : > { %18248 = vmatmul.mubr.msk.f32.gmra.mrb[28].mxu1 %vm660_vm0, %v22472_v60  ;;  %v25059_v60 = vld [vmem:[#allocation50_spill] sm:$0xff] }
 0x366   : > { %18250 = vmatprep.mubr.msk.f32.mxu1 %vm660_vm0, %v4004_v21 }
 0x369   : > { %18251 = vmatmul.mubr.msk.f32.gmra.mrb[30].mxu1 %vm660_vm0, %v4005_v56 }
 0x36a   : > { %18261 = vmatprep.mubr.msk.f32.mxu1 %vm660_vm0, %v25031_v31  ;;  %v25060_v31 = vld [vmem:[#allocation51_spill] sm:$0xff] }
 0x36d   : > { %18262 = vmatmul.mubr.msk.f32.vlgmr.msra.gmra.mrb[0].mxu1 %vm660_vm0, %v25032_v43  ;;  %v25061_v43 = vld [vmem:[#allocation52_spill] sm:$0xff] }
 0x36e   : > { %18264 = vmatprep.mubr.msk.f32.mxu1 %vm660_vm0, %v25033_v45  ;;  %v25062_v45 = vld [vmem:[#allocation19_spill] sm:$0xff] }
 0x371   : > { %18265 = vmatmul.mubr.msk.f32.gmra.mrb[2].mxu1 %vm660_vm0, %v25034_v57  ;;  %v4394_v57 = vld [vmem:[#allocation2 + $0x19a] sm:$0xff] }
 0x372   : > { %18267 = vmatprep.mubr.msk.f32.mxu1 %vm660_vm0, %v25035_v59  ;;  %v4395_v59 = vld [vmem:[#allocation2 + $0x1a2] sm:$0xff] }
 0x375   : > { %18268 = vmatmul.mubr.msk.f32.gmra.mrb[4].mxu1 %vm660_vm0, %v25036_v6  ;;  %v4993_v6 = vld [vmem:[#allocation10 + $0x30] sm:$0xff] }
 0x376   : > { %18270 = vmatprep.mubr.msk.f32.mxu1 %vm660_vm0, %v25037_v10  ;;  %v4994_v10 = vld [vmem:[#allocation10 + $0x38] sm:$0xff] }
 0x379   : > { %18271 = vmatmul.mubr.msk.f32.gmra.mrb[6].mxu1 %vm660_vm0, %v25038_v22  ;;  %v19851_v22 = vpack.c.bf16 %v4994_v10, %v4993_v6 }
 0x37a   : > { %18273 = vmatprep.mubr.msk.f32.mxu1 %vm660_vm0, %v25039_v24  ;;  %v4958_v24 = vld [vmem:[#allocation3 + $0x1] sm:$0xff] }
 0x37b   : > { %19852 = vmatprep.subr.bf16.mxu0 %v19851_v22  ;;  %18317 = vmatprep.mubr.msk.f32.mxu0 %vm660_vm0, %v4958_v24 }
 0x37c   : > { %19854 = vmatpush3.bf16.msra.mxu0 %v19851_v22 }
 0x37d   : > { %18274 = vmatmul.mubr.msk.f32.gmra.mrb[8].mxu1 %vm660_vm0, %v25040_v32  ;;  %v4954_v32 = vld [vmem:[#allocation10] sm:$0xff] }
 0x37e   : > { %18276 = vmatprep.mubr.msk.f32.mxu1 %vm660_vm0, %v25041_v46  ;;  %v4955_v46 = vld [vmem:[#allocation10 + $0x8] sm:$0xff] }
 0x381   : > { %18277 = vmatmul.mubr.msk.f32.gmra.mrb[10].mxu1 %vm660_vm0, %v25042_v55  ;;  %v19855_v55 = vpack.c.bf16 %v4955_v46, %v4954_v32 }
 0x382   : > { %18279 = vmatprep.mubr.msk.f32.mxu1 %vm660_vm0, %v25043_v1  ;;  %v4956_v1 = vld [vmem:[#allocation10 + $0x10] sm:$0xff] }
 0x383   : > { %19856 = vmatprep.subr.bf16.mxu0 %v19855_v55 }
 0x385   : > { %18280 = vmatmul.mubr.msk.f32.gmra.mrb[12].mxu1 %vm660_vm0, %v25044_v39  ;;  %v4957_v39 = vld [vmem:[#allocation10 + $0x18] sm:$0xff] }
 0x386   : > { %18282 = vmatprep.mubr.msk.f32.mxu1 %vm660_vm0, %v25045_v34  ;;  %v19859_v34 = vpack.c.bf16 %v4957_v39, %v4956_v1 }
 0x389   : > { %18283 = vmatmul.mubr.msk.f32.gmra.mrb[14].mxu1 %vm660_vm0, %v25046_v35  ;;  %v5670_v35 = vld [vmem:[#allocation10 + $0x40] sm:$0xff] }
 0x38a   : > { %18285 = vmatprep.mubr.msk.f32.mxu1 %vm660_vm0, %v25047_v54  ;;  %v5671_v54 = vld [vmem:[#allocation10 + $0x48] sm:$0xff] }
 0x38d   : > { %18286 = vmatmul.mubr.msk.f32.gmra.mrb[16].mxu1 %vm660_vm0, %v25048_v18  ;;  %v22704_v18 = vpack.c.bf16 %v5671_v54, %v5670_v35 }
 0x38e   : > { %18288 = vmatprep.mubr.msk.f32.mxu1 %vm660_vm0, %v25049_v20  ;;  %v22710_v20 = vld [vmem:[%s24813_s4] ss:$0 sm:$0xff] }
 0x391   : > { %18289 = vmatmul.mubr.msk.f32.gmra.mrb[18].mxu1 %vm660_vm0, %v25050_v28 }
 0x392   : > { %18291 = vmatprep.mubr.msk.f32.mxu1 %vm660_vm0, %v25051_v30 }
 0x395   : > { %18292 = vmatmul.mubr.msk.f32.gmra.mrb[20].mxu1 %vm660_vm0, %v25052_v38 }
 0x396   : > { %18294 = vmatprep.mubr.msk.f32.mxu1 %vm660_vm0, %v25053_v40 }
 0x399   : > { %18295 = vmatmul.mubr.msk.f32.gmra.mrb[22].mxu1 %vm660_vm0, %v25058_v50 }
 0x39a   : > { %18297 = vmatprep.mubr.msk.f32.mxu1 %vm660_vm0, %v25059_v60 }
 0x39d   : > { %18298 = vmatmul.mubr.msk.f32.gmra.mrb[24].mxu1 %vm660_vm0, %v25060_v31 }
 0x39e   : > { %18300 = vmatprep.mubr.msk.f32.mxu1 %vm660_vm0, %v25061_v43 }
 0x3a1   : > { %18301 = vmatmul.mubr.msk.f32.gmra.mrb[26].mxu1 %vm660_vm0, %v22335_v25  ;;  %v4959_v25 = vld [vmem:[#allocation3 + $0x9] sm:$0xff] }
 0x3a2   : > { %18303 = vmatprep.mubr.msk.f32.mxu1 %vm660_vm0, %v25062_v45  ;;  %18318 = vmatmul.mubr.msk.f32.vlgmr.msra.gmra.mrb[32].mxu0 %vm660_vm0, %v4959_v25 }
 0x3a3   : > { %19858 = vmatpush3.bf16.msra.mxu0 %v19855_v55 }
 0x3a4   : > { %19860 = vmatprep.subr.bf16.mxu0 %v19859_v34 }
 0x3a5   : > { %18304 = vmatmul.mubr.msk.f32.gmra.mrb[28].mxu1 %vm660_vm0, %v22540_v17 }
 0x3a6   : > { %18306 = vmatprep.mubr.msk.f32.mxu1 %vm660_vm0, %v4394_v57 }
 0x3a7   : > { %19862 = vmatpush3.bf16.msra.mxu0 %v19859_v34 }
 0x3a8   : > { %19864 = vmatprep.subr.bf16.mxu0 %v22704_v18 }
 0x3a9   : > { %18307 = vmatmul.mubr.msk.f32.gmra.mrb[30].mxu1 %vm660_vm0, %v4395_v59 }
 0x440   : > { %v18263_v28 = vpop.f32.mrb[0].mxu1 }
 0x441   : > { %v4762_v30 = vadd.f32 %v18263_v28, %v22710_v20  ;;  %v4563_v38 = vpop.f32.mrb[1].mxu1 }
 0x442   : > { %v4761_v40 = vadd.f32 %v22710_v20, %v4563_v38 }
 0x443   : > { %vm4794_vm5 = vcmp.ge.f32.partialorder %v4762_v30, 0.0  ;;  %v4826_v17 = vmul.f32 0.2, %v4762_v30 }
 0x444   : > { %vm4793_vm6 = vcmp.ge.f32.partialorder %v4761_v40, 0.0  ;;  %v4825_v58 = vmul.f32 0.2, %v4761_v40  ;;  %v18266_v51 = vpop.f32.mrb[2].mxu1 }
 0x445   : > { %v4858_v61 = vsel %vm4794_vm5, %v4762_v30, %v4826_v17  ;;  %v4764_v63 = vadd.f32 %v18266_v51, %v22710_v20  ;;  %v4573_v0 = vpop.f32.mrb[3].mxu1 }
 0x446   : > { %4891 = vst.msk [vmem:[#allocation3 + $0x21] sm:$0xff] %vm660_vm0, %v4858_v61  ;;  %v4857_v2 = vsel %vm4793_vm6, %v4761_v40, %v4825_v58  ;;  %v4763_v3 = vadd.f32 %v22710_v20, %v4573_v0 }
 0x447   : > { %4890 = vst.msk [vmem:[#allocation3 + $0x19] sm:$0xff] %vm660_vm0, %v4857_v2  ;;  %vm4796_vm7 = vcmp.ge.f32.partialorder %v4764_v63, 0.0  ;;  %v4828_v4 = vmul.f32 0.2, %v4764_v63 }
 0x448   : > { %vm4795_vm8 = vcmp.ge.f32.partialorder %v4763_v3, 0.0  ;;  %v4827_v5 = vmul.f32 0.2, %v4763_v3  ;;  %v18269_v8 = vpop.f32.mrb[4].mxu1 }
 0x449   : > { %v4860_v11 = vsel %vm4796_vm7, %v4764_v63, %v4828_v4  ;;  %v4766_v12 = vadd.f32 %v18269_v8, %v22710_v20  ;;  %v4583_v13 = vpop.f32.mrb[5].mxu1 }
 0x44a   : > { %4893 = vst.msk [vmem:[#allocation3 + $0x39] sm:$0xff] %vm660_vm0, %v4860_v11  ;;  %v4859_v14 = vsel %vm4795_vm8, %v4763_v3, %v4827_v5  ;;  %v4765_v15 = vadd.f32 %v22710_v20, %v4583_v13 }
 0x44b   : > { %4892 = vst.msk [vmem:[#allocation3 + $0x31] sm:$0xff] %vm660_vm0, %v4859_v14  ;;  %vm4798_vm9 = vcmp.ge.f32.partialorder %v4766_v12, 0.0  ;;  %v4830_v16 = vmul.f32 0.2, %v4766_v12 }
 0x44c   : > { %vm4797_vm10 = vcmp.ge.f32.partialorder %v4765_v15, 0.0  ;;  %v4829_v19 = vmul.f32 0.2, %v4765_v15  ;;  %v18272_v23 = vpop.f32.mrb[6].mxu1 }
 0x44d   : > { %v4862_v37 = vsel %vm4798_vm9, %v4766_v12, %v4830_v16  ;;  %v4768_v42 = vadd.f32 %v18272_v23, %v22710_v20  ;;  %v4593_v49 = vpop.f32.mrb[7].mxu1  ;;  %v22730_v44 = vld [vmem:[#allocation3 + $0x21] sm:$0xff] }
 0x44e   : > { %4895 = vst.msk [vmem:[#allocation3 + $0x51] sm:$0xff] %vm660_vm0, %v4862_v37  ;;  %v4861_v52 = vsel %vm4797_vm10, %v4765_v15, %v4829_v19  ;;  %v4767_v27 = vadd.f32 %v22710_v20, %v4593_v49  ;;  %v22725_v26 = vld [vmem:[#allocation3 + $0x19] sm:$0xff] }
 0x44f   : > { %4894 = vst.msk [vmem:[#allocation3 + $0x49] sm:$0xff] %vm660_vm0, %v4861_v52  ;;  %vm4800_vm11 = vcmp.ge.f32.partialorder %v4768_v42, 0.0  ;;  %v4832_v41 = vmul.f32 0.2, %v4768_v42  ;;  %18320 = vmatprep.mubr.msk.f32.mxu0 %vm660_vm0, %v22725_v26 }
 0x450   : > { %vm4799_vm12 = vcmp.ge.f32.partialorder %v4767_v27, 0.0  ;;  %v4831_v47 = vmul.f32 0.2, %v4767_v27  ;;  %v18275_v36 = vpop.f32.mrb[8].mxu1  ;;  %18321 = vmatmul.mubr.msk.f32.gmra.mrb[34].mxu0 %vm660_vm0, %v22730_v44 }
 0x451   : > { %v4864_v29 = vsel %vm4800_vm11, %v4768_v42, %v4832_v41  ;;  %v4770_v53 = vadd.f32 %v18275_v36, %v22710_v20  ;;  %v4603_v33 = vpop.f32.mrb[9].mxu1  ;;  %v22742_v21 = vld [vmem:[#allocation3 + $0x39] sm:$0xff] }
 0x452   : > { %4897 = vst.msk [vmem:[#allocation3 + $0x69] sm:$0xff] %vm660_vm0, %v4864_v29  ;;  %v4863_v48 = vsel %vm4799_vm12, %v4767_v27, %v4831_v47  ;;  %v4769_v62 = vadd.f32 %v22710_v20, %v4603_v33  ;;  %v22737_v7 = vld [vmem:[#allocation3 + $0x31] sm:$0xff] }
 0x453   : > { %4896 = vst.msk [vmem:[#allocation3 + $0x61] sm:$0xff] %vm660_vm0, %v4863_v48  ;;  %vm4802_vm13 = vcmp.ge.f32.partialorder %v4770_v53, 0.0  ;;  %v4834_v9 = vmul.f32 0.2, %v4770_v53  ;;  %18323 = vmatprep.mubr.msk.f32.mxu0 %vm660_vm0, %v22737_v7 }
 0x454   : > { %vm4801_vm14 = vcmp.ge.f32.partialorder %v4769_v62, 0.0  ;;  %v4833_v56 = vmul.f32 0.2, %v4769_v62  ;;  %v18278_v50 = vpop.f32.mrb[10].mxu1  ;;  %18324 = vmatmul.mubr.msk.f32.gmra.mrb[36].mxu0 %vm660_vm0, %v22742_v21 }
 0x455   : > { %v4866_v60 = vsel %vm4802_vm13, %v4770_v53, %v4834_v9  ;;  %v4772_v31 = vadd.f32 %v18278_v50, %v22710_v20  ;;  %v4613_v43 = vpop.f32.mrb[11].mxu1  ;;  %v22754_v10 = vld [vmem:[#allocation3 + $0x51] sm:$0xff] }
 0x456   : > { %4899 = vst.msk [vmem:[#allocation3 + $0x81] sm:$0xff] %vm660_vm0, %v4866_v60  ;;  %v4865_v45 = vsel %vm4801_vm14, %v4769_v62, %v4833_v56  ;;  %v4771_v57 = vadd.f32 %v22710_v20, %v4613_v43  ;;  %v22749_v59 = vld [vmem:[#allocation3 + $0x49] sm:$0xff] }
 0x457   : > { %4898 = vst.msk [vmem:[#allocation3 + $0x79] sm:$0xff] %vm660_vm0, %v4865_v45  ;;  %vm4804_vm15 = vcmp.ge.f32.partialorder %v4772_v31, 0.0  ;;  %v4836_v6 = vmul.f32 0.2, %v4772_v31  ;;  %18326 = vmatprep.mubr.msk.f32.mxu0 %vm660_vm0, %v22749_v59 }
 0x458   : > { %vm4803_vm1 = vcmp.ge.f32.partialorder %v4771_v57, 0.0  ;;  %v4835_v22 = vmul.f32 0.2, %v4771_v57  ;;  %v18281_v24 = vpop.f32.mrb[12].mxu1  ;;  %18327 = vmatmul.mubr.msk.f32.gmra.mrb[38].mxu0 %vm660_vm0, %v22754_v10 }
 0x459   : > { %v4868_v25 = vsel %vm4804_vm15, %v4772_v31, %v4836_v6  ;;  %v4774_v32 = vadd.f32 %v18281_v24, %v22710_v20  ;;  %v4623_v46 = vpop.f32.mrb[13].mxu1  ;;  %v22766_v35 = vld [vmem:[#allocation3 + $0x69] sm:$0xff] }
 0x45a   : > { %4901 = vst.msk [vmem:[#allocation3 + $0x99] sm:$0xff] %vm660_vm0, %v4868_v25  ;;  %v4867_v55 = vsel %vm4803_vm1, %v4771_v57, %v4835_v22  ;;  %v4773_v1 = vadd.f32 %v22710_v20, %v4623_v46  ;;  %v22761_v39 = vld [vmem:[#allocation3 + $0x61] sm:$0xff] }
 0x45b   : > { %4900 = vst.msk [vmem:[#allocation3 + $0x91] sm:$0xff] %vm660_vm0, %v4867_v55  ;;  %vm4806_vm2 = vcmp.ge.f32.partialorder %v4774_v32, 0.0  ;;  %v4838_v34 = vmul.f32 0.2, %v4774_v32  ;;  %18329 = vmatprep.mubr.msk.f32.mxu0 %vm660_vm0, %v22761_v39 }
 0x45c   : > { %vm4805_vm3 = vcmp.ge.f32.partialorder %v4773_v1, 0.0  ;;  %v4837_v54 = vmul.f32 0.2, %v4773_v1  ;;  %v18284_v28 = vpop.f32.mrb[14].mxu1  ;;  %18330 = vmatmul.mubr.msk.f32.gmra.mrb[40].mxu0 %vm660_vm0, %v22766_v35 }
 0x45d   : > { %v4870_v30 = vsel %vm4806_vm2, %v4774_v32, %v4838_v34  ;;  %v4776_v38 = vadd.f32 %v18284_v28, %v22710_v20  ;;  %v4633_v40 = vpop.f32.mrb[15].mxu1  ;;  %v22778_v63 = vld [vmem:[#allocation3 + $0x81] sm:$0xff] }
 0x45e   : > { %4903 = vst.msk [vmem:[#allocation3 + $0xb1] sm:$0xff] %vm660_vm0, %v4870_v30  ;;  %v4869_v17 = vsel %vm4805_vm3, %v4773_v1, %v4837_v54  ;;  %v4775_v58 = vadd.f32 %v22710_v20, %v4633_v40  ;;  %v22773_v51 = vld [vmem:[#allocation3 + $0x79] sm:$0xff] }
 0x45f   : > { %4902 = vst.msk [vmem:[#allocation3 + $0xa9] sm:$0xff] %vm660_vm0, %v4869_v17  ;;  %vm4808_vm4 = vcmp.ge.f32.partialorder %v4776_v38, 0.0  ;;  %v4840_v61 = vmul.f32 0.2, %v4776_v38  ;;  %18332 = vmatprep.mubr.msk.f32.mxu0 %vm660_vm0, %v22773_v51 }
 0x460   : > { %vm4807_vm5 = vcmp.ge.f32.partialorder %v4775_v58, 0.0  ;;  %v4839_v0 = vmul.f32 0.2, %v4775_v58  ;;  %v18287_v2 = vpop.f32.mrb[16].mxu1  ;;  %18333 = vmatmul.mubr.msk.f32.gmra.mrb[42].mxu0 %vm660_vm0, %v22778_v63 }
 0x461   : > { %v4872_v3 = vsel %vm4808_vm4, %v4776_v38, %v4840_v61  ;;  %v4778_v4 = vadd.f32 %v18287_v2, %v22710_v20  ;;  %v4643_v5 = vpop.f32.mrb[17].mxu1  ;;  %v22790_v14 = vld [vmem:[#allocation3 + $0x99] sm:$0xff] }
 0x462   : > { %4905 = vst.msk [vmem:[#allocation3 + $0xc9] sm:$0xff] %vm660_vm0, %v4872_v3  ;;  %v4871_v8 = vsel %vm4807_vm5, %v4775_v58, %v4839_v0  ;;  %v4777_v11 = vadd.f32 %v22710_v20, %v4643_v5  ;;  %v22785_v12 = vld [vmem:[#allocation3 + $0x91] sm:$0xff] }
 0x463   : > { %4904 = vst.msk [vmem:[#allocation3 + $0xc1] sm:$0xff] %vm660_vm0, %v4871_v8  ;;  %vm4810_vm6 = vcmp.ge.f32.partialorder %v4778_v4, 0.0  ;;  %v4842_v13 = vmul.f32 0.2, %v4778_v4  ;;  %18335 = vmatprep.mubr.msk.f32.mxu0 %vm660_vm0, %v22785_v12 }
 0x464   : > { %vm4809_vm7 = vcmp.ge.f32.partialorder %v4777_v11, 0.0  ;;  %v4841_v15 = vmul.f32 0.2, %v4777_v11  ;;  %v18290_v16 = vpop.f32.mrb[18].mxu1  ;;  %18336 = vmatmul.mubr.msk.f32.gmra.mrb[44].mxu0 %vm660_vm0, %v22790_v14 }
 0x465   : > { %v4874_v19 = vsel %vm4810_vm6, %v4778_v4, %v4842_v13  ;;  %v4780_v23 = vadd.f32 %v18290_v16, %v22710_v20  ;;  %v4653_v37 = vpop.f32.mrb[19].mxu1  ;;  %v22802_v41 = vld [vmem:[#allocation3 + $0xb1] sm:$0xff] }
 0x466   : > { %4907 = vst.msk [vmem:[#allocation3 + $0xe1] sm:$0xff] %vm660_vm0, %v4874_v19  ;;  %v4873_v42 = vsel %vm4809_vm7, %v4777_v11, %v4841_v15  ;;  %v4779_v49 = vadd.f32 %v22710_v20, %v4653_v37  ;;  %v22797_v52 = vld [vmem:[#allocation3 + $0xa9] sm:$0xff] }
 0x467   : > { %4906 = vst.msk [vmem:[#allocation3 + $0xd9] sm:$0xff] %vm660_vm0, %v4873_v42  ;;  %vm4812_vm8 = vcmp.ge.f32.partialorder %v4780_v23, 0.0  ;;  %v4844_v27 = vmul.f32 0.2, %v4780_v23  ;;  %18338 = vmatprep.mubr.msk.f32.mxu0 %vm660_vm0, %v22797_v52 }
 0x468   : > { %vm4811_vm9 = vcmp.ge.f32.partialorder %v4779_v49, 0.0  ;;  %v4843_v47 = vmul.f32 0.2, %v4779_v49  ;;  %v18293_v36 = vpop.f32.mrb[20].mxu1  ;;  %18339 = vmatmul.mubr.msk.f32.gmra.mrb[46].mxu0 %vm660_vm0, %v22802_v41 }
 0x469   : > { %v4876_v29 = vsel %vm4812_vm8, %v4780_v23, %v4844_v27  ;;  %v4782_v53 = vadd.f32 %v18293_v36, %v22710_v20  ;;  %v4663_v33 = vpop.f32.mrb[21].mxu1  ;;  %v22814_v50 = vld [vmem:[#allocation3 + $0xc9] sm:$0xff] }
 0x46a   : > { %4909 = vst.msk [vmem:[#allocation3 + $0xf9] sm:$0xff] %vm660_vm0, %v4876_v29  ;;  %v4875_v48 = vsel %vm4811_vm9, %v4779_v49, %v4843_v47  ;;  %v4781_v62 = vadd.f32 %v22710_v20, %v4663_v33  ;;  %v22809_v9 = vld [vmem:[#allocation3 + $0xc1] sm:$0xff] }
 0x46b   : > { %4908 = vst.msk [vmem:[#allocation3 + $0xf1] sm:$0xff] %vm660_vm0, %v4875_v48  ;;  %vm4814_vm10 = vcmp.ge.f32.partialorder %v4782_v53, 0.0  ;;  %v4846_v56 = vmul.f32 0.2, %v4782_v53  ;;  %18341 = vmatprep.mubr.msk.f32.mxu0 %vm660_vm0, %v22809_v9 }
 0x46c   : > { %vm4813_vm11 = vcmp.ge.f32.partialorder %v4781_v62, 0.0  ;;  %v4845_v60 = vmul.f32 0.2, %v4781_v62  ;;  %v18296_v31 = vpop.f32.mrb[22].mxu1  ;;  %18342 = vmatmul.mubr.msk.f32.gmra.mrb[48].mxu0 %vm660_vm0, %v22814_v50 }
 0x46d   : > { %v4878_v43 = vsel %vm4814_vm10, %v4782_v53, %v4846_v56  ;;  %v4784_v45 = vadd.f32 %v18296_v31, %v22710_v20  ;;  %v4673_v57 = vpop.f32.mrb[23].mxu1  ;;  %v22826_v32 = vld [vmem:[#allocation3 + $0xe1] sm:$0xff] }
 0x46e   : > { %4911 = vst.msk [vmem:[#allocation3 + $0x111] sm:$0xff] %vm660_vm0, %v4878_v43  ;;  %v4877_v6 = vsel %vm4813_vm11, %v4781_v62, %v4845_v60  ;;  %v4783_v22 = vadd.f32 %v22710_v20, %v4673_v57  ;;  %v22821_v24 = vld [vmem:[#allocation3 + $0xd9] sm:$0xff] }
 0x46f   : > { %4910 = vst.msk [vmem:[#allocation3 + $0x109] sm:$0xff] %vm660_vm0, %v4877_v6  ;;  %vm4816_vm12 = vcmp.ge.f32.partialorder %v4784_v45, 0.0  ;;  %v4848_v25 = vmul.f32 0.2, %v4784_v45  ;;  %18344 = vmatprep.mubr.msk.f32.mxu0 %vm660_vm0, %v22821_v24 }
 0x470   : > { %vm4815_vm13 = vcmp.ge.f32.partialorder %v4783_v22, 0.0  ;;  %v4847_v46 = vmul.f32 0.2, %v4783_v22  ;;  %v18299_v55 = vpop.f32.mrb[24].mxu1  ;;  %18345 = vmatmul.mubr.msk.f32.gmra.mrb[50].mxu0 %vm660_vm0, %v22826_v32 }
 0x471   : > { %v4880_v1 = vsel %vm4816_vm12, %v4784_v45, %v4848_v25  ;;  %v4786_v34 = vadd.f32 %v18299_v55, %v22710_v20  ;;  %v4683_v54 = vpop.f32.mrb[25].mxu1  ;;  %v22838_v17 = vld [vmem:[#allocation3 + $0xf9] sm:$0xff] }
 0x472   : > { %4913 = vst.msk [vmem:[#allocation3 + $0x129] sm:$0xff] %vm660_vm0, %v4880_v1  ;;  %v4879_v28 = vsel %vm4815_vm13, %v4783_v22, %v4847_v46  ;;  %v4785_v30 = vadd.f32 %v22710_v20, %v4683_v54  ;;  %v22833_v38 = vld [vmem:[#allocation3 + $0xf1] sm:$0xff]  ;;  %v4922_v55 = vld [vmem:[#allocation3] sm:$0xff] }
 0x473   : > { %4912 = vst.msk [vmem:[#allocation3 + $0x121] sm:$0xff] %vm660_vm0, %v4879_v28  ;;  %vm4818_vm14 = vcmp.ge.f32.partialorder %v4786_v34, 0.0  ;;  %v4850_v40 = vmul.f32 0.2, %v4786_v34  ;;  %18347 = vmatprep.mubr.msk.f32.mxu0 %vm660_vm0, %v22833_v38  ;;  %v5673_v54 = vld [vmem:[#allocation10 + $0x58] sm:$0xff]  ;;  %v4923_v28 = vld [vmem:[#allocation3 + $0x8] sm:$0xff] }
 0x474   : > { %vm4817_vm15 = vcmp.ge.f32.partialorder %v4785_v30, 0.0  ;;  %v4849_v58 = vmul.f32 0.2, %v4785_v30  ;;  %v18302_v61 = vpop.f32.mrb[26].mxu1  ;;  %18348 = vmatmul.mubr.msk.f32.gmra.mrb[52].mxu0 %vm660_vm0, %v22838_v17 }
 0x475   : > { %v4882_v0 = vsel %vm4818_vm14, %v4786_v34, %v4850_v40  ;;  %v4788_v2 = vadd.f32 %v18302_v61, %v22710_v20  ;;  %v4693_v3 = vpop.f32.mrb[27].mxu1  ;;  %v22850_v13 = vld [vmem:[#allocation3 + $0x111] sm:$0xff]  ;;  %v6060_v40 = vld [vmem:[#allocation10 + $0x60] sm:$0xff] }
 0x476   : > { %4915 = vst.msk [vmem:[#allocation3 + $0x141] sm:$0xff] %vm660_vm0, %v4882_v0  ;;  %v4881_v4 = vsel %vm4817_vm15, %v4785_v30, %v4849_v58  ;;  %v4787_v5 = vadd.f32 %v22710_v20, %v4693_v3  ;;  %v22845_v8 = vld [vmem:[#allocation3 + $0x109] sm:$0xff]  ;;  %v5672_v34 = vld [vmem:[#allocation10 + $0x50] sm:$0xff] }
 0x477   : > { %4914 = vst.msk [vmem:[#allocation3 + $0x139] sm:$0xff] %vm660_vm0, %v4881_v4  ;;  %vm4820_vm1 = vcmp.ge.f32.partialorder %v4788_v2, 0.0  ;;  %v4852_v11 = vmul.f32 0.2, %v4788_v2  ;;  %18350 = vmatprep.mubr.msk.f32.mxu0 %vm660_vm0, %v22845_v8  ;;  %v19867_v30 = vpack.c.bf16 %v5673_v54, %v5672_v34  ;;  %v6061_v58 = vld [vmem:[#allocation10 + $0x68] sm:$0xff]  ;;  %v22898_v61 = vld [vmem:[#allocation3 + $0x18] sm:$0xff] }
 0x478   : > { %vm4819_vm2 = vcmp.ge.f32.partialorder %v4787_v5, 0.0  ;;  %v4851_v15 = vmul.f32 0.2, %v4787_v5  ;;  %v18305_v16 = vpop.f32.mrb[28].mxu1  ;;  %18351 = vmatmul.mubr.msk.f32.gmra.mrb[54].mxu0 %vm660_vm0, %v22850_v13  ;;  %v22903_v0 = vpack.c.bf16 %v6061_v58, %v6060_v40  ;;  %v22909_v3 = vld [vmem:[#allocation3 + $0x30] sm:$0xff]  ;;  %v22914_v4 = vld [vmem:[#allocation3 + $0x38] sm:$0xff] }
 0x479   : > { %v4884_v19 = vsel %vm4820_vm1, %v4788_v2, %v4852_v11  ;;  %v4790_v23 = vadd.f32 %v18305_v16, %v22710_v20  ;;  %v4703_v37 = vpop.f32.mrb[29].mxu1  ;;  %v22862_v36 = vld [vmem:[#allocation3 + $0x129] sm:$0xff]  ;;  %v22905_v2 = vld [vmem:[#allocation3 + $0x20] sm:$0xff]  ;;  %v22934_v16 = vld [vmem:[#allocation3 + $0x78] sm:$0xff] }
 0x47a   : > { %4917 = vst.msk [vmem:[#allocation3 + $0x159] sm:$0xff] %vm660_vm0, %v4884_v19  ;;  %v4883_v42 = vsel %vm4819_vm2, %v4787_v5, %v4851_v15  ;;  %v4789_v49 = vadd.f32 %v22710_v20, %v4703_v37  ;;  %v22857_v27 = vld [vmem:[#allocation3 + $0x121] sm:$0xff]  ;;  %25063 = vst [vmem:[#allocation20_spill] sm:$0xff] %v22862_v36  ;;  %v22922_v5 = vld [vmem:[#allocation3 + $0x50] sm:$0xff] }
 0x47b   : > { %4916 = vst.msk [vmem:[#allocation3 + $0x151] sm:$0xff] %vm660_vm0, %v4883_v42  ;;  %vm4822_vm3 = vcmp.ge.f32.partialorder %v4790_v23, 0.0  ;;  %v4854_v47 = vmul.f32 0.2, %v4790_v23  ;;  %18353 = vmatprep.mubr.msk.f32.mxu0 %vm660_vm0, %v22857_v27  ;;  %v22926_v11 = vld [vmem:[#allocation3 + $0x60] sm:$0xff]  ;;  %v22930_v15 = vld [vmem:[#allocation3 + $0x68] sm:$0xff] }
 0x47c   : > { %vm4821_vm4 = vcmp.ge.f32.partialorder %v4789_v49, 0.0  ;;  %v4853_v29 = vmul.f32 0.2, %v4789_v49  ;;  %v18308_v53 = vpop.f32.mrb[30].mxu1  ;;  %18354 = vmatmul.mubr.msk.f32.gmra.mrb[56].mxu0 %vm660_vm0, %v22862_v36  ;;  %v22938_v19 = vld [vmem:[#allocation3 + $0x80] sm:$0xff]  ;;  %v22946_v37 = vld [vmem:[#allocation3 + $0x98] sm:$0xff] }
 0x47d   : > { %v4886_v33 = vsel %vm4822_vm3, %v4790_v23, %v4854_v47  ;;  %v4792_v48 = vadd.f32 %v18308_v53, %v22710_v20  ;;  %v4713_v62 = vpop.f32.mrb[31].mxu1  ;;  %v22874_v45 = vld [vmem:[#allocation3 + $0x141] sm:$0xff]  ;;  %v22942_v23 = vld [vmem:[#allocation3 + $0x90] sm:$0xff]  ;;  %v22966_v53 = vld [vmem:[#allocation3 + $0xd8] sm:$0xff] }
 0x47e   : > { %4919 = vst.msk [vmem:[#allocation3 + $0x171] sm:$0xff] %vm660_vm0, %v4886_v33  ;;  %v4885_v56 = vsel %vm4821_vm4, %v4789_v49, %v4853_v29  ;;  %v4791_v60 = vadd.f32 %v22710_v20, %v4713_v62  ;;  %v22869_v31 = vld [vmem:[#allocation3 + $0x139] sm:$0xff]  ;;  %25065 = vst [vmem:[#allocation22_spill] sm:$0xff] %v22874_v45  ;;  %v22950_v42 = vld [vmem:[#allocation3 + $0xa8] sm:$0xff] }
 0x47f   : > { %25064 = vst [vmem:[#allocation21_spill] sm:$0xff] %v22869_v31  ;;  %4918 = vst.msk [vmem:[#allocation3 + $0x169] sm:$0xff] %vm660_vm0, %v4885_v56  ;;  %vm4824_vm5 = vcmp.ge.f32.partialorder %v4792_v48, 0.0  ;;  %v4856_v43 = vmul.f32 0.2, %v4792_v48  ;;  %18356 = vmatprep.mubr.msk.f32.mxu0 %vm660_vm0, %v22869_v31  ;;  %v22954_v49 = vld [vmem:[#allocation3 + $0xb0] sm:$0xff] }
 0x480   : > { %vm4823_vm6 = vcmp.ge.f32.partialorder %v4791_v60, 0.0  ;;  %v4855_v57 = vmul.f32 0.2, %v4791_v60  ;;  %18357 = vmatmul.mubr.msk.f32.gmra.mrb[58].mxu0 %vm660_vm0, %v22874_v45  ;;  %v22958_v47 = vld [vmem:[#allocation3 + $0xc0] sm:$0xff]  ;;  %v22962_v29 = vld [vmem:[#allocation3 + $0xc8] sm:$0xff]  ;;  %v22978_v62 = vld [vmem:[#allocation3 + $0xf8] sm:$0xff] }
 0x481   : > { %v4888_v6 = vsel %vm4824_vm5, %v4792_v48, %v4856_v43  ;;  %v22884_v25 = vld [vmem:[#allocation3 + $0x159] sm:$0xff]  ;;  %v22974_v48 = vld [vmem:[#allocation3 + $0xf0] sm:$0xff]  ;;  %v22982_v56 = vld [vmem:[#allocation3 + $0x108] sm:$0xff] }
 0x482   : > { %4921 = vst.msk [vmem:[#allocation3 + $0x189] sm:$0xff] %vm660_vm0, %v4888_v6  ;;  %v4887_v20 = vsel %vm4823_vm6, %v4791_v60, %v4855_v57  ;;  %v22879_v22 = vld [vmem:[#allocation3 + $0x151] sm:$0xff]  ;;  %25067 = vst [vmem:[#allocation24_spill] sm:$0xff] %v22884_v25  ;;  %v22970_v33 = vld [vmem:[#allocation3 + $0xe0] sm:$0xff] }
 0x483   : > { %25066 = vst [vmem:[#allocation23_spill] sm:$0xff] %v22879_v22  ;;  %4920 = vst.msk [vmem:[#allocation3 + $0x181] sm:$0xff] %vm660_vm0, %v4887_v20  ;;  %18359 = vmatprep.mubr.msk.f32.mxu0 %vm660_vm0, %v22879_v22  ;;  %v22986_v60 = vld [vmem:[#allocation3 + $0x110] sm:$0xff]  ;;  %v22990_v43 = vld [vmem:[#allocation3 + $0x120] sm:$0xff] }
 0x484   : > { %18360 = vmatmul.mubr.msk.f32.gmra.mrb[60].mxu0 %vm660_vm0, %v22884_v25  ;;  %v22994_v57 = vld [vmem:[#allocation3 + $0x128] sm:$0xff]  ;;  %v22998_v6 = vld [vmem:[#allocation3 + $0x138] sm:$0xff]  ;;  %v23002_v20 = vld [vmem:[#allocation3 + $0x140] sm:$0xff] }
 0x485   : > { %v22892_v1 = vld [vmem:[#allocation3 + $0x171] sm:$0xff]  ;;  %v6063_v58 = vld [vmem:[#allocation10 + $0x78] sm:$0xff]  ;;  %v6450_v25 = vld [vmem:[#allocation10 + $0x80] sm:$0xff] }
 0x486   : > { %v22888_v46 = vld [vmem:[#allocation3 + $0x169] sm:$0xff]  ;;  %25069 = vst [vmem:[#allocation26_spill] sm:$0xff] %v22892_v1  ;;  %v23010_v34 = vld [vmem:[#allocation3 + $0x158] sm:$0xff] }
 0x487   : > { %25068 = vst [vmem:[#allocation25_spill] sm:$0xff] %v22888_v46  ;;  %18362 = vmatprep.mubr.msk.f32.mxu0 %vm660_vm0, %v22888_v46  ;;  %v23014_v54 = vld [vmem:[#allocation3 + $0x168] sm:$0xff]  ;;  %v6062_v40 = vld [vmem:[#allocation10 + $0x70] sm:$0xff]  ;;  %v23024_v45 = vld [vmem:[#allocation3 + $0x1a] sm:$0xff] }
 0x488   : > { %18363 = vmatmul.mubr.msk.f32.gmra.mrb[62].mxu0 %vm660_vm0, %v22892_v1  ;;  %v5638_v1 = vld [vmem:[#allocation3 + $0xa] sm:$0xff]  ;;  %v19875_v46 = vpack.c.bf16 %v6063_v58, %v6062_v40  ;;  %v23031_v36 = vld [vmem:[#allocation3 + $0x22] sm:$0xff]  ;;  %v23060_v40 = vld [vmem:[#allocation3 + $0x7a] sm:$0xff] }
 0x489   : > { %18373 = vmatprep.mubr.msk.f32.mxu0 %vm660_vm0, %v4922_v55  ;;  %v23006_v55 = vld [vmem:[#allocation3 + $0x150] sm:$0xff]  ;;  %25076 = vst [vmem:[#allocation33_spill] sm:$0xff] %v23060_v40  ;;  %v23064_v58 = vld [vmem:[#allocation3 + $0x82] sm:$0xff] }
 0x48a   : > { %v6451_v22 = vld [vmem:[#allocation10 + $0x88] sm:$0xff]  ;;  %25077 = vst [vmem:[#allocation34_spill] sm:$0xff] %v23064_v58 }
 0x48b   : > { %v23029_v31 = vpack.c.bf16 %v6451_v22, %v6450_v25  ;;  %v23044_v22 = vld [vmem:[#allocation3 + $0x4a] sm:$0xff]  ;;  %v23048_v25 = vld [vmem:[#allocation3 + $0x52] sm:$0xff] }
 0x48c   : > { %18374 = vmatmul.mubr.msk.f32.vlgmr.msra.gmra.mrb[32].mxu0 %vm660_vm0, %v4923_v28  ;;  %v5637_v28 = vld [vmem:[#allocation3 + $0x2] sm:$0xff]  ;;  %25072 = vst [vmem:[#allocation29_spill] sm:$0xff] %v23044_v22  ;;  %25073 = vst [vmem:[#allocation30_spill] sm:$0xff] %v23048_v25 }
 0x48d   : > { %18376 = vmatprep.mubr.msk.f32.mxu0 %vm660_vm0, %v22898_v61  ;;  %19866 = vmatpush3.bf16.msra.mxu0 %v22704_v18  ;;  %v22918_v18 = vld [vmem:[#allocation3 + $0x48] sm:$0xff] }
 0x48e   : > { %19868 = vmatprep.subr.bf16.mxu0 %v19867_v30 }
 0x490   : > { %18377 = vmatmul.mubr.msk.f32.gmra.mrb[34].mxu0 %vm660_vm0, %v22905_v2 }
 0x491   : > { %18379 = vmatprep.mubr.msk.f32.mxu0 %vm660_vm0, %v22909_v3  ;;  %19870 = vmatpush3.bf16.msra.mxu0 %v19867_v30  ;;  %v23018_v30 = vld [vmem:[#allocation3 + $0x170] sm:$0xff] }
 0x492   : > { %19872 = vmatprep.subr.bf16.mxu0 %v22903_v0 }
 0x494   : > { %18380 = vmatmul.mubr.msk.f32.gmra.mrb[36].mxu0 %vm660_vm0, %v22914_v4 }
 0x495   : > { %18382 = vmatprep.mubr.msk.f32.mxu0 %vm660_vm0, %v22918_v18 }
 0x498   : > { %18383 = vmatmul.mubr.msk.f32.gmra.mrb[38].mxu0 %vm660_vm0, %v22922_v5 }
 0x499   : > { %18385 = vmatprep.mubr.msk.f32.mxu0 %vm660_vm0, %v22926_v11 }
 0x49c   : > { %18386 = vmatmul.mubr.msk.f32.gmra.mrb[40].mxu0 %vm660_vm0, %v22930_v15 }
 0x49d   : > { %18388 = vmatprep.mubr.msk.f32.mxu0 %vm660_vm0, %v22934_v16 }
 0x4a0   : > { %18389 = vmatmul.mubr.msk.f32.gmra.mrb[42].mxu0 %vm660_vm0, %v22938_v19 }
 0x4a1   : > { %18391 = vmatprep.mubr.msk.f32.mxu0 %vm660_vm0, %v22942_v23 }
 0x4a4   : > { %18392 = vmatmul.mubr.msk.f32.gmra.mrb[44].mxu0 %vm660_vm0, %v22946_v37 }
 0x4a5   : > { %18394 = vmatprep.mubr.msk.f32.mxu0 %vm660_vm0, %v22950_v42 }
 0x4a8   : > { %18395 = vmatmul.mubr.msk.f32.gmra.mrb[46].mxu0 %vm660_vm0, %v22954_v49 }
 0x4a9   : > { %18397 = vmatprep.mubr.msk.f32.mxu0 %vm660_vm0, %v22958_v47 }
 0x4ac   : > { %18398 = vmatmul.mubr.msk.f32.gmra.mrb[48].mxu0 %vm660_vm0, %v22962_v29 }
 0x4ad   : > { %18400 = vmatprep.mubr.msk.f32.mxu0 %vm660_vm0, %v22966_v53 }
 0x4b0   : > { %18401 = vmatmul.mubr.msk.f32.gmra.mrb[50].mxu0 %vm660_vm0, %v22970_v33 }
 0x4b1   : > { %18403 = vmatprep.mubr.msk.f32.mxu0 %vm660_vm0, %v22974_v48 }
 0x4b4   : > { %18404 = vmatmul.mubr.msk.f32.gmra.mrb[52].mxu0 %vm660_vm0, %v22978_v62 }
 0x4b5   : > { %18406 = vmatprep.mubr.msk.f32.mxu0 %vm660_vm0, %v22982_v56 }
 0x4b8   : > { %18407 = vmatmul.mubr.msk.f32.gmra.mrb[54].mxu0 %vm660_vm0, %v22986_v60 }
 0x4b9   : > { %18409 = vmatprep.mubr.msk.f32.mxu0 %vm660_vm0, %v22990_v43 }
 0x4bc   : > { %18410 = vmatmul.mubr.msk.f32.gmra.mrb[56].mxu0 %vm660_vm0, %v22994_v57 }
 0x4bd   : > { %18412 = vmatprep.mubr.msk.f32.mxu0 %vm660_vm0, %v22998_v6 }
 0x4c0   : > { %18413 = vmatmul.mubr.msk.f32.gmra.mrb[58].mxu0 %vm660_vm0, %v23002_v20 }
 0x4c1   : > { %18415 = vmatprep.mubr.msk.f32.mxu0 %vm660_vm0, %v23006_v55 }
 0x4c4   : > { %18416 = vmatmul.mubr.msk.f32.gmra.mrb[60].mxu0 %vm660_vm0, %v23010_v34 }
 0x4c5   : > { %18418 = vmatprep.mubr.msk.f32.mxu0 %vm660_vm0, %v23014_v54 }
 0x4c8   : > { %18419 = vmatmul.mubr.msk.f32.gmra.mrb[62].mxu0 %vm660_vm0, %v23018_v30 }
 0x4c9   : > { %18429 = vmatprep.mubr.msk.f32.mxu0 %vm660_vm0, %v5637_v28  ;;  %v23035_v28 = vld [vmem:[#allocation3 + $0x32] sm:$0xff] }
 0x4ca   : > { %25070 = vst [vmem:[#allocation27_spill] sm:$0xff] %v23035_v28 }
 0x4cc   : > { %18430 = vmatmul.mubr.msk.f32.vlgmr.msra.gmra.mrb[32].mxu0 %vm660_vm0, %v5638_v1  ;;  %v23040_v1 = vld [vmem:[#allocation3 + $0x3a] sm:$0xff] }
 0x4cd   : > { %18432 = vmatprep.mubr.msk.f32.mxu0 %vm660_vm0, %v23024_v45  ;;  %19874 = vmatpush3.bf16.msra.mxu0 %v22903_v0  ;;  %25071 = vst [vmem:[#allocation28_spill] sm:$0xff] %v23040_v1  ;;  %v23052_v0 = vld [vmem:[#allocation3 + $0x62] sm:$0xff] }
 0x4ce   : > { %19876 = vmatprep.subr.bf16.mxu0 %v19875_v46  ;;  %25074 = vst [vmem:[#allocation31_spill] sm:$0xff] %v23052_v0 }
 0x4d0   : > { %18433 = vmatmul.mubr.msk.f32.gmra.mrb[34].mxu0 %vm660_vm0, %v23031_v36 }
 0x4d1   : > { %18435 = vmatprep.mubr.msk.f32.mxu0 %vm660_vm0, %v23035_v28  ;;  %19878 = vmatpush3.bf16.msra.mxu0 %v19875_v46  ;;  %v23056_v46 = vld [vmem:[#allocation3 + $0x6a] sm:$0xff] }
 0x4d2   : > { %19880 = vmatprep.subr.bf16.mxu0 %v23029_v31  ;;  %25075 = vst [vmem:[#allocation32_spill] sm:$0xff] %v23056_v46  ;;  %v6841_v28 = vld [vmem:[#allocation10 + $0xa8] sm:$0xff] }
 0x4d4   : > { %18436 = vmatmul.mubr.msk.f32.gmra.mrb[36].mxu0 %vm660_vm0, %v23040_v1  ;;  %v6453_v1 = vld [vmem:[#allocation10 + $0x98] sm:$0xff] }
 0x4d5   : > { %18438 = vmatprep.mubr.msk.f32.mxu0 %vm660_vm0, %v23044_v22  ;;  %v6452_v22 = vld [vmem:[#allocation10 + $0x90] sm:$0xff] }
 0x4d8   : > { %18439 = vmatmul.mubr.msk.f32.gmra.mrb[38].mxu0 %vm660_vm0, %v23048_v25  ;;  %v23068_v25 = vld [vmem:[#allocation3 + $0x92] sm:$0xff] }
 0x4d9   : > { %18441 = vmatprep.mubr.msk.f32.mxu0 %vm660_vm0, %v23052_v0  ;;  %25078 = vst [vmem:[#allocation35_spill] sm:$0xff] %v23068_v25  ;;  %v23072_v0 = vld [vmem:[#allocation3 + $0x9a] sm:$0xff] }
 0x4da   : > { %25079 = vst [vmem:[#allocation36_spill] sm:$0xff] %v23072_v0 }
 0x4dc   : > { %18442 = vmatmul.mubr.msk.f32.gmra.mrb[40].mxu0 %vm660_vm0, %v23056_v46  ;;  %v23076_v46 = vld [vmem:[#allocation3 + $0xaa] sm:$0xff] }
 0x4dd   : > { %18444 = vmatprep.mubr.msk.f32.mxu0 %vm660_vm0, %v23060_v40  ;;  %25080 = vst [vmem:[#allocation37_spill] sm:$0xff] %v23076_v46  ;;  %v23080_v40 = vld [vmem:[#allocation3 + $0xb2] sm:$0xff] }
 0x4de   : > { %25081 = vst [vmem:[#allocation38_spill] sm:$0xff] %v23080_v40 }
 0x4e0   : > { %18445 = vmatmul.mubr.msk.f32.gmra.mrb[42].mxu0 %vm660_vm0, %v23064_v58  ;;  %v23084_v58 = vld [vmem:[#allocation3 + $0xc2] sm:$0xff] }
 0x4e1   : > { %18447 = vmatprep.mubr.msk.f32.mxu0 %vm660_vm0, %v23068_v25  ;;  %25082 = vst [vmem:[#allocation39_spill] sm:$0xff] %v23084_v58  ;;  %v23088_v25 = vld [vmem:[#allocation3 + $0xca] sm:$0xff] }
 0x4e2   : > { %25083 = vst [vmem:[#allocation40_spill] sm:$0xff] %v23088_v25 }
 0x4e4   : > { %18448 = vmatmul.mubr.msk.f32.gmra.mrb[44].mxu0 %vm660_vm0, %v23072_v0  ;;  %v23092_v0 = vld [vmem:[#allocation3 + $0xda] sm:$0xff] }
 0x4e5   : > { %18450 = vmatprep.mubr.msk.f32.mxu0 %vm660_vm0, %v23076_v46  ;;  %25084 = vst [vmem:[#allocation41_spill] sm:$0xff] %v23092_v0  ;;  %v23096_v46 = vld [vmem:[#allocation3 + $0xe2] sm:$0xff] }
 0x4e6   : > { %25085 = vst [vmem:[#allocation42_spill] sm:$0xff] %v23096_v46 }
 0x4e8   : > { %18451 = vmatmul.mubr.msk.f32.gmra.mrb[46].mxu0 %vm660_vm0, %v23080_v40  ;;  %v23100_v40 = vld [vmem:[#allocation3 + $0xf2] sm:$0xff] }
 0x4e9   : > { %18453 = vmatprep.mubr.msk.f32.mxu0 %vm660_vm0, %v23084_v58  ;;  %25086 = vst [vmem:[#allocation43_spill] sm:$0xff] %v23100_v40  ;;  %v23104_v58 = vld [vmem:[#allocation3 + $0xfa] sm:$0xff] }
 0x4ea   : > { %25087 = vst [vmem:[#allocation44_spill] sm:$0xff] %v23104_v58 }
 0x4ec   : > { %18454 = vmatmul.mubr.msk.f32.gmra.mrb[48].mxu0 %vm660_vm0, %v23088_v25  ;;  %v23108_v25 = vld [vmem:[#allocation3 + $0x10a] sm:$0xff] }
 0x4ed   : > { %18456 = vmatprep.mubr.msk.f32.mxu0 %vm660_vm0, %v23092_v0  ;;  %25088 = vst [vmem:[#allocation45_spill] sm:$0xff] %v23108_v25  ;;  %v23112_v0 = vld [vmem:[#allocation3 + $0x112] sm:$0xff] }
 0x4ee   : > { %25089 = vst [vmem:[#allocation46_spill] sm:$0xff] %v23112_v0 }
 0x4f0   : > { %18457 = vmatmul.mubr.msk.f32.gmra.mrb[50].mxu0 %vm660_vm0, %v23096_v46  ;;  %v23116_v46 = vld [vmem:[#allocation3 + $0x122] sm:$0xff] }
 0x4f1   : > { %18459 = vmatprep.mubr.msk.f32.mxu0 %vm660_vm0, %v23100_v40  ;;  %25090 = vst [vmem:[#allocation47_spill] sm:$0xff] %v23116_v46  ;;  %v23120_v40 = vld [vmem:[#allocation3 + $0x12a] sm:$0xff] }
 0x4f2   : > { %25091 = vst [vmem:[#allocation48_spill] sm:$0xff] %v23120_v40 }
 0x4f4   : > { %18460 = vmatmul.mubr.msk.f32.gmra.mrb[52].mxu0 %vm660_vm0, %v23104_v58  ;;  %v23124_v58 = vld [vmem:[#allocation3 + $0x13a] sm:$0xff] }
 0x4f5   : > { %18462 = vmatprep.mubr.msk.f32.mxu0 %vm660_vm0, %v23108_v25  ;;  %25092 = vst [vmem:[#allocation49_spill] sm:$0xff] %v23124_v58  ;;  %v23128_v25 = vld [vmem:[#allocation3 + $0x142] sm:$0xff] }
 0x4f6   : > { %25093 = vst [vmem:[#allocation50_spill] sm:$0xff] %v23128_v25 }
 0x4f8   : > { %18463 = vmatmul.mubr.msk.f32.gmra.mrb[54].mxu0 %vm660_vm0, %v23112_v0  ;;  %v23132_v0 = vld [vmem:[#allocation3 + $0x152] sm:$0xff] }
 0x4f9   : > { %18465 = vmatprep.mubr.msk.f32.mxu0 %vm660_vm0, %v23116_v46  ;;  %25094 = vst [vmem:[#allocation51_spill] sm:$0xff] %v23132_v0  ;;  %v23136_v46 = vld [vmem:[#allocation3 + $0x15a] sm:$0xff] }
 0x4fa   : > { %25095 = vst [vmem:[#allocation52_spill] sm:$0xff] %v23136_v46 }
 0x4fc   : > { %18466 = vmatmul.mubr.msk.f32.gmra.mrb[56].mxu0 %vm660_vm0, %v23120_v40  ;;  %v23140_v40 = vld [vmem:[#allocation3 + $0x16a] sm:$0xff] }
 0x4fd   : > { %18468 = vmatprep.mubr.msk.f32.mxu0 %vm660_vm0, %v23124_v58  ;;  %25096 = vst [vmem:[#allocation19_spill] sm:$0xff] %v23140_v40  ;;  %v23144_v58 = vld [vmem:[#allocation3 + $0x172] sm:$0xff] }
 0x500   : > { %18469 = vmatmul.mubr.msk.f32.gmra.mrb[58].mxu0 %vm660_vm0, %v23128_v25  ;;  %v6840_v25 = vld [vmem:[#allocation10 + $0xa0] sm:$0xff] }
 0x501   : > { %18471 = vmatprep.mubr.msk.f32.mxu0 %vm660_vm0, %v23132_v0  ;;  %v19883_v0 = vpack.c.bf16 %v6453_v1, %v6452_v22  ;;  %v7231_v22 = vld [vmem:[#allocation10 + $0xc0] sm:$0xff] }
 0x504   : > { %18472 = vmatmul.mubr.msk.f32.gmra.mrb[60].mxu0 %vm660_vm0, %v23136_v46 }
 0x505   : > { %18474 = vmatprep.mubr.msk.f32.mxu0 %vm660_vm0, %v23140_v40  ;;  %v19887_v40 = vpack.c.bf16 %v6841_v28, %v6840_v25  ;;  %v6843_v28 = vld [vmem:[#allocation10 + $0xb8] sm:$0xff]  ;;  %v7232_v25 = vld [vmem:[#allocation10 + $0xc8] sm:$0xff] }
 0x508   : > { %18475 = vmatmul.mubr.msk.f32.gmra.mrb[62].mxu0 %vm660_vm0, %v23144_v58 }
 0x509   : > { %18485 = vmatprep.mubr.msk.f32.mxu0 %vm660_vm0, %v22898_v61  ;;  %v23213_v61 = vld [vmem:[#allocation3 + $0x188] sm:$0xff] }
 0x50c   : > { %18486 = vmatmul.mubr.msk.f32.vlgmr.msra.gmra.mrb[32].mxu0 %vm660_vm0, %v22905_v2  ;;  %v6842_v2 = vld [vmem:[#allocation10 + $0xb0] sm:$0xff] }
 0x50d   : > { %18488 = vmatprep.mubr.msk.f32.mxu0 %vm660_vm0, %v22909_v3  ;;  %19882 = vmatpush3.bf16.msra.mxu0 %v23029_v31  ;;  %v23209_v31 = vld [vmem:[#allocation3 + $0x180] sm:$0xff]  ;;  %v19891_v1 = vpack.c.bf16 %v6843_v28, %v6842_v2 }
 0x50e   : > { %19884 = vmatprep.subr.bf16.mxu0 %v19883_v0  ;;  %v25115_v2 = vld [vmem:[#allocation38_spill] sm:$0xff]  ;;  %v25116_v28 = vld [vmem:[#allocation39_spill] sm:$0xff] }
 0x510   : > { %18489 = vmatmul.mubr.msk.f32.gmra.mrb[34].mxu0 %vm660_vm0, %v22914_v4 }
 0x511   : > { %18491 = vmatprep.mubr.msk.f32.mxu0 %vm660_vm0, %v22918_v18  ;;  %19886 = vmatpush3.bf16.msra.mxu0 %v19883_v0  ;;  %v19895_v0 = vpack.c.bf16 %v7232_v25, %v7231_v22  ;;  %v25118_v22 = vld [vmem:[#allocation41_spill] sm:$0xff]  ;;  %v25119_v25 = vld [vmem:[#allocation42_spill] sm:$0xff] }
 0x512   : > { %19888 = vmatprep.subr.bf16.mxu0 %v19887_v40 }
 0x514   : > { %18492 = vmatmul.mubr.msk.f32.gmra.mrb[36].mxu0 %vm660_vm0, %v22922_v5 }
 0x515   : > { %18494 = vmatprep.mubr.msk.f32.mxu0 %vm660_vm0, %v22926_v11 }
 0x518   : > { %18495 = vmatmul.mubr.msk.f32.gmra.mrb[38].mxu0 %vm660_vm0, %v22930_v15 }
 0x519   : > { %18497 = vmatprep.mubr.msk.f32.mxu0 %vm660_vm0, %v22934_v16 }
 0x51c   : > { %18498 = vmatmul.mubr.msk.f32.gmra.mrb[40].mxu0 %vm660_vm0, %v22938_v19 }
 0x51d   : > { %18500 = vmatprep.mubr.msk.f32.mxu0 %vm660_vm0, %v22942_v23 }
 0x520   : > { %18501 = vmatmul.mubr.msk.f32.gmra.mrb[42].mxu0 %vm660_vm0, %v22946_v37 }
 0x521   : > { %18503 = vmatprep.mubr.msk.f32.mxu0 %vm660_vm0, %v22950_v42 }
 0x524   : > { %18504 = vmatmul.mubr.msk.f32.gmra.mrb[44].mxu0 %vm660_vm0, %v22954_v49 }
 0x525   : > { %18506 = vmatprep.mubr.msk.f32.mxu0 %vm660_vm0, %v22958_v47 }
 0x528   : > { %18507 = vmatmul.mubr.msk.f32.gmra.mrb[46].mxu0 %vm660_vm0, %v22962_v29 }
 0x529   : > { %18509 = vmatprep.mubr.msk.f32.mxu0 %vm660_vm0, %v22966_v53 }
 0x52c   : > { %18510 = vmatmul.mubr.msk.f32.gmra.mrb[48].mxu0 %vm660_vm0, %v22970_v33 }
 0x52d   : > { %18512 = vmatprep.mubr.msk.f32.mxu0 %vm660_vm0, %v22974_v48 }
 0x530   : > { %18513 = vmatmul.mubr.msk.f32.gmra.mrb[50].mxu0 %vm660_vm0, %v22978_v62 }
 0x531   : > { %18515 = vmatprep.mubr.msk.f32.mxu0 %vm660_vm0, %v22982_v56 }
 0x534   : > { %18516 = vmatmul.mubr.msk.f32.gmra.mrb[52].mxu0 %vm660_vm0, %v22986_v60 }
 0x535   : > { %18518 = vmatprep.mubr.msk.f32.mxu0 %vm660_vm0, %v22990_v43 }
 0x538   : > { %18519 = vmatmul.mubr.msk.f32.gmra.mrb[54].mxu0 %vm660_vm0, %v22994_v57 }
 0x539   : > { %18521 = vmatprep.mubr.msk.f32.mxu0 %vm660_vm0, %v22998_v6 }
 0x53c   : > { %18522 = vmatmul.mubr.msk.f32.gmra.mrb[56].mxu0 %vm660_vm0, %v23002_v20 }
 0x53d   : > { %18524 = vmatprep.mubr.msk.f32.mxu0 %vm660_vm0, %v23006_v55 }
 0x540   : > { %18525 = vmatmul.mubr.msk.f32.gmra.mrb[58].mxu0 %vm660_vm0, %v23010_v34 }
 0x541   : > { %18527 = vmatprep.mubr.msk.f32.mxu0 %vm660_vm0, %v23014_v54 }
 0x544   : > { %18528 = vmatmul.mubr.msk.f32.gmra.mrb[60].mxu0 %vm660_vm0, %v23018_v30 }
 0x545   : > { %18530 = vmatprep.mubr.msk.f32.mxu0 %vm660_vm0, %v23209_v31 }
 0x548   : > { %18531 = vmatmul.mubr.msk.f32.gmra.mrb[62].mxu0 %vm660_vm0, %v23213_v61 }
 0x549   : > { %18541 = vmatprep.mubr.msk.f32.mxu0 %vm660_vm0, %v22725_v26  ;;  %v25097_v26 = vld [vmem:[#allocation20_spill] sm:$0xff] }
 0x54c   : > { %18542 = vmatmul.mubr.msk.f32.vlgmr.msra.gmra.mrb[32].mxu0 %vm660_vm0, %v22730_v44  ;;  %v25098_v44 = vld [vmem:[#allocation21_spill] sm:$0xff] }
 0x54d   : > { %18544 = vmatprep.mubr.msk.f32.mxu0 %vm660_vm0, %v22737_v7  ;;  %19890 = vmatpush3.bf16.msra.mxu0 %v19887_v40  ;;  %v25099_v7 = vld [vmem:[#allocation22_spill] sm:$0xff]  ;;  %v25114_v40 = vld [vmem:[#allocation37_spill] sm:$0xff] }
 0x54e   : > { %19892 = vmatprep.subr.bf16.mxu0 %v19891_v1 }
 0x550   : > { %18545 = vmatmul.mubr.msk.f32.gmra.mrb[34].mxu0 %vm660_vm0, %v22742_v21  ;;  %v25100_v21 = vld [vmem:[#allocation23_spill] sm:$0xff] }
 0x551   : > { %18547 = vmatprep.mubr.msk.f32.mxu0 %vm660_vm0, %v22749_v59  ;;  %19894 = vmatpush3.bf16.msra.mxu0 %v19891_v1  ;;  %v25101_v59 = vld [vmem:[#allocation24_spill] sm:$0xff] }
 0x552   : > { %19896 = vmatprep.subr.bf16.mxu0 %v19895_v0  ;;  %v25117_v1 = vld [vmem:[#allocation40_spill] sm:$0xff] }
 0x554   : > { %18548 = vmatmul.mubr.msk.f32.gmra.mrb[36].mxu0 %vm660_vm0, %v22754_v10  ;;  %v25102_v10 = vld [vmem:[#allocation25_spill] sm:$0xff] }
 0x555   : > { %18550 = vmatprep.mubr.msk.f32.mxu0 %vm660_vm0, %v22761_v39  ;;  %v25103_v39 = vld [vmem:[#allocation26_spill] sm:$0xff] }
 0x558   : > { %18551 = vmatmul.mubr.msk.f32.gmra.mrb[38].mxu0 %vm660_vm0, %v22766_v35  ;;  %v23277_v35 = vld [vmem:[#allocation3 + $0x181] sm:$0xff] }
 0x559   : > { %18553 = vmatprep.mubr.msk.f32.mxu0 %vm660_vm0, %v22773_v51  ;;  %v23281_v51 = vld [vmem:[#allocation3 + $0x189] sm:$0xff] }
 0x55c   : > { %18554 = vmatmul.mubr.msk.f32.gmra.mrb[40].mxu0 %vm660_vm0, %v22778_v63  ;;  %v7233_v63 = vld [vmem:[#allocation10 + $0xd0] sm:$0xff] }
 0x55d   : > { %18556 = vmatprep.mubr.msk.f32.mxu0 %vm660_vm0, %v22785_v12  ;;  %v7234_v12 = vld [vmem:[#allocation10 + $0xd8] sm:$0xff] }
 0x560   : > { %18557 = vmatmul.mubr.msk.f32.gmra.mrb[42].mxu0 %vm660_vm0, %v22790_v14  ;;  %v19899_v14 = vpack.c.bf16 %v7234_v12, %v7233_v63  ;;  %v25122_v63 = vld [vmem:[#allocation45_spill] sm:$0xff]  ;;  %v25123_v12 = vld [vmem:[#allocation46_spill] sm:$0xff] }
 0x561   : > { %18559 = vmatprep.mubr.msk.f32.mxu0 %vm660_vm0, %v22797_v52  ;;  %v7621_v52 = vld [vmem:[#allocation10 + $0xe0] sm:$0xff] }
 0x564   : > { %18560 = vmatmul.mubr.msk.f32.gmra.mrb[44].mxu0 %vm660_vm0, %v22802_v41  ;;  %v7622_v41 = vld [vmem:[#allocation10 + $0xe8] sm:$0xff] }
 0x565   : > { %18562 = vmatprep.mubr.msk.f32.mxu0 %vm660_vm0, %v22809_v9  ;;  %v25104_v9 = vld [vmem:[#allocation27_spill] sm:$0xff] }
 0x568   : > { %18563 = vmatmul.mubr.msk.f32.gmra.mrb[46].mxu0 %vm660_vm0, %v22814_v50  ;;  %v19903_v50 = vpack.c.bf16 %v7622_v41, %v7621_v52  ;;  %v25125_v52 = vld [vmem:[#allocation48_spill] sm:$0xff]  ;;  %v25126_v41 = vld [vmem:[#allocation49_spill] sm:$0xff] }
 0x569   : > { %18565 = vmatprep.mubr.msk.f32.mxu0 %vm660_vm0, %v22821_v24  ;;  %v25105_v24 = vld [vmem:[#allocation28_spill] sm:$0xff] }
 0x56c   : > { %18566 = vmatmul.mubr.msk.f32.gmra.mrb[48].mxu0 %vm660_vm0, %v22826_v32  ;;  %v25106_v32 = vld [vmem:[#allocation29_spill] sm:$0xff] }
 0x56d   : > { %18568 = vmatprep.mubr.msk.f32.mxu0 %vm660_vm0, %v22833_v38  ;;  %v25107_v38 = vld [vmem:[#allocation30_spill] sm:$0xff] }
 0x570   : > { %18569 = vmatmul.mubr.msk.f32.gmra.mrb[50].mxu0 %vm660_vm0, %v22838_v17  ;;  %v25108_v17 = vld [vmem:[#allocation31_spill] sm:$0xff] }
 0x571   : > { %18571 = vmatprep.mubr.msk.f32.mxu0 %vm660_vm0, %v22845_v8  ;;  %v25109_v8 = vld [vmem:[#allocation32_spill] sm:$0xff] }
 0x574   : > { %18572 = vmatmul.mubr.msk.f32.gmra.mrb[52].mxu0 %vm660_vm0, %v22850_v13  ;;  %v25110_v13 = vld [vmem:[#allocation33_spill] sm:$0xff] }
 0x575   : > { %18574 = vmatprep.mubr.msk.f32.mxu0 %vm660_vm0, %v22857_v27  ;;  %v25111_v27 = vld [vmem:[#allocation34_spill] sm:$0xff] }
 0x578   : > { %18575 = vmatmul.mubr.msk.f32.gmra.mrb[54].mxu0 %vm660_vm0, %v25097_v26  ;;  %v25121_v26 = vld [vmem:[#allocation44_spill] sm:$0xff] }
 0x579   : > { %18577 = vmatprep.mubr.msk.f32.mxu0 %vm660_vm0, %v25098_v44 }
 0x57c   : > { %18578 = vmatmul.mubr.msk.f32.gmra.mrb[56].mxu0 %vm660_vm0, %v25099_v7 }
 0x57d   : > { %18580 = vmatprep.mubr.msk.f32.mxu0 %vm660_vm0, %v25100_v21 }
 0x580   : > { %18581 = vmatmul.mubr.msk.f32.gmra.mrb[58].mxu0 %vm660_vm0, %v25101_v59 }
 0x581   : > { %18583 = vmatprep.mubr.msk.f32.mxu0 %vm660_vm0, %v25102_v10 }
 0x584   : > { %18584 = vmatmul.mubr.msk.f32.gmra.mrb[60].mxu0 %vm660_vm0, %v25103_v39 }
 0x585   : > { %18586 = vmatprep.mubr.msk.f32.mxu0 %vm660_vm0, %v23277_v35 }
 0x588   : > { %18587 = vmatmul.mubr.msk.f32.gmra.mrb[62].mxu0 %vm660_vm0, %v23281_v51 }
 0x589   : > { %18597 = vmatprep.mubr.msk.f32.mxu0 %vm660_vm0, %v23024_v45  ;;  %v25113_v45 = vld [vmem:[#allocation36_spill] sm:$0xff] }
 0x58c   : > { %18598 = vmatmul.mubr.msk.f32.vlgmr.msra.gmra.mrb[32].mxu0 %vm660_vm0, %v23031_v36  ;;  %v25112_v36 = vld [vmem:[#allocation35_spill] sm:$0xff] }
 0x58d   : > { %18600 = vmatprep.mubr.msk.f32.mxu0 %vm660_vm0, %v25104_v9  ;;  %19898 = vmatpush3.bf16.msra.mxu0 %v19895_v0  ;;  %v25120_v0 = vld [vmem:[#allocation43_spill] sm:$0xff] }
 0x58e   : > { %19900 = vmatprep.subr.bf16.mxu0 %v19899_v14 }
 0x590   : > { %18601 = vmatmul.mubr.msk.f32.gmra.mrb[34].mxu0 %vm660_vm0, %v25105_v24 }
 0x591   : > { %18603 = vmatprep.mubr.msk.f32.mxu0 %vm660_vm0, %v25106_v32  ;;  %19902 = vmatpush3.bf16.msra.mxu0 %v19899_v14  ;;  %v25124_v14 = vld [vmem:[#allocation47_spill] sm:$0xff] }
 0x592   : > { %19904 = vmatprep.subr.bf16.mxu0 %v19903_v50 }
 0x594   : > { %18604 = vmatmul.mubr.msk.f32.gmra.mrb[36].mxu0 %vm660_vm0, %v25107_v38 }
 0x595   : > { %18606 = vmatprep.mubr.msk.f32.mxu0 %vm660_vm0, %v25108_v17 }
 0x598   : > { %18607 = vmatmul.mubr.msk.f32.gmra.mrb[38].mxu0 %vm660_vm0, %v25109_v8 }
 0x599   : > { %18609 = vmatprep.mubr.msk.f32.mxu0 %vm660_vm0, %v25110_v13 }
 0x59c   : > { %18610 = vmatmul.mubr.msk.f32.gmra.mrb[40].mxu0 %vm660_vm0, %v25111_v27 }
 0x59d   : > { %18612 = vmatprep.mubr.msk.f32.mxu0 %vm660_vm0, %v25112_v36 }
 0x5a0   : > { %18613 = vmatmul.mubr.msk.f32.gmra.mrb[42].mxu0 %vm660_vm0, %v25113_v45 }
 0x5a1   : > { %18615 = vmatprep.mubr.msk.f32.mxu0 %vm660_vm0, %v25114_v40 }
 0x5a4   : > { %18616 = vmatmul.mubr.msk.f32.gmra.mrb[44].mxu0 %vm660_vm0, %v25115_v2 }
 0x5a5   : > { %18618 = vmatprep.mubr.msk.f32.mxu0 %vm660_vm0, %v25116_v28 }
 0x5a8   : > { %18619 = vmatmul.mubr.msk.f32.gmra.mrb[46].mxu0 %vm660_vm0, %v25117_v1 }
 0x5a9   : > { %18621 = vmatprep.mubr.msk.f32.mxu0 %vm660_vm0, %v25118_v22 }
 0x5ac   : > { %18622 = vmatmul.mubr.msk.f32.gmra.mrb[48].mxu0 %vm660_vm0, %v25119_v25  ;;  %v25127_v25 = vld [vmem:[#allocation50_spill] sm:$0xff] }
 0x5ad   : > { %18624 = vmatprep.mubr.msk.f32.mxu0 %vm660_vm0, %v25120_v0  ;;  %v25128_v0 = vld [vmem:[#allocation51_spill] sm:$0xff] }
 0x5b0   : > { %18625 = vmatmul.mubr.msk.f32.gmra.mrb[50].mxu0 %vm660_vm0, %v25121_v26 }
 0x5b1   : > { %18627 = vmatprep.mubr.msk.f32.mxu0 %vm660_vm0, %v25122_v63  ;;  %v25129_v63 = vld [vmem:[#allocation19_spill] sm:$0xff] }
 0x5b4   : > { %18628 = vmatmul.mubr.msk.f32.gmra.mrb[52].mxu0 %vm660_vm0, %v25123_v12 }
 0x5b5   : > { %18630 = vmatprep.mubr.msk.f32.mxu0 %vm660_vm0, %v25124_v14  ;;  %v23345_v14 = vld [vmem:[#allocation3 + $0x182] sm:$0xff] }
 0x5b6   : > { %25130 = vst [vmem:[#allocation20_spill] sm:$0xff] %v23345_v14 }
 0x5b8   : > { %18631 = vmatmul.mubr.msk.f32.gmra.mrb[54].mxu0 %vm660_vm0, %v25125_v52  ;;  %v7624_v52 = vld [vmem:[#allocation10 + $0xf8] sm:$0xff] }
 0x5b9   : > { %18633 = vmatprep.mubr.msk.f32.mxu0 %vm660_vm0, %v25126_v41  ;;  %v23349_v41 = vld [vmem:[#allocation3 + $0x18a] sm:$0xff] }
 0x5bc   : > { %18634 = vmatmul.mubr.msk.f32.gmra.mrb[56].mxu0 %vm660_vm0, %v25127_v25  ;;  %v7623_v25 = vld [vmem:[#allocation10 + $0xf0] sm:$0xff] }
 0x5bd   : > { %18636 = vmatprep.mubr.msk.f32.mxu0 %vm660_vm0, %v25128_v0  ;;  %v8012_v0 = vld [vmem:[#allocation10 + $0x108] sm:$0xff] }
 0x5c0   : > { %18637 = vmatmul.mubr.msk.f32.gmra.mrb[58].mxu0 %vm660_vm0, %v23136_v46  ;;  %v19907_v46 = vpack.c.bf16 %v7624_v52, %v7623_v25 }
 0x5c1   : > { %18639 = vmatprep.mubr.msk.f32.mxu0 %vm660_vm0, %v25129_v63  ;;  %v8011_v63 = vld [vmem:[#allocation10 + $0x100] sm:$0xff] }
 0x5c4   : > { %18640 = vmatmul.mubr.msk.f32.gmra.mrb[60].mxu0 %vm660_vm0, %v23144_v58 }
 0x5c5   : > { %18642 = vmatprep.mubr.msk.f32.mxu0 %vm660_vm0, %v23345_v14  ;;  %v19911_v14 = vpack.c.bf16 %v8012_v0, %v8011_v63 }
 0x5c8   : > { %18643 = vmatmul.mubr.msk.f32.gmra.mrb[62].mxu0 %vm660_vm0, %v23349_v41 }
 0x5c9   : > { %18653 = vmatprep.mubr.msk.f32.mxu0 %vm660_vm0, %v22909_v3  ;;  %v7228_v3 = vld [vmem:[#allocation3 + $0x198] sm:$0xff] }
 0x5cc   : > { %18654 = vmatmul.mubr.msk.f32.vlgmr.msra.gmra.mrb[32].mxu0 %vm660_vm0, %v22914_v4  ;;  %v7229_v4 = vld [vmem:[#allocation3 + $0x1a0] sm:$0xff] }
 0x5cd   : > { %18656 = vmatprep.mubr.msk.f32.mxu0 %vm660_vm0, %v22918_v18  ;;  %19906 = vmatpush3.bf16.msra.mxu0 %v19903_v50  ;;  %v8013_v18 = vld [vmem:[#allocation10 + $0x110] sm:$0xff]  ;;  %v8008_v50 = vld [vmem:[#allocation3 + $0x19a] sm:$0xff] }
 0x5ce   : > { %19908 = vmatprep.subr.bf16.mxu0 %v19907_v46 }
 0x5d0   : > { %18657 = vmatmul.mubr.msk.f32.gmra.mrb[34].mxu0 %vm660_vm0, %v22922_v5  ;;  %v8014_v5 = vld [vmem:[#allocation10 + $0x118] sm:$0xff] }
 0x5d1   : > { %18659 = vmatprep.mubr.msk.f32.mxu0 %vm660_vm0, %v22926_v11  ;;  %19910 = vmatpush3.bf16.msra.mxu0 %v19907_v46  ;;  %v7588_v11 = vld [vmem:[#allocation3 + $0x31] sm:$0xff]  ;;  %v7619_v46 = vld [vmem:[#allocation3 + $0x1a1] sm:$0xff] }
 0x5d2   : > { %19912 = vmatprep.subr.bf16.mxu0 %v19911_v14 }
 0x5d4   : > { %18660 = vmatmul.mubr.msk.f32.gmra.mrb[36].mxu0 %vm660_vm0, %v22930_v15  ;;  %v19915_v15 = vpack.c.bf16 %v8014_v5, %v8013_v18 }
 0x5d5   : > { %18662 = vmatprep.mubr.msk.f32.mxu0 %vm660_vm0, %v22934_v16  ;;  %v7589_v16 = vld [vmem:[#allocation3 + $0x39] sm:$0xff] }
 0x5d8   : > { %18663 = vmatmul.mubr.msk.f32.gmra.mrb[38].mxu0 %vm660_vm0, %v22938_v19  ;;  %v7590_v19 = vld [vmem:[#allocation3 + $0x49] sm:$0xff] }
 0x5d9   : > { %18665 = vmatprep.mubr.msk.f32.mxu0 %vm660_vm0, %v22942_v23  ;;  %v7591_v23 = vld [vmem:[#allocation3 + $0x51] sm:$0xff] }
 0x5dc   : > { %18666 = vmatmul.mubr.msk.f32.gmra.mrb[40].mxu0 %vm660_vm0, %v22946_v37  ;;  %v7592_v37 = vld [vmem:[#allocation3 + $0x61] sm:$0xff] }
 0x5dd   : > { %18668 = vmatprep.mubr.msk.f32.mxu0 %vm660_vm0, %v22950_v42  ;;  %v7593_v42 = vld [vmem:[#allocation3 + $0x69] sm:$0xff] }
 0x5e0   : > { %18669 = vmatmul.mubr.msk.f32.gmra.mrb[42].mxu0 %vm660_vm0, %v22954_v49  ;;  %v7594_v49 = vld [vmem:[#allocation3 + $0x79] sm:$0xff] }
 0x5e1   : > { %18671 = vmatprep.mubr.msk.f32.mxu0 %vm660_vm0, %v22958_v47  ;;  %v7595_v47 = vld [vmem:[#allocation3 + $0x81] sm:$0xff] }
 0x5e4   : > { %18672 = vmatmul.mubr.msk.f32.gmra.mrb[44].mxu0 %vm660_vm0, %v22962_v29  ;;  %v7596_v29 = vld [vmem:[#allocation3 + $0x91] sm:$0xff] }
 0x5e5   : > { %18674 = vmatprep.mubr.msk.f32.mxu0 %vm660_vm0, %v22966_v53  ;;  %v7597_v53 = vld [vmem:[#allocation3 + $0x99] sm:$0xff] }
 0x5e8   : > { %18675 = vmatmul.mubr.msk.f32.gmra.mrb[46].mxu0 %vm660_vm0, %v22970_v33  ;;  %v7598_v33 = vld [vmem:[#allocation3 + $0xa9] sm:$0xff] }
 0x5e9   : > { %18677 = vmatprep.mubr.msk.f32.mxu0 %vm660_vm0, %v22974_v48  ;;  %v7599_v48 = vld [vmem:[#allocation3 + $0xb1] sm:$0xff] }
 0x5ec   : > { %18678 = vmatmul.mubr.msk.f32.gmra.mrb[48].mxu0 %vm660_vm0, %v22978_v62  ;;  %v7600_v62 = vld [vmem:[#allocation3 + $0xc1] sm:$0xff] }
 0x5ed   : > { %18680 = vmatprep.mubr.msk.f32.mxu0 %vm660_vm0, %v22982_v56  ;;  %v7601_v56 = vld [vmem:[#allocation3 + $0xc9] sm:$0xff] }
 0x5f0   : > { %18681 = vmatmul.mubr.msk.f32.gmra.mrb[50].mxu0 %vm660_vm0, %v22986_v60  ;;  %v7602_v60 = vld [vmem:[#allocation3 + $0xd9] sm:$0xff] }
 0x5f1   : > { %18683 = vmatprep.mubr.msk.f32.mxu0 %vm660_vm0, %v22990_v43  ;;  %v7603_v43 = vld [vmem:[#allocation3 + $0xe1] sm:$0xff] }
 0x5f4   : > { %18684 = vmatmul.mubr.msk.f32.gmra.mrb[52].mxu0 %vm660_vm0, %v22994_v57  ;;  %v7604_v57 = vld [vmem:[#allocation3 + $0xf1] sm:$0xff] }
 0x5f5   : > { %18686 = vmatprep.mubr.msk.f32.mxu0 %vm660_vm0, %v22998_v6  ;;  %v7605_v6 = vld [vmem:[#allocation3 + $0xf9] sm:$0xff] }
 0x5f8   : > { %18687 = vmatmul.mubr.msk.f32.gmra.mrb[54].mxu0 %vm660_vm0, %v23002_v20  ;;  %v7606_v20 = vld [vmem:[#allocation3 + $0x109] sm:$0xff] }
 0x5f9   : > { %18689 = vmatprep.mubr.msk.f32.mxu0 %vm660_vm0, %v23006_v55  ;;  %v7607_v55 = vld [vmem:[#allocation3 + $0x111] sm:$0xff] }
 0x5fc   : > { %18690 = vmatmul.mubr.msk.f32.gmra.mrb[56].mxu0 %vm660_vm0, %v23010_v34  ;;  %v7608_v34 = vld [vmem:[#allocation3 + $0x121] sm:$0xff] }
 0x5fd   : > { %18692 = vmatprep.mubr.msk.f32.mxu0 %vm660_vm0, %v23014_v54  ;;  %v7609_v54 = vld [vmem:[#allocation3 + $0x129] sm:$0xff] }
 0x600   : > { %18693 = vmatmul.mubr.msk.f32.gmra.mrb[58].mxu0 %vm660_vm0, %v23018_v30  ;;  %v7618_v30 = vld [vmem:[#allocation3 + $0x199] sm:$0xff] }
 0x601   : > { %18695 = vmatprep.mubr.msk.f32.mxu0 %vm660_vm0, %v23209_v31  ;;  %v25131_v31 = vld [vmem:[#allocation42_spill] sm:$0xff] }
 0x604   : > { %18696 = vmatmul.mubr.msk.f32.gmra.mrb[60].mxu0 %vm660_vm0, %v23213_v61  ;;  %v25132_v61 = vld [vmem:[#allocation43_spill] sm:$0xff] }
 0x605   : > { %18698 = vmatprep.mubr.msk.f32.mxu0 %vm660_vm0, %v7228_v3 }
 0x608   : > { %18699 = vmatmul.mubr.msk.f32.gmra.mrb[62].mxu0 %vm660_vm0, %v7229_v4 }
 0x609   : > { %18709 = vmatprep.mubr.msk.f32.mxu0 %vm660_vm0, %v7588_v11 }
 0x60c   : > { %18710 = vmatmul.mubr.msk.f32.vlgmr.msra.gmra.mrb[32].mxu0 %vm660_vm0, %v7589_v16 }
 0x60d   : > { %18712 = vmatprep.mubr.msk.f32.mxu0 %vm660_vm0, %v7590_v19  ;;  %19914 = vmatpush3.bf16.msra.mxu0 %v19911_v14 }
 0x60e   : > { %19916 = vmatprep.subr.bf16.mxu0 %v19915_v15 }
 0x610   : > { %18713 = vmatmul.mubr.msk.f32.gmra.mrb[34].mxu0 %vm660_vm0, %v7591_v23 }
 0x611   : > { %18715 = vmatprep.mubr.msk.f32.mxu0 %vm660_vm0, %v7592_v37  ;;  %19918 = vmatpush3.bf16.msra.mxu0 %v19915_v15 }
 0x614   : > { %18716 = vmatmul.mubr.msk.f32.gmra.mrb[36].mxu0 %vm660_vm0, %v7593_v42 }
 0x615   : > { %18718 = vmatprep.mubr.msk.f32.mxu0 %vm660_vm0, %v7594_v49 }
 0x618   : > { %18719 = vmatmul.mubr.msk.f32.gmra.mrb[38].mxu0 %vm660_vm0, %v7595_v47 }
 0x619   : > { %18721 = vmatprep.mubr.msk.f32.mxu0 %vm660_vm0, %v7596_v29 }
 0x61c   : > { %18722 = vmatmul.mubr.msk.f32.gmra.mrb[40].mxu0 %vm660_vm0, %v7597_v53 }
 0x61d   : > { %18724 = vmatprep.mubr.msk.f32.mxu0 %vm660_vm0, %v7598_v33 }
 0x620   : > { %18725 = vmatmul.mubr.msk.f32.gmra.mrb[42].mxu0 %vm660_vm0, %v7599_v48 }
 0x621   : > { %18727 = vmatprep.mubr.msk.f32.mxu0 %vm660_vm0, %v7600_v62 }
 0x624   : > { %18728 = vmatmul.mubr.msk.f32.gmra.mrb[44].mxu0 %vm660_vm0, %v7601_v56 }
 0x625   : > { %18730 = vmatprep.mubr.msk.f32.mxu0 %vm660_vm0, %v7602_v60 }
 0x628   : > { %18731 = vmatmul.mubr.msk.f32.gmra.mrb[46].mxu0 %vm660_vm0, %v7603_v43 }
 0x629   : > { %18733 = vmatprep.mubr.msk.f32.mxu0 %vm660_vm0, %v7604_v57 }
 0x62c   : > { %18734 = vmatmul.mubr.msk.f32.gmra.mrb[48].mxu0 %vm660_vm0, %v7605_v6 }
 0x62d   : > { %18736 = vmatprep.mubr.msk.f32.mxu0 %vm660_vm0, %v7606_v20 }
 0x630   : > { %18737 = vmatmul.mubr.msk.f32.gmra.mrb[50].mxu0 %vm660_vm0, %v7607_v55 }
 0x631   : > { %18739 = vmatprep.mubr.msk.f32.mxu0 %vm660_vm0, %v7608_v34 }
 0x634   : > { %18740 = vmatmul.mubr.msk.f32.gmra.mrb[52].mxu0 %vm660_vm0, %v7609_v54 }
 0x635   : > { %18742 = vmatprep.mubr.msk.f32.mxu0 %vm660_vm0, %v25098_v44  ;;  %v25133_v44 = vld [vmem:[#allocation45_spill] sm:$0xff] }
 0x638   : > { %18743 = vmatmul.mubr.msk.f32.gmra.mrb[54].mxu0 %vm660_vm0, %v25099_v7  ;;  %v25134_v7 = vld [vmem:[#allocation47_spill] sm:$0xff] }
 0x639   : > { %18745 = vmatprep.mubr.msk.f32.mxu0 %vm660_vm0, %v25100_v21  ;;  %v25135_v21 = vld [vmem:[#allocation48_spill] sm:$0xff] }
 0x63c   : > { %18746 = vmatmul.mubr.msk.f32.gmra.mrb[56].mxu0 %vm660_vm0, %v25101_v59  ;;  %v25136_v59 = vld [vmem:[#allocation49_spill] sm:$0xff] }
 0x63d   : > { %18748 = vmatprep.mubr.msk.f32.mxu0 %vm660_vm0, %v25102_v10  ;;  %v25137_v10 = vld [vmem:[#allocation50_spill] sm:$0xff] }
 0x640   : > { %18749 = vmatmul.mubr.msk.f32.gmra.mrb[58].mxu0 %vm660_vm0, %v25103_v39  ;;  %v25138_v39 = vld [vmem:[#allocation51_spill] sm:$0xff] }
 0x641   : > { %18751 = vmatprep.mubr.msk.f32.mxu0 %vm660_vm0, %v23277_v35  ;;  %v25139_v35 = vld [vmem:[#allocation52_spill] sm:$0xff] }
 0x644   : > { %18752 = vmatmul.mubr.msk.f32.gmra.mrb[60].mxu0 %vm660_vm0, %v23281_v51  ;;  %v25140_v51 = vld [vmem:[#allocation19_spill] sm:$0xff] }
 0x645   : > { %18754 = vmatprep.mubr.msk.f32.mxu0 %vm660_vm0, %v7618_v30 }
 0x648   : > { %18755 = vmatmul.mubr.msk.f32.gmra.mrb[62].mxu0 %vm660_vm0, %v7619_v46 }
 0x649   : > { %18765 = vmatprep.mubr.msk.f32.mxu0 %vm660_vm0, %v25104_v9  ;;  %v25141_v9 = vld [vmem:[#allocation20_spill] sm:$0xff] }
 0x64c   : > { %18766 = vmatmul.mubr.msk.f32.vlgmr.msra.gmra.mrb[32].mxu0 %vm660_vm0, %v25105_v24  ;;  %v8009_v24 = vld [vmem:[#allocation3 + $0x1a2] sm:$0xff] }
 0x64d   : > { %18768 = vmatprep.mubr.msk.f32.mxu0 %vm660_vm0, %v25106_v32  ;;  %v8504_v32 = vld [vmem:[%s24826_s17 + $0x8] sm:$0xff] }
 0x64e   : > { %8583 = vmatprep.mubr.f32.mxu1 %v8504_v32 }
 0x650   : > { %18769 = vmatmul.mubr.msk.f32.gmra.mrb[34].mxu0 %vm660_vm0, %v25107_v38 }
 0x651   : > { %18771 = vmatprep.mubr.msk.f32.mxu0 %vm660_vm0, %v25108_v17 }
 0x654   : > { %18772 = vmatmul.mubr.msk.f32.gmra.mrb[36].mxu0 %vm660_vm0, %v25109_v8 }
 0x655   : > { %18774 = vmatprep.mubr.msk.f32.mxu0 %vm660_vm0, %v25110_v13 }
 0x658   : > { %18775 = vmatmul.mubr.msk.f32.gmra.mrb[38].mxu0 %vm660_vm0, %v25111_v27 }
 0x659   : > { %18777 = vmatprep.mubr.msk.f32.mxu0 %vm660_vm0, %v25112_v36 }
 0x65c   : > { %18778 = vmatmul.mubr.msk.f32.gmra.mrb[40].mxu0 %vm660_vm0, %v25113_v45 }
 0x65d   : > { %18780 = vmatprep.mubr.msk.f32.mxu0 %vm660_vm0, %v25114_v40 }
 0x660   : > { %18781 = vmatmul.mubr.msk.f32.gmra.mrb[42].mxu0 %vm660_vm0, %v25115_v2 }
 0x661   : > { %18783 = vmatprep.mubr.msk.f32.mxu0 %vm660_vm0, %v25116_v28 }
 0x664   : > { %18784 = vmatmul.mubr.msk.f32.gmra.mrb[44].mxu0 %vm660_vm0, %v25117_v1 }
 0x665   : > { %18786 = vmatprep.mubr.msk.f32.mxu0 %vm660_vm0, %v25118_v22 }
 0x668   : > { %18787 = vmatmul.mubr.msk.f32.gmra.mrb[46].mxu0 %vm660_vm0, %v25131_v31 }
 0x669   : > { %18789 = vmatprep.mubr.msk.f32.mxu0 %vm660_vm0, %v25132_v61 }
 0x66c   : > { %18790 = vmatmul.mubr.msk.f32.gmra.mrb[48].mxu0 %vm660_vm0, %v25121_v26 }
 0x66d   : > { %18792 = vmatprep.mubr.msk.f32.mxu0 %vm660_vm0, %v25133_v44 }
 0x670   : > { %18793 = vmatmul.mubr.msk.f32.gmra.mrb[50].mxu0 %vm660_vm0, %v25123_v12 }
 0x671   : > { %18795 = vmatprep.mubr.msk.f32.mxu0 %vm660_vm0, %v25134_v7 }
 0x674   : > { %18796 = vmatmul.mubr.msk.f32.gmra.mrb[52].mxu0 %vm660_vm0, %v25135_v21 }
 0x675   : > { %18798 = vmatprep.mubr.msk.f32.mxu0 %vm660_vm0, %v25136_v59 }
 0x678   : > { %18799 = vmatmul.mubr.msk.f32.gmra.mrb[54].mxu0 %vm660_vm0, %v25137_v10 }
 0x679   : > { %18801 = vmatprep.mubr.msk.f32.mxu0 %vm660_vm0, %v25138_v39 }
 0x67c   : > { %18802 = vmatmul.mubr.msk.f32.gmra.mrb[56].mxu0 %vm660_vm0, %v25139_v35 }
 0x67d   : > { %18804 = vmatprep.mubr.msk.f32.mxu0 %vm660_vm0, %v25140_v51 }
 0x680   : > { %18805 = vmatmul.mubr.msk.f32.gmra.mrb[58].mxu0 %vm660_vm0, %v23144_v58  ;;  %v23523_v58 = vld [vmem:[%s24815_s6] ss:$0 sm:$0xff] }
 0x681   : > { %18807 = vmatprep.mubr.msk.f32.mxu0 %vm660_vm0, %v25141_v9 }
 0x684   : > { %18808 = vmatmul.mubr.msk.f32.gmra.mrb[60].mxu0 %vm660_vm0, %v23349_v41 }
 0x685   : > { %18810 = vmatprep.mubr.msk.f32.mxu0 %vm660_vm0, %v8008_v50 }
 0x688   : > { %18811 = vmatmul.mubr.msk.f32.gmra.mrb[62].mxu0 %vm660_vm0, %v8009_v24 }
 0x71f   : > { %v18767_v38 = vpop.f32.mrb[32].mxu0 }
 0x720   : > { %v8376_v17 = vadd.f32 %v18767_v38, %v23523_v58  ;;  %v8177_v8 = vpop.f32.mrb[33].mxu0 }
 0x721   : > { %v8375_v13 = vadd.f32 %v23523_v58, %v8177_v8 }
 0x722   : > { %vm8408_vm7 = vcmp.ge.f32.partialorder %v8376_v17, 0.0  ;;  %v8440_v27 = vmul.f32 0.2, %v8376_v17 }
 0x723   : > { %vm8407_vm8 = vcmp.ge.f32.partialorder %v8375_v13, 0.0  ;;  %v8439_v36 = vmul.f32 0.2, %v8375_v13  ;;  %v18770_v45 = vpop.f32.mrb[34].mxu0 }
 0x724   : > { %v23527_v40 = vsel %vm8408_vm7, %v8376_v17, %v8440_v27  ;;  %v8378_v2 = vadd.f32 %v18770_v45, %v23523_v58  ;;  %v8187_v28 = vpop.f32.mrb[35].mxu0 }
 0x725   : > { %v23530_v1 = vsel %vm8407_vm8, %v8375_v13, %v8439_v36  ;;  %v8377_v22 = vadd.f32 %v23523_v58, %v8187_v28 }
 0x726   : > { %v19921_v25 = vpack.c.bf16 %v23527_v40, %v23530_v1  ;;  %vm8410_vm9 = vcmp.ge.f32.partialorder %v8378_v2, 0.0  ;;  %v8442_v0 = vmul.f32 0.2, %v8378_v2 }
 0x727   : > { %vm8409_vm10 = vcmp.ge.f32.partialorder %v8377_v22, 0.0  ;;  %v8441_v26 = vmul.f32 0.2, %v8377_v22  ;;  %v18773_v63 = vpop.f32.mrb[36].mxu0 }
 0x728   : > { %v23535_v12 = vsel %vm8410_vm9, %v8378_v2, %v8442_v0  ;;  %v8380_v14 = vadd.f32 %v18773_v63, %v23523_v58  ;;  %v8197_v52 = vpop.f32.mrb[37].mxu0 }
 0x729   : > { %v23538_v41 = vsel %vm8409_vm10, %v8377_v22, %v8441_v26  ;;  %v8379_v3 = vadd.f32 %v23523_v58, %v8197_v52 }
 0x72a   : > { %v19925_v4 = vpack.c.bf16 %v23535_v12, %v23538_v41  ;;  %vm8412_vm11 = vcmp.ge.f32.partialorder %v8380_v14, 0.0  ;;  %v8444_v18 = vmul.f32 0.2, %v8380_v14 }
 0x72b   : > { %vm8411_vm12 = vcmp.ge.f32.partialorder %v8379_v3, 0.0  ;;  %v8443_v5 = vmul.f32 0.2, %v8379_v3  ;;  %v18776_v11 = vpop.f32.mrb[38].mxu0 }
 0x72c   : > { %v23543_v15 = vsel %vm8412_vm11, %v8380_v14, %v8444_v18  ;;  %v8382_v16 = vadd.f32 %v18776_v11, %v23523_v58  ;;  %v8207_v19 = vpop.f32.mrb[39].mxu0 }
 0x72d   : > { %v23546_v23 = vsel %vm8411_vm12, %v8379_v3, %v8443_v5  ;;  %v8381_v37 = vadd.f32 %v23523_v58, %v8207_v19 }
 0x72e   : > { %v19929_v42 = vpack.c.bf16 %v23543_v15, %v23546_v23  ;;  %vm8414_vm13 = vcmp.ge.f32.partialorder %v8382_v16, 0.0  ;;  %v8446_v49 = vmul.f32 0.2, %v8382_v16 }
 0x72f   : > { %vm8413_vm14 = vcmp.ge.f32.partialorder %v8381_v37, 0.0  ;;  %v8445_v47 = vmul.f32 0.2, %v8381_v37  ;;  %v18779_v29 = vpop.f32.mrb[40].mxu0 }
 0x730   : > { %v23551_v53 = vsel %vm8414_vm13, %v8382_v16, %v8446_v49  ;;  %v8384_v33 = vadd.f32 %v18779_v29, %v23523_v58  ;;  %v8217_v48 = vpop.f32.mrb[41].mxu0 }
 0x731   : > { %v23554_v62 = vsel %vm8413_vm14, %v8381_v37, %v8445_v47  ;;  %v8383_v56 = vadd.f32 %v23523_v58, %v8217_v48 }
 0x732   : > { %v19933_v60 = vpack.c.bf16 %v23551_v53, %v23554_v62  ;;  %vm8416_vm15 = vcmp.ge.f32.partialorder %v8384_v33, 0.0  ;;  %v8448_v43 = vmul.f32 0.2, %v8384_v33 }
 0x733   : > { %vm8415_vm1 = vcmp.ge.f32.partialorder %v8383_v56, 0.0  ;;  %v8447_v57 = vmul.f32 0.2, %v8383_v56  ;;  %v18782_v6 = vpop.f32.mrb[42].mxu0 }
 0x734   : > { %v23559_v20 = vsel %vm8416_vm15, %v8384_v33, %v8448_v43  ;;  %v8386_v55 = vadd.f32 %v18782_v6, %v23523_v58  ;;  %v8227_v34 = vpop.f32.mrb[43].mxu0 }
 0x735   : > { %v23562_v54 = vsel %vm8415_vm1, %v8383_v56, %v8447_v57  ;;  %v8385_v30 = vadd.f32 %v23523_v58, %v8227_v34 }
 0x736   : > { %v19937_v46 = vpack.c.bf16 %v23559_v20, %v23562_v54  ;;  %vm8418_vm2 = vcmp.ge.f32.partialorder %v8386_v55, 0.0  ;;  %v8450_v31 = vmul.f32 0.2, %v8386_v55 }
 0x737   : > { %vm8417_vm3 = vcmp.ge.f32.partialorder %v8385_v30, 0.0  ;;  %v8449_v61 = vmul.f32 0.2, %v8385_v30  ;;  %v18785_v44 = vpop.f32.mrb[44].mxu0 }
 0x738   : > { %v23567_v7 = vsel %vm8418_vm2, %v8386_v55, %v8450_v31  ;;  %v8388_v21 = vadd.f32 %v18785_v44, %v23523_v58  ;;  %v8237_v59 = vpop.f32.mrb[45].mxu0 }
 0x739   : > { %v23570_v10 = vsel %vm8417_vm3, %v8385_v30, %v8449_v61  ;;  %v8387_v39 = vadd.f32 %v23523_v58, %v8237_v59 }
 0x73a   : > { %v19941_v35 = vpack.c.bf16 %v23567_v7, %v23570_v10  ;;  %vm8420_vm4 = vcmp.ge.f32.partialorder %v8388_v21, 0.0  ;;  %v8452_v51 = vmul.f32 0.2, %v8388_v21  ;;  %v8506_v7 = vld [vmem:[%s24826_s17 + $0x18] sm:$0xff]  ;;  %v8505_v10 = vld [vmem:[%s24826_s17 + $0x10] sm:$0xff] }
 0x73b   : > { %vm8419_vm5 = vcmp.ge.f32.partialorder %v8387_v39, 0.0  ;;  %v8451_v9 = vmul.f32 0.2, %v8387_v39  ;;  %v18788_v50 = vpop.f32.mrb[46].mxu0 }
 0x73c   : > { %v23575_v24 = vsel %vm8420_vm4, %v8388_v21, %v8452_v51  ;;  %v8390_v32 = vadd.f32 %v18788_v50, %v23523_v58  ;;  %v8247_v38 = vpop.f32.mrb[47].mxu0 }
 0x73d   : > { %v23578_v17 = vsel %vm8419_vm5, %v8387_v39, %v8451_v9  ;;  %v8389_v8 = vadd.f32 %v23523_v58, %v8247_v38 }
 0x73e   : > { %v19945_v13 = vpack.c.bf16 %v23575_v24, %v23578_v17  ;;  %vm8422_vm6 = vcmp.ge.f32.partialorder %v8390_v32, 0.0  ;;  %v8454_v27 = vmul.f32 0.2, %v8390_v32  ;;  %v8507_v24 = vld [vmem:[%s24826_s17 + $0x20] sm:$0xff]  ;;  %v8510_v17 = vld [vmem:[%s24826_s17 + $0x38] sm:$0xff] }
 0x73f   : > { %vm8421_vm7 = vcmp.ge.f32.partialorder %v8389_v8, 0.0  ;;  %v8453_v36 = vmul.f32 0.2, %v8389_v8  ;;  %v18791_v45 = vpop.f32.mrb[48].mxu0 }
 0x740   : > { %v23583_v2 = vsel %vm8422_vm6, %v8390_v32, %v8454_v27  ;;  %v8392_v28 = vadd.f32 %v18791_v45, %v23523_v58  ;;  %v8257_v22 = vpop.f32.mrb[49].mxu0 }
 0x741   : > { %v23586_v0 = vsel %vm8421_vm7, %v8389_v8, %v8453_v36  ;;  %v8391_v26 = vadd.f32 %v23523_v58, %v8257_v22 }
 0x742   : > { %v19949_v63 = vpack.c.bf16 %v23583_v2, %v23586_v0  ;;  %vm8424_vm8 = vcmp.ge.f32.partialorder %v8392_v28, 0.0  ;;  %v8456_v14 = vmul.f32 0.2, %v8392_v28  ;;  %v8512_v2 = vld [vmem:[%s24826_s17 + $0x48] sm:$0xff]  ;;  %v8511_v0 = vld [vmem:[%s24826_s17 + $0x40] sm:$0xff] }
 0x743   : > { %vm8423_vm9 = vcmp.ge.f32.partialorder %v8391_v26, 0.0  ;;  %v8455_v52 = vmul.f32 0.2, %v8391_v26  ;;  %v18794_v3 = vpop.f32.mrb[50].mxu0 }
 0x744   : > { %v8394_v18 = vadd.f32 %v18794_v3, %v23523_v58  ;;  %v8267_v5 = vpop.f32.mrb[51].mxu0  ;;  %v8488_v11 = vsel %vm8424_vm8, %v8392_v28, %v8456_v14 }
 0x745   : > { %v8393_v16 = vadd.f32 %v23523_v58, %v8267_v5  ;;  %v8487_v19 = vsel %vm8423_vm9, %v8391_v26, %v8455_v52 }
 0x746   : > { %vm8426_vm10 = vcmp.ge.f32.partialorder %v8394_v18, 0.0  ;;  %v8458_v37 = vmul.f32 0.2, %v8394_v18  ;;  %v19919_v49 = vpack.c.bf16 %v8488_v11, %v8487_v19 }
 0x747   : > { %vm8425_vm11 = vcmp.ge.f32.partialorder %v8393_v16, 0.0  ;;  %v8457_v47 = vmul.f32 0.2, %v8393_v16  ;;  %v18797_v29 = vpop.f32.mrb[52].mxu0 }
 0x748   : > { %v8396_v33 = vadd.f32 %v18797_v29, %v23523_v58  ;;  %v8277_v48 = vpop.f32.mrb[53].mxu0  ;;  %19920 = vmatprep.subr.bf16.mxu1 %v19919_v49  ;;  %v8490_v56 = vsel %vm8426_vm10, %v8394_v18, %v8458_v37 }
 0x749   : > { %v8395_v43 = vadd.f32 %v23523_v58, %v8277_v48  ;;  %19922 = vmatpush3.bf16.msra.mxu1 %v19921_v25  ;;  %v8489_v57 = vsel %vm8425_vm11, %v8393_v16, %v8457_v47 }
 0x74a   : > { %vm8428_vm12 = vcmp.ge.f32.partialorder %v8396_v33, 0.0  ;;  %v8460_v6 = vmul.f32 0.2, %v8396_v33  ;;  %v19923_v55 = vpack.c.bf16 %v8490_v56, %v8489_v57  ;;  %v8513_v56 = vld [vmem:[%s24826_s17 + $0x50] sm:$0xff]  ;;  %v8515_v57 = vld [vmem:[%s24826_s17 + $0x60] sm:$0xff] }
 0x74b   : > { %vm8427_vm13 = vcmp.ge.f32.partialorder %v8395_v43, 0.0  ;;  %v8459_v34 = vmul.f32 0.2, %v8395_v43  ;;  %v18800_v30 = vpop.f32.mrb[54].mxu0 }
 0x74c   : > { %v8398_v31 = vadd.f32 %v18800_v30, %v23523_v58  ;;  %v8287_v61 = vpop.f32.mrb[55].mxu0  ;;  %19924 = vmatprep.subr.bf16.mxu1 %v19923_v55  ;;  %v8492_v44 = vsel %vm8428_vm12, %v8396_v33, %v8460_v6  ;;  %v8518_v6 = vld [vmem:[%s24826_s17 + $0x78] sm:$0xff]  ;;  %v8517_v55 = vld [vmem:[%s24826_s17 + $0x70] sm:$0xff] }
 0x74d   : > { %v8397_v21 = vadd.f32 %v23523_v58, %v8287_v61  ;;  %19926 = vmatpush3.bf16.msra.mxu1 %v19925_v4  ;;  %v8491_v40 = vsel %vm8427_vm13, %v8395_v43, %v8459_v34  ;;  %v8516_v43 = vld [vmem:[%s24826_s17 + $0x68] sm:$0xff]  ;;  %v8654_v34 = vld [vmem:[#allocation12 + $0x20] sm:$0xff]  ;;  %v8655_v30 = vld [vmem:[#allocation12 + $0x28] sm:$0xff] }
 0x74e   : > { %vm8430_vm14 = vcmp.ge.f32.partialorder %v8398_v31, 0.0  ;;  %v8462_v1 = vmul.f32 0.2, %v8398_v31  ;;  %v19927_v25 = vpack.c.bf16 %v8492_v44, %v8491_v40  ;;  %v8656_v61 = vld [vmem:[#allocation12 + $0x30] sm:$0xff]  ;;  %v8657_v44 = vld [vmem:[#allocation12 + $0x38] sm:$0xff] }
 0x74f   : > { %vm8429_vm15 = vcmp.ge.f32.partialorder %v8397_v21, 0.0  ;;  %v8461_v59 = vmul.f32 0.2, %v8397_v21  ;;  %v18803_v39 = vpop.f32.mrb[56].mxu0  ;;  %v8645_v40 = vld [vmem:[#allocation4 + $0x1] sm:$0xff] }
 0x750   : > { %v8400_v51 = vadd.f32 %v18803_v39, %v23523_v58  ;;  %v8297_v9 = vpop.f32.mrb[57].mxu0  ;;  %19928 = vmatprep.subr.bf16.mxu1 %v19927_v25  ;;  %v8494_v50 = vsel %vm8430_vm14, %v8398_v31, %v8462_v1  ;;  %v19951_v31 = vpack.c.bf16 %v8655_v30, %v8654_v34  ;;  %v8641_v1 = vld [vmem:[#allocation12] sm:$0xff]  ;;  %v8642_v25 = vld [vmem:[#allocation12 + $0x8] sm:$0xff]  ;;  %v9077_v30 = vld [vmem:[#allocation12 + $0x70] sm:$0xff] }
 0x751   : > { %v8399_v32 = vadd.f32 %v23523_v58, %v8297_v9  ;;  %19930 = vmatpush3.bf16.msra.mxu1 %v19929_v42  ;;  %v8493_v12 = vsel %vm8429_vm15, %v8397_v21, %v8461_v59  ;;  %v19955_v21 = vpack.c.bf16 %v8657_v44, %v8656_v61  ;;  %v19959_v59 = vpack.c.bf16 %v8642_v25, %v8641_v1 }
 0x752   : > { %vm8432_vm1 = vcmp.ge.f32.partialorder %v8400_v51, 0.0  ;;  %v8464_v41 = vmul.f32 0.2, %v8400_v51  ;;  %v19931_v4 = vpack.c.bf16 %v8494_v50, %v8493_v12 }
 0x753   : > { %vm8431_vm2 = vcmp.ge.f32.partialorder %v8399_v32, 0.0  ;;  %v8463_v38 = vmul.f32 0.2, %v8399_v32  ;;  %v18806_v8 = vpop.f32.mrb[58].mxu0 }
 0x754   : > { %v8402_v27 = vadd.f32 %v18806_v8, %v23523_v58  ;;  %v8307_v36 = vpop.f32.mrb[59].mxu0  ;;  %19932 = vmatprep.subr.bf16.mxu1 %v19931_v4  ;;  %v8496_v45 = vsel %vm8432_vm1, %v8400_v51, %v8464_v41  ;;  %v8643_v41 = vld [vmem:[#allocation12 + $0x10] sm:$0xff]  ;;  %v8644_v4 = vld [vmem:[#allocation12 + $0x18] sm:$0xff] }
 0x755   : > { %v8401_v28 = vadd.f32 %v23523_v58, %v8307_v36  ;;  %19934 = vmatpush3.bf16.msra.mxu1 %v19933_v60  ;;  %v8495_v15 = vsel %vm8431_vm2, %v8399_v32, %v8463_v38  ;;  %v19963_v36 = vpack.c.bf16 %v8644_v4, %v8643_v41  ;;  %v9375_v4 = vld [vmem:[#allocation12 + $0xa0] sm:$0xff]  ;;  %vm11390_vm2 = vcmask 523264  }
 0x756   : > { %vm8434_vm3 = vcmp.ge.f32.partialorder %v8402_v27, 0.0  ;;  %v8466_v23 = vmul.f32 0.2, %v8402_v27  ;;  %v19935_v42 = vpack.c.bf16 %v8496_v45, %v8495_v15  ;;  %v8926_v15 = vld [vmem:[#allocation12 + $0x48] sm:$0xff] }
 0x757   : > { %vm8433_vm4 = vcmp.ge.f32.partialorder %v8401_v28, 0.0  ;;  %v8465_v22 = vmul.f32 0.2, %v8401_v28  ;;  %v18809_v26 = vpop.f32.mrb[60].mxu0 }
 0x758   : > { %v8404_v14 = vadd.f32 %v18809_v26, %v23523_v58  ;;  %v8317_v52 = vpop.f32.mrb[61].mxu0  ;;  %19936 = vmatprep.subr.bf16.mxu1 %v19935_v42  ;;  %v8498_v3 = vsel %vm8434_vm3, %v8402_v27, %v8466_v23  ;;  %vm810_vm3 = vcmask 259072  }
 0x759   : > { %v8403_v18 = vadd.f32 %v23523_v58, %v8317_v52  ;;  %19938 = vmatpush3.bf16.msra.mxu1 %v19937_v46  ;;  %v8497_v53 = vsel %vm8433_vm4, %v8401_v28, %v8465_v22  ;;  %v8925_v28 = vld [vmem:[#allocation12 + $0x40] sm:$0xff]  ;;  %vm21263_vm4 = vmmov 0  }
 0x75a   : > { %vm8436_vm5 = vcmp.ge.f32.partialorder %v8404_v14, 0.0  ;;  %v8468_v62 = vmul.f32 0.2, %v8404_v14  ;;  %v19939_v60 = vpack.c.bf16 %v8498_v3, %v8497_v53  ;;  %v19967_v26 = vpack.c.bf16 %v8926_v15, %v8925_v28  ;;  %v9378_v28 = vld [vmem:[#allocation12 + $0xb8] sm:$0xff] }
 0x75b   : > { %vm8435_vm6 = vcmp.ge.f32.partialorder %v8403_v18, 0.0  ;;  %v8467_v5 = vmul.f32 0.2, %v8403_v18  ;;  %v18812_v11 = vpop.f32.mrb[62].mxu0 }
 0x75c   : > { %v8406_v16 = vadd.f32 %v18812_v11, %v23523_v58  ;;  %v8327_v19 = vpop.f32.mrb[63].mxu0  ;;  %19940 = vmatprep.subr.bf16.mxu1 %v19939_v60  ;;  %v8500_v37 = vsel %vm8436_vm5, %v8404_v14, %v8468_v62 }
 0x75d   : > { %v8405_v49 = vadd.f32 %v23523_v58, %v8327_v19  ;;  %19942 = vmatpush3.bf16.msra.mxu1 %v19941_v35  ;;  %v8499_v20 = vsel %vm8435_vm6, %v8403_v18, %v8467_v5  ;;  %v8503_v58 = vld [vmem:[%s24826_s17] sm:$0xff]  ;;  %v8508_v35 = vld [vmem:[%s24826_s17 + $0x28] sm:$0xff] }
 0x75e   : > { %vm8438_vm7 = vcmp.ge.f32.partialorder %v8406_v16, 0.0  ;;  %v8470_v54 = vmul.f32 0.2, %v8406_v16  ;;  %v19943_v46 = vpack.c.bf16 %v8500_v37, %v8499_v20 }
 0x75f   : > { %vm8437_vm8 = vcmp.ge.f32.partialorder %v8405_v49, 0.0  ;;  %v8469_v47 = vmul.f32 0.2, %v8405_v49 }
 0x760   : > { %19944 = vmatprep.subr.bf16.mxu1 %v19943_v46  ;;  %v8502_v29 = vsel %vm8438_vm7, %v8406_v16, %v8470_v54 }
 0x761   : > { %19946 = vmatpush3.bf16.msra.mxu1 %v19945_v13  ;;  %v8501_v33 = vsel %vm8437_vm8, %v8405_v49, %v8469_v47  ;;  %v8509_v13 = vld [vmem:[%s24826_s17 + $0x30] sm:$0xff] }
 0x762   : > { %v19947_v48 = vpack.c.bf16 %v8502_v29, %v8501_v33  ;;  %v8633_v29 = vld [vmem:[#allocation4] sm:$0xff] }
 0x764   : > { %19948 = vmatprep.subr.bf16.mxu1 %v19947_v48  ;;  %v8927_v48 = vld [vmem:[#allocation12 + $0x50] sm:$0xff] }
 0x765   : > { %19950 = vmatpush3.bf16.msra.mxu1 %v19949_v63  ;;  %v8514_v63 = vld [vmem:[%s24826_s17 + $0x58] sm:$0xff] }
 0x766   : > { %19952 = vmatprep.subr.bf16.mxu1 %v19951_v31 }
 0x768   : > { %8584 = vmatmul.mubr.f32.vlgmr.msra.gmra.mrb[32].mxu1 %v8503_v58  ;;  %v8928_v58 = vld [vmem:[#allocation12 + $0x58] sm:$0xff] }
 0x769   : > { %8588 = vmatprep.mubr.f32.mxu1 %v8506_v7  ;;  %19954 = vmatpush3.bf16.msra.mxu1 %v19951_v31  ;;  %v10036_v7 = vld [vmem:[#allocation13 + $0x20] sm:$0xff]  ;;  %v9078_v31 = vld [vmem:[#allocation12 + $0x78] sm:$0xff] }
 0x76a   : > { %19956 = vmatprep.subr.bf16.mxu1 %v19955_v21  ;;  %v19979_v61 = vpack.c.bf16 %v9078_v31, %v9077_v30 }
 0x76c   : > { %8589 = vmatmul.mubr.f32.gmra.mrb[34].mxu1 %v8505_v10  ;;  %v10037_v10 = vld [vmem:[#allocation13 + $0x28] sm:$0xff] }
 0x76d   : > { %8593 = vmatprep.mubr.f32.mxu1 %v8508_v35  ;;  %19958 = vmatpush3.bf16.msra.mxu1 %v19955_v21  ;;  %v20023_v35 = vpack.c.bf16 %v10037_v10, %v10036_v7  ;;  %v9225_v21 = vld [vmem:[#allocation12 + $0x80] sm:$0xff] }
 0x76e   : > { %19960 = vmatprep.subr.bf16.mxu1 %v19959_v59  ;;  %v10023_v10 = vld [vmem:[#allocation13] sm:$0xff] }
 0x76f   : > { %20024 = vmatprep.subr.bf16.mxu0 %v20023_v35 }
 0x770   : > { %8594 = vmatmul.mubr.f32.gmra.mrb[36].mxu1 %v8507_v24  ;;  %v19971_v24 = vpack.c.bf16 %v8928_v58, %v8927_v48  ;;  %20026 = vmatpush3.bf16.msra.mxu0 %v20023_v35  ;;  %v9828_v48 = vld [vmem:[#allocation12 + $0x110] sm:$0xff]  ;;  %v9829_v58 = vld [vmem:[#allocation12 + $0x118] sm:$0xff]  ;;  %v10024_v35 = vld [vmem:[#allocation13 + $0x8] sm:$0xff] }
 0x771   : > { %8598 = vmatprep.mubr.f32.mxu1 %v8510_v17  ;;  %v20019_v7 = vpack.c.bf16 %v9829_v58, %v9828_v48  ;;  %v10458_v48 = vld [vmem:[#allocation13 + $0x68] sm:$0xff] }
 0x774   : > { %8599 = vmatmul.mubr.f32.gmra.mrb[38].mxu1 %v8509_v13  ;;  %v9075_v13 = vld [vmem:[#allocation12 + $0x60] sm:$0xff] }
 0x775   : > { %8603 = vmatprep.mubr.f32.mxu1 %v8512_v2  ;;  %v9076_v2 = vld [vmem:[#allocation12 + $0x68] sm:$0xff] }
 0x778   : > { %8604 = vmatmul.mubr.f32.gmra.mrb[40].mxu1 %v8511_v0 }
 0x779   : > { %8608 = vmatprep.mubr.f32.mxu1 %v8514_v63  ;;  %v19975_v63 = vpack.c.bf16 %v9076_v2, %v9075_v13 }
 0x77c   : > { %8609 = vmatmul.mubr.f32.gmra.mrb[42].mxu1 %v8513_v56 }
 0x77d   : > { %8613 = vmatprep.mubr.f32.mxu1 %v8516_v43 }
 0x780   : > { %8614 = vmatmul.mubr.f32.gmra.mrb[44].mxu1 %v8515_v57 }
 0x781   : > { %8618 = vmatprep.mubr.f32.mxu1 %v8518_v6 }
 0x784   : > { %8619 = vmatmul.mubr.f32.gmra.mrb[46].mxu1 %v8517_v55  ;;  %v8916_v55 = vld [vmem:[#allocation4 + $0x2] sm:$0xff] }
 0x785   : > { %18821 = vmatprep.mubr.msk.f32.mxu1 %vm660_vm0, %v8645_v40  ;;  %v9226_v40 = vld [vmem:[#allocation12 + $0x88] sm:$0xff] }
 0x786   : > { %v19983_v25 = vpack.c.bf16 %v9226_v40, %v9225_v21 }
 0x83b   : > { %v17240_v39 = vpop.f32.mrb[32].mxu1 }
 0x83c   : > { %v17241_v51 = vpop.f32.mrb[33].mxu1 }
 0x83d   : > { %v17242_v9 = vadd.f32 %v17241_v51, %v17240_v39 }
 0x83f   : > { %8625 = vst.msk [vmem:[#allocation4 + $0x11] sm:$0xff] %vm660_vm0, %v17242_v9  ;;  %v17243_v50 = vpop.f32.mrb[34].mxu1 }
 0x840   : > { %v17244_v32 = vpop.f32.mrb[35].mxu1 }
 0x841   : > { %v17245_v12 = vadd.f32 %v17244_v32, %v17243_v50  ;;  %v9227_v32 = vld [vmem:[#allocation12 + $0x90] sm:$0xff] }
 0x843   : > { %8626 = vst.msk [vmem:[#allocation4 + $0x21] sm:$0xff] %vm660_vm0, %v17245_v12  ;;  %v17246_v38 = vpop.f32.mrb[36].mxu1  ;;  %v9228_v12 = vld [vmem:[#allocation12 + $0x98] sm:$0xff] }
 0x844   : > { %v17247_v8 = vpop.f32.mrb[37].mxu1  ;;  %v19987_v41 = vpack.c.bf16 %v9228_v12, %v9227_v32 }
 0x845   : > { %v17248_v27 = vadd.f32 %v17247_v8, %v17246_v38  ;;  %v9376_v38 = vld [vmem:[#allocation12 + $0xa8] sm:$0xff] }
 0x846   : > { %v23677_v45 = vld [vmem:[#allocation4 + $0x11] sm:$0xff]  ;;  %v19991_v8 = vpack.c.bf16 %v9376_v38, %v9375_v4 }
 0x847   : > { %8627 = vst.msk [vmem:[#allocation4 + $0x31] sm:$0xff] %vm660_vm0, %v17248_v27  ;;  %v17249_v23 = vpop.f32.mrb[38].mxu1  ;;  %18822 = vmatmul.mubr.msk.f32.vlgmr.msra.gmra.mrb[48].mxu1 %vm660_vm0, %v23677_v45  ;;  %v8634_v17 = vld [vmem:[#allocation4 + $0x10] sm:$0xff] }
 0x848   : > { %v17250_v42 = vpop.f32.mrb[39].mxu1  ;;  %19962 = vmatpush3.bf16.msra.mxu1 %v19959_v59  ;;  %v8917_v44 = vld [vmem:[#allocation4 + $0x12] sm:$0xff] }
 0x849   : > { %v17251_v22 = vadd.f32 %v17250_v42, %v17249_v23  ;;  %19964 = vmatprep.subr.bf16.mxu1 %v19963_v36  ;;  %v9526_v23 = vld [vmem:[#allocation12 + $0xc0] sm:$0xff]  ;;  %v9527_v42 = vld [vmem:[#allocation12 + $0xc8] sm:$0xff] }
 0x84a   : > { %v23682_v14 = vld [vmem:[#allocation4 + $0x21] sm:$0xff] }
 0x84b   : > { %8628 = vst.msk [vmem:[#allocation4 + $0x41] sm:$0xff] %vm660_vm0, %v17251_v22  ;;  %v17252_v52 = vpop.f32.mrb[40].mxu1  ;;  %18824 = vmatprep.mubr.msk.f32.mxu1 %vm660_vm0, %v23682_v14  ;;  %v23713_v0 = vld [vmem:[#allocation4 + $0x20] sm:$0xff]  ;;  %v19999_v22 = vpack.c.bf16 %v9527_v42, %v9526_v23 }
 0x84c   : > { %v17253_v3 = vpop.f32.mrb[41].mxu1  ;;  %19966 = vmatpush3.bf16.msra.mxu1 %v19963_v36  ;;  %v23739_v1 = vld [vmem:[#allocation4 + $0x22] sm:$0xff]  ;;  %v10308_v23 = vld [vmem:[#allocation13 + $0x48] sm:$0xff] }
 0x84d   : > { %v17254_v18 = vadd.f32 %v17253_v3, %v17252_v52  ;;  %19968 = vmatprep.subr.bf16.mxu1 %v19967_v26  ;;  %v9377_v36 = vld [vmem:[#allocation12 + $0xb0] sm:$0xff]  ;;  %v9529_v52 = vld [vmem:[#allocation12 + $0xd8] sm:$0xff] }
 0x84e   : > { %v23687_v53 = vld [vmem:[#allocation4 + $0x31] sm:$0xff]  ;;  %v19995_v15 = vpack.c.bf16 %v9378_v28, %v9377_v36 }
 0x84f   : > { %8629 = vst.msk [vmem:[#allocation4 + $0x51] sm:$0xff] %vm660_vm0, %v17254_v18  ;;  %v17255_v62 = vpop.f32.mrb[42].mxu1  ;;  %18825 = vmatmul.mubr.msk.f32.gmra.mrb[50].mxu1 %vm660_vm0, %v23687_v53  ;;  %v23717_v56 = vld [vmem:[#allocation4 + $0x30] sm:$0xff] }
 0x850   : > { %v17256_v60 = vpop.f32.mrb[43].mxu1  ;;  %v23743_v59 = vld [vmem:[#allocation4 + $0x32] sm:$0xff] }
 0x851   : > { %v17257_v5 = vadd.f32 %v17256_v60, %v17255_v62  ;;  %v9676_v18 = vld [vmem:[#allocation12 + $0xe0] sm:$0xff]  ;;  %v9677_v62 = vld [vmem:[#allocation12 + $0xe8] sm:$0xff] }
 0x852   : > { %v23692_v11 = vld [vmem:[#allocation4 + $0x41] sm:$0xff]  ;;  %v20007_v60 = vpack.c.bf16 %v9677_v62, %v9676_v18 }
 0x853   : > { %8630 = vst.msk [vmem:[#allocation4 + $0x61] sm:$0xff] %vm660_vm0, %v17257_v5  ;;  %v17258_v16 = vpop.f32.mrb[44].mxu1  ;;  %18827 = vmatprep.mubr.msk.f32.mxu1 %vm660_vm0, %v23692_v11  ;;  %v23721_v43 = vld [vmem:[#allocation4 + $0x40] sm:$0xff] }
 0x854   : > { %v17259_v19 = vpop.f32.mrb[45].mxu1  ;;  %v23747_v39 = vld [vmem:[#allocation4 + $0x42] sm:$0xff] }
 0x855   : > { %v17260_v37 = vadd.f32 %v17259_v19, %v17258_v16  ;;  %v9678_v16 = vld [vmem:[#allocation12 + $0xf0] sm:$0xff]  ;;  %v9679_v19 = vld [vmem:[#allocation12 + $0xf8] sm:$0xff] }
 0x856   : > { %v23697_v49 = vld [vmem:[#allocation4 + $0x51] sm:$0xff] }
 0x857   : > { %8631 = vst.msk [vmem:[#allocation4 + $0x71] sm:$0xff] %vm660_vm0, %v17260_v37  ;;  %18828 = vmatmul.mubr.msk.f32.gmra.mrb[52].mxu1 %vm660_vm0, %v23697_v49  ;;  %v17261_v20 = vpop.f32.mrb[46].mxu1  ;;  %v23725_v57 = vld [vmem:[#allocation4 + $0x50] sm:$0xff]  ;;  %v20011_v37 = vpack.c.bf16 %v9679_v19, %v9678_v16  ;;  %v10015_v16 = vld [vmem:[#allocation5] sm:$0xff] }
 0x858   : > { %v17262_v54 = vpop.f32.mrb[47].mxu1  ;;  %v23751_v51 = vld [vmem:[#allocation4 + $0x52] sm:$0xff] }
 0x859   : > { %v17263_v46 = vadd.f32 %v17262_v54, %v17261_v20  ;;  %v9826_v20 = vld [vmem:[#allocation12 + $0x100] sm:$0xff]  ;;  %v9827_v54 = vld [vmem:[#allocation12 + $0x108] sm:$0xff] }
 0x85a   : > { %v23702_v47 = vld [vmem:[#allocation4 + $0x61] sm:$0xff] }
 0x85b   : > { %18830 = vmatprep.mubr.msk.f32.mxu1 %vm660_vm0, %v23702_v47  ;;  %8632 = vst.msk [vmem:[#allocation4 + $0x81] sm:$0xff] %vm660_vm0, %v17263_v46  ;;  %v23729_v6 = vld [vmem:[#allocation4 + $0x60] sm:$0xff]  ;;  %v20015_v46 = vpack.c.bf16 %v9827_v54, %v9826_v20  ;;  %v10310_v20 = vld [vmem:[#allocation13 + $0x58] sm:$0xff] }
 0x85c   : > { %v23755_v9 = vld [vmem:[#allocation4 + $0x62] sm:$0xff] }
 0x85e   : > { %v23707_v33 = vld [vmem:[#allocation4 + $0x71] sm:$0xff] }
 0x85f   : > { %18831 = vmatmul.mubr.msk.f32.gmra.mrb[54].mxu1 %vm660_vm0, %v23707_v33  ;;  %v23733_v34 = vld [vmem:[#allocation4 + $0x70] sm:$0xff] }
 0x860   : > { %18841 = vmatprep.mubr.msk.f32.mxu1 %vm660_vm0, %v8633_v29  ;;  %v23759_v50 = vld [vmem:[#allocation4 + $0x72] sm:$0xff] }
 0x861   : > { %v9524_v29 = vld [vmem:[#allocation4 + $0x90] sm:$0xff] }
 0x862   : > { %v9073_v27 = vld [vmem:[#allocation4 + $0x80] sm:$0xff] }
 0x863   : > { %18842 = vmatmul.mubr.msk.f32.vlgmr.msra.gmra.mrb[48].mxu1 %vm660_vm0, %v8634_v17  ;;  %v9373_v5 = vld [vmem:[#allocation4 + $0x82] sm:$0xff] }
 0x864   : > { %18844 = vmatprep.mubr.msk.f32.mxu1 %vm660_vm0, %v23713_v0  ;;  %19970 = vmatpush3.bf16.msra.mxu1 %v19967_v26  ;;  %v9528_v26 = vld [vmem:[#allocation12 + $0xd0] sm:$0xff] }
 0x865   : > { %19972 = vmatprep.subr.bf16.mxu1 %v19971_v24  ;;  %v20003_v3 = vpack.c.bf16 %v9529_v52, %v9528_v26 }
 0x867   : > { %18845 = vmatmul.mubr.msk.f32.gmra.mrb[50].mxu1 %vm660_vm0, %v23717_v56 }
 0x868   : > { %18847 = vmatprep.mubr.msk.f32.mxu1 %vm660_vm0, %v23721_v43  ;;  %19974 = vmatpush3.bf16.msra.mxu1 %v19971_v24  ;;  %v20031_v24 = vpack.c.bf16 %v10024_v35, %v10023_v10  ;;  %v10459_v10 = vld [vmem:[#allocation13 + $0x70] sm:$0xff]  ;;  %v10460_v35 = vld [vmem:[#allocation13 + $0x78] sm:$0xff] }
 0x869   : > { %19976 = vmatprep.subr.bf16.mxu1 %v19975_v63 }
 0x86b   : > { %18848 = vmatmul.mubr.msk.f32.gmra.mrb[52].mxu1 %vm660_vm0, %v23725_v57 }
 0x86c   : > { %18850 = vmatprep.mubr.msk.f32.mxu1 %vm660_vm0, %v23729_v6 }
 0x86f   : > { %18851 = vmatmul.mubr.msk.f32.gmra.mrb[54].mxu1 %vm660_vm0, %v23733_v34 }
 0x870   : > { %18861 = vmatprep.mubr.msk.f32.mxu1 %vm660_vm0, %v8916_v55 }
 0x873   : > { %18862 = vmatmul.mubr.msk.f32.vlgmr.msra.gmra.mrb[48].mxu1 %vm660_vm0, %v8917_v44 }
 0x874   : > { %18864 = vmatprep.mubr.msk.f32.mxu1 %vm660_vm0, %v23739_v1  ;;  %19978 = vmatpush3.bf16.msra.mxu1 %v19975_v63 }
 0x875   : > { %19980 = vmatprep.subr.bf16.mxu1 %v19979_v61 }
 0x877   : > { %18865 = vmatmul.mubr.msk.f32.gmra.mrb[50].mxu1 %vm660_vm0, %v23743_v59 }
 0x878   : > { %18867 = vmatprep.mubr.msk.f32.mxu1 %vm660_vm0, %v23747_v39  ;;  %19982 = vmatpush3.bf16.msra.mxu1 %v19979_v61 }
 0x879   : > { %19984 = vmatprep.subr.bf16.mxu1 %v19983_v25 }
 0x87b   : > { %18868 = vmatmul.mubr.msk.f32.gmra.mrb[52].mxu1 %vm660_vm0, %v23751_v51 }
 0x87c   : > { %18870 = vmatprep.mubr.msk.f32.mxu1 %vm660_vm0, %v23755_v9 }
 0x87f   : > { %18871 = vmatmul.mubr.msk.f32.gmra.mrb[54].mxu1 %vm660_vm0, %v23759_v50 }
 0x880   : > { %18881 = vmatprep.mubr.msk.f32.mxu1 %vm660_vm0, %v8634_v17  ;;  %v16302_v17 = vld [vmem:[%s24817_s8] ss:$0 sm:$0xff] }
 0x883   : > { %18882 = vmatmul.mubr.msk.f32.vlgmr.msra.gmra.mrb[48].mxu1 %vm660_vm0, %v23713_v0 }
 0x884   : > { %18884 = vmatprep.mubr.msk.f32.mxu1 %vm660_vm0, %v23717_v56  ;;  %19986 = vmatpush3.bf16.msra.mxu1 %v19983_v25 }
 0x885   : > { %19988 = vmatprep.subr.bf16.mxu1 %v19987_v41 }
 0x887   : > { %18885 = vmatmul.mubr.msk.f32.gmra.mrb[50].mxu1 %vm660_vm0, %v23721_v43 }
 0x888   : > { %18887 = vmatprep.mubr.msk.f32.mxu1 %vm660_vm0, %v23725_v57  ;;  %19990 = vmatpush3.bf16.msra.mxu1 %v19987_v41 }
 0x889   : > { %19992 = vmatprep.subr.bf16.mxu1 %v19991_v8 }
 0x88b   : > { %18888 = vmatmul.mubr.msk.f32.gmra.mrb[52].mxu1 %vm660_vm0, %v23729_v6 }
 0x88c   : > { %18890 = vmatprep.mubr.msk.f32.mxu1 %vm660_vm0, %v23733_v34 }
 0x88f   : > { %18891 = vmatmul.mubr.msk.f32.gmra.mrb[54].mxu1 %vm660_vm0, %v9073_v27 }
 0x890   : > { %18901 = vmatprep.mubr.msk.f32.mxu1 %vm660_vm0, %v23677_v45  ;;  %v9223_v45 = vld [vmem:[#allocation4 + $0x81] sm:$0xff] }
 0x893   : > { %18902 = vmatmul.mubr.msk.f32.vlgmr.msra.gmra.mrb[48].mxu1 %vm660_vm0, %v23682_v14 }
 0x894   : > { %18904 = vmatprep.mubr.msk.f32.mxu1 %vm660_vm0, %v23687_v53  ;;  %19994 = vmatpush3.bf16.msra.mxu1 %v19991_v8 }
 0x895   : > { %19996 = vmatprep.subr.bf16.mxu1 %v19995_v15 }
 0x897   : > { %18905 = vmatmul.mubr.msk.f32.gmra.mrb[50].mxu1 %vm660_vm0, %v23692_v11 }
 0x898   : > { %18907 = vmatprep.mubr.msk.f32.mxu1 %vm660_vm0, %v23697_v49  ;;  %19998 = vmatpush3.bf16.msra.mxu1 %v19995_v15  ;;  %v10307_v15 = vld [vmem:[#allocation13 + $0x40] sm:$0xff] }
 0x899   : > { %20000 = vmatprep.subr.bf16.mxu1 %v19999_v22  ;;  %v20039_v52 = vpack.c.bf16 %v10308_v23, %v10307_v15  ;;  %v11208_v23 = vld [vmem:[#allocation13 + $0x100] sm:$0xff] }
 0x89b   : > { %18908 = vmatmul.mubr.msk.f32.gmra.mrb[52].mxu1 %vm660_vm0, %v23702_v47 }
 0x89c   : > { %18910 = vmatprep.mubr.msk.f32.mxu1 %vm660_vm0, %v23707_v33 }
 0x89f   : > { %18911 = vmatmul.mubr.msk.f32.gmra.mrb[54].mxu1 %vm660_vm0, %v9223_v45 }
 0x8a0   : > { %18921 = vmatprep.mubr.msk.f32.mxu1 %vm660_vm0, %v8917_v44 }
 0x8a3   : > { %18922 = vmatmul.mubr.msk.f32.vlgmr.msra.gmra.mrb[48].mxu1 %vm660_vm0, %v23739_v1 }
 0x8a4   : > { %18924 = vmatprep.mubr.msk.f32.mxu1 %vm660_vm0, %v23743_v59  ;;  %20002 = vmatpush3.bf16.msra.mxu1 %v19999_v22 }
 0x8a5   : > { %20004 = vmatprep.subr.bf16.mxu1 %v20003_v3 }
 0x8a7   : > { %18925 = vmatmul.mubr.msk.f32.gmra.mrb[50].mxu1 %vm660_vm0, %v23747_v39 }
 0x8a8   : > { %18927 = vmatprep.mubr.msk.f32.mxu1 %vm660_vm0, %v23751_v51  ;;  %20006 = vmatpush3.bf16.msra.mxu1 %v20003_v3 }
 0x8a9   : > { %20008 = vmatprep.subr.bf16.mxu1 %v20007_v60 }
 0x8ab   : > { %18928 = vmatmul.mubr.msk.f32.gmra.mrb[52].mxu1 %vm660_vm0, %v23755_v9 }
 0x8ac   : > { %18930 = vmatprep.mubr.msk.f32.mxu1 %vm660_vm0, %v23759_v50 }
 0x8af   : > { %18931 = vmatmul.mubr.msk.f32.gmra.mrb[54].mxu1 %vm660_vm0, %v9373_v5 }
 0x8b0   : > { %18941 = vmatprep.mubr.msk.f32.mxu1 %vm660_vm0, %v23713_v0 }
 0x8b3   : > { %18942 = vmatmul.mubr.msk.f32.vlgmr.msra.gmra.mrb[48].mxu1 %vm660_vm0, %v23717_v56 }
 0x8b4   : > { %18944 = vmatprep.mubr.msk.f32.mxu1 %vm660_vm0, %v23721_v43  ;;  %20010 = vmatpush3.bf16.msra.mxu1 %v20007_v60 }
 0x8b5   : > { %20012 = vmatprep.subr.bf16.mxu1 %v20011_v37 }
 0x8b7   : > { %18945 = vmatmul.mubr.msk.f32.gmra.mrb[50].mxu1 %vm660_vm0, %v23725_v57 }
 0x8b8   : > { %18947 = vmatprep.mubr.msk.f32.mxu1 %vm660_vm0, %v23729_v6  ;;  %20014 = vmatpush3.bf16.msra.mxu1 %v20011_v37  ;;  %v10309_v37 = vld [vmem:[#allocation13 + $0x50] sm:$0xff] }
 0x8b9   : > { %20016 = vmatprep.subr.bf16.mxu1 %v20015_v46  ;;  %v20043_v54 = vpack.c.bf16 %v10310_v20, %v10309_v37 }
 0x8bb   : > { %18948 = vmatmul.mubr.msk.f32.gmra.mrb[52].mxu1 %vm660_vm0, %v23733_v34 }
 0x8bc   : > { %18950 = vmatprep.mubr.msk.f32.mxu1 %vm660_vm0, %v9073_v27 }
 0x8bf   : > { %18951 = vmatmul.mubr.msk.f32.gmra.mrb[54].mxu1 %vm660_vm0, %v9524_v29  ;;  %v10457_v29 = vld [vmem:[#allocation13 + $0x60] sm:$0xff] }
 0x8c0   : > { %18961 = vmatprep.mubr.msk.f32.mxu1 %vm660_vm0, %v23682_v14  ;;  %v9674_v14 = vld [vmem:[#allocation4 + $0x91] sm:$0xff] }
 0x8c3   : > { %18962 = vmatmul.mubr.msk.f32.vlgmr.msra.gmra.mrb[48].mxu1 %vm660_vm0, %v23687_v53  ;;  %v9824_v53 = vld [vmem:[#allocation4 + $0x92] sm:$0xff] }
 0x8c4   : > { %18964 = vmatprep.mubr.msk.f32.mxu1 %vm660_vm0, %v23692_v11  ;;  %20018 = vmatpush3.bf16.msra.mxu1 %v20015_v46  ;;  %v10038_v11 = vld [vmem:[#allocation13 + $0x30] sm:$0xff] }
 0x8c5   : > { %20020 = vmatprep.subr.bf16.mxu1 %v20019_v7 }
 0x8c7   : > { %18965 = vmatmul.mubr.msk.f32.gmra.mrb[50].mxu1 %vm660_vm0, %v23697_v49  ;;  %v10039_v49 = vld [vmem:[#allocation13 + $0x38] sm:$0xff] }
 0x8c8   : > { %18967 = vmatprep.mubr.msk.f32.mxu1 %vm660_vm0, %v23702_v47  ;;  %20022 = vmatpush3.bf16.msra.mxu1 %v20019_v7  ;;  %v20027_v47 = vpack.c.bf16 %v10039_v49, %v10038_v11  ;;  %v20047_v7 = vpack.c.bf16 %v10458_v48, %v10457_v29 }
 0x8ca   : > { %20028 = vmatprep.subr.bf16.mxu0 %v20027_v47 }
 0x8cb   : > { %18968 = vmatmul.mubr.msk.f32.gmra.mrb[52].mxu1 %vm660_vm0, %v23707_v33  ;;  %20030 = vmatpush3.bf16.msra.mxu0 %v20027_v47  ;;  %v10027_v33 = vld [vmem:[#allocation5 + $0x1] sm:$0xff] }
 0x8cc   : > { %18970 = vmatprep.mubr.msk.f32.mxu1 %vm660_vm0, %v9223_v45  ;;  %19001 = vmatprep.mubr.msk.f32.mxu0 %vm660_vm0, %v10027_v33  ;;  %v10298_v47 = vld [vmem:[#allocation5 + $0x2] sm:$0xff] }
 0x8cd   : > { %20032 = vmatprep.subr.bf16.mxu0 %v20031_v24 }
 0x8cf   : > { %18971 = vmatmul.mubr.msk.f32.gmra.mrb[54].mxu1 %vm660_vm0, %v9674_v14 }
 0x8d0   : > { %18981 = vmatprep.mubr.msk.f32.mxu1 %vm660_vm0, %v23739_v1 }
 0x8d3   : > { %18982 = vmatmul.mubr.msk.f32.vlgmr.msra.gmra.mrb[48].mxu1 %vm660_vm0, %v23743_v59 }
 0x8d4   : > { %18984 = vmatprep.mubr.msk.f32.mxu1 %vm660_vm0, %v23747_v39 }
 0x8d7   : > { %18985 = vmatmul.mubr.msk.f32.gmra.mrb[50].mxu1 %vm660_vm0, %v23751_v51  ;;  %v10025_v51 = vld [vmem:[#allocation13 + $0x10] sm:$0xff] }
 0x8d8   : > { %18987 = vmatprep.mubr.msk.f32.mxu1 %vm660_vm0, %v23755_v9  ;;  %v10026_v9 = vld [vmem:[#allocation13 + $0x18] sm:$0xff] }
 0x8d9   : > { %v20035_v8 = vpack.c.bf16 %v10026_v9, %v10025_v51  ;;  %v10909_v51 = vld [vmem:[#allocation13 + $0xc8] sm:$0xff] }
 0x8db   : > { %18988 = vmatmul.mubr.msk.f32.gmra.mrb[52].mxu1 %vm660_vm0, %v23759_v50 }
 0x8dc   : > { %18990 = vmatprep.mubr.msk.f32.mxu1 %vm660_vm0, %v9373_v5 }
 0x8df   : > { %18991 = vmatmul.mubr.msk.f32.gmra.mrb[54].mxu1 %vm660_vm0, %v9824_v53 }
 0x9a6   : > { %v18983_v13 = vpop.f32.mrb[48].mxu1 }
 0x9a7   : > { %v9975_v2 = vadd.f32 %v18983_v13, %v16302_v17  ;;  %v9920_v0 = vpop.f32.mrb[49].mxu1  ;;  %v10607_v13 = vld [vmem:[#allocation13 + $0x80] sm:$0xff] }
 0x9a8   : > { %v9974_v63 = vadd.f32 %v16302_v17, %v9920_v0 }
 0x9a9   : > { %vm9983_vm9 = vcmp.ge.f32.partialorder %v9975_v2, 0.0  ;;  %v9991_v56 = vmul.f32 0.2, %v9975_v2 }
 0x9aa   : > { %vm9982_vm10 = vcmp.ge.f32.partialorder %v9974_v63, 0.0  ;;  %v9990_v43 = vmul.f32 0.2, %v9974_v63  ;;  %v18986_v57 = vpop.f32.mrb[50].mxu1 }
 0x9ab   : > { %v9999_v6 = vsel %vm9983_vm9, %v9975_v2, %v9991_v56  ;;  %v9977_v55 = vadd.f32 %v18986_v57, %v16302_v17  ;;  %v9930_v34 = vpop.f32.mrb[51].mxu1  ;;  %v10608_v2 = vld [vmem:[#allocation13 + $0x88] sm:$0xff] }
 0x9ac   : > { %10008 = vst.msk [vmem:[#allocation5 + $0x21] sm:$0xff] %vm660_vm0, %v9999_v6  ;;  %v9998_v30 = vsel %vm9982_vm10, %v9974_v63, %v9990_v43  ;;  %v9976_v31 = vadd.f32 %v16302_v17, %v9930_v34  ;;  %v20055_v63 = vpack.c.bf16 %v10608_v2, %v10607_v13  ;;  %v10609_v34 = vld [vmem:[#allocation13 + $0x90] sm:$0xff] }
 0x9ad   : > { %10007 = vst.msk [vmem:[#allocation5 + $0x11] sm:$0xff] %vm660_vm0, %v9998_v30  ;;  %vm9985_vm11 = vcmp.ge.f32.partialorder %v9977_v55, 0.0  ;;  %v9993_v61 = vmul.f32 0.2, %v9977_v55  ;;  %v10610_v30 = vld [vmem:[#allocation13 + $0x98] sm:$0xff] }
 0x9ae   : > { %vm9984_vm12 = vcmp.ge.f32.partialorder %v9976_v31, 0.0  ;;  %v9992_v44 = vmul.f32 0.2, %v9976_v31  ;;  %v18989_v21 = vpop.f32.mrb[52].mxu1 }
 0x9af   : > { %v10001_v40 = vsel %vm9985_vm11, %v9977_v55, %v9993_v61  ;;  %v9979_v1 = vadd.f32 %v18989_v21, %v16302_v17  ;;  %v9940_v25 = vpop.f32.mrb[53].mxu1  ;;  %v10757_v61 = vld [vmem:[#allocation13 + $0xa0] sm:$0xff] }
 0x9b0   : > { %10010 = vst.msk [vmem:[#allocation5 + $0x41] sm:$0xff] %vm660_vm0, %v10001_v40  ;;  %v10000_v59 = vsel %vm9984_vm12, %v9976_v31, %v9992_v44  ;;  %v9978_v39 = vadd.f32 %v16302_v17, %v9940_v25  ;;  %v20059_v31 = vpack.c.bf16 %v10610_v30, %v10609_v34  ;;  %v10758_v44 = vld [vmem:[#allocation13 + $0xa8] sm:$0xff]  ;;  %v10760_v25 = vld [vmem:[#allocation13 + $0xb8] sm:$0xff] }
 0x9b1   : > { %10009 = vst.msk [vmem:[#allocation5 + $0x31] sm:$0xff] %vm660_vm0, %v10000_v59  ;;  %vm9987_vm13 = vcmp.ge.f32.partialorder %v9979_v1, 0.0  ;;  %v9995_v50 = vmul.f32 0.2, %v9979_v1  ;;  %v20063_v21 = vpack.c.bf16 %v10758_v44, %v10757_v61 }
 0x9b2   : > { %vm9986_vm14 = vcmp.ge.f32.partialorder %v9978_v39, 0.0  ;;  %v9994_v32 = vmul.f32 0.2, %v9978_v39  ;;  %v18992_v12 = vpop.f32.mrb[54].mxu1 }
 0x9b3   : > { %v10003_v41 = vsel %vm9987_vm13, %v9979_v1, %v9995_v50  ;;  %v9981_v4 = vadd.f32 %v18992_v12, %v16302_v17  ;;  %v9950_v38 = vpop.f32.mrb[55].mxu1  ;;  %v23862_v22 = vld [vmem:[#allocation5 + $0x21] sm:$0xff]  ;;  %v10911_v12 = vld [vmem:[#allocation13 + $0xd8] sm:$0xff]  ;;  %vm11473_vm13 = vcmask 257024  }
 0x9b4   : > { %10012 = vst.msk [vmem:[#allocation5 + $0x61] sm:$0xff] %vm660_vm0, %v10003_v41  ;;  %v10002_v27 = vsel %vm9986_vm14, %v9978_v39, %v9994_v32  ;;  %v9980_v36 = vadd.f32 %v16302_v17, %v9950_v38  ;;  %v23857_v28 = vld [vmem:[#allocation5 + $0x11] sm:$0xff]  ;;  %v23890_v58 = vld [vmem:[#allocation5 + $0x20] sm:$0xff]  ;;  %vm11476_vm14 = vcmask 261124  }
 0x9b5   : > { %10011 = vst.msk [vmem:[#allocation5 + $0x51] sm:$0xff] %vm660_vm0, %v10002_v27  ;;  %vm9989_vm15 = vcmp.ge.f32.partialorder %v9981_v4, 0.0  ;;  %v9997_v42 = vmul.f32 0.2, %v9981_v4  ;;  %19002 = vmatmul.mubr.msk.f32.vlgmr.msra.gmra.mrb[64].mxu0 %vm660_vm0, %v23857_v28  ;;  %v10016_v46 = vld [vmem:[#allocation5 + $0x10] sm:$0xff]  ;;  %v23916_v0 = vld [vmem:[#allocation5 + $0x22] sm:$0xff] }
 0x9b6   : > { %vm9988_vm1 = vcmp.ge.f32.partialorder %v9980_v36, 0.0  ;;  %v9996_v45 = vmul.f32 0.2, %v9980_v36  ;;  %19004 = vmatprep.mubr.msk.f32.mxu0 %vm660_vm0, %v23862_v22  ;;  %20034 = vmatpush3.bf16.msra.mxu0 %v20031_v24  ;;  %v20051_v24 = vpack.c.bf16 %v10460_v35, %v10459_v10  ;;  %v10299_v17 = vld [vmem:[#allocation5 + $0x12] sm:$0xff]  ;;  %v10759_v1 = vld [vmem:[#allocation13 + $0xb0] sm:$0xff] }
 0x9b7   : > { %v10005_v26 = vsel %vm9989_vm15, %v9981_v4, %v9997_v42  ;;  %20036 = vmatprep.subr.bf16.mxu0 %v20035_v8  ;;  %v23872_v62 = vld [vmem:[#allocation5 + $0x41] sm:$0xff]  ;;  %v20067_v59 = vpack.c.bf16 %v10760_v25, %v10759_v1  ;;  %v10908_v39 = vld [vmem:[#allocation13 + $0xc0] sm:$0xff]  ;;  %v11059_v38 = vld [vmem:[#allocation13 + $0xe8] sm:$0xff] }
 0x9b8   : > { %10014 = vst.msk [vmem:[#allocation5 + $0x81] sm:$0xff] %vm660_vm0, %v10005_v26  ;;  %v10004_v3 = vsel %vm9988_vm1, %v9980_v36, %v9996_v45  ;;  %v23867_v18 = vld [vmem:[#allocation5 + $0x31] sm:$0xff]  ;;  %v23898_v53 = vld [vmem:[#allocation5 + $0x40] sm:$0xff]  ;;  %v20071_v9 = vpack.c.bf16 %v10909_v51, %v10908_v39  ;;  %v16379_v39 = vld [vmem:[%s24820_s11 + $0x28] sm:$0xff] }
 0x9b9   : > { %10013 = vst.msk [vmem:[#allocation5 + $0x71] sm:$0xff] %vm660_vm0, %v10004_v3  ;;  %19005 = vmatmul.mubr.msk.f32.gmra.mrb[66].mxu0 %vm660_vm0, %v23867_v18  ;;  %v23894_v14 = vld [vmem:[#allocation5 + $0x30] sm:$0xff]  ;;  %v23924_v43 = vld [vmem:[#allocation5 + $0x42] sm:$0xff]  ;;  %v11209_v42 = vld [vmem:[#allocation13 + $0x108] sm:$0xff] }
 0x9ba   : > { %19007 = vmatprep.mubr.msk.f32.mxu0 %vm660_vm0, %v23872_v62  ;;  %20038 = vmatpush3.bf16.msra.mxu0 %v20035_v8  ;;  %v23920_v56 = vld [vmem:[#allocation5 + $0x32] sm:$0xff]  ;;  %v10910_v32 = vld [vmem:[#allocation13 + $0xd0] sm:$0xff]  ;;  %v20087_v45 = vpack.c.bf16 %v11209_v42, %v11208_v23  ;;  %v11211_v3 = vld [vmem:[#allocation13 + $0x118] sm:$0xff] }
 0x9bb   : > { %20040 = vmatprep.subr.bf16.mxu0 %v20039_v52  ;;  %v23880_v5 = vld [vmem:[#allocation5 + $0x61] sm:$0xff]  ;;  %v20075_v41 = vpack.c.bf16 %v10911_v12, %v10910_v32  ;;  %v11058_v4 = vld [vmem:[#allocation13 + $0xe0] sm:$0xff] }
 0x9bc   : > { %v23876_v60 = vld [vmem:[#allocation5 + $0x51] sm:$0xff]  ;;  %v23906_v49 = vld [vmem:[#allocation5 + $0x60] sm:$0xff]  ;;  %v20079_v8 = vpack.c.bf16 %v11059_v38, %v11058_v4  ;;  %v11389_v51 = vld [vmem:[%s24827_s18 + $0x8] sm:$0xff] }
 0x9bd   : > { %19008 = vmatmul.mubr.msk.f32.gmra.mrb[68].mxu0 %vm660_vm0, %v23876_v60  ;;  %v23902_v11 = vld [vmem:[#allocation5 + $0x50] sm:$0xff]  ;;  %v23932_v6 = vld [vmem:[#allocation5 + $0x62] sm:$0xff]  ;;  %v16381_v32 = vld [vmem:[%s24820_s11 + $0x38] sm:$0xff] }
 0x9be   : > { %19010 = vmatprep.mubr.msk.f32.mxu0 %vm660_vm0, %v23880_v5  ;;  %v23928_v57 = vld [vmem:[#allocation5 + $0x52] sm:$0xff]  ;;  %v11060_v36 = vld [vmem:[#allocation13 + $0xf0] sm:$0xff] }
 0x9bf   : > { %v10455_v40 = vld [vmem:[#allocation5 + $0x80] sm:$0xff]  ;;  %v10906_v26 = vld [vmem:[#allocation5 + $0x90] sm:$0xff]  ;;  %v11484_v4 = vld [vmem:[%s24820_s11 + $0x8] sm:$0xff] }
 0x9c0   : > { %v23884_v19 = vld [vmem:[#allocation5 + $0x71] sm:$0xff]  ;;  %v10605_v50 = vld [vmem:[#allocation5 + $0x81] sm:$0xff] }
 0x9c1   : > { %19011 = vmatmul.mubr.msk.f32.gmra.mrb[70].mxu0 %vm660_vm0, %v23884_v19  ;;  %v23910_v33 = vld [vmem:[#allocation5 + $0x70] sm:$0xff]  ;;  %v10755_v27 = vld [vmem:[#allocation5 + $0x82] sm:$0xff] }
 0x9c2   : > { %19021 = vmatprep.mubr.msk.f32.mxu0 %vm660_vm0, %v10015_v16  ;;  %v23936_v55 = vld [vmem:[#allocation5 + $0x72] sm:$0xff]  ;;  %v16385_v23 = vld [vmem:[%s24820_s11 + $0x48] sm:$0xff] }
 0x9c5   : > { %19022 = vmatmul.mubr.msk.f32.vlgmr.msra.gmra.mrb[64].mxu0 %vm660_vm0, %v10016_v46 }
 0x9c6   : > { %19024 = vmatprep.mubr.msk.f32.mxu0 %vm660_vm0, %v23890_v58  ;;  %20042 = vmatpush3.bf16.msra.mxu0 %v20039_v52  ;;  %v11210_v52 = vld [vmem:[#allocation13 + $0x110] sm:$0xff] }
 0x9c7   : > { %20044 = vmatprep.subr.bf16.mxu0 %v20043_v54  ;;  %v20091_v16 = vpack.c.bf16 %v11211_v3, %v11210_v52  ;;  %v16387_v52 = vld [vmem:[%s24820_s11 + $0x58] sm:$0xff] }
 0x9c9   : > { %19025 = vmatmul.mubr.msk.f32.gmra.mrb[66].mxu0 %vm660_vm0, %v23894_v14 }
 0x9ca   : > { %19027 = vmatprep.mubr.msk.f32.mxu0 %vm660_vm0, %v23898_v53  ;;  %20046 = vmatpush3.bf16.msra.mxu0 %v20043_v54 }
 0x9cb   : > { %20048 = vmatprep.subr.bf16.mxu0 %v20047_v7 }
 0x9cd   : > { %19028 = vmatmul.mubr.msk.f32.gmra.mrb[68].mxu0 %vm660_vm0, %v23902_v11 }
 0x9ce   : > { %19030 = vmatprep.mubr.msk.f32.mxu0 %vm660_vm0, %v23906_v49 }
 0x9d1   : > { %19031 = vmatmul.mubr.msk.f32.gmra.mrb[70].mxu0 %vm660_vm0, %v23910_v33 }
 0x9d2   : > { %19041 = vmatprep.mubr.msk.f32.mxu0 %vm660_vm0, %v10298_v47 }
 0x9d5   : > { %19042 = vmatmul.mubr.msk.f32.vlgmr.msra.gmra.mrb[64].mxu0 %vm660_vm0, %v10299_v17 }
 0x9d6   : > { %19044 = vmatprep.mubr.msk.f32.mxu0 %vm660_vm0, %v23916_v0  ;;  %20050 = vmatpush3.bf16.msra.mxu0 %v20047_v7 }
 0x9d7   : > { %20052 = vmatprep.subr.bf16.mxu0 %v20051_v24 }
 0x9d9   : > { %19045 = vmatmul.mubr.msk.f32.gmra.mrb[66].mxu0 %vm660_vm0, %v23920_v56 }
 0x9da   : > { %19047 = vmatprep.mubr.msk.f32.mxu0 %vm660_vm0, %v23924_v43  ;;  %20054 = vmatpush3.bf16.msra.mxu0 %v20051_v24 }
 0x9db   : > { %20056 = vmatprep.subr.bf16.mxu0 %v20055_v63 }
 0x9dd   : > { %19048 = vmatmul.mubr.msk.f32.gmra.mrb[68].mxu0 %vm660_vm0, %v23928_v57 }
 0x9de   : > { %19050 = vmatprep.mubr.msk.f32.mxu0 %vm660_vm0, %v23932_v6 }
 0x9e1   : > { %19051 = vmatmul.mubr.msk.f32.gmra.mrb[70].mxu0 %vm660_vm0, %v23936_v55 }
 0x9e2   : > { %19061 = vmatprep.mubr.msk.f32.mxu0 %vm660_vm0, %v10016_v46 }
 0x9e5   : > { %19062 = vmatmul.mubr.msk.f32.vlgmr.msra.gmra.mrb[64].mxu0 %vm660_vm0, %v23890_v58 }
 0x9e6   : > { %19064 = vmatprep.mubr.msk.f32.mxu0 %vm660_vm0, %v23894_v14  ;;  %20058 = vmatpush3.bf16.msra.mxu0 %v20055_v63 }
 0x9e7   : > { %20060 = vmatprep.subr.bf16.mxu0 %v20059_v31 }
 0x9e9   : > { %19065 = vmatmul.mubr.msk.f32.gmra.mrb[66].mxu0 %vm660_vm0, %v23898_v53 }
 0x9ea   : > { %19067 = vmatprep.mubr.msk.f32.mxu0 %vm660_vm0, %v23902_v11  ;;  %20062 = vmatpush3.bf16.msra.mxu0 %v20059_v31 }
 0x9eb   : > { %20064 = vmatprep.subr.bf16.mxu0 %v20063_v21 }
 0x9ed   : > { %19068 = vmatmul.mubr.msk.f32.gmra.mrb[68].mxu0 %vm660_vm0, %v23906_v49 }
 0x9ee   : > { %19070 = vmatprep.mubr.msk.f32.mxu0 %vm660_vm0, %v23910_v33 }
 0x9f1   : > { %19071 = vmatmul.mubr.msk.f32.gmra.mrb[70].mxu0 %vm660_vm0, %v10455_v40 }
 0x9f2   : > { %19081 = vmatprep.mubr.msk.f32.mxu0 %vm660_vm0, %v23857_v28  ;;  %v11061_v28 = vld [vmem:[#allocation13 + $0xf8] sm:$0xff] }
 0x9f3   : > { %v20083_v15 = vpack.c.bf16 %v11061_v28, %v11060_v36  ;;  %v11486_v36 = vld [vmem:[%s24820_s11 + $0x18] sm:$0xff] }
 0x9f5   : > { %19082 = vmatmul.mubr.msk.f32.vlgmr.msra.gmra.mrb[64].mxu0 %vm660_vm0, %v23862_v22 }
 0x9f6   : > { %19084 = vmatprep.mubr.msk.f32.mxu0 %vm660_vm0, %v23867_v18  ;;  %20066 = vmatpush3.bf16.msra.mxu0 %v20063_v21 }
 0x9f7   : > { %20068 = vmatprep.subr.bf16.mxu0 %v20067_v59 }
 0x9f9   : > { %19085 = vmatmul.mubr.msk.f32.gmra.mrb[66].mxu0 %vm660_vm0, %v23872_v62 }
 0x9fa   : > { %19087 = vmatprep.mubr.msk.f32.mxu0 %vm660_vm0, %v23876_v60  ;;  %20070 = vmatpush3.bf16.msra.mxu0 %v20067_v59  ;;  %v16378_v59 = vld [vmem:[%s24820_s11 + $0x20] sm:$0xff] }
 0x9fb   : > { %20072 = vmatprep.subr.bf16.mxu0 %v20071_v9 }
 0x9fd   : > { %19088 = vmatmul.mubr.msk.f32.gmra.mrb[68].mxu0 %vm660_vm0, %v23880_v5 }
 0x9fe   : > { %19090 = vmatprep.mubr.msk.f32.mxu0 %vm660_vm0, %v23884_v19 }
 0xa01   : > { %19091 = vmatmul.mubr.msk.f32.gmra.mrb[70].mxu0 %vm660_vm0, %v10605_v50 }
 0xa02   : > { %19101 = vmatprep.mubr.msk.f32.mxu0 %vm660_vm0, %v10299_v17 }
 0xa05   : > { %19102 = vmatmul.mubr.msk.f32.vlgmr.msra.gmra.mrb[64].mxu0 %vm660_vm0, %v23916_v0 }
 0xa06   : > { %19104 = vmatprep.mubr.msk.f32.mxu0 %vm660_vm0, %v23920_v56  ;;  %20074 = vmatpush3.bf16.msra.mxu0 %v20071_v9  ;;  %v24050_v9 = vpack.c.bf16 %v16379_v39, %v16378_v59 }
 0xa07   : > { %20076 = vmatprep.subr.bf16.mxu0 %v20075_v41 }
 0xa09   : > { %19105 = vmatmul.mubr.msk.f32.gmra.mrb[66].mxu0 %vm660_vm0, %v23924_v43 }
 0xa0a   : > { %19107 = vmatprep.mubr.msk.f32.mxu0 %vm660_vm0, %v23928_v57  ;;  %20078 = vmatpush3.bf16.msra.mxu0 %v20075_v41  ;;  %v11483_v41 = vld [vmem:[%s24820_s11] sm:$0xff] }
 0xa0b   : > { %20080 = vmatprep.subr.bf16.mxu0 %v20079_v8 }
 0xa0d   : > { %19108 = vmatmul.mubr.msk.f32.gmra.mrb[68].mxu0 %vm660_vm0, %v23932_v6 }
 0xa0e   : > { %19110 = vmatprep.mubr.msk.f32.mxu0 %vm660_vm0, %v23936_v55 }
 0xa11   : > { %19111 = vmatmul.mubr.msk.f32.gmra.mrb[70].mxu0 %vm660_vm0, %v10755_v27 }
 0xa12   : > { %19121 = vmatprep.mubr.msk.f32.mxu0 %vm660_vm0, %v23890_v58 }
 0xa15   : > { %19122 = vmatmul.mubr.msk.f32.vlgmr.msra.gmra.mrb[64].mxu0 %vm660_vm0, %v23894_v14 }
 0xa16   : > { %19124 = vmatprep.mubr.msk.f32.mxu0 %vm660_vm0, %v23898_v53  ;;  %20082 = vmatpush3.bf16.msra.mxu0 %v20079_v8  ;;  %v24073_v8 = vpack.c.bf16 %v11484_v4, %v11483_v41 }
 0xa17   : > { %20084 = vmatprep.subr.bf16.mxu0 %v20083_v15 }
 0xa19   : > { %19125 = vmatmul.mubr.msk.f32.gmra.mrb[66].mxu0 %vm660_vm0, %v23902_v11 }
 0xa1a   : > { %19127 = vmatprep.mubr.msk.f32.mxu0 %vm660_vm0, %v23906_v49  ;;  %20086 = vmatpush3.bf16.msra.mxu0 %v20083_v15  ;;  %v16384_v15 = vld [vmem:[%s24820_s11 + $0x40] sm:$0xff] }
 0xa1b   : > { %20088 = vmatprep.subr.bf16.mxu0 %v20087_v45 }
 0xa1d   : > { %19128 = vmatmul.mubr.msk.f32.gmra.mrb[68].mxu0 %vm660_vm0, %v23910_v33 }
 0xa1e   : > { %19130 = vmatprep.mubr.msk.f32.mxu0 %vm660_vm0, %v10455_v40 }
 0xa21   : > { %19131 = vmatmul.mubr.msk.f32.gmra.mrb[70].mxu0 %vm660_vm0, %v10906_v26  ;;  %v16386_v26 = vld [vmem:[%s24820_s11 + $0x50] sm:$0xff] }
 0xa22   : > { %19141 = vmatprep.mubr.msk.f32.mxu0 %vm660_vm0, %v23862_v22  ;;  %v11056_v22 = vld [vmem:[#allocation5 + $0x91] sm:$0xff]  ;;  %v24110_v3 = vpack.c.bf16 %v16387_v52, %v16386_v26  ;;  %v12211_v26 = vld [vmem:[%s25143_s1 + $0x8] sm:$0xff] }
 0xa25   : > { %19142 = vmatmul.mubr.msk.f32.vlgmr.msra.gmra.mrb[64].mxu0 %vm660_vm0, %v23867_v18  ;;  %v11206_v18 = vld [vmem:[#allocation5 + $0x92] sm:$0xff] }
 0xa26   : > { %19144 = vmatprep.mubr.msk.f32.mxu0 %vm660_vm0, %v23872_v62  ;;  %20090 = vmatpush3.bf16.msra.mxu0 %v20087_v45  ;;  %v11388_v62 = vld [vmem:[%s24827_s18] sm:$0xff]  ;;  %v24096_v45 = vpack.c.bf16 %v16385_v23, %v16384_v15 }
 0xa27   : > { %20092 = vmatprep.subr.bf16.mxu0 %v20091_v16  ;;  %19189 = vmatprep.mubr.msk.f32.mxu1 %vm11390_vm2, %v11388_v62  ;;  %v16394_v62 = vld [vmem:[%s24820_s11 + $0x80] sm:$0xff] }
 0xa29   : > { %19145 = vmatmul.mubr.msk.f32.gmra.mrb[66].mxu0 %vm660_vm0, %v23876_v60  ;;  %v21262_v60 = vmov 0.0|0.0  }
 0xa2a   : > { %19147 = vmatprep.mubr.msk.f32.mxu0 %vm660_vm0, %v23880_v5  ;;  %20094 = vmatpush3.bf16.msra.mxu0 %v20091_v16  ;;  %v25142_v5 = vmov 0.0  }
 0xa2b   : > { %20129 = vmatprep.subr.bf16.mxu0 %v21262_v60  ;;  %811 = vst.msk [vmem:[#allocation6] sm:$0x3f] %vm810_vm3, %v25142_v5  ;;  %812 = vst.msk [vmem:[#allocation6 + $0x8] sm:$0x3f] %vm810_vm3, %v25142_v5 }
 0xa2c   : > { %813 = vst.msk [vmem:[#allocation6 + $0x10] sm:$0x3f] %vm810_vm3, %v25142_v5  ;;  %814 = vst.msk [vmem:[#allocation6 + $0x18] sm:$0x3f] %vm810_vm3, %v25142_v5 }
 0xa2d   : > { %19148 = vmatmul.mubr.msk.f32.gmra.mrb[68].mxu0 %vm660_vm0, %v23884_v19  ;;  %815 = vst.msk [vmem:[#allocation6 + $0x20] sm:$0x3f] %vm810_vm3, %v25142_v5  ;;  %816 = vst.msk [vmem:[#allocation6 + $0x28] sm:$0x3f] %vm810_vm3, %v25142_v5  ;;  %v16375_v19 = vld [vmem:[%s24819_s10] ss:$0 sm:$0xff] }
 0xa2e   : > { %19150 = vmatprep.mubr.msk.f32.mxu0 %vm660_vm0, %v10605_v50  ;;  %v16380_v50 = vld [vmem:[%s24820_s11 + $0x30] sm:$0xff] }
 0xa2f   : > { %v24061_v12 = vpack.c.bf16 %v16381_v32, %v16380_v50 }
 0xa31   : > { %19151 = vmatmul.mubr.msk.f32.gmra.mrb[70].mxu0 %vm660_vm0, %v11056_v22  ;;  %v16389_v22 = vld [vmem:[%s24820_s11 + $0x60] sm:$0xff] }
 0xa32   : > { %19161 = vmatprep.mubr.msk.f32.mxu0 %vm660_vm0, %v23916_v0  ;;  %v11487_v38 = vld [vmem:[#allocation6 + $0x1] sm:$0xf] }
 0xa33   : > { %v11482_v42 = vld [vmem:[#allocation6] sm:$0xf] }
 0xa34   : > { %v11639_v16 = vld [vmem:[#allocation6 + $0x2] sm:$0xf] }
 0xa35   : > { %19162 = vmatmul.mubr.msk.f32.vlgmr.msra.gmra.mrb[64].mxu0 %vm660_vm0, %v23920_v56 }
 0xa36   : > { %19164 = vmatprep.mubr.msk.f32.mxu0 %vm660_vm0, %v23924_v43 }
 0xa39   : > { %19165 = vmatmul.mubr.msk.f32.gmra.mrb[66].mxu0 %vm660_vm0, %v23928_v57 }
 0xa3a   : > { %19167 = vmatprep.mubr.msk.f32.mxu0 %vm660_vm0, %v23932_v6 }
 0xa3d   : > { %19168 = vmatmul.mubr.msk.f32.gmra.mrb[68].mxu0 %vm660_vm0, %v23936_v55 }
 0xa3e   : > { %19170 = vmatprep.mubr.msk.f32.mxu0 %vm660_vm0, %v10755_v27  ;;  %v11485_v27 = vld [vmem:[%s24820_s11 + $0x10] sm:$0xff] }
 0xa3f   : > { %v24084_v28 = vpack.c.bf16 %v11486_v36, %v11485_v27 }
 0xa41   : > { %19171 = vmatmul.mubr.msk.f32.gmra.mrb[70].mxu0 %vm660_vm0, %v11206_v18  ;;  %v16390_v18 = vld [vmem:[%s24820_s11 + $0x68] sm:$0xff] }
 0xa42   : > { %19233 = vmatprep.mubr.msk.f32.mxu0 %vm21263_vm4, %v25142_v5 }
 0xb08   : > { %v19163_v37 = vpop.f32.mrb[64].mxu0 }
 0xb09   : > { %v11357_v20 = vadd.f32 %v19163_v37, %v16375_v19  ;;  %v11302_v54 = vpop.f32.mrb[65].mxu0  ;;  %v16395_v37 = vld [vmem:[%s24820_s11 + $0x88] sm:$0xff] }
 0xb0a   : > { %v11356_v46 = vadd.f32 %v16375_v19, %v11302_v54  ;;  %v16392_v54 = vld [vmem:[%s24820_s11 + $0x78] sm:$0xff] }
 0xb0b   : > { %vm11365_vm5 = vcmp.ge.f32.partialorder %v11357_v20, 0.0  ;;  %v11373_v29 = vmul.f32 0.2, %v11357_v20 }
 0xb0c   : > { %vm11364_vm6 = vcmp.ge.f32.partialorder %v11356_v46, 0.0  ;;  %v11372_v48 = vmul.f32 0.2, %v11356_v46  ;;  %v19166_v58 = vpop.f32.mrb[66].mxu0 }
 0xb0d   : > { %v11359_v7 = vadd.f32 %v19166_v58, %v16375_v19  ;;  %v11312_v14 = vpop.f32.mrb[67].mxu0  ;;  %v11381_v53 = vsel %vm11365_vm5, %v11357_v20, %v11373_v29  ;;  %v16391_v20 = vld [vmem:[%s24820_s11 + $0x70] sm:$0xff]  ;;  %vm15514_vm5 = vcmask 0  }
 0xb0e   : > { %v11358_v11 = vadd.f32 %v16375_v19, %v11312_v14  ;;  %v11380_v49 = vsel %vm11364_vm6, %v11356_v46, %v11372_v48  ;;  %v24137_v46 = vpack.c.bf16 %v16395_v37, %v16394_v62  ;;  %v16396_v29 = vld [vmem:[%s24820_s11 + $0x90] sm:$0xff]  ;;  %v16397_v48 = vld [vmem:[%s24820_s11 + $0x98] sm:$0xff]  ;;  %v24146_v58 = vpack.c.bf16 %v16392_v54, %v16391_v20 }
 0xb0f   : > { %vm11367_vm7 = vcmp.ge.f32.partialorder %v11359_v7, 0.0  ;;  %v11375_v47 = vmul.f32 0.2, %v11359_v7  ;;  %v20095_v33 = vpack.c.bf16 %v11381_v53, %v11380_v49  ;;  %v16400_v49 = vld [vmem:[%s24820_s11 + $0xa8] sm:$0xff]  ;;  %v12212_v62 = vld [vmem:[%s25143_s1 + $0x10] sm:$0xff]  ;;  %v12213_v37 = vld [vmem:[%s25143_s1 + $0x18] sm:$0xff] }
 0xb10   : > { %vm11366_vm8 = vcmp.ge.f32.partialorder %v11358_v11, 0.0  ;;  %v11374_v10 = vmul.f32 0.2, %v11358_v11  ;;  %v19169_v35 = vpop.f32.mrb[68].mxu0  ;;  %v20175_v20 = vpack.c.bf16 %v12213_v37, %v12212_v62  ;;  %v16422_v54 = vld [vmem:[%s25143_s1 + $0x30] sm:$0xff]  ;;  %v16429_v62 = vld [vmem:[%s25143_s1 + $0x58] sm:$0xff] }
 0xb11   : > { %v11361_v24 = vadd.f32 %v19169_v35, %v16375_v19  ;;  %v11322_v17 = vpop.f32.mrb[69].mxu0  ;;  %20096 = vmatprep.subr.bf16.mxu1 %v20095_v33  ;;  %v11383_v13 = vsel %vm11367_vm7, %v11359_v7, %v11375_v47  ;;  %v24150_v7 = vpack.c.bf16 %v16397_v48, %v16396_v29  ;;  %v16404_v47 = vld [vmem:[%s24820_s11 + $0xc0] sm:$0xff]  ;;  %v16423_v29 = vld [vmem:[%s25143_s1 + $0x38] sm:$0xff] }
 0xb12   : > { %v11360_v2 = vadd.f32 %v16375_v19, %v11322_v17  ;;  %20098 = vmatpush3.bf16.msra.mxu1 %v20095_v33  ;;  %v11382_v0 = vsel %vm11366_vm8, %v11358_v11, %v11374_v10  ;;  %v16399_v11 = vld [vmem:[%s24820_s11 + $0xa0] sm:$0xff]  ;;  %v16405_v33 = vld [vmem:[%s24820_s11 + $0xc8] sm:$0xff]  ;;  %v16402_v17 = vld [vmem:[%s24820_s11 + $0xb8] sm:$0xff]  ;;  %v20169_v48 = vpack.c.bf16 %v16423_v29, %v16422_v54 }
 0xb13   : > { %vm11369_vm9 = vcmp.ge.f32.partialorder %v11361_v24, 0.0  ;;  %v11377_v63 = vmul.f32 0.2, %v11361_v24  ;;  %v20099_v56 = vpack.c.bf16 %v11383_v13, %v11382_v0  ;;  %v24169_v10 = vpack.c.bf16 %v16400_v49, %v16399_v11  ;;  %v16406_v13 = vld [vmem:[%s24820_s11 + $0xd0] sm:$0xff] }
 0xb14   : > { %vm11368_vm10 = vcmp.ge.f32.partialorder %v11360_v2, 0.0  ;;  %v11376_v43 = vmul.f32 0.2, %v11360_v2  ;;  %v19172_v57 = vpop.f32.mrb[70].mxu0  ;;  %v24171_v35 = vpack.c.bf16 %v16405_v33, %v16404_v47 }
 0xb15   : > { %v11363_v6 = vadd.f32 %v19172_v57, %v16375_v19  ;;  %v11332_v55 = vpop.f32.mrb[71].mxu0  ;;  %20100 = vmatprep.subr.bf16.mxu1 %v20099_v56  ;;  %v11385_v34 = vsel %vm11369_vm9, %v11361_v24, %v11377_v63  ;;  %v16401_v24 = vld [vmem:[%s24820_s11 + $0xb0] sm:$0xff] }
 0xb16   : > { %v11362_v30 = vadd.f32 %v16375_v19, %v11332_v55  ;;  %20102 = vmatpush3.bf16.msra.mxu1 %v20099_v56  ;;  %v11384_v31 = vsel %vm11368_vm10, %v11360_v2, %v11376_v43  ;;  %v24126_v19 = vpack.c.bf16 %v16390_v18, %v16389_v22  ;;  %v16407_v2 = vld [vmem:[%s24820_s11 + $0xd8] sm:$0xff]  ;;  %v24195_v43 = vpack.c.bf16 %v16402_v17, %v16401_v24  ;;  %v16421_v22 = vld [vmem:[%s25143_s1 + $0x28] sm:$0xff] }
 0xb17   : > { %vm11371_vm11 = vcmp.ge.f32.partialorder %v11363_v6, 0.0  ;;  %v11379_v61 = vmul.f32 0.2, %v11363_v6  ;;  %v20103_v44 = vpack.c.bf16 %v11385_v34, %v11384_v31  ;;  %v24197_v57 = vpack.c.bf16 %v16407_v2, %v16406_v13  ;;  %v16410_v34 = vld [vmem:[%s24820_s11 + $0xe8] sm:$0xff] }
 0xb18   : > { %vm11370_vm12 = vcmp.ge.f32.partialorder %v11362_v30, 0.0  ;;  %v11378_v21 = vmul.f32 0.2, %v11362_v30  ;;  %20131 = vmatpush3.bf16.msra.mxu0 %v24126_v19  ;;  %v16415_v31 = vld [vmem:[%s24820_s11 + $0x108] sm:$0xff] }
 0xb19   : > { %20104 = vmatprep.subr.bf16.mxu1 %v20103_v44  ;;  %v11387_v40 = vsel %vm11371_vm11, %v11363_v6, %v11379_v61  ;;  %20132 = vmatprep.subr.bf16.mxu0 %v21262_v60  ;;  %v16409_v6 = vld [vmem:[%s24820_s11 + $0xe0] sm:$0xff] }
 0xb1a   : > { %20106 = vmatpush3.bf16.msra.mxu1 %v20103_v44  ;;  %v11386_v1 = vsel %vm11370_vm12, %v11362_v30, %v11378_v21  ;;  %v16414_v30 = vld [vmem:[%s24820_s11 + $0x100] sm:$0xff]  ;;  %v24219_v61 = vpack.c.bf16 %v16410_v34, %v16409_v6  ;;  %v16411_v21 = vld [vmem:[%s24820_s11 + $0xf0] sm:$0xff] }
 0xb1b   : > { %v20107_v25 = vpack.c.bf16 %v11387_v40, %v11386_v1  ;;  %v24221_v44 = vpack.c.bf16 %v16415_v31, %v16414_v30  ;;  %v16412_v40 = vld [vmem:[%s24820_s11 + $0xf8] sm:$0xff]  ;;  %v16416_v1 = vld [vmem:[%s24820_s11 + $0x110] sm:$0xff] }
 0xb1c   : > { %20134 = vmatpush3.bf16.msra.mxu0 %v24146_v58  ;;  %v24247_v41 = vpack.c.bf16 %v16412_v40, %v16411_v21  ;;  %v24304_v40 = vld [vmem:[%s25144_s20] ss:$0 sm:$0xff] }
 0xb1d   : > { %20108 = vmatprep.subr.bf16.mxu1 %v20107_v25  ;;  %20141 = vmatprep.subr.bf16.mxu0 %v21262_v60 }
 0xb1e   : > { %20110 = vmatpush3.bf16.msra.mxu1 %v20107_v25  ;;  %v16417_v25 = vld [vmem:[%s24820_s11 + $0x118] sm:$0xff] }
 0xb1f   : > { %20111 = vmatprep.subr.bf16.mxu1 %v21262_v60  ;;  %v24249_v4 = vpack.c.bf16 %v16417_v25, %v16416_v1  ;;  %v16431_v25 = vld [vmem:[%s25143_s1 + $0x60] sm:$0xff] }
 0xb21   : > { %19190 = vmatmul.mubr.msk.f32.vlgmr.msra.gmra.mrb[56].mxu1 %vm11390_vm2, %v11389_v51 }
 0xb22   : > { %20113 = vmatpush3.bf16.msra.mxu1 %v24050_v9  ;;  %19200 = vmatprep.mubr.msk.f32.mxu1 %vm21263_vm4, %v25142_v5 }
 0xb23   : > { %20114 = vmatprep.subr.bf16.mxu1 %v21262_v60 }
 0xb26   : > { %20116 = vmatpush3.bf16.msra.mxu1 %v24061_v12 }
 0xb27   : > { %20117 = vmatprep.subr.bf16.mxu1 %v21262_v60 }
 0xb29   : > { %19201 = vmatmul.mubr.msk.f32.vlgmr.msra.gmra.mrb[58].mxu1 %vm660_vm0, %v11487_v38 }
 0xb2a   : > { %20119 = vmatpush3.bf16.msra.mxu1 %v24073_v8  ;;  %19211 = vmatprep.mubr.msk.f32.mxu1 %vm21263_vm4, %v25142_v5 }
 0xb2b   : > { %20120 = vmatprep.subr.bf16.mxu1 %v21262_v60 }
 0xb2e   : > { %20122 = vmatpush3.bf16.msra.mxu1 %v24084_v28 }
 0xb2f   : > { %20123 = vmatprep.subr.bf16.mxu1 %v21262_v60 }
 0xb31   : > { %19212 = vmatmul.mubr.msk.f32.vlgmr.msra.gmra.mrb[60].mxu1 %vm660_vm0, %v11482_v42  ;;  %v12210_v42 = vld [vmem:[%s25143_s1] sm:$0xff] }
 0xb32   : > { %20125 = vmatpush3.bf16.msra.mxu1 %v24096_v45  ;;  %19222 = vmatprep.mubr.msk.f32.mxu1 %vm21263_vm4, %v25142_v5  ;;  %v20172_v52 = vpack.c.bf16 %v12211_v26, %v12210_v42  ;;  %v16433_v42 = vld [vmem:[%s25143_s1 + $0x70] sm:$0xff]  ;;  %v16434_v26 = vld [vmem:[%s25143_s1 + $0x78] sm:$0xff] }
 0xb33   : > { %20126 = vmatprep.subr.bf16.mxu1 %v21262_v60  ;;  %v20187_v37 = vpack.c.bf16 %v16434_v26, %v16433_v42 }
 0xb36   : > { %20128 = vmatpush3.bf16.msra.mxu1 %v24110_v3 }
 0xb37   : > { %20135 = vmatprep.subr.bf16.mxu1 %v21262_v60 }
 0xb39   : > { %19223 = vmatmul.mubr.msk.f32.vlgmr.msra.gmra.mrb[62].mxu1 %vm660_vm0, %v11639_v16  ;;  %v16420_v16 = vld [vmem:[%s25143_s1 + $0x20] sm:$0xff] }
 0xb3a   : > { %19244 = vmatprep.mubr.msk.f32.mxu1 %vm21263_vm4, %v25142_v5  ;;  %20137 = vmatpush3.bf16.msra.mxu1 %v24137_v46  ;;  %v20166_v18 = vpack.c.bf16 %v16421_v22, %v16420_v16 }
 0xb3b   : > { %20138 = vmatprep.subr.bf16.mxu1 %v21262_v60 }
 0xb3e   : > { %20140 = vmatpush3.bf16.msra.mxu1 %v24150_v7 }
 0xb3f   : > { %20147 = vmatprep.subr.bf16.mxu1 %v21262_v60 }
 0xbf4   : > { %v19191_v14 = vpop.f32.mrb[56].mxu1 }
 0xbf5   : > { %11479 = vst.msk [vmem:[#allocation6 + $0x19] sm:$0xf] %vm11473_vm13, %v19191_v14  ;;  %v11463_v53 = vpop.f32.mrb[57].mxu1 }
 0xbf6   : > { %11481 = vst.msk [vmem:[#allocation6 + $0x1d] sm:$0xf0] %vm11476_vm14, %v19191_v14  ;;  %11477 = vst.msk [vmem:[#allocation6 + $0xd] sm:$0xf0] %vm11476_vm14, %v11463_v53 }
 0xbf7   : > { %11474 = vst.msk [vmem:[#allocation6 + $0x9] sm:$0xf] %vm11473_vm13, %v11463_v53 }
 0xbfc   : > { %v11562_v0 = vpop.f32.mrb[58].mxu1 }
 0xbfd   : > { %v19202_v55 = vpop.f32.mrb[59].mxu1  ;;  %v24239_v51 = vld [vmem:[#allocation6 + $0x10] sm:$0xf] }
 0xbfe   : > { %v24185_v63 = vld [vmem:[#allocation6 + $0x8] sm:$0xf]  ;;  %v24261_v38 = vld [vmem:[#allocation6 + $0x11] sm:$0xf] }
 0xbff   : > { %v24187_v56 = vld [vmem:[#allocation6 + $0x9] sm:$0xf]  ;;  %19234 = vmatmul.mubr.msk.f32.vlgmr.msra.gmra.mrb[72].mxu0 %vm660_vm0, %v24185_v63  ;;  %v24263_v27 = vld [vmem:[#allocation6 + $0x12] sm:$0xf] }
 0xc00   : > { %19245 = vmatmul.mubr.msk.f32.vlgmr.msra.gmra.mrb[64].mxu1 %vm660_vm0, %v24187_v56  ;;  %20143 = vmatpush3.bf16.msra.mxu0 %v24169_v10  ;;  %v24237_v39 = vld [vmem:[#allocation6 + $0xa] sm:$0xf] }
 0xc01   : > { %20149 = vmatpush3.bf16.msra.mxu1 %v24171_v35  ;;  %20144 = vmatprep.subr.bf16.mxu0 %v21262_v60 }
 0xc02   : > { %20150 = vmatprep.subr.bf16.mxu1 %v21262_v60  ;;  %19255 = vmatprep.mubr.msk.f32.mxu0 %vm21263_vm4, %v25142_v5 }
 0xc03   : > { %19266 = vmatprep.mubr.msk.f32.mxu1 %vm21263_vm4, %v25142_v5 }
 0xc04   : > { %20146 = vmatpush3.bf16.msra.mxu0 %v24195_v43  ;;  %v11635_v59 = vpop.f32.mrb[60].mxu1 }
 0xc05   : > { %20152 = vmatpush3.bf16.msra.mxu1 %v24197_v57  ;;  %20153 = vmatprep.subr.bf16.mxu0 %v21262_v60  ;;  %v11636_v50 = vadd.f32 %v11635_v59, %v11562_v0  ;;  %v19213_v32 = vpop.f32.mrb[61].mxu1  ;;  %v16432_v59 = vld [vmem:[%s25143_s1 + $0x68] sm:$0xff] }
 0xc06   : > { %20159 = vmatprep.subr.bf16.mxu1 %v21262_v60  ;;  %v16426_v32 = vld [vmem:[%s25143_s1 + $0x40] sm:$0xff] }
 0xc07   : > { %19256 = vmatmul.mubr.msk.f32.vlgmr.msra.gmra.mrb[74].mxu0 %vm660_vm0, %v24237_v39 }
 0xc08   : > { %19267 = vmatmul.mubr.msk.f32.vlgmr.msra.gmra.mrb[66].mxu1 %vm660_vm0, %v24239_v51  ;;  %20155 = vmatpush3.bf16.msra.mxu0 %v24219_v61 }
 0xc09   : > { %20161 = vmatpush3.bf16.msra.mxu1 %v24221_v44  ;;  %20156 = vmatprep.subr.bf16.mxu0 %v21262_v60 }
 0xc0a   : > { %20162 = vmatprep.subr.bf16.mxu1 %v21262_v60  ;;  %19277 = vmatprep.mubr.msk.f32.mxu0 %vm21263_vm4, %v25142_v5 }
 0xc0b   : > { %19288 = vmatprep.mubr.msk.f32.mxu1 %vm21263_vm4, %v25142_v5 }
 0xc0c   : > { %20158 = vmatpush3.bf16.msra.mxu0 %v24247_v41  ;;  %v11714_v36 = vpop.f32.mrb[62].mxu1 }
 0xc0d   : > { %20164 = vmatpush3.bf16.msra.mxu1 %v24249_v4  ;;  %20165 = vmatprep.subr.bf16.mxu0 %v21262_v60  ;;  %v11718_v15 = vadd.f32 %v11714_v36, %v11636_v50  ;;  %v19224_v23 = vpop.f32.mrb[63].mxu1  ;;  %v16427_v36 = vld [vmem:[%s25143_s1 + $0x48] sm:$0xff] }
 0xc0e   : > { %20171 = vmatprep.subr.bf16.mxu1 %v21262_v60  ;;  %v20184_v23 = vpack.c.bf16 %v16432_v59, %v16431_v25  ;;  %v20178_v16 = vpack.c.bf16 %v16427_v36, %v16426_v32 }
 0xc0f   : > { %19278 = vmatmul.mubr.msk.f32.vlgmr.msra.gmra.mrb[76].mxu0 %vm660_vm0, %v24261_v38 }
 0xc10   : > { %19289 = vmatmul.mubr.msk.f32.vlgmr.msra.gmra.mrb[68].mxu1 %vm660_vm0, %v24263_v27  ;;  %19299 = vmatprep.mubr.msk.f32.mxu0 %vm21263_vm4, %v25142_v5 }
 0xc11   : > { %19310 = vmatprep.mubr.msk.f32.mxu1 %vm21263_vm4, %v25142_v5  ;;  %20173 = vmatpush3.bf16.msra.mxu1 %v20172_v52 }
 0xc12   : > { %20174 = vmatprep.subr.bf16.mxu1 %v21262_v60  ;;  %20167 = vmatpush3.bf16.msra.mxu0 %v20166_v18  ;;  %v16428_v18 = vld [vmem:[%s25143_s1 + $0x50] sm:$0xff] }
 0xc13   : > { %20168 = vmatprep.subr.bf16.mxu0 %v21262_v60 }
 0xc15   : > { %20176 = vmatpush3.bf16.msra.mxu1 %v20175_v20  ;;  %v20181_v20 = vpack.c.bf16 %v16429_v62, %v16428_v18 }
 0xc16   : > { %20183 = vmatprep.subr.bf16.mxu1 %v21262_v60  ;;  %20170 = vmatpush3.bf16.msra.mxu0 %v20169_v48  ;;  %v16445_v48 = vld [vmem:[%s25143_s1 + $0x80] sm:$0xff] }
 0xc17   : > { %20177 = vmatprep.subr.bf16.mxu0 %v21262_v60 }
 0xcd2   : > { %v11794_v14 = vpop.f32.mrb[72].mxu0 }
 0xcd3   : > { %v11874_v53 = vpop.f32.mrb[64].mxu1  ;;  %v11798_v11 = vadd.f32 %v11794_v14, %v11718_v15  ;;  %v19235_v49 = vpop.f32.mrb[73].mxu0  ;;  %v16446_v14 = vld [vmem:[%s25143_s1 + $0x88] sm:$0xff] }
 0xcd4   : > { %v19246_v47 = vpop.f32.mrb[65].mxu1  ;;  %v16451_v49 = vld [vmem:[%s25143_s1 + $0xa8] sm:$0xff] }
 0xcd5   : > { %v11878_v33 = vadd.f32 %v11874_v53, %v11798_v11  ;;  %v20244_v53 = vpack.c.bf16 %v16446_v14, %v16445_v48  ;;  %v16450_v11 = vld [vmem:[%s25143_s1 + $0xa0] sm:$0xff] }
 0xcd6   : > { %v20250_v47 = vpack.c.bf16 %v16451_v49, %v16450_v11 }
 0xcda   : > { %v11954_v24 = vpop.f32.mrb[74].mxu0 }
 0xcdb   : > { %v12034_v17 = vpop.f32.mrb[66].mxu1  ;;  %v11958_v13 = vadd.f32 %v11954_v24, %v11878_v33  ;;  %v19257_v2 = vpop.f32.mrb[75].mxu0  ;;  %v16447_v33 = vld [vmem:[%s25143_s1 + $0x90] sm:$0xff]  ;;  %v16448_v24 = vld [vmem:[%s25143_s1 + $0x98] sm:$0xff] }
 0xcdc   : > { %v19268_v0 = vpop.f32.mrb[67].mxu1  ;;  %v16453_v2 = vld [vmem:[%s25143_s1 + $0xb8] sm:$0xff] }
 0xcdd   : > { %v12038_v6 = vadd.f32 %v12034_v17, %v11958_v13  ;;  %v20247_v17 = vpack.c.bf16 %v16448_v24, %v16447_v33  ;;  %v16452_v13 = vld [vmem:[%s25143_s1 + $0xb0] sm:$0xff] }
 0xcde   : > { %v20253_v0 = vpack.c.bf16 %v16453_v2, %v16452_v13 }
 0xce2   : > { %v12114_v55 = vpop.f32.mrb[76].mxu0 }
 0xce3   : > { %v12194_v34 = vpop.f32.mrb[68].mxu1  ;;  %v12118_v30 = vadd.f32 %v12114_v55, %v12038_v6  ;;  %v19279_v31 = vpop.f32.mrb[77].mxu0 }
 0xce4   : > { %v19290_v21 = vpop.f32.mrb[69].mxu1 }
 0xce5   : > { %v12198_v1 = vadd.f32 %v12194_v34, %v12118_v30 }
 0xce7   : > { %v12206_v50 = vadd.f32 %v24304_v40, %v12198_v1 }
 0xce9   : > { %vm12207_vm15 = vcmp.ge.f32.partialorder %v12206_v50, 0.0  ;;  %v12208_v15 = vmul.f32 0.2, %v12206_v50 }
 0xceb   : > { %v12209_v52 = vsel %vm12207_vm15, %v12206_v50, %v12208_v15 }
 0xcec   : > { %v12220_v22 = vrot.slane %v12209_v52, 1  ;;  %19311 = vmatmul.mubr.msk.f32.vlgmr.msra.gmra.mrb[70].mxu1 %vm660_vm0, %v12209_v52  ;;  %v12449_v54 = vrot.slane %v12209_v52, 3  ;;  %v12370_v29 = vrot.slane %v12209_v52, 2 }
 0xced   : > { %20185 = vmatpush3.bf16.msra.mxu1 %v20184_v23  ;;  %19332 = vmatprep.mubr.msk.f32.mxu1 %vm21263_vm4, %v25142_v5 }
 0xcee   : > { %19300 = vmatmul.mubr.msk.f32.vlgmr.msra.gmra.mrb[78].mxu0 %vm660_vm0, %v12220_v22  ;;  %20186 = vmatprep.subr.bf16.mxu1 %v21262_v60 }
 0xcef   : > { %20179 = vmatpush3.bf16.msra.mxu0 %v20178_v16  ;;  %19321 = vmatprep.mubr.msk.f32.mxu0 %vm21263_vm4, %v25142_v5 }
 0xcf0   : > { %20180 = vmatprep.subr.bf16.mxu0 %v21262_v60 }
 0xcf1   : > { %20188 = vmatpush3.bf16.msra.mxu1 %v20187_v37 }
 0xcf2   : > { %20195 = vmatprep.subr.bf16.mxu1 %v21262_v60 }
 0xcf3   : > { %20182 = vmatpush3.bf16.msra.mxu0 %v20181_v20 }
 0xcf4   : > { %19333 = vmatmul.mubr.msk.f32.vlgmr.msra.gmra.mrb[72].mxu1 %vm660_vm0, %v12449_v54  ;;  %20189 = vmatprep.subr.bf16.mxu0 %v21262_v60 }
 0xcf5   : > { %20197 = vmatpush3.bf16.msra.mxu1 %v24073_v8  ;;  %19354 = vmatprep.mubr.msk.f32.mxu1 %vm21263_vm4, %v25142_v5 }
 0xcf6   : > { %19322 = vmatmul.mubr.msk.f32.vlgmr.msra.gmra.mrb[80].mxu0 %vm660_vm0, %v12370_v29  ;;  %20198 = vmatprep.subr.bf16.mxu1 %v21262_v60 }
 0xcf7   : > { %20191 = vmatpush3.bf16.msra.mxu0 %v24050_v9  ;;  %19343 = vmatprep.mubr.msk.f32.mxu0 %vm21263_vm4, %v25142_v5 }
 0xcf8   : > { %20192 = vmatprep.subr.bf16.mxu0 %v21262_v60 }
 0xcf9   : > { %20200 = vmatpush3.bf16.msra.mxu1 %v24084_v28 }
 0xcfa   : > { %20207 = vmatprep.subr.bf16.mxu1 %v21262_v60 }
 0xcfb   : > { %20194 = vmatpush3.bf16.msra.mxu0 %v24061_v12 }
 0xcfc   : > { %19355 = vmatmul.mubr.msk.f32.vlgmr.msra.gmra.mrb[74].mxu1 %vm660_vm0, %v24185_v63  ;;  %20201 = vmatprep.subr.bf16.mxu0 %v21262_v60  ;;  %v24402_v63 = vld [vmem:[#allocation6 + $0x19] sm:$0xf] }
 0xcfd   : > { %20209 = vmatpush3.bf16.msra.mxu1 %v24126_v19  ;;  %19376 = vmatprep.mubr.msk.f32.mxu1 %vm21263_vm4, %v25142_v5 }
 0xcfe   : > { %19344 = vmatmul.mubr.msk.f32.vlgmr.msra.gmra.mrb[82].mxu0 %vm660_vm0, %v24187_v56  ;;  %20210 = vmatprep.subr.bf16.mxu1 %v21262_v60  ;;  %v24407_v56 = vld [vmem:[#allocation6 + $0x18] sm:$0xf] }
 0xcff   : > { %20203 = vmatpush3.bf16.msra.mxu0 %v24096_v45  ;;  %19365 = vmatprep.mubr.msk.f32.mxu0 %vm21263_vm4, %v25142_v5 }
 0xd00   : > { %20204 = vmatprep.subr.bf16.mxu0 %v21262_v60 }
 0xd01   : > { %20212 = vmatpush3.bf16.msra.mxu1 %v24146_v58 }
 0xd02   : > { %20219 = vmatprep.subr.bf16.mxu1 %v21262_v60 }
 0xd03   : > { %20206 = vmatpush3.bf16.msra.mxu0 %v24110_v3 }
 0xd04   : > { %19377 = vmatmul.mubr.msk.f32.vlgmr.msra.gmra.mrb[76].mxu1 %vm660_vm0, %v24239_v51  ;;  %20213 = vmatprep.subr.bf16.mxu0 %v21262_v60 }
 0xd05   : > { %20221 = vmatpush3.bf16.msra.mxu1 %v24169_v10  ;;  %19398 = vmatprep.mubr.msk.f32.mxu1 %vm21263_vm4, %v25142_v5 }
 0xd06   : > { %19366 = vmatmul.mubr.msk.f32.vlgmr.msra.gmra.mrb[84].mxu0 %vm660_vm0, %v24237_v39  ;;  %20222 = vmatprep.subr.bf16.mxu1 %v21262_v60  ;;  %v24419_v39 = vld [vmem:[#allocation6 + $0x1a] sm:$0xf] }
 0xd07   : > { %20215 = vmatpush3.bf16.msra.mxu0 %v24137_v46  ;;  %19387 = vmatprep.mubr.msk.f32.mxu0 %vm21263_vm4, %v25142_v5 }
 0xd08   : > { %20216 = vmatprep.subr.bf16.mxu0 %v21262_v60 }
 0xd09   : > { %20224 = vmatpush3.bf16.msra.mxu1 %v24195_v43 }
 0xd0a   : > { %20231 = vmatprep.subr.bf16.mxu1 %v21262_v60 }
 0xd0b   : > { %20218 = vmatpush3.bf16.msra.mxu0 %v24150_v7 }
 0xd0c   : > { %19399 = vmatmul.mubr.msk.f32.vlgmr.msra.gmra.mrb[78].mxu1 %vm660_vm0, %v24263_v27  ;;  %20225 = vmatprep.subr.bf16.mxu0 %v21262_v60 }
 0xd0d   : > { %20233 = vmatpush3.bf16.msra.mxu1 %v24219_v61  ;;  %19420 = vmatprep.mubr.msk.f32.mxu1 %vm21263_vm4, %v25142_v5 }
 0xd0e   : > { %19388 = vmatmul.mubr.msk.f32.vlgmr.msra.gmra.mrb[86].mxu0 %vm660_vm0, %v24261_v38  ;;  %20234 = vmatprep.subr.bf16.mxu1 %v21262_v60 }
 0xd0f   : > { %20227 = vmatpush3.bf16.msra.mxu0 %v24171_v35  ;;  %19409 = vmatprep.mubr.msk.f32.mxu0 %vm21263_vm4, %v25142_v5 }
 0xd10   : > { %20228 = vmatprep.subr.bf16.mxu0 %v21262_v60 }
 0xd11   : > { %20236 = vmatpush3.bf16.msra.mxu1 %v24247_v41 }
 0xd12   : > { %20243 = vmatprep.subr.bf16.mxu1 %v21262_v60 }
 0xd13   : > { %20230 = vmatpush3.bf16.msra.mxu0 %v24197_v57 }
 0xd14   : > { %19421 = vmatmul.mubr.msk.f32.vlgmr.msra.gmra.mrb[80].mxu1 %vm660_vm0, %v24402_v63  ;;  %20237 = vmatprep.subr.bf16.mxu0 %v21262_v60 }
 0xd15   : > { %19442 = vmatprep.mubr.msk.f32.mxu1 %vm21263_vm4, %v25142_v5  ;;  %20245 = vmatpush3.bf16.msra.mxu1 %v20244_v53 }
 0xd16   : > { %19410 = vmatmul.mubr.msk.f32.vlgmr.msra.gmra.mrb[88].mxu0 %vm660_vm0, %v24407_v56  ;;  %20246 = vmatprep.subr.bf16.mxu1 %v21262_v60 }
 0xd17   : > { %20239 = vmatpush3.bf16.msra.mxu0 %v24221_v44  ;;  %19431 = vmatprep.mubr.msk.f32.mxu0 %vm21263_vm4, %v25142_v5 }
 0xd18   : > { %20240 = vmatprep.subr.bf16.mxu0 %v21262_v60 }
 0xd19   : > { %20248 = vmatpush3.bf16.msra.mxu1 %v20247_v17 }
 0xd1a   : > { %20255 = vmatprep.subr.bf16.mxu1 %v21262_v60 }
 0xd1b   : > { %20242 = vmatpush3.bf16.msra.mxu0 %v24249_v4 }
 0xd1c   : > { %20249 = vmatprep.subr.bf16.mxu0 %v21262_v60 }
 0xd1e   : > { %19432 = vmatmul.mubr.msk.f32.vlgmr.msra.gmra.mrb[90].mxu0 %vm660_vm0, %v24419_v39 }
 0xd1f   : > { %19453 = vmatprep.mubr.msk.f32.mxu0 %vm21263_vm4, %v25142_v5  ;;  %20251 = vmatpush3.bf16.msra.mxu0 %v20250_v47 }
 0xd20   : > { %20252 = vmatprep.subr.bf16.mxu0 %v21262_v60 }
 0xd23   : > { %20254 = vmatpush3.bf16.msra.mxu0 %v20253_v0 }
 0xd24   : > { %20261 = vmatprep.subr.bf16.mxu0 %v21262_v60 }
 0xdbf   : > { %v12361_v6 = vpop.f32.mrb[70].mxu1 }
 0xdc0   : > { %v19312_v55 = vpop.f32.mrb[71].mxu1 }
 0xdc1   : > { %v12289_v34 = vpop.f32.mrb[78].mxu0  ;;  %v16456_v55 = vld [vmem:[%s25143_s1 + $0xc8] sm:$0xff] }
 0xdc2   : > { %v12362_v30 = vadd.f32 %v12361_v6, %v12289_v34  ;;  %v19301_v31 = vpop.f32.mrb[79].mxu0  ;;  %v16455_v6 = vld [vmem:[%s25143_s1 + $0xc0] sm:$0xff] }
 0xdc3   : > { %v16461_v31 = vld [vmem:[%s25143_s1 + $0xe8] sm:$0xff] }
 0xdc7   : > { %v12518_v21 = vpop.f32.mrb[72].mxu1 }
 0xdc8   : > { %v19334_v1 = vpop.f32.mrb[73].mxu1 }
 0xdc9   : > { %v12439_v25 = vpop.f32.mrb[80].mxu0  ;;  %v20256_v1 = vpack.c.bf16 %v16456_v55, %v16455_v6 }
 0xdca   : > { %v12443_v59 = vadd.f32 %v12439_v25, %v12362_v30  ;;  %v19323_v50 = vpop.f32.mrb[81].mxu0  ;;  %v16460_v30 = vld [vmem:[%s25143_s1 + $0xe0] sm:$0xff]  ;;  %v16457_v25 = vld [vmem:[%s25143_s1 + $0xd0] sm:$0xff] }
 0xdcc   : > { %v24453_v32 = vadd.f32 %v12518_v21, %v12443_v59  ;;  %v16458_v59 = vld [vmem:[%s25143_s1 + $0xd8] sm:$0xff] }
 0xdcf   : > { %v12659_v36 = vpop.f32.mrb[74].mxu1 }
 0xdd0   : > { %v19356_v15 = vpop.f32.mrb[75].mxu1 }
 0xdd1   : > { %v12589_v23 = vpop.f32.mrb[82].mxu0 }
 0xdd2   : > { %v12660_v42 = vadd.f32 %v12659_v36, %v12589_v23  ;;  %v19345_v26 = vpop.f32.mrb[83].mxu0  ;;  %v20262_v36 = vpack.c.bf16 %v16461_v31, %v16460_v30  ;;  %v16462_v23 = vld [vmem:[%s25143_s1 + $0xf0] sm:$0xff] }
 0xdd3   : > { %v20259_v26 = vpack.c.bf16 %v16458_v59, %v16457_v25 }
 0xdd7   : > { %v12800_v52 = vpop.f32.mrb[76].mxu1 }
 0xdd8   : > { %v19378_v16 = vpop.f32.mrb[77].mxu1 }
 0xdd9   : > { %v12729_v22 = vpop.f32.mrb[84].mxu0 }
 0xdda   : > { %v12733_v18 = vadd.f32 %v12729_v22, %v12660_v42  ;;  %v19367_v62 = vpop.f32.mrb[85].mxu0  ;;  %v16463_v42 = vld [vmem:[%s25143_s1 + $0xf8] sm:$0xff] }
 0xddb   : > { %v16475_v62 = vld [vmem:[%s25143_s1 + $0x108] sm:$0xff] }
 0xddc   : > { %v12804_v37 = vadd.f32 %v12800_v52, %v12733_v18  ;;  %v20265_v52 = vpack.c.bf16 %v16463_v42, %v16462_v23  ;;  %v16474_v18 = vld [vmem:[%s25143_s1 + $0x100] sm:$0xff] }
 0xddf   : > { %v12942_v20 = vpop.f32.mrb[78].mxu1 }
 0xde0   : > { %v19400_v54 = vpop.f32.mrb[79].mxu1 }
 0xde1   : > { %v12871_v29 = vpop.f32.mrb[86].mxu0  ;;  %v16480_v54 = vld [vmem:[%s25143_s1 + $0x128] sm:$0xff] }
 0xde2   : > { %v12875_v48 = vadd.f32 %v12871_v29, %v12804_v37  ;;  %v19389_v14 = vpop.f32.mrb[87].mxu0  ;;  %v20322_v37 = vpack.c.bf16 %v16475_v62, %v16474_v18 }
 0xde3   : > { %v16477_v14 = vld [vmem:[%s25143_s1 + $0x118] sm:$0xff] }
 0xde4   : > { %v12946_v53 = vadd.f32 %v12942_v20, %v12875_v48  ;;  %v16479_v20 = vld [vmem:[%s25143_s1 + $0x120] sm:$0xff]  ;;  %v16476_v48 = vld [vmem:[%s25143_s1 + $0x110] sm:$0xff] }
 0xde5   : > { %v20328_v29 = vpack.c.bf16 %v16480_v54, %v16479_v20 }
 0xde7   : > { %v13092_v11 = vpop.f32.mrb[80].mxu1 }
 0xde8   : > { %v19422_v49 = vpop.f32.mrb[81].mxu1 }
 0xde9   : > { %v13017_v47 = vpop.f32.mrb[88].mxu0  ;;  %v16482_v49 = vld [vmem:[%s25143_s1 + $0x138] sm:$0xff] }
 0xdea   : > { %v13021_v33 = vadd.f32 %v13017_v47, %v12946_v53  ;;  %v19411_v24 = vpop.f32.mrb[89].mxu0  ;;  %v20325_v53 = vpack.c.bf16 %v16477_v14, %v16476_v48 }
 0xdec   : > { %v13096_v17 = vadd.f32 %v13092_v11, %v13021_v33  ;;  %v16481_v11 = vld [vmem:[%s25143_s1 + $0x130] sm:$0xff] }
 0xded   : > { %v20331_v47 = vpack.c.bf16 %v16482_v49, %v16481_v11 }
 0xdf1   : > { %v13167_v13 = vpop.f32.mrb[90].mxu0 }
 0xdf2   : > { %v13171_v2 = vadd.f32 %v13167_v13, %v13096_v17  ;;  %v19433_v0 = vpop.f32.mrb[91].mxu0 }
 0xdf4   : > { %v13172_v34 = vadd.f32 %v24304_v40, %v13171_v2 }
 0xdf6   : > { %vm13173_vm1 = vcmp.ge.f32.partialorder %v13172_v34, 0.0  ;;  %v13174_v21 = vmul.f32 0.2, %v13172_v34 }
 0xdf8   : > { %v13175_v50 = vsel %vm13173_vm1, %v13172_v34, %v13174_v21 }
 0xdf9   : > { %19443 = vmatmul.mubr.msk.f32.vlgmr.msra.gmra.mrb[82].mxu1 %vm660_vm0, %v13175_v50  ;;  %v13260_v15 = vrot.slane %v13175_v50, 1  ;;  %v13339_v16 = vrot.slane %v13175_v50, 2  ;;  %v13418_v22 = vrot.slane %v13175_v50, 3 }
 0xdfa   : > { %20257 = vmatpush3.bf16.msra.mxu1 %v20256_v1  ;;  %19464 = vmatprep.mubr.msk.f32.mxu1 %vm21263_vm4, %v25142_v5 }
 0xdfb   : > { %19454 = vmatmul.mubr.msk.f32.vlgmr.msra.gmra.mrb[92].mxu0 %vm660_vm0, %v13260_v15  ;;  %20258 = vmatprep.subr.bf16.mxu1 %v21262_v60 }
 0xdfc   : > { %20263 = vmatpush3.bf16.msra.mxu0 %v20262_v36  ;;  %19475 = vmatprep.mubr.msk.f32.mxu0 %vm21263_vm4, %v25142_v5 }
 0xdfd   : > { %20264 = vmatprep.subr.bf16.mxu0 %v21262_v60 }
 0xdfe   : > { %20260 = vmatpush3.bf16.msra.mxu1 %v20259_v26 }
 0xdff   : > { %20267 = vmatprep.subr.bf16.mxu1 %v21262_v60 }
 0xe00   : > { %20266 = vmatpush3.bf16.msra.mxu0 %v20265_v52 }
 0xe01   : > { %19465 = vmatmul.mubr.msk.f32.vlgmr.msra.gmra.mrb[84].mxu1 %vm660_vm0, %v13339_v16  ;;  %20273 = vmatprep.subr.bf16.mxu0 %v21262_v60 }
 0xe02   : > { %20269 = vmatpush3.bf16.msra.mxu1 %v24050_v9  ;;  %19486 = vmatprep.mubr.msk.f32.mxu1 %vm21263_vm4, %v25142_v5 }
 0xe03   : > { %19476 = vmatmul.mubr.msk.f32.vlgmr.msra.gmra.mrb[94].mxu0 %vm660_vm0, %v13418_v22  ;;  %20270 = vmatprep.subr.bf16.mxu1 %v21262_v60 }
 0xe04   : > { %20275 = vmatpush3.bf16.msra.mxu0 %v24073_v8  ;;  %19497 = vmatprep.mubr.msk.f32.mxu0 %vm21263_vm4, %v25142_v5 }
 0xe05   : > { %20276 = vmatprep.subr.bf16.mxu0 %v21262_v60 }
 0xe06   : > { %20272 = vmatpush3.bf16.msra.mxu1 %v24061_v12 }
 0xe07   : > { %20279 = vmatprep.subr.bf16.mxu1 %v21262_v60 }
 0xe08   : > { %20278 = vmatpush3.bf16.msra.mxu0 %v24084_v28 }
 0xe09   : > { %19487 = vmatmul.mubr.msk.f32.vlgmr.msra.gmra.mrb[86].mxu1 %vm660_vm0, %v24261_v38  ;;  %20285 = vmatprep.subr.bf16.mxu0 %v21262_v60  ;;  %v24557_v38 = vld [vmem:[#allocation6 + $0x21] sm:$0xf] }
 0xe0a   : > { %20281 = vmatpush3.bf16.msra.mxu1 %v24096_v45  ;;  %19508 = vmatprep.mubr.msk.f32.mxu1 %vm21263_vm4, %v25142_v5 }
 0xe0b   : > { %19498 = vmatmul.mubr.msk.f32.vlgmr.msra.gmra.mrb[96].mxu0 %vm660_vm0, %v24239_v51  ;;  %20282 = vmatprep.subr.bf16.mxu1 %v21262_v60  ;;  %v24551_v51 = vld [vmem:[#allocation6 + $0x20] sm:$0xf] }
 0xe0c   : > { %20287 = vmatpush3.bf16.msra.mxu0 %v24126_v19  ;;  %19519 = vmatprep.mubr.msk.f32.mxu0 %vm21263_vm4, %v25142_v5 }
 0xe0d   : > { %20288 = vmatprep.subr.bf16.mxu0 %v21262_v60 }
 0xe0e   : > { %20284 = vmatpush3.bf16.msra.mxu1 %v24110_v3 }
 0xe0f   : > { %20291 = vmatprep.subr.bf16.mxu1 %v21262_v60 }
 0xe10   : > { %20290 = vmatpush3.bf16.msra.mxu0 %v24146_v58 }
 0xe11   : > { %19509 = vmatmul.mubr.msk.f32.vlgmr.msra.gmra.mrb[88].mxu1 %vm660_vm0, %v24263_v27  ;;  %20297 = vmatprep.subr.bf16.mxu0 %v21262_v60  ;;  %v24568_v27 = vld [vmem:[#allocation6 + $0x22] sm:$0xf] }
 0xe12   : > { %20293 = vmatpush3.bf16.msra.mxu1 %v24137_v46  ;;  %19530 = vmatprep.mubr.msk.f32.mxu1 %vm21263_vm4, %v25142_v5 }
 0xe13   : > { %19520 = vmatmul.mubr.msk.f32.vlgmr.msra.gmra.mrb[98].mxu0 %vm660_vm0, %v24407_v56  ;;  %20294 = vmatprep.subr.bf16.mxu1 %v21262_v60 }
 0xe14   : > { %20299 = vmatpush3.bf16.msra.mxu0 %v24169_v10  ;;  %19541 = vmatprep.mubr.msk.f32.mxu0 %vm21263_vm4, %v25142_v5 }
 0xe15   : > { %20300 = vmatprep.subr.bf16.mxu0 %v21262_v60 }
 0xe16   : > { %20296 = vmatpush3.bf16.msra.mxu1 %v24150_v7 }
 0xe17   : > { %20303 = vmatprep.subr.bf16.mxu1 %v21262_v60 }
 0xe18   : > { %20302 = vmatpush3.bf16.msra.mxu0 %v24195_v43 }
 0xe19   : > { %19531 = vmatmul.mubr.msk.f32.vlgmr.msra.gmra.mrb[90].mxu1 %vm660_vm0, %v24402_v63  ;;  %20309 = vmatprep.subr.bf16.mxu0 %v21262_v60 }
 0xe1a   : > { %20305 = vmatpush3.bf16.msra.mxu1 %v24171_v35  ;;  %19552 = vmatprep.mubr.msk.f32.mxu1 %vm21263_vm4, %v25142_v5 }
 0xe1b   : > { %19542 = vmatmul.mubr.msk.f32.vlgmr.msra.gmra.mrb[100].mxu0 %vm660_vm0, %v24419_v39  ;;  %20306 = vmatprep.subr.bf16.mxu1 %v21262_v60 }
 0xe1c   : > { %20311 = vmatpush3.bf16.msra.mxu0 %v24219_v61  ;;  %19563 = vmatprep.mubr.msk.f32.mxu0 %vm21263_vm4, %v25142_v5 }
 0xe1d   : > { %20312 = vmatprep.subr.bf16.mxu0 %v21262_v60 }
 0xe1e   : > { %20308 = vmatpush3.bf16.msra.mxu1 %v24197_v57 }
 0xe1f   : > { %20315 = vmatprep.subr.bf16.mxu1 %v21262_v60 }
 0xe20   : > { %20314 = vmatpush3.bf16.msra.mxu0 %v24247_v41 }
 0xe21   : > { %19553 = vmatmul.mubr.msk.f32.vlgmr.msra.gmra.mrb[92].mxu1 %vm660_vm0, %v24551_v51  ;;  %20321 = vmatprep.subr.bf16.mxu0 %v21262_v60 }
 0xe22   : > { %20317 = vmatpush3.bf16.msra.mxu1 %v24221_v44  ;;  %19574 = vmatprep.mubr.msk.f32.mxu1 %vm21263_vm4, %v25142_v5 }
 0xe23   : > { %19564 = vmatmul.mubr.msk.f32.vlgmr.msra.gmra.mrb[102].mxu0 %vm660_vm0, %v24557_v38  ;;  %20318 = vmatprep.subr.bf16.mxu1 %v21262_v60 }
 0xe24   : > { %19585 = vmatprep.mubr.msk.f32.mxu0 %vm21263_vm4, %v25142_v5  ;;  %20323 = vmatpush3.bf16.msra.mxu0 %v20322_v37 }
 0xe25   : > { %20324 = vmatprep.subr.bf16.mxu0 %v21262_v60 }
 0xe26   : > { %20320 = vmatpush3.bf16.msra.mxu1 %v24249_v4 }
 0xe27   : > { %20327 = vmatprep.subr.bf16.mxu1 %v21262_v60 }
 0xe28   : > { %20326 = vmatpush3.bf16.msra.mxu0 %v20325_v53 }
 0xe29   : > { %19575 = vmatmul.mubr.msk.f32.vlgmr.msra.gmra.mrb[94].mxu1 %vm660_vm0, %v24568_v27  ;;  %20333 = vmatprep.subr.bf16.mxu0 %v21262_v60 }
 0xe2a   : > { %19596 = vmatprep.mubr.msk.f32.mxu1 %vm21263_vm4, %v25142_v5  ;;  %20329 = vmatpush3.bf16.msra.mxu1 %v20328_v29 }
 0xe2b   : > { %20330 = vmatprep.subr.bf16.mxu1 %v21262_v60 }
 0xe2e   : > { %20332 = vmatpush3.bf16.msra.mxu1 %v20331_v47 }
 0xe2f   : > { %20339 = vmatprep.subr.bf16.mxu1 %v21262_v60 }
 0xecc   : > { %v13250_v33 = vpop.f32.mrb[82].mxu1 }
 0xecd   : > { %v13254_v24 = vadd.f32 %v13250_v33, %v24453_v32  ;;  %v19444_v17 = vpop.f32.mrb[83].mxu1 }
 0xece   : > { %v13329_v13 = vpop.f32.mrb[92].mxu0  ;;  %v16485_v17 = vld [vmem:[%s25143_s1 + $0x148] sm:$0xff] }
 0xecf   : > { %v13333_v2 = vadd.f32 %v13329_v13, %v13254_v24  ;;  %v19455_v0 = vpop.f32.mrb[93].mxu0  ;;  %v16484_v24 = vld [vmem:[%s25143_s1 + $0x140] sm:$0xff] }
 0xed0   : > { %v16490_v0 = vld [vmem:[%s25143_s1 + $0x168] sm:$0xff] }
 0xed4   : > { %v13408_v6 = vpop.f32.mrb[84].mxu1 }
 0xed5   : > { %v13412_v55 = vadd.f32 %v13408_v6, %v13333_v2  ;;  %v19466_v34 = vpop.f32.mrb[85].mxu1  ;;  %v16489_v2 = vld [vmem:[%s25143_s1 + $0x160] sm:$0xff] }
 0xed6   : > { %v13487_v30 = vpop.f32.mrb[94].mxu0  ;;  %v16486_v34 = vld [vmem:[%s25143_s1 + $0x150] sm:$0xff] }
 0xed7   : > { %v24603_v31 = vadd.f32 %v13487_v30, %v13412_v55  ;;  %v19477_v21 = vpop.f32.mrb[95].mxu0  ;;  %v20334_v55 = vpack.c.bf16 %v16485_v17, %v16484_v24  ;;  %v16487_v30 = vld [vmem:[%s25143_s1 + $0x158] sm:$0xff] }
 0xedc   : > { %v13558_v1 = vpop.f32.mrb[86].mxu1 }
 0xedd   : > { %v19488_v25 = vpop.f32.mrb[87].mxu1 }
 0xede   : > { %v13628_v59 = vpop.f32.mrb[96].mxu0 }
 0xedf   : > { %v13629_v50 = vadd.f32 %v13628_v59, %v13558_v1  ;;  %v19499_v36 = vpop.f32.mrb[97].mxu0  ;;  %v20340_v1 = vpack.c.bf16 %v16490_v0, %v16489_v2  ;;  %v16491_v59 = vld [vmem:[%s25143_s1 + $0x170] sm:$0xff] }
 0xee0   : > { %v20337_v36 = vpack.c.bf16 %v16487_v30, %v16486_v34 }
 0xee4   : > { %v13698_v15 = vpop.f32.mrb[88].mxu1 }
 0xee5   : > { %v13702_v23 = vadd.f32 %v13698_v15, %v13629_v50  ;;  %v19510_v42 = vpop.f32.mrb[89].mxu1  ;;  %v16492_v50 = vld [vmem:[%s25143_s1 + $0x178] sm:$0xff] }
 0xee6   : > { %v13769_v32 = vpop.f32.mrb[98].mxu0  ;;  %v20343_v15 = vpack.c.bf16 %v16492_v50, %v16491_v59  ;;  %v16518_v50 = vld [vmem:[%s25143_s1 + $0x1e0] sm:$0xff] }
 0xee7   : > { %v13773_v26 = vadd.f32 %v13769_v32, %v13702_v23  ;;  %v19521_v52 = vpop.f32.mrb[99].mxu0 }
 0xeec   : > { %v13840_v16 = vpop.f32.mrb[90].mxu1 }
 0xeed   : > { %v13844_v22 = vadd.f32 %v13840_v16, %v13773_v26  ;;  %v19532_v18 = vpop.f32.mrb[91].mxu1 }
 0xeee   : > { %v13911_v62 = vpop.f32.mrb[100].mxu0 }
 0xeef   : > { %v13915_v37 = vadd.f32 %v13911_v62, %v13844_v22  ;;  %v19543_v20 = vpop.f32.mrb[101].mxu0 }
 0xef4   : > { %v13986_v54 = vpop.f32.mrb[92].mxu1 }
 0xef5   : > { %v13990_v29 = vadd.f32 %v13986_v54, %v13915_v37  ;;  %v19554_v48 = vpop.f32.mrb[93].mxu1 }
 0xef6   : > { %v14061_v14 = vpop.f32.mrb[102].mxu0 }
 0xef7   : > { %v14065_v53 = vadd.f32 %v14061_v14, %v13990_v29  ;;  %v19565_v11 = vpop.f32.mrb[103].mxu0 }
 0xefc   : > { %v14136_v49 = vpop.f32.mrb[94].mxu1 }
 0xefd   : > { %v14140_v47 = vadd.f32 %v14136_v49, %v14065_v53  ;;  %v19576_v33 = vpop.f32.mrb[95].mxu1 }
 0xeff   : > { %v14141_v13 = vadd.f32 %v24304_v40, %v14140_v47 }
 0xf01   : > { %vm14142_vm2 = vcmp.ge.f32.partialorder %v14141_v13, 0.0  ;;  %v14143_v6 = vmul.f32 0.2, %v14141_v13 }
 0xf03   : > { %v14144_v21 = vsel %vm14142_vm2, %v14141_v13, %v14143_v6 }
 0xf04   : > { %19586 = vmatmul.mubr.msk.f32.vlgmr.msra.gmra.mrb[104].mxu0 %vm660_vm0, %v14144_v21  ;;  %v14229_v25 = vrot.slane %v14144_v21, 1  ;;  %v14308_v23 = vrot.slane %v14144_v21, 2  ;;  %v14387_v42 = vrot.slane %v14144_v21, 3 }
 0xf05   : > { %20335 = vmatpush3.bf16.msra.mxu0 %v20334_v55  ;;  %19607 = vmatprep.mubr.msk.f32.mxu0 %vm21263_vm4, %v25142_v5 }
 0xf06   : > { %19597 = vmatmul.mubr.msk.f32.vlgmr.msra.gmra.mrb[96].mxu1 %vm660_vm0, %v14229_v25  ;;  %20336 = vmatprep.subr.bf16.mxu0 %v21262_v60  ;;  %v16514_v25 = vld [vmem:[%s25143_s1 + $0x1c8] sm:$0xff] }
 0xf07   : > { %20341 = vmatpush3.bf16.msra.mxu1 %v20340_v1  ;;  %19618 = vmatprep.mubr.msk.f32.mxu1 %vm21263_vm4, %v25142_v5  ;;  %v16513_v1 = vld [vmem:[%s25143_s1 + $0x1c0] sm:$0xff] }
 0xf08   : > { %20342 = vmatprep.subr.bf16.mxu1 %v21262_v60 }
 0xf09   : > { %20338 = vmatpush3.bf16.msra.mxu0 %v20337_v36  ;;  %v16519_v36 = vld [vmem:[%s25143_s1 + $0x1e8] sm:$0xff] }
 0xf0a   : > { %20345 = vmatprep.subr.bf16.mxu0 %v21262_v60 }
 0xf0b   : > { %20344 = vmatpush3.bf16.msra.mxu1 %v20343_v15 }
 0xf0c   : > { %19608 = vmatmul.mubr.msk.f32.vlgmr.msra.gmra.mrb[106].mxu0 %vm660_vm0, %v14308_v23  ;;  %20351 = vmatprep.subr.bf16.mxu1 %v21262_v60  ;;  %v20412_v23 = vpack.c.bf16 %v16514_v25, %v16513_v1 }
 0xf0d   : > { %20347 = vmatpush3.bf16.msra.mxu0 %v24050_v9  ;;  %19629 = vmatprep.mubr.msk.f32.mxu0 %vm21263_vm4, %v25142_v5  ;;  %v14886_v9 = vld [vmem:[#allocation6 + $0x28] sm:$0xf] }
 0xf0e   : > { %19619 = vmatmul.mubr.msk.f32.vlgmr.msra.gmra.mrb[98].mxu1 %vm660_vm0, %v14387_v42  ;;  %20348 = vmatprep.subr.bf16.mxu0 %v21262_v60  ;;  %v16515_v42 = vld [vmem:[%s25143_s1 + $0x1d0] sm:$0xff] }
 0xf0f   : > { %20353 = vmatpush3.bf16.msra.mxu1 %v24073_v8  ;;  %19640 = vmatprep.mubr.msk.f32.mxu1 %vm21263_vm4, %v25142_v5  ;;  %v15036_v8 = vld [vmem:[#allocation6 + $0x2a] sm:$0xf] }
 0xf10   : > { %20354 = vmatprep.subr.bf16.mxu1 %v21262_v60 }
 0xf11   : > { %20350 = vmatpush3.bf16.msra.mxu0 %v24061_v12  ;;  %v14961_v12 = vld [vmem:[#allocation6 + $0x29] sm:$0xf] }
 0xf12   : > { %20357 = vmatprep.subr.bf16.mxu0 %v21262_v60 }
 0xf13   : > { %20356 = vmatpush3.bf16.msra.mxu1 %v24084_v28  ;;  %v16503_v28 = vld [vmem:[%s25143_s1 + $0x180] sm:$0xff] }
 0xf14   : > { %19630 = vmatmul.mubr.msk.f32.vlgmr.msra.gmra.mrb[108].mxu0 %vm660_vm0, %v24402_v63  ;;  %20363 = vmatprep.subr.bf16.mxu1 %v21262_v60 }
 0xf15   : > { %20359 = vmatpush3.bf16.msra.mxu0 %v24096_v45  ;;  %19651 = vmatprep.mubr.msk.f32.mxu0 %vm21263_vm4, %v25142_v5  ;;  %v16504_v45 = vld [vmem:[%s25143_s1 + $0x188] sm:$0xff] }
 0xf16   : > { %19641 = vmatmul.mubr.msk.f32.vlgmr.msra.gmra.mrb[100].mxu1 %vm660_vm0, %v24407_v56  ;;  %20360 = vmatprep.subr.bf16.mxu0 %v21262_v60 }
 0xf17   : > { %20365 = vmatpush3.bf16.msra.mxu1 %v24126_v19  ;;  %19662 = vmatprep.mubr.msk.f32.mxu1 %vm21263_vm4, %v25142_v5  ;;  %v16508_v19 = vld [vmem:[%s25143_s1 + $0x1a0] sm:$0xff] }
 0xf18   : > { %20366 = vmatprep.subr.bf16.mxu1 %v21262_v60 }
 0xf19   : > { %20362 = vmatpush3.bf16.msra.mxu0 %v24110_v3  ;;  %v20400_v3 = vpack.c.bf16 %v16504_v45, %v16503_v28  ;;  %v16520_v28 = vld [vmem:[%s25143_s1 + $0x1f0] sm:$0xff]  ;;  %v16521_v45 = vld [vmem:[%s25143_s1 + $0x1f8] sm:$0xff] }
 0xf1a   : > { %20369 = vmatprep.subr.bf16.mxu0 %v21262_v60 }
 0xf1b   : > { %20368 = vmatpush3.bf16.msra.mxu1 %v24146_v58 }
 0xf1c   : > { %19652 = vmatmul.mubr.msk.f32.vlgmr.msra.gmra.mrb[110].mxu0 %vm660_vm0, %v24419_v39  ;;  %20375 = vmatprep.subr.bf16.mxu1 %v21262_v60 }
 0xf1d   : > { %20371 = vmatpush3.bf16.msra.mxu0 %v24137_v46  ;;  %19673 = vmatprep.mubr.msk.f32.mxu0 %vm21263_vm4, %v25142_v5  ;;  %v16509_v46 = vld [vmem:[%s25143_s1 + $0x1a8] sm:$0xff] }
 0xf1e   : > { %19663 = vmatmul.mubr.msk.f32.vlgmr.msra.gmra.mrb[102].mxu1 %vm660_vm0, %v24551_v51  ;;  %20372 = vmatprep.subr.bf16.mxu0 %v21262_v60  ;;  %v20406_v58 = vpack.c.bf16 %v16509_v46, %v16508_v19  ;;  %v20421_v19 = vpack.c.bf16 %v16521_v45, %v16520_v28 }
 0xf1f   : > { %20377 = vmatpush3.bf16.msra.mxu1 %v24169_v10  ;;  %19684 = vmatprep.mubr.msk.f32.mxu1 %vm21263_vm4, %v25142_v5  ;;  %v16506_v10 = vld [vmem:[%s25143_s1 + $0x198] sm:$0xff] }
 0xf20   : > { %20378 = vmatprep.subr.bf16.mxu1 %v21262_v60 }
 0xf21   : > { %20374 = vmatpush3.bf16.msra.mxu0 %v24150_v7  ;;  %v16505_v7 = vld [vmem:[%s25143_s1 + $0x190] sm:$0xff] }
 0xf22   : > { %20381 = vmatprep.subr.bf16.mxu0 %v21262_v60 }
 0xf23   : > { %20380 = vmatpush3.bf16.msra.mxu1 %v24195_v43  ;;  %v16510_v43 = vld [vmem:[%s25143_s1 + $0x1b0] sm:$0xff] }
 0xf24   : > { %19674 = vmatmul.mubr.msk.f32.vlgmr.msra.gmra.mrb[112].mxu0 %vm660_vm0, %v24557_v38  ;;  %20387 = vmatprep.subr.bf16.mxu1 %v21262_v60 }
 0xf25   : > { %20383 = vmatpush3.bf16.msra.mxu0 %v24171_v35  ;;  %19695 = vmatprep.mubr.msk.f32.mxu0 %vm21263_vm4, %v25142_v5  ;;  %v20403_v35 = vpack.c.bf16 %v16506_v10, %v16505_v7  ;;  %v15436_v7 = vld [vmem:[%s25145_s27] sm:$0xff]  ;;  %v15437_v10 = vld [vmem:[%s25145_s27 + $0x8] sm:$0xff] }
 0xf26   : > { %19685 = vmatmul.mubr.msk.f32.vlgmr.msra.gmra.mrb[104].mxu1 %vm660_vm0, %v24568_v27  ;;  %20384 = vmatprep.subr.bf16.mxu0 %v21262_v60 }
 0xf27   : > { %20389 = vmatpush3.bf16.msra.mxu1 %v24219_v61  ;;  %19706 = vmatprep.mubr.msk.f32.mxu1 %vm21263_vm4, %v25142_v5 }
 0xf28   : > { %20390 = vmatprep.subr.bf16.mxu1 %v21262_v60 }
 0xf29   : > { %20386 = vmatpush3.bf16.msra.mxu0 %v24197_v57  ;;  %v16511_v57 = vld [vmem:[%s25143_s1 + $0x1b8] sm:$0xff] }
 0xf2a   : > { %20393 = vmatprep.subr.bf16.mxu0 %v21262_v60  ;;  %v20409_v61 = vpack.c.bf16 %v16511_v57, %v16510_v43  ;;  %v15438_v43 = vld [vmem:[%s25145_s27 + $0x10] sm:$0xff] }
 0xf2b   : > { %20392 = vmatpush3.bf16.msra.mxu1 %v24247_v41 }
 0xf2c   : > { %19696 = vmatmul.mubr.msk.f32.vlgmr.msra.gmra.mrb[114].mxu0 %vm660_vm0, %v14886_v9  ;;  %20399 = vmatprep.subr.bf16.mxu1 %v21262_v60  ;;  %v16516_v9 = vld [vmem:[%s25143_s1 + $0x1d8] sm:$0xff] }
 0xf2d   : > { %20395 = vmatpush3.bf16.msra.mxu0 %v24221_v44  ;;  %19717 = vmatprep.mubr.msk.f32.mxu0 %vm21263_vm4, %v25142_v5 }
 0xf2e   : > { %19707 = vmatmul.mubr.msk.f32.vlgmr.msra.gmra.mrb[106].mxu1 %vm660_vm0, %v14961_v12  ;;  %20396 = vmatprep.subr.bf16.mxu0 %v21262_v60  ;;  %v20418_v12 = vpack.c.bf16 %v16519_v36, %v16518_v50 }
 0xf2f   : > { %19728 = vmatprep.mubr.msk.f32.mxu1 %vm21263_vm4, %v25142_v5  ;;  %20401 = vmatpush3.bf16.msra.mxu1 %v20400_v3  ;;  %v20415_v3 = vpack.c.bf16 %v16516_v9, %v16515_v42 }
 0xf30   : > { %20402 = vmatprep.subr.bf16.mxu1 %v21262_v60 }
 0xf31   : > { %20398 = vmatpush3.bf16.msra.mxu0 %v24249_v4 }
 0xf32   : > { %20405 = vmatprep.subr.bf16.mxu0 %v21262_v60 }
 0xf33   : > { %20404 = vmatpush3.bf16.msra.mxu1 %v20403_v35  ;;  %v20424_v35 = vpack.c.bf16 %v15437_v10, %v15436_v7 }
 0xf34   : > { %19718 = vmatmul.mubr.msk.f32.vlgmr.msra.gmra.mrb[116].mxu0 %vm660_vm0, %v15036_v8  ;;  %20411 = vmatprep.subr.bf16.mxu1 %v21262_v60 }
 0xf35   : > { %19739 = vmatprep.mubr.msk.f32.mxu0 %vm21263_vm4, %v25142_v5  ;;  %20407 = vmatpush3.bf16.msra.mxu0 %v20406_v58 }
 0xf36   : > { %20408 = vmatprep.subr.bf16.mxu0 %v21262_v60 }
 0xf39   : > { %20410 = vmatpush3.bf16.msra.mxu0 %v20409_v61 }
 0xf3a   : > { %20417 = vmatprep.subr.bf16.mxu0 %v21262_v60 }
 0xfd7   : > { %v14219_v44 = vpop.f32.mrb[104].mxu0 }
 0xfd8   : > { %v14223_v41 = vadd.f32 %v14219_v44, %v24603_v31  ;;  %v19587_v4 = vpop.f32.mrb[105].mxu0 }
 0xfd9   : > { %v14298_v63 = vpop.f32.mrb[96].mxu1 }
 0xfda   : > { %v14302_v56 = vadd.f32 %v14298_v63, %v14223_v41  ;;  %v19598_v39 = vpop.f32.mrb[97].mxu1 }
 0xfdf   : > { %v14377_v51 = vpop.f32.mrb[106].mxu0 }
 0xfe0   : > { %v14381_v38 = vadd.f32 %v14377_v51, %v14302_v56  ;;  %v19609_v27 = vpop.f32.mrb[107].mxu0 }
 0xfe1   : > { %v14456_v32 = vpop.f32.mrb[98].mxu1  ;;  %v15431_v27 = vld [vmem:[%s25146_s14] sm:$0x1] }
 0xfe2   : > { %v24744_v26 = vadd.f32 %v14456_v32, %v14381_v38  ;;  %v19620_v52 = vpop.f32.mrb[99].mxu1 }
 0xfe7   : > { %v14527_v16 = vpop.f32.mrb[108].mxu0 }
 0xfe8   : > { %v19631_v22 = vpop.f32.mrb[109].mxu0 }
 0xfe9   : > { %v14597_v18 = vpop.f32.mrb[100].mxu1 }
 0xfea   : > { %v14598_v62 = vadd.f32 %v14597_v18, %v14527_v16  ;;  %v19642_v37 = vpop.f32.mrb[101].mxu1 }
 0xfef   : > { %v14667_v20 = vpop.f32.mrb[110].mxu0 }
 0xff0   : > { %v14671_v54 = vadd.f32 %v14667_v20, %v14598_v62  ;;  %v19653_v29 = vpop.f32.mrb[111].mxu0 }
 0xff1   : > { %v14738_v31 = vpop.f32.mrb[102].mxu1 }
 0xff2   : > { %v14742_v48 = vadd.f32 %v14738_v31, %v14671_v54  ;;  %v19664_v14 = vpop.f32.mrb[103].mxu1 }
 0xff7   : > { %v14809_v53 = vpop.f32.mrb[112].mxu0 }
 0xff8   : > { %v14813_v11 = vadd.f32 %v14809_v53, %v14742_v48  ;;  %v19675_v49 = vpop.f32.mrb[113].mxu0 }
 0xff9   : > { %v14880_v47 = vpop.f32.mrb[104].mxu1 }
 0xffa   : > { %v14884_v33 = vadd.f32 %v14880_v47, %v14813_v11  ;;  %v19686_v24 = vpop.f32.mrb[105].mxu1 }
 0xfff   : > { %v14956_v17 = vpop.f32.mrb[114].mxu0 }
0x1000   : > { %v14960_v13 = vadd.f32 %v14956_v17, %v14884_v33  ;;  %v19697_v2 = vpop.f32.mrb[115].mxu0 }
0x1001   : > { %v15031_v0 = vpop.f32.mrb[106].mxu1 }
0x1002   : > { %v15035_v6 = vadd.f32 %v15031_v0, %v14960_v13  ;;  %v19708_v55 = vpop.f32.mrb[107].mxu1 }
0x1007   : > { %v15106_v34 = vpop.f32.mrb[116].mxu0 }
0x1008   : > { %v15110_v30 = vadd.f32 %v15106_v34, %v15035_v6  ;;  %v19719_v21 = vpop.f32.mrb[117].mxu0 }
0x100a   : > { %v15111_v59 = vadd.f32 %v24304_v40, %v15110_v30 }
0x100c   : > { %vm15112_vm3 = vcmp.ge.f32.partialorder %v15111_v59, 0.0  ;;  %v15113_v15 = vmul.f32 0.2, %v15111_v59 }
0x100e   : > { %v15114_v40 = vsel %vm15112_vm3, %v15111_v59, %v15113_v15 }
0x100f   : > { %19729 = vmatmul.mubr.msk.f32.vlgmr.msra.gmra.mrb[108].mxu1 %vm660_vm0, %v15114_v40  ;;  %v15199_v8 = vrot.slane %v15114_v40, 1  ;;  %v15278_v46 = vrot.slane %v15114_v40, 2  ;;  %v15357_v58 = vrot.slane %v15114_v40, 3 }
0x1010   : > { %20413 = vmatpush3.bf16.msra.mxu1 %v20412_v23  ;;  %19750 = vmatprep.mubr.msk.f32.mxu1 %vm21263_vm4, %v25142_v5 }
0x1011   : > { %19740 = vmatmul.mubr.msk.f32.vlgmr.msra.gmra.mrb[118].mxu0 %vm660_vm0, %v15199_v8  ;;  %20414 = vmatprep.subr.bf16.mxu1 %v21262_v60 }
0x1012   : > { %20419 = vmatpush3.bf16.msra.mxu0 %v20418_v12  ;;  %19761 = vmatprep.mubr.msk.f32.mxu0 %vm21263_vm4, %v25142_v5 }
0x1013   : > { %20420 = vmatprep.subr.bf16.mxu0 %v21262_v60 }
0x1014   : > { %20416 = vmatpush3.bf16.msra.mxu1 %v20415_v3 }
0x1015   : > { %20423 = vmatprep.subr.bf16.mxu1 %v21262_v60 }
0x1016   : > { %20422 = vmatpush3.bf16.msra.mxu0 %v20421_v19 }
0x1017   : > { %19751 = vmatmul.mubr.msk.f32.vlgmr.msra.gmra.mrb[110].mxu1 %vm660_vm0, %v15278_v46 }
0x1018   : > { %19772 = vmatprep.mubr.msk.f32.mxu1 %vm21263_vm4, %v25142_v5  ;;  %20425 = vmatpush3.bf16.msra.mxu1 %v20424_v35  ;;  %v15439_v5 = vld [vmem:[%s25145_s27 + $0x18] sm:$0xff] }
0x1019   : > { %19762 = vmatmul.mubr.msk.f32.vlgmr.msra.gmra.mrb[120].mxu0 %vm660_vm0, %v15357_v58  ;;  %20426 = vmatprep.subr.bf16.mxu1 %v21262_v60  ;;  %v20427_v57 = vpack.c.bf16 %v15439_v5, %v15438_v43 }
0x101c   : > { %20428 = vmatpush3.bf16.msra.mxu1 %v20427_v57 }
0x10e2   : > { %v15189_v61 = vpop.f32.mrb[108].mxu1 }
0x10e3   : > { %v15193_v44 = vadd.f32 %v15189_v61, %v24744_v26  ;;  %v19730_v41 = vpop.f32.mrb[109].mxu1  ;;  %v15440_v26 = vld [vmem:[#allocation7] sm:$0x1] }
0x10e4   : > { %v15268_v4 = vpop.f32.mrb[118].mxu0 }
0x10e5   : > { %v15272_v63 = vadd.f32 %v15268_v4, %v15193_v44  ;;  %v19741_v56 = vpop.f32.mrb[119].mxu0 }
0x10ea   : > { %v15347_v39 = vpop.f32.mrb[110].mxu1 }
0x10eb   : > { %v15351_v60 = vadd.f32 %v15347_v39, %v15272_v63  ;;  %v19752_v51 = vpop.f32.mrb[111].mxu1 }
0x10ec   : > { %v15426_v38 = vpop.f32.mrb[120].mxu0 }
0x10ed   : > { %v15430_v32 = vadd.f32 %v15426_v38, %v15351_v60  ;;  %v19763_v52 = vpop.f32.mrb[121].mxu0 }
0x10ef   : > { %v15432_v16 = vadd.f32 %v15431_v27, %v15430_v32 }
0x10f1   : > { %vm15433_vm4 = vcmp.ge.f32.partialorder %v15432_v16, 0.0  ;;  %v15434_v22 = vmul.f32 0.2, %v15432_v16 }
0x10f3   : > { %v15435_v18 = vsel %vm15433_vm4, %v15432_v16, %v15434_v22 }
0x10f4   : > { %19773 = vmatmul.mubr.msk.f32.vlgmr.msra.gmra.mrb[112].mxu1 %vm660_vm0, %v15435_v18 }
0x11c7   : > { %v15510_v62 = vpop.f32.mrb[112].mxu1 }
0x11c8   : > { %v15511_v37 = vadd.f32 %v15510_v62, %v15440_v26  ;;  %v19774_v20 = vpop.f32.mrb[113].mxu1 }
0x11ca   : > { %15515 = vst.msk [vmem:[%s659_s25] sm:$0x1] %vm15514_vm5, %v15511_v37 }
0x11cb PF: > { %s25148_s3 = sld [smem:[#allocation18_spill]] }
0x11d1   : > { %s34_s20 = sadd.s32 1, %s25148_s3  }
0x11d2   : > { %p31_p6 = scmp.ge.s32.totalorder %s34_s20, 4  }
0x11d4   :  { %33 = sbr.rel (!%p31_p6) target bundleno = 13 (0xd), region = 211 }
0x11db   :  { %15533 = vsyncpa [#allocation9], 1 }
0x11dc   :  { %15535 = vsyncpa [#allocation9 + $0x1], 1 }
0x11dd   :  { %15536 = vsyncpa [#allocation11], 1 }
0x11de   :  { %15537 = vsyncpa [#allocation14], 1 }

</bundles_post_ra>
